<compile_context>
chip_gen: v7x
topology: tpu7x:2x2x1
jax: 0.10.0
libtpu: 0.0.40
codegen_flags: <defaults>
</compile_context>

<pallas_src>
import jax
import jax.numpy as jnp
from jax.experimental import pallas as pl
from jax.experimental.pallas import tpu as pltpu


# ---------------------------------------------------------------------------
# In-kernel helpers.  They operate on register/VMEM *values* only -- the
# kernel's refs are touched exclusively with full-block `ref[...]` access.
# ---------------------------------------------------------------------------
def _bn(v, s_ref, b_ref):
    """Inference-mode BN folded to scale/bias; (1, C) rows broadcast over v."""
    return v * s_ref[...] + b_ref[...]


def _pad1(v, axis):
    """Zero-pad a value by 1 on both ends of `axis` via concatenation
    (no XLA jnp.pad, no scratch zeroing)."""
    shp = list(v.shape)
    shp[axis] = 1
    z = jnp.zeros(shp, v.dtype)
    return jnp.concatenate([z, v, z], axis=axis)


def _tap_s2(vp, dh, dw, dt, ho, wo, t):
    """Stride-2 spatial tap of a padded (H+2, W+2, T(+pad), C) value:
    patch[i, j, tt] = vp[2*i + dh, 2*j + dw, tt + dt].
    Implemented with plain slices + a leading-dim reshape -- no strided
    slicing of refs or values."""
    c = vp.shape[-1]
    v = vp[dh:dh + 2 * ho, dw:dw + 2 * wo, dt:dt + t, :]
    v = v.reshape(ho, 2, wo, 2, t, c)
    return v[:, 0, :, 0]


def _stem(x, w_xy_ref, w_t_ref, s_ref, b_ref):
    """1x3x3 spatial conv (stride 2, pad 1, no bias) -> 3x1x1 depthwise
    temporal conv (pad 1) -> BN -> ReLU.  x: (H, W, T, Cin)."""
    h, w, t, cin = x.shape
    ho, wo = h // 2, w // 2
    c0 = w_t_ref.shape[1]
    w_xy = w_xy_ref[...]                                   # (9*cin, c0)

    xp = _pad1(_pad1(x, 0), 1)                             # (h+2, w+2, t, cin)

    # 9 spatial taps -> 9 small MXU matmuls, 3 independent partial sums (ILP).
    parts = []
    for dh in range(3):
        acc = jnp.zeros((ho * wo * t, c0), jnp.float32)
        for dw in range(3):
            p = _tap_s2(xp, dh, dw, 0, ho, wo, t).reshape(ho * wo * t, cin)
            k = (dh * 3 + dw) * cin
            acc = acc + jnp.dot(p, w_xy[k:k + cin, :],
                                preferred_element_type=jnp.float32)
        parts.append(acc)
    y = (parts[0] + parts[1] + parts[2]).reshape(ho, wo, t, c0)

    # depthwise temporal 3-tap conv (pad 1) + fused BN + ReLU
    w_t = w_t_ref[...]                                     # (3, c0)
    yp = _pad1(y, 2)                                       # (ho, wo, t+2, c0)
    z = (yp[:, :, 0:t, :] * w_t[0]
         + yp[:, :, 1:t + 1, :] * w_t[1]
         + yp[:, :, 2:t + 2, :] * w_t[2])
    return jnp.maximum(_bn(z, s_ref, b_ref), 0.0)


def _res_block(x, ws):
    """X3D bottleneck residual block with spatial stride 2.
    1x1x1 expand + BN + ReLU -> 3x3x3 depthwise (stride 2) + BN -> SE gate ->
    swish -> 1x1x1 project + BN -> strided shortcut projection -> add + ReLU.
    x: (H, W, T, Cin) -> (H/2, W/2, T, Cout)."""
    (wa_ref, sa_ref, ba_ref, wb_ref, sb_ref, bb_ref,
     wse1_ref, bse1_ref, wse2_ref, bse2_ref,
     wc_ref, sc_ref, bc_ref, wsc_ref, ssc_ref, bsc_ref) = ws
    h, w, t, cin = x.shape
    ho, wo = h // 2, w // 2
    cmid = wa_ref.shape[1]
    cout = wc_ref.shape[1]

    # ---- 1x1x1 expand conv (MXU) + BN + ReLU ----
    h1 = jnp.dot(x.reshape(h * w * t, cin), wa_ref[...],
                 preferred_element_type=jnp.float32)
    h1 = jnp.maximum(_bn(h1, sa_ref, ba_ref), 0.0).reshape(h, w, t, cmid)

    # ---- depthwise 3x3x3 conv, spatial stride 2, pad 1, + BN ----
    # halo built by concatenating zero slabs on the padded value (pad is
    # applied *after* the ReLU, so no halo re-masking is needed).
    hp = _pad1(_pad1(_pad1(h1, 0), 1), 2)                  # (h+2, w+2, t+2, cmid)
    wb = wb_ref[...]                                       # (27, cmid)
    parts = []
    for dt in range(3):
        acc = jnp.zeros((ho, wo, t, cmid), jnp.float32)
        for dh in range(3):
            for dw in range(3):
                p = _tap_s2(hp, dh, dw, dt, ho, wo, t)
                acc = acc + p * wb[dt * 9 + dh * 3 + dw]
        parts.append(acc)
    h2 = _bn(parts[0] + parts[1] + parts[2], sb_ref, bb_ref)

    # ---- SE gate (global avg pool + 2 tiny FCs + sigmoid), then swish ----
    rows2 = h2.reshape(ho * wo * t, cmid)
    pooled = jnp.mean(rows2, axis=0, keepdims=True)        # (1, cmid)
    hid = jnp.maximum(
        jnp.dot(pooled, wse1_ref[...], preferred_element_type=jnp.float32)
        + bse1_ref[...], 0.0)                              # (1, se_r)
    gate = jax.nn.sigmoid(
        jnp.dot(hid, wse2_ref[...], preferred_element_type=jnp.float32)
        + bse2_ref[...])                                   # (1, cmid)
    h3 = rows2 * gate
    h4 = h3 * jax.nn.sigmoid(h3)                           # swish

    # ---- 1x1x1 project conv (MXU) + BN ----
    h5 = _bn(jnp.dot(h4, wc_ref[...], preferred_element_type=jnp.float32),
             sc_ref, bc_ref)                               # (ho*wo*t, cout)

    # ---- shortcut: stride-2 spatial subsample + 1x1x1 conv (MXU) + BN ----
    xs = x.reshape(ho, 2, wo, 2, t, cin)[:, 0, :, 0]       # rows/cols 0,2,4,...
    sh = _bn(jnp.dot(xs.reshape(ho * wo * t, cin), wsc_ref[...],
                     preferred_element_type=jnp.float32), ssc_ref, bsc_ref)

    return jnp.maximum(h5 + sh, 0.0).reshape(ho, wo, t, cout)


# ---------------------------------------------------------------------------
# Single fused kernel: stem + both residual blocks, one grid step per sample.
# ---------------------------------------------------------------------------
def _x3d_fused_kernel(x_ref, *refs):
    o_ref = refs[-1]
    ws = refs[:-1]
    w_xy, w_t, s_st, b_st = ws[0], ws[1], ws[2], ws[3]
    blk1 = ws[4:20]
    blk2 = ws[20:36]

    x = x_ref[...].astype(jnp.float32)                     # (H, W, T, Cin)
    y = _stem(x, w_xy, w_t, s_st, b_st)                    # (H/2, W/2, T, c0)
    y = _res_block(y, blk1)                                # (H/4, W/4, T, c1)
    y = _res_block(y, blk2)                                # (H/8, W/8, T, c2)
    o_ref[...] = y.astype(o_ref.dtype)


def _x3d_forward_fused(x, params):
    """x: (N, H, W, T, Cin) -> (N, H/8, W/8, T, Cout)."""
    n, h, w, t, cin = x.shape
    ho, wo = h // 8, w // 8
    cout = params["stage2"]["wc"].shape[1]

    row = lambda v: v.reshape(1, -1)
    stem = params["stem"]
    args = [x, stem["w_xy"], stem["w_t"], row(stem["s_stem"]), row(stem["b_stem"])]
    for name in ("stage1", "stage2"):
        blk = params[name]
        args += [blk["wa"], row(blk["sa"]), row(blk["ba"]),
                 blk["wb"], row(blk["sb"]), row(blk["bb"]),
                 blk["w_se1"], row(blk["b_se1"]), blk["w_se2"], row(blk["b_se2"]),
                 blk["wc"], row(blk["sc"]), row(blk["bc"]),
                 blk["wsc"], row(blk["ssc"]), row(blk["bsc"])]

    in_specs = [pl.BlockSpec((None, h, w, t, cin), lambda b: (b, 0, 0, 0, 0))]
    in_specs += [pl.BlockSpec(a.shape, lambda b: (0, 0)) for a in args[1:]]

    return pl.pallas_call(
        _x3d_fused_kernel,
        out_shape=jax.ShapeDtypeStruct((n, ho, wo, t, cout), jnp.float32),
        grid=(n,),
        in_specs=in_specs,
        out_specs=pl.BlockSpec((None, ho, wo, t, cout), lambda b: (b, 0, 0, 0, 0)),
        compiler_params=pltpu.CompilerParams(
            dimension_semantics=("parallel",),
            vmem_limit_bytes=32 * 1024 * 1024),
    )(*args)


# ---------------------------------------------------------------------------
# Forward pass (mirrors pytorchvideo X3D blocks[:-1] at reduced scale).
# ---------------------------------------------------------------------------
def video_model_forward(x_ncthw, params):
    # NCTHW -> (N, H, W, T, C): H/W on untiled leading axes, C on lanes.
    x = jnp.transpose(x_ncthw, (0, 3, 4, 2, 1)).astype(jnp.float32)
    y = _x3d_forward_fused(x, params)
    # back to NCTHW to match the PyTorch module's output convention
    return jnp.transpose(y, (0, 4, 3, 1, 2))


# ---------------------------------------------------------------------------
# Deterministic synthetic parameter init (inference BN folded to scale/bias).
# ---------------------------------------------------------------------------
def _dense(key, fan_in, shape):
    return (jax.random.normal(key, shape) / jnp.sqrt(float(fan_in))).astype(jnp.float32)


def _make_bn(key, c):
    k1, k2, k3, k4 = jax.random.split(key, 4)
    gamma = jax.random.uniform(k1, (c,), minval=0.5, maxval=1.5)
    beta = jax.random.normal(k2, (c,)) * 0.1
    mean = jax.random.normal(k3, (c,)) * 0.1
    var = jax.random.uniform(k4, (c,), minval=0.5, maxval=1.5)
    scale = (gamma / jnp.sqrt(var + 1e-5)).astype(jnp.float32)
    bias = (beta - mean * scale).astype(jnp.float32)
    return scale, bias


def init_params(key):
    keys = iter(jax.random.split(key, 32))
    c0 = 8
    params = {
        "stem": {
            "w_xy": _dense(next(keys), 27, (27, c0)),   # 3x3 spatial taps x 3 in-ch
            "w_t": _dense(next(keys), 3, (3, c0)),      # 3x1x1 depthwise temporal
        }
    }
    params["stem"]["s_stem"], params["stem"]["b_stem"] = _make_bn(next(keys), c0)

    def make_block(cin, cmid, cout, se_r):
        blk = {}
        blk["wa"] = _dense(next(keys), cin, (cin, cmid))
        blk["sa"], blk["ba"] = _make_bn(next(keys), cmid)
        blk["wb"] = _dense(next(keys), 27, (27, cmid))      # 3x3x3 depthwise taps
        blk["sb"], blk["bb"] = _make_bn(next(keys), cmid)
        blk["w_se1"] = _dense(next(keys), cmid, (cmid, se_r))
        blk["b_se1"] = jnp.zeros((se_r,), jnp.float32)
        blk["w_se2"] = _dense(next(keys), se_r, (se_r, cmid))
        blk["b_se2"] = jnp.zeros((cmid,), jnp.float32)
        blk["wc"] = _dense(next(keys), cmid, (cmid, cout))
        blk["sc"], blk["bc"] = _make_bn(next(keys), cout)
        blk["wsc"] = _dense(next(keys), cin, (cin, cout))
        blk["ssc"], blk["bsc"] = _make_bn(next(keys), cout)
        return blk

    params["stage1"] = make_block(cin=8, cmid=16, cout=8, se_r=4)
    params["stage2"] = make_block(cin=8, cmid=32, cout=16, se_r=8)
    return params


if __name__ == "__main__":
    key = jax.random.PRNGKey(0)
    kx, kp = jax.random.split(key)
    # PyTorch-style video input: (N, C, T, H, W)
    x_ncthw = jax.random.normal(kx, (2, 3, 4, 16, 16), dtype=jnp.float32)
    params = init_params(kp)
    fwd = jax.jit(video_model_forward)
    out = jax.block_until_ready(fwd(x_ncthw, params))
    assert out.shape == (2, 16, 4, 2, 2), out.shape
    assert bool(jnp.all(jnp.isfinite(out)))
    print("KERNEL_OK")
</pallas_src>

<mosaic_0001>
module attributes {stable_mosaic.version = 11 : i64} {
  func.func @_x3d_fused_kernel(%arg0: i32, %arg1: memref<1x16x16x4x3xf32, #tpu.memory_space<vmem>>, %arg2: memref<27x8xf32, #tpu.memory_space<vmem>>, %arg3: memref<3x8xf32, #tpu.memory_space<vmem>>, %arg4: memref<1x8xf32, #tpu.memory_space<vmem>>, %arg5: memref<1x8xf32, #tpu.memory_space<vmem>>, %arg6: memref<8x16xf32, #tpu.memory_space<vmem>>, %arg7: memref<1x16xf32, #tpu.memory_space<vmem>>, %arg8: memref<1x16xf32, #tpu.memory_space<vmem>>, %arg9: memref<27x16xf32, #tpu.memory_space<vmem>>, %arg10: memref<1x16xf32, #tpu.memory_space<vmem>>, %arg11: memref<1x16xf32, #tpu.memory_space<vmem>>, %arg12: memref<16x4xf32, #tpu.memory_space<vmem>>, %arg13: memref<1x4xf32, #tpu.memory_space<vmem>>, %arg14: memref<4x16xf32, #tpu.memory_space<vmem>>, %arg15: memref<1x16xf32, #tpu.memory_space<vmem>>, %arg16: memref<16x8xf32, #tpu.memory_space<vmem>>, %arg17: memref<1x8xf32, #tpu.memory_space<vmem>>, %arg18: memref<1x8xf32, #tpu.memory_space<vmem>>, %arg19: memref<8x8xf32, #tpu.memory_space<vmem>>, %arg20: memref<1x8xf32, #tpu.memory_space<vmem>>, %arg21: memref<1x8xf32, #tpu.memory_space<vmem>>, %arg22: memref<8x32xf32, #tpu.memory_space<vmem>>, %arg23: memref<1x32xf32, #tpu.memory_space<vmem>>, %arg24: memref<1x32xf32, #tpu.memory_space<vmem>>, %arg25: memref<27x32xf32, #tpu.memory_space<vmem>>, %arg26: memref<1x32xf32, #tpu.memory_space<vmem>>, %arg27: memref<1x32xf32, #tpu.memory_space<vmem>>, %arg28: memref<32x8xf32, #tpu.memory_space<vmem>>, %arg29: memref<1x8xf32, #tpu.memory_space<vmem>>, %arg30: memref<8x32xf32, #tpu.memory_space<vmem>>, %arg31: memref<1x32xf32, #tpu.memory_space<vmem>>, %arg32: memref<32x16xf32, #tpu.memory_space<vmem>>, %arg33: memref<1x16xf32, #tpu.memory_space<vmem>>, %arg34: memref<1x16xf32, #tpu.memory_space<vmem>>, %arg35: memref<8x16xf32, #tpu.memory_space<vmem>>, %arg36: memref<1x16xf32, #tpu.memory_space<vmem>>, %arg37: memref<1x16xf32, #tpu.memory_space<vmem>>, %arg38: memref<1x2x2x4x16xf32, #tpu.memory_space<vmem>>) attributes {dimension_semantics = [#tpu.dimension_semantics<parallel>], iteration_bounds = array<i64: 2>, scalar_prefetch = 0 : i64, scratch_operands = 0 : i64, tpu.core_type = #tpu.core_type<tc>, window_params = [{transform_indices = @transform_0, window_bounds = array<i64: 1, 16, 16, 4, 3>}, {pipeline_mode = #tpu.pipeline_mode<synchronous>, transform_indices = @transform_1, window_bounds = array<i64: 27, 8>}, {pipeline_mode = #tpu.pipeline_mode<synchronous>, transform_indices = @transform_2, window_bounds = array<i64: 3, 8>}, {pipeline_mode = #tpu.pipeline_mode<synchronous>, transform_indices = @transform_3, window_bounds = array<i64: 1, 8>}, {pipeline_mode = #tpu.pipeline_mode<synchronous>, transform_indices = @transform_4, window_bounds = array<i64: 1, 8>}, {pipeline_mode = #tpu.pipeline_mode<synchronous>, transform_indices = @transform_5, window_bounds = array<i64: 8, 16>}, {pipeline_mode = #tpu.pipeline_mode<synchronous>, transform_indices = @transform_6, window_bounds = array<i64: 1, 16>}, {pipeline_mode = #tpu.pipeline_mode<synchronous>, transform_indices = @transform_7, window_bounds = array<i64: 1, 16>}, {pipeline_mode = #tpu.pipeline_mode<synchronous>, transform_indices = @transform_8, window_bounds = array<i64: 27, 16>}, {pipeline_mode = #tpu.pipeline_mode<synchronous>, transform_indices = @transform_9, window_bounds = array<i64: 1, 16>}, {pipeline_mode = #tpu.pipeline_mode<synchronous>, transform_indices = @transform_10, window_bounds = array<i64: 1, 16>}, {pipeline_mode = #tpu.pipeline_mode<synchronous>, transform_indices = @transform_11, window_bounds = array<i64: 16, 4>}, {pipeline_mode = #tpu.pipeline_mode<synchronous>, transform_indices = @transform_12, window_bounds = array<i64: 1, 4>}, {pipeline_mode = #tpu.pipeline_mode<synchronous>, transform_indices = @transform_13, window_bounds = array<i64: 4, 16>}, {pipeline_mode = #tpu.pipeline_mode<synchronous>, transform_indices = @transform_14, window_bounds = array<i64: 1, 16>}, {pipeline_mode = #tpu.pipeline_mode<synchronous>, transform_indices = @transform_15, window_bounds = array<i64: 16, 8>}, {pipeline_mode = #tpu.pipeline_mode<synchronous>, transform_indices = @transform_16, window_bounds = array<i64: 1, 8>}, {pipeline_mode = #tpu.pipeline_mode<synchronous>, transform_indices = @transform_17, window_bounds = array<i64: 1, 8>}, {pipeline_mode = #tpu.pipeline_mode<synchronous>, transform_indices = @transform_18, window_bounds = array<i64: 8, 8>}, {pipeline_mode = #tpu.pipeline_mode<synchronous>, transform_indices = @transform_19, window_bounds = array<i64: 1, 8>}, {pipeline_mode = #tpu.pipeline_mode<synchronous>, transform_indices = @transform_20, window_bounds = array<i64: 1, 8>}, {pipeline_mode = #tpu.pipeline_mode<synchronous>, transform_indices = @transform_21, window_bounds = array<i64: 8, 32>}, {pipeline_mode = #tpu.pipeline_mode<synchronous>, transform_indices = @transform_22, window_bounds = array<i64: 1, 32>}, {pipeline_mode = #tpu.pipeline_mode<synchronous>, transform_indices = @transform_23, window_bounds = array<i64: 1, 32>}, {pipeline_mode = #tpu.pipeline_mode<synchronous>, transform_indices = @transform_24, window_bounds = array<i64: 27, 32>}, {pipeline_mode = #tpu.pipeline_mode<synchronous>, transform_indices = @transform_25, window_bounds = array<i64: 1, 32>}, {pipeline_mode = #tpu.pipeline_mode<synchronous>, transform_indices = @transform_26, window_bounds = array<i64: 1, 32>}, {pipeline_mode = #tpu.pipeline_mode<synchronous>, transform_indices = @transform_27, window_bounds = array<i64: 32, 8>}, {pipeline_mode = #tpu.pipeline_mode<synchronous>, transform_indices = @transform_28, window_bounds = array<i64: 1, 8>}, {pipeline_mode = #tpu.pipeline_mode<synchronous>, transform_indices = @transform_29, window_bounds = array<i64: 8, 32>}, {pipeline_mode = #tpu.pipeline_mode<synchronous>, transform_indices = @transform_30, window_bounds = array<i64: 1, 32>}, {pipeline_mode = #tpu.pipeline_mode<synchronous>, transform_indices = @transform_31, window_bounds = array<i64: 32, 16>}, {pipeline_mode = #tpu.pipeline_mode<synchronous>, transform_indices = @transform_32, window_bounds = array<i64: 1, 16>}, {pipeline_mode = #tpu.pipeline_mode<synchronous>, transform_indices = @transform_33, window_bounds = array<i64: 1, 16>}, {pipeline_mode = #tpu.pipeline_mode<synchronous>, transform_indices = @transform_34, window_bounds = array<i64: 8, 16>}, {pipeline_mode = #tpu.pipeline_mode<synchronous>, transform_indices = @transform_35, window_bounds = array<i64: 1, 16>}, {pipeline_mode = #tpu.pipeline_mode<synchronous>, transform_indices = @transform_36, window_bounds = array<i64: 1, 16>}, {transform_indices = @transform_37, window_bounds = array<i64: 1, 2, 2, 4, 16>}]} {
    %c0 = arith.constant 0 : index
    %c0_0 = arith.constant 0 : index
    %c0_1 = arith.constant 0 : index
    %c0_2 = arith.constant 0 : index
    %c0_3 = arith.constant 0 : index
    %0 = vector.load %arg1[%c0, %c0_0, %c0_1, %c0_2, %c0_3] : memref<1x16x16x4x3xf32, #tpu.memory_space<vmem>>, vector<1x16x16x4x3xf32>
    %1 = vector.shape_cast %0 : vector<1x16x16x4x3xf32> to vector<16x16x4x3xf32>
    %c0_4 = arith.constant 0 : index
    %c0_5 = arith.constant 0 : index
    %2 = vector.load %arg2[%c0_4, %c0_5] : memref<27x8xf32, #tpu.memory_space<vmem>>, vector<27x8xf32>
    %cst = arith.constant 0.000000e+00 : f32
    %3 = vector.broadcast %cst : f32 to vector<1x16x4x3xf32>
    %4 = tpu.concatenate %3, %1, %3 in 0 : vector<1x16x4x3xf32>, vector<16x16x4x3xf32>, vector<1x16x4x3xf32> -> vector<18x16x4x3xf32>
    %cst_6 = arith.constant 0.000000e+00 : f32
    %5 = vector.broadcast %cst_6 : f32 to vector<18x1x4x3xf32>
    %6 = tpu.concatenate %5, %4, %5 in 1 : vector<18x1x4x3xf32>, vector<18x16x4x3xf32>, vector<18x1x4x3xf32> -> vector<18x18x4x3xf32>
    %cst_7 = arith.constant 0.000000e+00 : f32
    %7 = vector.broadcast %cst_7 : f32 to vector<256x8xf32>
    %8 = vector.extract_strided_slice %6 {offsets = [0, 0, 0, 0], sizes = [16, 16, 4, 3], strides = [1, 1, 1, 1]} : vector<18x18x4x3xf32> to vector<16x16x4x3xf32>
    %9 = vector.shape_cast %8 : vector<16x16x4x3xf32> to vector<8x2x8x2x4x3xf32>
    %10 = vector.extract_strided_slice %9 {offsets = [0, 0, 0, 0, 0, 0], sizes = [8, 1, 8, 1, 4, 3], strides = [1, 1, 1, 1, 1, 1]} : vector<8x2x8x2x4x3xf32> to vector<8x1x8x1x4x3xf32>
    %11 = vector.shape_cast %10 : vector<8x1x8x1x4x3xf32> to vector<8x8x4x3xf32>
    %12 = vector.shape_cast %11 : vector<8x8x4x3xf32> to vector<256x3xf32>
    %13 = vector.extract_strided_slice %2 {offsets = [0, 0], sizes = [3, 8], strides = [1, 1]} : vector<27x8xf32> to vector<3x8xf32>
    %cst_8 = arith.constant dense<0.000000e+00> : vector<256x8xf32>
    %14 = tpu.matmul %12, %13, %cst_8 {dimension_numbers = #tpu.dot_dimension_numbers<[1], [0], [0], [1], [0, 0, 1, 1], [], []>} : vector<256x3xf32>, vector<3x8xf32>, vector<256x8xf32> -> vector<256x8xf32>
    %15 = arith.addf %7, %14 : vector<256x8xf32>
    %16 = vector.extract_strided_slice %6 {offsets = [0, 1, 0, 0], sizes = [16, 16, 4, 3], strides = [1, 1, 1, 1]} : vector<18x18x4x3xf32> to vector<16x16x4x3xf32>
    %17 = vector.shape_cast %16 : vector<16x16x4x3xf32> to vector<8x2x8x2x4x3xf32>
    %18 = vector.extract_strided_slice %17 {offsets = [0, 0, 0, 0, 0, 0], sizes = [8, 1, 8, 1, 4, 3], strides = [1, 1, 1, 1, 1, 1]} : vector<8x2x8x2x4x3xf32> to vector<8x1x8x1x4x3xf32>
    %19 = vector.shape_cast %18 : vector<8x1x8x1x4x3xf32> to vector<8x8x4x3xf32>
    %20 = vector.shape_cast %19 : vector<8x8x4x3xf32> to vector<256x3xf32>
    %21 = vector.extract_strided_slice %2 {offsets = [3, 0], sizes = [3, 8], strides = [1, 1]} : vector<27x8xf32> to vector<3x8xf32>
    %cst_9 = arith.constant dense<0.000000e+00> : vector<256x8xf32>
    %22 = tpu.matmul %20, %21, %cst_9 {dimension_numbers = #tpu.dot_dimension_numbers<[1], [0], [0], [1], [0, 0, 1, 1], [], []>} : vector<256x3xf32>, vector<3x8xf32>, vector<256x8xf32> -> vector<256x8xf32>
    %23 = arith.addf %15, %22 : vector<256x8xf32>
    %24 = vector.extract_strided_slice %6 {offsets = [0, 2, 0, 0], sizes = [16, 16, 4, 3], strides = [1, 1, 1, 1]} : vector<18x18x4x3xf32> to vector<16x16x4x3xf32>
    %25 = vector.shape_cast %24 : vector<16x16x4x3xf32> to vector<8x2x8x2x4x3xf32>
    %26 = vector.extract_strided_slice %25 {offsets = [0, 0, 0, 0, 0, 0], sizes = [8, 1, 8, 1, 4, 3], strides = [1, 1, 1, 1, 1, 1]} : vector<8x2x8x2x4x3xf32> to vector<8x1x8x1x4x3xf32>
    %27 = vector.shape_cast %26 : vector<8x1x8x1x4x3xf32> to vector<8x8x4x3xf32>
    %28 = vector.shape_cast %27 : vector<8x8x4x3xf32> to vector<256x3xf32>
    %29 = vector.extract_strided_slice %2 {offsets = [6, 0], sizes = [3, 8], strides = [1, 1]} : vector<27x8xf32> to vector<3x8xf32>
    %cst_10 = arith.constant dense<0.000000e+00> : vector<256x8xf32>
    %30 = tpu.matmul %28, %29, %cst_10 {dimension_numbers = #tpu.dot_dimension_numbers<[1], [0], [0], [1], [0, 0, 1, 1], [], []>} : vector<256x3xf32>, vector<3x8xf32>, vector<256x8xf32> -> vector<256x8xf32>
    %31 = arith.addf %23, %30 : vector<256x8xf32>
    %cst_11 = arith.constant 0.000000e+00 : f32
    %32 = vector.broadcast %cst_11 : f32 to vector<256x8xf32>
    %33 = vector.extract_strided_slice %6 {offsets = [1, 0, 0, 0], sizes = [16, 16, 4, 3], strides = [1, 1, 1, 1]} : vector<18x18x4x3xf32> to vector<16x16x4x3xf32>
    %34 = vector.shape_cast %33 : vector<16x16x4x3xf32> to vector<8x2x8x2x4x3xf32>
    %35 = vector.extract_strided_slice %34 {offsets = [0, 0, 0, 0, 0, 0], sizes = [8, 1, 8, 1, 4, 3], strides = [1, 1, 1, 1, 1, 1]} : vector<8x2x8x2x4x3xf32> to vector<8x1x8x1x4x3xf32>
    %36 = vector.shape_cast %35 : vector<8x1x8x1x4x3xf32> to vector<8x8x4x3xf32>
    %37 = vector.shape_cast %36 : vector<8x8x4x3xf32> to vector<256x3xf32>
    %38 = vector.extract_strided_slice %2 {offsets = [9, 0], sizes = [3, 8], strides = [1, 1]} : vector<27x8xf32> to vector<3x8xf32>
    %cst_12 = arith.constant dense<0.000000e+00> : vector<256x8xf32>
    %39 = tpu.matmul %37, %38, %cst_12 {dimension_numbers = #tpu.dot_dimension_numbers<[1], [0], [0], [1], [0, 0, 1, 1], [], []>} : vector<256x3xf32>, vector<3x8xf32>, vector<256x8xf32> -> vector<256x8xf32>
    %40 = arith.addf %32, %39 : vector<256x8xf32>
    %41 = vector.extract_strided_slice %6 {offsets = [1, 1, 0, 0], sizes = [16, 16, 4, 3], strides = [1, 1, 1, 1]} : vector<18x18x4x3xf32> to vector<16x16x4x3xf32>
    %42 = vector.shape_cast %41 : vector<16x16x4x3xf32> to vector<8x2x8x2x4x3xf32>
    %43 = vector.extract_strided_slice %42 {offsets = [0, 0, 0, 0, 0, 0], sizes = [8, 1, 8, 1, 4, 3], strides = [1, 1, 1, 1, 1, 1]} : vector<8x2x8x2x4x3xf32> to vector<8x1x8x1x4x3xf32>
    %44 = vector.shape_cast %43 : vector<8x1x8x1x4x3xf32> to vector<8x8x4x3xf32>
    %45 = vector.shape_cast %44 : vector<8x8x4x3xf32> to vector<256x3xf32>
    %46 = vector.extract_strided_slice %2 {offsets = [12, 0], sizes = [3, 8], strides = [1, 1]} : vector<27x8xf32> to vector<3x8xf32>
    %cst_13 = arith.constant dense<0.000000e+00> : vector<256x8xf32>
    %47 = tpu.matmul %45, %46, %cst_13 {dimension_numbers = #tpu.dot_dimension_numbers<[1], [0], [0], [1], [0, 0, 1, 1], [], []>} : vector<256x3xf32>, vector<3x8xf32>, vector<256x8xf32> -> vector<256x8xf32>
    %48 = arith.addf %40, %47 : vector<256x8xf32>
    %49 = vector.extract_strided_slice %6 {offsets = [1, 2, 0, 0], sizes = [16, 16, 4, 3], strides = [1, 1, 1, 1]} : vector<18x18x4x3xf32> to vector<16x16x4x3xf32>
    %50 = vector.shape_cast %49 : vector<16x16x4x3xf32> to vector<8x2x8x2x4x3xf32>
    %51 = vector.extract_strided_slice %50 {offsets = [0, 0, 0, 0, 0, 0], sizes = [8, 1, 8, 1, 4, 3], strides = [1, 1, 1, 1, 1, 1]} : vector<8x2x8x2x4x3xf32> to vector<8x1x8x1x4x3xf32>
    %52 = vector.shape_cast %51 : vector<8x1x8x1x4x3xf32> to vector<8x8x4x3xf32>
    %53 = vector.shape_cast %52 : vector<8x8x4x3xf32> to vector<256x3xf32>
    %54 = vector.extract_strided_slice %2 {offsets = [15, 0], sizes = [3, 8], strides = [1, 1]} : vector<27x8xf32> to vector<3x8xf32>
    %cst_14 = arith.constant dense<0.000000e+00> : vector<256x8xf32>
    %55 = tpu.matmul %53, %54, %cst_14 {dimension_numbers = #tpu.dot_dimension_numbers<[1], [0], [0], [1], [0, 0, 1, 1], [], []>} : vector<256x3xf32>, vector<3x8xf32>, vector<256x8xf32> -> vector<256x8xf32>
    %56 = arith.addf %48, %55 : vector<256x8xf32>
    %cst_15 = arith.constant 0.000000e+00 : f32
    %57 = vector.broadcast %cst_15 : f32 to vector<256x8xf32>
    %58 = vector.extract_strided_slice %6 {offsets = [2, 0, 0, 0], sizes = [16, 16, 4, 3], strides = [1, 1, 1, 1]} : vector<18x18x4x3xf32> to vector<16x16x4x3xf32>
    %59 = vector.shape_cast %58 : vector<16x16x4x3xf32> to vector<8x2x8x2x4x3xf32>
    %60 = vector.extract_strided_slice %59 {offsets = [0, 0, 0, 0, 0, 0], sizes = [8, 1, 8, 1, 4, 3], strides = [1, 1, 1, 1, 1, 1]} : vector<8x2x8x2x4x3xf32> to vector<8x1x8x1x4x3xf32>
    %61 = vector.shape_cast %60 : vector<8x1x8x1x4x3xf32> to vector<8x8x4x3xf32>
    %62 = vector.shape_cast %61 : vector<8x8x4x3xf32> to vector<256x3xf32>
    %63 = vector.extract_strided_slice %2 {offsets = [18, 0], sizes = [3, 8], strides = [1, 1]} : vector<27x8xf32> to vector<3x8xf32>
    %cst_16 = arith.constant dense<0.000000e+00> : vector<256x8xf32>
    %64 = tpu.matmul %62, %63, %cst_16 {dimension_numbers = #tpu.dot_dimension_numbers<[1], [0], [0], [1], [0, 0, 1, 1], [], []>} : vector<256x3xf32>, vector<3x8xf32>, vector<256x8xf32> -> vector<256x8xf32>
    %65 = arith.addf %57, %64 : vector<256x8xf32>
    %66 = vector.extract_strided_slice %6 {offsets = [2, 1, 0, 0], sizes = [16, 16, 4, 3], strides = [1, 1, 1, 1]} : vector<18x18x4x3xf32> to vector<16x16x4x3xf32>
    %67 = vector.shape_cast %66 : vector<16x16x4x3xf32> to vector<8x2x8x2x4x3xf32>
    %68 = vector.extract_strided_slice %67 {offsets = [0, 0, 0, 0, 0, 0], sizes = [8, 1, 8, 1, 4, 3], strides = [1, 1, 1, 1, 1, 1]} : vector<8x2x8x2x4x3xf32> to vector<8x1x8x1x4x3xf32>
    %69 = vector.shape_cast %68 : vector<8x1x8x1x4x3xf32> to vector<8x8x4x3xf32>
    %70 = vector.shape_cast %69 : vector<8x8x4x3xf32> to vector<256x3xf32>
    %71 = vector.extract_strided_slice %2 {offsets = [21, 0], sizes = [3, 8], strides = [1, 1]} : vector<27x8xf32> to vector<3x8xf32>
    %cst_17 = arith.constant dense<0.000000e+00> : vector<256x8xf32>
    %72 = tpu.matmul %70, %71, %cst_17 {dimension_numbers = #tpu.dot_dimension_numbers<[1], [0], [0], [1], [0, 0, 1, 1], [], []>} : vector<256x3xf32>, vector<3x8xf32>, vector<256x8xf32> -> vector<256x8xf32>
    %73 = arith.addf %65, %72 : vector<256x8xf32>
    %74 = vector.extract_strided_slice %6 {offsets = [2, 2, 0, 0], sizes = [16, 16, 4, 3], strides = [1, 1, 1, 1]} : vector<18x18x4x3xf32> to vector<16x16x4x3xf32>
    %75 = vector.shape_cast %74 : vector<16x16x4x3xf32> to vector<8x2x8x2x4x3xf32>
    %76 = vector.extract_strided_slice %75 {offsets = [0, 0, 0, 0, 0, 0], sizes = [8, 1, 8, 1, 4, 3], strides = [1, 1, 1, 1, 1, 1]} : vector<8x2x8x2x4x3xf32> to vector<8x1x8x1x4x3xf32>
    %77 = vector.shape_cast %76 : vector<8x1x8x1x4x3xf32> to vector<8x8x4x3xf32>
    %78 = vector.shape_cast %77 : vector<8x8x4x3xf32> to vector<256x3xf32>
    %79 = vector.extract_strided_slice %2 {offsets = [24, 0], sizes = [3, 8], strides = [1, 1]} : vector<27x8xf32> to vector<3x8xf32>
    %cst_18 = arith.constant dense<0.000000e+00> : vector<256x8xf32>
    %80 = tpu.matmul %78, %79, %cst_18 {dimension_numbers = #tpu.dot_dimension_numbers<[1], [0], [0], [1], [0, 0, 1, 1], [], []>} : vector<256x3xf32>, vector<3x8xf32>, vector<256x8xf32> -> vector<256x8xf32>
    %81 = arith.addf %73, %80 : vector<256x8xf32>
    %82 = arith.addf %31, %56 : vector<256x8xf32>
    %83 = arith.addf %82, %81 : vector<256x8xf32>
    %84 = vector.shape_cast %83 : vector<256x8xf32> to vector<8x8x4x8xf32>
    %c0_19 = arith.constant 0 : index
    %c0_20 = arith.constant 0 : index
    %85 = vector.load %arg3[%c0_19, %c0_20] : memref<3x8xf32, #tpu.memory_space<vmem>>, vector<3x8xf32>
    %cst_21 = arith.constant 0.000000e+00 : f32
    %86 = vector.broadcast %cst_21 : f32 to vector<8x8x1x8xf32>
    %87 = tpu.concatenate %86, %84, %86 in 2 : vector<8x8x1x8xf32>, vector<8x8x4x8xf32>, vector<8x8x1x8xf32> -> vector<8x8x6x8xf32>
    %88 = vector.extract_strided_slice %87 {offsets = [0, 0, 0, 0], sizes = [8, 8, 4, 8], strides = [1, 1, 1, 1]} : vector<8x8x6x8xf32> to vector<8x8x4x8xf32>
    %89 = vector.extract_strided_slice %85 {offsets = [0, 0], sizes = [1, 8], strides = [1, 1]} : vector<3x8xf32> to vector<1x8xf32>
    %90 = vector.shape_cast %89 : vector<1x8xf32> to vector<8xf32>
    %91 = vector.shape_cast %90 : vector<8xf32> to vector<1x1x1x8xf32>
    %92 = vector.broadcast %91 : vector<1x1x1x8xf32> to vector<8x8x4x8xf32>
    %93 = arith.mulf %88, %92 : vector<8x8x4x8xf32>
    %94 = vector.extract_strided_slice %87 {offsets = [0, 0, 1, 0], sizes = [8, 8, 4, 8], strides = [1, 1, 1, 1]} : vector<8x8x6x8xf32> to vector<8x8x4x8xf32>
    %95 = vector.extract_strided_slice %85 {offsets = [1, 0], sizes = [1, 8], strides = [1, 1]} : vector<3x8xf32> to vector<1x8xf32>
    %96 = vector.shape_cast %95 : vector<1x8xf32> to vector<8xf32>
    %97 = vector.shape_cast %96 : vector<8xf32> to vector<1x1x1x8xf32>
    %98 = vector.broadcast %97 : vector<1x1x1x8xf32> to vector<8x8x4x8xf32>
    %99 = arith.mulf %94, %98 : vector<8x8x4x8xf32>
    %100 = arith.addf %93, %99 : vector<8x8x4x8xf32>
    %101 = vector.extract_strided_slice %87 {offsets = [0, 0, 2, 0], sizes = [8, 8, 4, 8], strides = [1, 1, 1, 1]} : vector<8x8x6x8xf32> to vector<8x8x4x8xf32>
    %102 = vector.extract_strided_slice %85 {offsets = [2, 0], sizes = [1, 8], strides = [1, 1]} : vector<3x8xf32> to vector<1x8xf32>
    %103 = vector.shape_cast %102 : vector<1x8xf32> to vector<8xf32>
    %104 = vector.shape_cast %103 : vector<8xf32> to vector<1x1x1x8xf32>
    %105 = vector.broadcast %104 : vector<1x1x1x8xf32> to vector<8x8x4x8xf32>
    %106 = arith.mulf %101, %105 : vector<8x8x4x8xf32>
    %107 = arith.addf %100, %106 : vector<8x8x4x8xf32>
    %c0_22 = arith.constant 0 : index
    %c0_23 = arith.constant 0 : index
    %108 = vector.load %arg4[%c0_22, %c0_23] : memref<1x8xf32, #tpu.memory_space<vmem>>, vector<1x8xf32>
    %109 = vector.shape_cast %108 : vector<1x8xf32> to vector<1x1x1x8xf32>
    %110 = vector.broadcast %109 : vector<1x1x1x8xf32> to vector<8x8x4x8xf32>
    %111 = arith.mulf %107, %110 : vector<8x8x4x8xf32>
    %c0_24 = arith.constant 0 : index
    %c0_25 = arith.constant 0 : index
    %112 = vector.load %arg5[%c0_24, %c0_25] : memref<1x8xf32, #tpu.memory_space<vmem>>, vector<1x8xf32>
    %113 = vector.shape_cast %112 : vector<1x8xf32> to vector<1x1x1x8xf32>
    %114 = vector.broadcast %113 : vector<1x1x1x8xf32> to vector<8x8x4x8xf32>
    %115 = arith.addf %111, %114 : vector<8x8x4x8xf32>
    %cst_26 = arith.constant 0.000000e+00 : f32
    %116 = vector.broadcast %cst_26 : f32 to vector<8x8x4x8xf32>
    %117 = arith.maximumf %115, %116 : vector<8x8x4x8xf32>
    %118 = vector.shape_cast %117 : vector<8x8x4x8xf32> to vector<256x8xf32>
    %c0_27 = arith.constant 0 : index
    %c0_28 = arith.constant 0 : index
    %119 = vector.load %arg6[%c0_27, %c0_28] : memref<8x16xf32, #tpu.memory_space<vmem>>, vector<8x16xf32>
    %cst_29 = arith.constant dense<0.000000e+00> : vector<256x16xf32>
    %120 = tpu.matmul %118, %119, %cst_29 {dimension_numbers = #tpu.dot_dimension_numbers<[1], [0], [0], [1], [0, 0, 1, 1], [], []>} : vector<256x8xf32>, vector<8x16xf32>, vector<256x16xf32> -> vector<256x16xf32>
    %c0_30 = arith.constant 0 : index
    %c0_31 = arith.constant 0 : index
    %121 = vector.load %arg7[%c0_30, %c0_31] : memref<1x16xf32, #tpu.memory_space<vmem>>, vector<1x16xf32>
    %122 = vector.broadcast %121 : vector<1x16xf32> to vector<256x16xf32>
    %123 = arith.mulf %120, %122 : vector<256x16xf32>
    %c0_32 = arith.constant 0 : index
    %c0_33 = arith.constant 0 : index
    %124 = vector.load %arg8[%c0_32, %c0_33] : memref<1x16xf32, #tpu.memory_space<vmem>>, vector<1x16xf32>
    %125 = vector.broadcast %124 : vector<1x16xf32> to vector<256x16xf32>
    %126 = arith.addf %123, %125 : vector<256x16xf32>
    %cst_34 = arith.constant 0.000000e+00 : f32
    %127 = vector.broadcast %cst_34 : f32 to vector<256x16xf32>
    %128 = arith.maximumf %126, %127 : vector<256x16xf32>
    %129 = vector.shape_cast %128 : vector<256x16xf32> to vector<8x8x4x16xf32>
    %cst_35 = arith.constant 0.000000e+00 : f32
    %130 = vector.broadcast %cst_35 : f32 to vector<1x8x4x16xf32>
    %131 = tpu.concatenate %130, %129, %130 in 0 : vector<1x8x4x16xf32>, vector<8x8x4x16xf32>, vector<1x8x4x16xf32> -> vector<10x8x4x16xf32>
    %cst_36 = arith.constant 0.000000e+00 : f32
    %132 = vector.broadcast %cst_36 : f32 to vector<10x1x4x16xf32>
    %133 = tpu.concatenate %132, %131, %132 in 1 : vector<10x1x4x16xf32>, vector<10x8x4x16xf32>, vector<10x1x4x16xf32> -> vector<10x10x4x16xf32>
    %cst_37 = arith.constant 0.000000e+00 : f32
    %134 = vector.broadcast %cst_37 : f32 to vector<10x10x1x16xf32>
    %135 = tpu.concatenate %134, %133, %134 in 2 : vector<10x10x1x16xf32>, vector<10x10x4x16xf32>, vector<10x10x1x16xf32> -> vector<10x10x6x16xf32>
    %c0_38 = arith.constant 0 : index
    %c0_39 = arith.constant 0 : index
    %136 = vector.load %arg9[%c0_38, %c0_39] : memref<27x16xf32, #tpu.memory_space<vmem>>, vector<27x16xf32>
    %cst_40 = arith.constant 0.000000e+00 : f32
    %137 = vector.broadcast %cst_40 : f32 to vector<4x4x4x16xf32>
    %138 = vector.extract_strided_slice %135 {offsets = [0, 0, 0, 0], sizes = [8, 8, 4, 16], strides = [1, 1, 1, 1]} : vector<10x10x6x16xf32> to vector<8x8x4x16xf32>
    %139 = vector.shape_cast %138 : vector<8x8x4x16xf32> to vector<4x2x4x2x4x16xf32>
    %140 = vector.extract_strided_slice %139 {offsets = [0, 0, 0, 0, 0, 0], sizes = [4, 1, 4, 1, 4, 16], strides = [1, 1, 1, 1, 1, 1]} : vector<4x2x4x2x4x16xf32> to vector<4x1x4x1x4x16xf32>
    %141 = vector.shape_cast %140 : vector<4x1x4x1x4x16xf32> to vector<4x4x4x16xf32>
    %142 = vector.extract_strided_slice %136 {offsets = [0, 0], sizes = [1, 16], strides = [1, 1]} : vector<27x16xf32> to vector<1x16xf32>
    %143 = vector.shape_cast %142 : vector<1x16xf32> to vector<16xf32>
    %144 = vector.shape_cast %143 : vector<16xf32> to vector<1x1x1x16xf32>
    %145 = vector.broadcast %144 : vector<1x1x1x16xf32> to vector<4x4x4x16xf32>
    %146 = arith.mulf %141, %145 : vector<4x4x4x16xf32>
    %147 = arith.addf %137, %146 : vector<4x4x4x16xf32>
    %148 = vector.extract_strided_slice %135 {offsets = [0, 1, 0, 0], sizes = [8, 8, 4, 16], strides = [1, 1, 1, 1]} : vector<10x10x6x16xf32> to vector<8x8x4x16xf32>
    %149 = vector.shape_cast %148 : vector<8x8x4x16xf32> to vector<4x2x4x2x4x16xf32>
    %150 = vector.extract_strided_slice %149 {offsets = [0, 0, 0, 0, 0, 0], sizes = [4, 1, 4, 1, 4, 16], strides = [1, 1, 1, 1, 1, 1]} : vector<4x2x4x2x4x16xf32> to vector<4x1x4x1x4x16xf32>
    %151 = vector.shape_cast %150 : vector<4x1x4x1x4x16xf32> to vector<4x4x4x16xf32>
    %152 = vector.extract_strided_slice %136 {offsets = [1, 0], sizes = [1, 16], strides = [1, 1]} : vector<27x16xf32> to vector<1x16xf32>
    %153 = vector.shape_cast %152 : vector<1x16xf32> to vector<16xf32>
    %154 = vector.shape_cast %153 : vector<16xf32> to vector<1x1x1x16xf32>
    %155 = vector.broadcast %154 : vector<1x1x1x16xf32> to vector<4x4x4x16xf32>
    %156 = arith.mulf %151, %155 : vector<4x4x4x16xf32>
    %157 = arith.addf %147, %156 : vector<4x4x4x16xf32>
    %158 = vector.extract_strided_slice %135 {offsets = [0, 2, 0, 0], sizes = [8, 8, 4, 16], strides = [1, 1, 1, 1]} : vector<10x10x6x16xf32> to vector<8x8x4x16xf32>
    %159 = vector.shape_cast %158 : vector<8x8x4x16xf32> to vector<4x2x4x2x4x16xf32>
    %160 = vector.extract_strided_slice %159 {offsets = [0, 0, 0, 0, 0, 0], sizes = [4, 1, 4, 1, 4, 16], strides = [1, 1, 1, 1, 1, 1]} : vector<4x2x4x2x4x16xf32> to vector<4x1x4x1x4x16xf32>
    %161 = vector.shape_cast %160 : vector<4x1x4x1x4x16xf32> to vector<4x4x4x16xf32>
    %162 = vector.extract_strided_slice %136 {offsets = [2, 0], sizes = [1, 16], strides = [1, 1]} : vector<27x16xf32> to vector<1x16xf32>
    %163 = vector.shape_cast %162 : vector<1x16xf32> to vector<16xf32>
    %164 = vector.shape_cast %163 : vector<16xf32> to vector<1x1x1x16xf32>
    %165 = vector.broadcast %164 : vector<1x1x1x16xf32> to vector<4x4x4x16xf32>
    %166 = arith.mulf %161, %165 : vector<4x4x4x16xf32>
    %167 = arith.addf %157, %166 : vector<4x4x4x16xf32>
    %168 = vector.extract_strided_slice %135 {offsets = [1, 0, 0, 0], sizes = [8, 8, 4, 16], strides = [1, 1, 1, 1]} : vector<10x10x6x16xf32> to vector<8x8x4x16xf32>
    %169 = vector.shape_cast %168 : vector<8x8x4x16xf32> to vector<4x2x4x2x4x16xf32>
    %170 = vector.extract_strided_slice %169 {offsets = [0, 0, 0, 0, 0, 0], sizes = [4, 1, 4, 1, 4, 16], strides = [1, 1, 1, 1, 1, 1]} : vector<4x2x4x2x4x16xf32> to vector<4x1x4x1x4x16xf32>
    %171 = vector.shape_cast %170 : vector<4x1x4x1x4x16xf32> to vector<4x4x4x16xf32>
    %172 = vector.extract_strided_slice %136 {offsets = [3, 0], sizes = [1, 16], strides = [1, 1]} : vector<27x16xf32> to vector<1x16xf32>
    %173 = vector.shape_cast %172 : vector<1x16xf32> to vector<16xf32>
    %174 = vector.shape_cast %173 : vector<16xf32> to vector<1x1x1x16xf32>
    %175 = vector.broadcast %174 : vector<1x1x1x16xf32> to vector<4x4x4x16xf32>
    %176 = arith.mulf %171, %175 : vector<4x4x4x16xf32>
    %177 = arith.addf %167, %176 : vector<4x4x4x16xf32>
    %178 = vector.extract_strided_slice %135 {offsets = [1, 1, 0, 0], sizes = [8, 8, 4, 16], strides = [1, 1, 1, 1]} : vector<10x10x6x16xf32> to vector<8x8x4x16xf32>
    %179 = vector.shape_cast %178 : vector<8x8x4x16xf32> to vector<4x2x4x2x4x16xf32>
    %180 = vector.extract_strided_slice %179 {offsets = [0, 0, 0, 0, 0, 0], sizes = [4, 1, 4, 1, 4, 16], strides = [1, 1, 1, 1, 1, 1]} : vector<4x2x4x2x4x16xf32> to vector<4x1x4x1x4x16xf32>
    %181 = vector.shape_cast %180 : vector<4x1x4x1x4x16xf32> to vector<4x4x4x16xf32>
    %182 = vector.extract_strided_slice %136 {offsets = [4, 0], sizes = [1, 16], strides = [1, 1]} : vector<27x16xf32> to vector<1x16xf32>
    %183 = vector.shape_cast %182 : vector<1x16xf32> to vector<16xf32>
    %184 = vector.shape_cast %183 : vector<16xf32> to vector<1x1x1x16xf32>
    %185 = vector.broadcast %184 : vector<1x1x1x16xf32> to vector<4x4x4x16xf32>
    %186 = arith.mulf %181, %185 : vector<4x4x4x16xf32>
    %187 = arith.addf %177, %186 : vector<4x4x4x16xf32>
    %188 = vector.extract_strided_slice %135 {offsets = [1, 2, 0, 0], sizes = [8, 8, 4, 16], strides = [1, 1, 1, 1]} : vector<10x10x6x16xf32> to vector<8x8x4x16xf32>
    %189 = vector.shape_cast %188 : vector<8x8x4x16xf32> to vector<4x2x4x2x4x16xf32>
    %190 = vector.extract_strided_slice %189 {offsets = [0, 0, 0, 0, 0, 0], sizes = [4, 1, 4, 1, 4, 16], strides = [1, 1, 1, 1, 1, 1]} : vector<4x2x4x2x4x16xf32> to vector<4x1x4x1x4x16xf32>
    %191 = vector.shape_cast %190 : vector<4x1x4x1x4x16xf32> to vector<4x4x4x16xf32>
    %192 = vector.extract_strided_slice %136 {offsets = [5, 0], sizes = [1, 16], strides = [1, 1]} : vector<27x16xf32> to vector<1x16xf32>
    %193 = vector.shape_cast %192 : vector<1x16xf32> to vector<16xf32>
    %194 = vector.shape_cast %193 : vector<16xf32> to vector<1x1x1x16xf32>
    %195 = vector.broadcast %194 : vector<1x1x1x16xf32> to vector<4x4x4x16xf32>
    %196 = arith.mulf %191, %195 : vector<4x4x4x16xf32>
    %197 = arith.addf %187, %196 : vector<4x4x4x16xf32>
    %198 = vector.extract_strided_slice %135 {offsets = [2, 0, 0, 0], sizes = [8, 8, 4, 16], strides = [1, 1, 1, 1]} : vector<10x10x6x16xf32> to vector<8x8x4x16xf32>
    %199 = vector.shape_cast %198 : vector<8x8x4x16xf32> to vector<4x2x4x2x4x16xf32>
    %200 = vector.extract_strided_slice %199 {offsets = [0, 0, 0, 0, 0, 0], sizes = [4, 1, 4, 1, 4, 16], strides = [1, 1, 1, 1, 1, 1]} : vector<4x2x4x2x4x16xf32> to vector<4x1x4x1x4x16xf32>
    %201 = vector.shape_cast %200 : vector<4x1x4x1x4x16xf32> to vector<4x4x4x16xf32>
    %202 = vector.extract_strided_slice %136 {offsets = [6, 0], sizes = [1, 16], strides = [1, 1]} : vector<27x16xf32> to vector<1x16xf32>
    %203 = vector.shape_cast %202 : vector<1x16xf32> to vector<16xf32>
    %204 = vector.shape_cast %203 : vector<16xf32> to vector<1x1x1x16xf32>
    %205 = vector.broadcast %204 : vector<1x1x1x16xf32> to vector<4x4x4x16xf32>
    %206 = arith.mulf %201, %205 : vector<4x4x4x16xf32>
    %207 = arith.addf %197, %206 : vector<4x4x4x16xf32>
    %208 = vector.extract_strided_slice %135 {offsets = [2, 1, 0, 0], sizes = [8, 8, 4, 16], strides = [1, 1, 1, 1]} : vector<10x10x6x16xf32> to vector<8x8x4x16xf32>
    %209 = vector.shape_cast %208 : vector<8x8x4x16xf32> to vector<4x2x4x2x4x16xf32>
    %210 = vector.extract_strided_slice %209 {offsets = [0, 0, 0, 0, 0, 0], sizes = [4, 1, 4, 1, 4, 16], strides = [1, 1, 1, 1, 1, 1]} : vector<4x2x4x2x4x16xf32> to vector<4x1x4x1x4x16xf32>
    %211 = vector.shape_cast %210 : vector<4x1x4x1x4x16xf32> to vector<4x4x4x16xf32>
    %212 = vector.extract_strided_slice %136 {offsets = [7, 0], sizes = [1, 16], strides = [1, 1]} : vector<27x16xf32> to vector<1x16xf32>
    %213 = vector.shape_cast %212 : vector<1x16xf32> to vector<16xf32>
    %214 = vector.shape_cast %213 : vector<16xf32> to vector<1x1x1x16xf32>
    %215 = vector.broadcast %214 : vector<1x1x1x16xf32> to vector<4x4x4x16xf32>
    %216 = arith.mulf %211, %215 : vector<4x4x4x16xf32>
    %217 = arith.addf %207, %216 : vector<4x4x4x16xf32>
    %218 = vector.extract_strided_slice %135 {offsets = [2, 2, 0, 0], sizes = [8, 8, 4, 16], strides = [1, 1, 1, 1]} : vector<10x10x6x16xf32> to vector<8x8x4x16xf32>
    %219 = vector.shape_cast %218 : vector<8x8x4x16xf32> to vector<4x2x4x2x4x16xf32>
    %220 = vector.extract_strided_slice %219 {offsets = [0, 0, 0, 0, 0, 0], sizes = [4, 1, 4, 1, 4, 16], strides = [1, 1, 1, 1, 1, 1]} : vector<4x2x4x2x4x16xf32> to vector<4x1x4x1x4x16xf32>
    %221 = vector.shape_cast %220 : vector<4x1x4x1x4x16xf32> to vector<4x4x4x16xf32>
    %222 = vector.extract_strided_slice %136 {offsets = [8, 0], sizes = [1, 16], strides = [1, 1]} : vector<27x16xf32> to vector<1x16xf32>
    %223 = vector.shape_cast %222 : vector<1x16xf32> to vector<16xf32>
    %224 = vector.shape_cast %223 : vector<16xf32> to vector<1x1x1x16xf32>
    %225 = vector.broadcast %224 : vector<1x1x1x16xf32> to vector<4x4x4x16xf32>
    %226 = arith.mulf %221, %225 : vector<4x4x4x16xf32>
    %227 = arith.addf %217, %226 : vector<4x4x4x16xf32>
    %cst_41 = arith.constant 0.000000e+00 : f32
    %228 = vector.broadcast %cst_41 : f32 to vector<4x4x4x16xf32>
    %229 = vector.extract_strided_slice %135 {offsets = [0, 0, 1, 0], sizes = [8, 8, 4, 16], strides = [1, 1, 1, 1]} : vector<10x10x6x16xf32> to vector<8x8x4x16xf32>
    %230 = vector.shape_cast %229 : vector<8x8x4x16xf32> to vector<4x2x4x2x4x16xf32>
    %231 = vector.extract_strided_slice %230 {offsets = [0, 0, 0, 0, 0, 0], sizes = [4, 1, 4, 1, 4, 16], strides = [1, 1, 1, 1, 1, 1]} : vector<4x2x4x2x4x16xf32> to vector<4x1x4x1x4x16xf32>
    %232 = vector.shape_cast %231 : vector<4x1x4x1x4x16xf32> to vector<4x4x4x16xf32>
    %233 = vector.extract_strided_slice %136 {offsets = [9, 0], sizes = [1, 16], strides = [1, 1]} : vector<27x16xf32> to vector<1x16xf32>
    %234 = vector.shape_cast %233 : vector<1x16xf32> to vector<16xf32>
    %235 = vector.shape_cast %234 : vector<16xf32> to vector<1x1x1x16xf32>
    %236 = vector.broadcast %235 : vector<1x1x1x16xf32> to vector<4x4x4x16xf32>
    %237 = arith.mulf %232, %236 : vector<4x4x4x16xf32>
    %238 = arith.addf %228, %237 : vector<4x4x4x16xf32>
    %239 = vector.extract_strided_slice %135 {offsets = [0, 1, 1, 0], sizes = [8, 8, 4, 16], strides = [1, 1, 1, 1]} : vector<10x10x6x16xf32> to vector<8x8x4x16xf32>
    %240 = vector.shape_cast %239 : vector<8x8x4x16xf32> to vector<4x2x4x2x4x16xf32>
    %241 = vector.extract_strided_slice %240 {offsets = [0, 0, 0, 0, 0, 0], sizes = [4, 1, 4, 1, 4, 16], strides = [1, 1, 1, 1, 1, 1]} : vector<4x2x4x2x4x16xf32> to vector<4x1x4x1x4x16xf32>
    %242 = vector.shape_cast %241 : vector<4x1x4x1x4x16xf32> to vector<4x4x4x16xf32>
    %243 = vector.extract_strided_slice %136 {offsets = [10, 0], sizes = [1, 16], strides = [1, 1]} : vector<27x16xf32> to vector<1x16xf32>
    %244 = vector.shape_cast %243 : vector<1x16xf32> to vector<16xf32>
    %245 = vector.shape_cast %244 : vector<16xf32> to vector<1x1x1x16xf32>
    %246 = vector.broadcast %245 : vector<1x1x1x16xf32> to vector<4x4x4x16xf32>
    %247 = arith.mulf %242, %246 : vector<4x4x4x16xf32>
    %248 = arith.addf %238, %247 : vector<4x4x4x16xf32>
    %249 = vector.extract_strided_slice %135 {offsets = [0, 2, 1, 0], sizes = [8, 8, 4, 16], strides = [1, 1, 1, 1]} : vector<10x10x6x16xf32> to vector<8x8x4x16xf32>
    %250 = vector.shape_cast %249 : vector<8x8x4x16xf32> to vector<4x2x4x2x4x16xf32>
    %251 = vector.extract_strided_slice %250 {offsets = [0, 0, 0, 0, 0, 0], sizes = [4, 1, 4, 1, 4, 16], strides = [1, 1, 1, 1, 1, 1]} : vector<4x2x4x2x4x16xf32> to vector<4x1x4x1x4x16xf32>
    %252 = vector.shape_cast %251 : vector<4x1x4x1x4x16xf32> to vector<4x4x4x16xf32>
    %253 = vector.extract_strided_slice %136 {offsets = [11, 0], sizes = [1, 16], strides = [1, 1]} : vector<27x16xf32> to vector<1x16xf32>
    %254 = vector.shape_cast %253 : vector<1x16xf32> to vector<16xf32>
    %255 = vector.shape_cast %254 : vector<16xf32> to vector<1x1x1x16xf32>
    %256 = vector.broadcast %255 : vector<1x1x1x16xf32> to vector<4x4x4x16xf32>
    %257 = arith.mulf %252, %256 : vector<4x4x4x16xf32>
    %258 = arith.addf %248, %257 : vector<4x4x4x16xf32>
    %259 = vector.extract_strided_slice %135 {offsets = [1, 0, 1, 0], sizes = [8, 8, 4, 16], strides = [1, 1, 1, 1]} : vector<10x10x6x16xf32> to vector<8x8x4x16xf32>
    %260 = vector.shape_cast %259 : vector<8x8x4x16xf32> to vector<4x2x4x2x4x16xf32>
    %261 = vector.extract_strided_slice %260 {offsets = [0, 0, 0, 0, 0, 0], sizes = [4, 1, 4, 1, 4, 16], strides = [1, 1, 1, 1, 1, 1]} : vector<4x2x4x2x4x16xf32> to vector<4x1x4x1x4x16xf32>
    %262 = vector.shape_cast %261 : vector<4x1x4x1x4x16xf32> to vector<4x4x4x16xf32>
    %263 = vector.extract_strided_slice %136 {offsets = [12, 0], sizes = [1, 16], strides = [1, 1]} : vector<27x16xf32> to vector<1x16xf32>
    %264 = vector.shape_cast %263 : vector<1x16xf32> to vector<16xf32>
    %265 = vector.shape_cast %264 : vector<16xf32> to vector<1x1x1x16xf32>
    %266 = vector.broadcast %265 : vector<1x1x1x16xf32> to vector<4x4x4x16xf32>
    %267 = arith.mulf %262, %266 : vector<4x4x4x16xf32>
    %268 = arith.addf %258, %267 : vector<4x4x4x16xf32>
    %269 = vector.extract_strided_slice %135 {offsets = [1, 1, 1, 0], sizes = [8, 8, 4, 16], strides = [1, 1, 1, 1]} : vector<10x10x6x16xf32> to vector<8x8x4x16xf32>
    %270 = vector.shape_cast %269 : vector<8x8x4x16xf32> to vector<4x2x4x2x4x16xf32>
    %271 = vector.extract_strided_slice %270 {offsets = [0, 0, 0, 0, 0, 0], sizes = [4, 1, 4, 1, 4, 16], strides = [1, 1, 1, 1, 1, 1]} : vector<4x2x4x2x4x16xf32> to vector<4x1x4x1x4x16xf32>
    %272 = vector.shape_cast %271 : vector<4x1x4x1x4x16xf32> to vector<4x4x4x16xf32>
    %273 = vector.extract_strided_slice %136 {offsets = [13, 0], sizes = [1, 16], strides = [1, 1]} : vector<27x16xf32> to vector<1x16xf32>
    %274 = vector.shape_cast %273 : vector<1x16xf32> to vector<16xf32>
    %275 = vector.shape_cast %274 : vector<16xf32> to vector<1x1x1x16xf32>
    %276 = vector.broadcast %275 : vector<1x1x1x16xf32> to vector<4x4x4x16xf32>
    %277 = arith.mulf %272, %276 : vector<4x4x4x16xf32>
    %278 = arith.addf %268, %277 : vector<4x4x4x16xf32>
    %279 = vector.extract_strided_slice %135 {offsets = [1, 2, 1, 0], sizes = [8, 8, 4, 16], strides = [1, 1, 1, 1]} : vector<10x10x6x16xf32> to vector<8x8x4x16xf32>
    %280 = vector.shape_cast %279 : vector<8x8x4x16xf32> to vector<4x2x4x2x4x16xf32>
    %281 = vector.extract_strided_slice %280 {offsets = [0, 0, 0, 0, 0, 0], sizes = [4, 1, 4, 1, 4, 16], strides = [1, 1, 1, 1, 1, 1]} : vector<4x2x4x2x4x16xf32> to vector<4x1x4x1x4x16xf32>
    %282 = vector.shape_cast %281 : vector<4x1x4x1x4x16xf32> to vector<4x4x4x16xf32>
    %283 = vector.extract_strided_slice %136 {offsets = [14, 0], sizes = [1, 16], strides = [1, 1]} : vector<27x16xf32> to vector<1x16xf32>
    %284 = vector.shape_cast %283 : vector<1x16xf32> to vector<16xf32>
    %285 = vector.shape_cast %284 : vector<16xf32> to vector<1x1x1x16xf32>
    %286 = vector.broadcast %285 : vector<1x1x1x16xf32> to vector<4x4x4x16xf32>
    %287 = arith.mulf %282, %286 : vector<4x4x4x16xf32>
    %288 = arith.addf %278, %287 : vector<4x4x4x16xf32>
    %289 = vector.extract_strided_slice %135 {offsets = [2, 0, 1, 0], sizes = [8, 8, 4, 16], strides = [1, 1, 1, 1]} : vector<10x10x6x16xf32> to vector<8x8x4x16xf32>
    %290 = vector.shape_cast %289 : vector<8x8x4x16xf32> to vector<4x2x4x2x4x16xf32>
    %291 = vector.extract_strided_slice %290 {offsets = [0, 0, 0, 0, 0, 0], sizes = [4, 1, 4, 1, 4, 16], strides = [1, 1, 1, 1, 1, 1]} : vector<4x2x4x2x4x16xf32> to vector<4x1x4x1x4x16xf32>
    %292 = vector.shape_cast %291 : vector<4x1x4x1x4x16xf32> to vector<4x4x4x16xf32>
    %293 = vector.extract_strided_slice %136 {offsets = [15, 0], sizes = [1, 16], strides = [1, 1]} : vector<27x16xf32> to vector<1x16xf32>
    %294 = vector.shape_cast %293 : vector<1x16xf32> to vector<16xf32>
    %295 = vector.shape_cast %294 : vector<16xf32> to vector<1x1x1x16xf32>
    %296 = vector.broadcast %295 : vector<1x1x1x16xf32> to vector<4x4x4x16xf32>
    %297 = arith.mulf %292, %296 : vector<4x4x4x16xf32>
    %298 = arith.addf %288, %297 : vector<4x4x4x16xf32>
    %299 = vector.extract_strided_slice %135 {offsets = [2, 1, 1, 0], sizes = [8, 8, 4, 16], strides = [1, 1, 1, 1]} : vector<10x10x6x16xf32> to vector<8x8x4x16xf32>
    %300 = vector.shape_cast %299 : vector<8x8x4x16xf32> to vector<4x2x4x2x4x16xf32>
    %301 = vector.extract_strided_slice %300 {offsets = [0, 0, 0, 0, 0, 0], sizes = [4, 1, 4, 1, 4, 16], strides = [1, 1, 1, 1, 1, 1]} : vector<4x2x4x2x4x16xf32> to vector<4x1x4x1x4x16xf32>
    %302 = vector.shape_cast %301 : vector<4x1x4x1x4x16xf32> to vector<4x4x4x16xf32>
    %303 = vector.extract_strided_slice %136 {offsets = [16, 0], sizes = [1, 16], strides = [1, 1]} : vector<27x16xf32> to vector<1x16xf32>
    %304 = vector.shape_cast %303 : vector<1x16xf32> to vector<16xf32>
    %305 = vector.shape_cast %304 : vector<16xf32> to vector<1x1x1x16xf32>
    %306 = vector.broadcast %305 : vector<1x1x1x16xf32> to vector<4x4x4x16xf32>
    %307 = arith.mulf %302, %306 : vector<4x4x4x16xf32>
    %308 = arith.addf %298, %307 : vector<4x4x4x16xf32>
    %309 = vector.extract_strided_slice %135 {offsets = [2, 2, 1, 0], sizes = [8, 8, 4, 16], strides = [1, 1, 1, 1]} : vector<10x10x6x16xf32> to vector<8x8x4x16xf32>
    %310 = vector.shape_cast %309 : vector<8x8x4x16xf32> to vector<4x2x4x2x4x16xf32>
    %311 = vector.extract_strided_slice %310 {offsets = [0, 0, 0, 0, 0, 0], sizes = [4, 1, 4, 1, 4, 16], strides = [1, 1, 1, 1, 1, 1]} : vector<4x2x4x2x4x16xf32> to vector<4x1x4x1x4x16xf32>
    %312 = vector.shape_cast %311 : vector<4x1x4x1x4x16xf32> to vector<4x4x4x16xf32>
    %313 = vector.extract_strided_slice %136 {offsets = [17, 0], sizes = [1, 16], strides = [1, 1]} : vector<27x16xf32> to vector<1x16xf32>
    %314 = vector.shape_cast %313 : vector<1x16xf32> to vector<16xf32>
    %315 = vector.shape_cast %314 : vector<16xf32> to vector<1x1x1x16xf32>
    %316 = vector.broadcast %315 : vector<1x1x1x16xf32> to vector<4x4x4x16xf32>
    %317 = arith.mulf %312, %316 : vector<4x4x4x16xf32>
    %318 = arith.addf %308, %317 : vector<4x4x4x16xf32>
    %cst_42 = arith.constant 0.000000e+00 : f32
    %319 = vector.broadcast %cst_42 : f32 to vector<4x4x4x16xf32>
    %320 = vector.extract_strided_slice %135 {offsets = [0, 0, 2, 0], sizes = [8, 8, 4, 16], strides = [1, 1, 1, 1]} : vector<10x10x6x16xf32> to vector<8x8x4x16xf32>
    %321 = vector.shape_cast %320 : vector<8x8x4x16xf32> to vector<4x2x4x2x4x16xf32>
    %322 = vector.extract_strided_slice %321 {offsets = [0, 0, 0, 0, 0, 0], sizes = [4, 1, 4, 1, 4, 16], strides = [1, 1, 1, 1, 1, 1]} : vector<4x2x4x2x4x16xf32> to vector<4x1x4x1x4x16xf32>
    %323 = vector.shape_cast %322 : vector<4x1x4x1x4x16xf32> to vector<4x4x4x16xf32>
    %324 = vector.extract_strided_slice %136 {offsets = [18, 0], sizes = [1, 16], strides = [1, 1]} : vector<27x16xf32> to vector<1x16xf32>
    %325 = vector.shape_cast %324 : vector<1x16xf32> to vector<16xf32>
    %326 = vector.shape_cast %325 : vector<16xf32> to vector<1x1x1x16xf32>
    %327 = vector.broadcast %326 : vector<1x1x1x16xf32> to vector<4x4x4x16xf32>
    %328 = arith.mulf %323, %327 : vector<4x4x4x16xf32>
    %329 = arith.addf %319, %328 : vector<4x4x4x16xf32>
    %330 = vector.extract_strided_slice %135 {offsets = [0, 1, 2, 0], sizes = [8, 8, 4, 16], strides = [1, 1, 1, 1]} : vector<10x10x6x16xf32> to vector<8x8x4x16xf32>
    %331 = vector.shape_cast %330 : vector<8x8x4x16xf32> to vector<4x2x4x2x4x16xf32>
    %332 = vector.extract_strided_slice %331 {offsets = [0, 0, 0, 0, 0, 0], sizes = [4, 1, 4, 1, 4, 16], strides = [1, 1, 1, 1, 1, 1]} : vector<4x2x4x2x4x16xf32> to vector<4x1x4x1x4x16xf32>
    %333 = vector.shape_cast %332 : vector<4x1x4x1x4x16xf32> to vector<4x4x4x16xf32>
    %334 = vector.extract_strided_slice %136 {offsets = [19, 0], sizes = [1, 16], strides = [1, 1]} : vector<27x16xf32> to vector<1x16xf32>
    %335 = vector.shape_cast %334 : vector<1x16xf32> to vector<16xf32>
    %336 = vector.shape_cast %335 : vector<16xf32> to vector<1x1x1x16xf32>
    %337 = vector.broadcast %336 : vector<1x1x1x16xf32> to vector<4x4x4x16xf32>
    %338 = arith.mulf %333, %337 : vector<4x4x4x16xf32>
    %339 = arith.addf %329, %338 : vector<4x4x4x16xf32>
    %340 = vector.extract_strided_slice %135 {offsets = [0, 2, 2, 0], sizes = [8, 8, 4, 16], strides = [1, 1, 1, 1]} : vector<10x10x6x16xf32> to vector<8x8x4x16xf32>
    %341 = vector.shape_cast %340 : vector<8x8x4x16xf32> to vector<4x2x4x2x4x16xf32>
    %342 = vector.extract_strided_slice %341 {offsets = [0, 0, 0, 0, 0, 0], sizes = [4, 1, 4, 1, 4, 16], strides = [1, 1, 1, 1, 1, 1]} : vector<4x2x4x2x4x16xf32> to vector<4x1x4x1x4x16xf32>
    %343 = vector.shape_cast %342 : vector<4x1x4x1x4x16xf32> to vector<4x4x4x16xf32>
    %344 = vector.extract_strided_slice %136 {offsets = [20, 0], sizes = [1, 16], strides = [1, 1]} : vector<27x16xf32> to vector<1x16xf32>
    %345 = vector.shape_cast %344 : vector<1x16xf32> to vector<16xf32>
    %346 = vector.shape_cast %345 : vector<16xf32> to vector<1x1x1x16xf32>
    %347 = vector.broadcast %346 : vector<1x1x1x16xf32> to vector<4x4x4x16xf32>
    %348 = arith.mulf %343, %347 : vector<4x4x4x16xf32>
    %349 = arith.addf %339, %348 : vector<4x4x4x16xf32>
    %350 = vector.extract_strided_slice %135 {offsets = [1, 0, 2, 0], sizes = [8, 8, 4, 16], strides = [1, 1, 1, 1]} : vector<10x10x6x16xf32> to vector<8x8x4x16xf32>
    %351 = vector.shape_cast %350 : vector<8x8x4x16xf32> to vector<4x2x4x2x4x16xf32>
    %352 = vector.extract_strided_slice %351 {offsets = [0, 0, 0, 0, 0, 0], sizes = [4, 1, 4, 1, 4, 16], strides = [1, 1, 1, 1, 1, 1]} : vector<4x2x4x2x4x16xf32> to vector<4x1x4x1x4x16xf32>
    %353 = vector.shape_cast %352 : vector<4x1x4x1x4x16xf32> to vector<4x4x4x16xf32>
    %354 = vector.extract_strided_slice %136 {offsets = [21, 0], sizes = [1, 16], strides = [1, 1]} : vector<27x16xf32> to vector<1x16xf32>
    %355 = vector.shape_cast %354 : vector<1x16xf32> to vector<16xf32>
    %356 = vector.shape_cast %355 : vector<16xf32> to vector<1x1x1x16xf32>
    %357 = vector.broadcast %356 : vector<1x1x1x16xf32> to vector<4x4x4x16xf32>
    %358 = arith.mulf %353, %357 : vector<4x4x4x16xf32>
    %359 = arith.addf %349, %358 : vector<4x4x4x16xf32>
    %360 = vector.extract_strided_slice %135 {offsets = [1, 1, 2, 0], sizes = [8, 8, 4, 16], strides = [1, 1, 1, 1]} : vector<10x10x6x16xf32> to vector<8x8x4x16xf32>
    %361 = vector.shape_cast %360 : vector<8x8x4x16xf32> to vector<4x2x4x2x4x16xf32>
    %362 = vector.extract_strided_slice %361 {offsets = [0, 0, 0, 0, 0, 0], sizes = [4, 1, 4, 1, 4, 16], strides = [1, 1, 1, 1, 1, 1]} : vector<4x2x4x2x4x16xf32> to vector<4x1x4x1x4x16xf32>
    %363 = vector.shape_cast %362 : vector<4x1x4x1x4x16xf32> to vector<4x4x4x16xf32>
    %364 = vector.extract_strided_slice %136 {offsets = [22, 0], sizes = [1, 16], strides = [1, 1]} : vector<27x16xf32> to vector<1x16xf32>
    %365 = vector.shape_cast %364 : vector<1x16xf32> to vector<16xf32>
    %366 = vector.shape_cast %365 : vector<16xf32> to vector<1x1x1x16xf32>
    %367 = vector.broadcast %366 : vector<1x1x1x16xf32> to vector<4x4x4x16xf32>
    %368 = arith.mulf %363, %367 : vector<4x4x4x16xf32>
    %369 = arith.addf %359, %368 : vector<4x4x4x16xf32>
    %370 = vector.extract_strided_slice %135 {offsets = [1, 2, 2, 0], sizes = [8, 8, 4, 16], strides = [1, 1, 1, 1]} : vector<10x10x6x16xf32> to vector<8x8x4x16xf32>
    %371 = vector.shape_cast %370 : vector<8x8x4x16xf32> to vector<4x2x4x2x4x16xf32>
    %372 = vector.extract_strided_slice %371 {offsets = [0, 0, 0, 0, 0, 0], sizes = [4, 1, 4, 1, 4, 16], strides = [1, 1, 1, 1, 1, 1]} : vector<4x2x4x2x4x16xf32> to vector<4x1x4x1x4x16xf32>
    %373 = vector.shape_cast %372 : vector<4x1x4x1x4x16xf32> to vector<4x4x4x16xf32>
    %374 = vector.extract_strided_slice %136 {offsets = [23, 0], sizes = [1, 16], strides = [1, 1]} : vector<27x16xf32> to vector<1x16xf32>
    %375 = vector.shape_cast %374 : vector<1x16xf32> to vector<16xf32>
    %376 = vector.shape_cast %375 : vector<16xf32> to vector<1x1x1x16xf32>
    %377 = vector.broadcast %376 : vector<1x1x1x16xf32> to vector<4x4x4x16xf32>
    %378 = arith.mulf %373, %377 : vector<4x4x4x16xf32>
    %379 = arith.addf %369, %378 : vector<4x4x4x16xf32>
    %380 = vector.extract_strided_slice %135 {offsets = [2, 0, 2, 0], sizes = [8, 8, 4, 16], strides = [1, 1, 1, 1]} : vector<10x10x6x16xf32> to vector<8x8x4x16xf32>
    %381 = vector.shape_cast %380 : vector<8x8x4x16xf32> to vector<4x2x4x2x4x16xf32>
    %382 = vector.extract_strided_slice %381 {offsets = [0, 0, 0, 0, 0, 0], sizes = [4, 1, 4, 1, 4, 16], strides = [1, 1, 1, 1, 1, 1]} : vector<4x2x4x2x4x16xf32> to vector<4x1x4x1x4x16xf32>
    %383 = vector.shape_cast %382 : vector<4x1x4x1x4x16xf32> to vector<4x4x4x16xf32>
    %384 = vector.extract_strided_slice %136 {offsets = [24, 0], sizes = [1, 16], strides = [1, 1]} : vector<27x16xf32> to vector<1x16xf32>
    %385 = vector.shape_cast %384 : vector<1x16xf32> to vector<16xf32>
    %386 = vector.shape_cast %385 : vector<16xf32> to vector<1x1x1x16xf32>
    %387 = vector.broadcast %386 : vector<1x1x1x16xf32> to vector<4x4x4x16xf32>
    %388 = arith.mulf %383, %387 : vector<4x4x4x16xf32>
    %389 = arith.addf %379, %388 : vector<4x4x4x16xf32>
    %390 = vector.extract_strided_slice %135 {offsets = [2, 1, 2, 0], sizes = [8, 8, 4, 16], strides = [1, 1, 1, 1]} : vector<10x10x6x16xf32> to vector<8x8x4x16xf32>
    %391 = vector.shape_cast %390 : vector<8x8x4x16xf32> to vector<4x2x4x2x4x16xf32>
    %392 = vector.extract_strided_slice %391 {offsets = [0, 0, 0, 0, 0, 0], sizes = [4, 1, 4, 1, 4, 16], strides = [1, 1, 1, 1, 1, 1]} : vector<4x2x4x2x4x16xf32> to vector<4x1x4x1x4x16xf32>
    %393 = vector.shape_cast %392 : vector<4x1x4x1x4x16xf32> to vector<4x4x4x16xf32>
    %394 = vector.extract_strided_slice %136 {offsets = [25, 0], sizes = [1, 16], strides = [1, 1]} : vector<27x16xf32> to vector<1x16xf32>
    %395 = vector.shape_cast %394 : vector<1x16xf32> to vector<16xf32>
    %396 = vector.shape_cast %395 : vector<16xf32> to vector<1x1x1x16xf32>
    %397 = vector.broadcast %396 : vector<1x1x1x16xf32> to vector<4x4x4x16xf32>
    %398 = arith.mulf %393, %397 : vector<4x4x4x16xf32>
    %399 = arith.addf %389, %398 : vector<4x4x4x16xf32>
    %400 = vector.extract_strided_slice %135 {offsets = [2, 2, 2, 0], sizes = [8, 8, 4, 16], strides = [1, 1, 1, 1]} : vector<10x10x6x16xf32> to vector<8x8x4x16xf32>
    %401 = vector.shape_cast %400 : vector<8x8x4x16xf32> to vector<4x2x4x2x4x16xf32>
    %402 = vector.extract_strided_slice %401 {offsets = [0, 0, 0, 0, 0, 0], sizes = [4, 1, 4, 1, 4, 16], strides = [1, 1, 1, 1, 1, 1]} : vector<4x2x4x2x4x16xf32> to vector<4x1x4x1x4x16xf32>
    %403 = vector.shape_cast %402 : vector<4x1x4x1x4x16xf32> to vector<4x4x4x16xf32>
    %404 = vector.extract_strided_slice %136 {offsets = [26, 0], sizes = [1, 16], strides = [1, 1]} : vector<27x16xf32> to vector<1x16xf32>
    %405 = vector.shape_cast %404 : vector<1x16xf32> to vector<16xf32>
    %406 = vector.shape_cast %405 : vector<16xf32> to vector<1x1x1x16xf32>
    %407 = vector.broadcast %406 : vector<1x1x1x16xf32> to vector<4x4x4x16xf32>
    %408 = arith.mulf %403, %407 : vector<4x4x4x16xf32>
    %409 = arith.addf %399, %408 : vector<4x4x4x16xf32>
    %410 = arith.addf %227, %318 : vector<4x4x4x16xf32>
    %411 = arith.addf %410, %409 : vector<4x4x4x16xf32>
    %c0_43 = arith.constant 0 : index
    %c0_44 = arith.constant 0 : index
    %412 = vector.load %arg10[%c0_43, %c0_44] : memref<1x16xf32, #tpu.memory_space<vmem>>, vector<1x16xf32>
    %413 = vector.shape_cast %412 : vector<1x16xf32> to vector<1x1x1x16xf32>
    %414 = vector.broadcast %413 : vector<1x1x1x16xf32> to vector<4x4x4x16xf32>
    %415 = arith.mulf %411, %414 : vector<4x4x4x16xf32>
    %c0_45 = arith.constant 0 : index
    %c0_46 = arith.constant 0 : index
    %416 = vector.load %arg11[%c0_45, %c0_46] : memref<1x16xf32, #tpu.memory_space<vmem>>, vector<1x16xf32>
    %417 = vector.shape_cast %416 : vector<1x16xf32> to vector<1x1x1x16xf32>
    %418 = vector.broadcast %417 : vector<1x1x1x16xf32> to vector<4x4x4x16xf32>
    %419 = arith.addf %415, %418 : vector<4x4x4x16xf32>
    %420 = vector.shape_cast %419 : vector<4x4x4x16xf32> to vector<64x16xf32>
    %cst_47 = arith.constant dense<0.000000e+00> : vector<16xf32>
    %421 = vector.multi_reduction <add>, %420, %cst_47 [0] : vector<64x16xf32> to vector<16xf32>
    %422 = vector.shape_cast %421 : vector<16xf32> to vector<1x16xf32>
    %cst_48 = arith.constant 6.400000e+01 : f32
    %423 = vector.broadcast %cst_48 : f32 to vector<1x16xf32>
    %424 = arith.divf %422, %423 : vector<1x16xf32>
    %c0_49 = arith.constant 0 : index
    %c0_50 = arith.constant 0 : index
    %425 = vector.load %arg12[%c0_49, %c0_50] : memref<16x4xf32, #tpu.memory_space<vmem>>, vector<16x4xf32>
    %cst_51 = arith.constant dense<0.000000e+00> : vector<1x4xf32>
    %426 = tpu.matmul %424, %425, %cst_51 {dimension_numbers = #tpu.dot_dimension_numbers<[1], [0], [0], [1], [0, 0, 1, 1], [], []>} : vector<1x16xf32>, vector<16x4xf32>, vector<1x4xf32> -> vector<1x4xf32>
    %c0_52 = arith.constant 0 : index
    %c0_53 = arith.constant 0 : index
    %427 = vector.load %arg13[%c0_52, %c0_53] : memref<1x4xf32, #tpu.memory_space<vmem>>, vector<1x4xf32>
    %428 = arith.addf %426, %427 : vector<1x4xf32>
    %cst_54 = arith.constant 0.000000e+00 : f32
    %429 = vector.broadcast %cst_54 : f32 to vector<1x4xf32>
    %430 = arith.maximumf %428, %429 : vector<1x4xf32>
    %c0_55 = arith.constant 0 : index
    %c0_56 = arith.constant 0 : index
    %431 = vector.load %arg14[%c0_55, %c0_56] : memref<4x16xf32, #tpu.memory_space<vmem>>, vector<4x16xf32>
    %cst_57 = arith.constant dense<0.000000e+00> : vector<1x16xf32>
    %432 = tpu.matmul %430, %431, %cst_57 {dimension_numbers = #tpu.dot_dimension_numbers<[1], [0], [0], [1], [0, 0, 1, 1], [], []>} : vector<1x4xf32>, vector<4x16xf32>, vector<1x16xf32> -> vector<1x16xf32>
    %c0_58 = arith.constant 0 : index
    %c0_59 = arith.constant 0 : index
    %433 = vector.load %arg15[%c0_58, %c0_59] : memref<1x16xf32, #tpu.memory_space<vmem>>, vector<1x16xf32>
    %434 = arith.addf %432, %433 : vector<1x16xf32>
    %435 = arith.negf %434 : vector<1x16xf32>
    %436 = math.exp %435 : vector<1x16xf32>
    %cst_60 = arith.constant 1.000000e+00 : f32
    %437 = vector.broadcast %cst_60 : f32 to vector<1x16xf32>
    %438 = arith.addf %437, %436 : vector<1x16xf32>
    %439 = arith.divf %437, %438 : vector<1x16xf32>
    %440 = vector.broadcast %439 : vector<1x16xf32> to vector<64x16xf32>
    %441 = arith.mulf %420, %440 : vector<64x16xf32>
    %442 = arith.negf %441 : vector<64x16xf32>
    %443 = math.exp %442 : vector<64x16xf32>
    %cst_61 = arith.constant 1.000000e+00 : f32
    %444 = vector.broadcast %cst_61 : f32 to vector<64x16xf32>
    %445 = arith.addf %444, %443 : vector<64x16xf32>
    %446 = arith.divf %444, %445 : vector<64x16xf32>
    %447 = arith.mulf %441, %446 : vector<64x16xf32>
    %c0_62 = arith.constant 0 : index
    %c0_63 = arith.constant 0 : index
    %448 = vector.load %arg16[%c0_62, %c0_63] : memref<16x8xf32, #tpu.memory_space<vmem>>, vector<16x8xf32>
    %cst_64 = arith.constant dense<0.000000e+00> : vector<64x8xf32>
    %449 = tpu.matmul %447, %448, %cst_64 {dimension_numbers = #tpu.dot_dimension_numbers<[1], [0], [0], [1], [0, 0, 1, 1], [], []>} : vector<64x16xf32>, vector<16x8xf32>, vector<64x8xf32> -> vector<64x8xf32>
    %c0_65 = arith.constant 0 : index
    %c0_66 = arith.constant 0 : index
    %450 = vector.load %arg17[%c0_65, %c0_66] : memref<1x8xf32, #tpu.memory_space<vmem>>, vector<1x8xf32>
    %451 = vector.broadcast %450 : vector<1x8xf32> to vector<64x8xf32>
    %452 = arith.mulf %449, %451 : vector<64x8xf32>
    %c0_67 = arith.constant 0 : index
    %c0_68 = arith.constant 0 : index
    %453 = vector.load %arg18[%c0_67, %c0_68] : memref<1x8xf32, #tpu.memory_space<vmem>>, vector<1x8xf32>
    %454 = vector.broadcast %453 : vector<1x8xf32> to vector<64x8xf32>
    %455 = arith.addf %452, %454 : vector<64x8xf32>
    %456 = vector.shape_cast %117 : vector<8x8x4x8xf32> to vector<4x2x4x2x4x8xf32>
    %457 = vector.extract_strided_slice %456 {offsets = [0, 0, 0, 0, 0, 0], sizes = [4, 1, 4, 1, 4, 8], strides = [1, 1, 1, 1, 1, 1]} : vector<4x2x4x2x4x8xf32> to vector<4x1x4x1x4x8xf32>
    %458 = vector.shape_cast %457 : vector<4x1x4x1x4x8xf32> to vector<4x4x4x8xf32>
    %459 = vector.shape_cast %458 : vector<4x4x4x8xf32> to vector<64x8xf32>
    %c0_69 = arith.constant 0 : index
    %c0_70 = arith.constant 0 : index
    %460 = vector.load %arg19[%c0_69, %c0_70] : memref<8x8xf32, #tpu.memory_space<vmem>>, vector<8x8xf32>
    %cst_71 = arith.constant dense<0.000000e+00> : vector<64x8xf32>
    %461 = tpu.matmul %459, %460, %cst_71 {dimension_numbers = #tpu.dot_dimension_numbers<[1], [0], [0], [1], [0, 0, 1, 1], [], []>} : vector<64x8xf32>, vector<8x8xf32>, vector<64x8xf32> -> vector<64x8xf32>
    %c0_72 = arith.constant 0 : index
    %c0_73 = arith.constant 0 : index
    %462 = vector.load %arg20[%c0_72, %c0_73] : memref<1x8xf32, #tpu.memory_space<vmem>>, vector<1x8xf32>
    %463 = vector.broadcast %462 : vector<1x8xf32> to vector<64x8xf32>
    %464 = arith.mulf %461, %463 : vector<64x8xf32>
    %c0_74 = arith.constant 0 : index
    %c0_75 = arith.constant 0 : index
    %465 = vector.load %arg21[%c0_74, %c0_75] : memref<1x8xf32, #tpu.memory_space<vmem>>, vector<1x8xf32>
    %466 = vector.broadcast %465 : vector<1x8xf32> to vector<64x8xf32>
    %467 = arith.addf %464, %466 : vector<64x8xf32>
    %468 = arith.addf %455, %467 : vector<64x8xf32>
    %cst_76 = arith.constant 0.000000e+00 : f32
    %469 = vector.broadcast %cst_76 : f32 to vector<64x8xf32>
    %470 = arith.maximumf %468, %469 : vector<64x8xf32>
    %471 = vector.shape_cast %470 : vector<64x8xf32> to vector<4x4x4x8xf32>
    %472 = vector.shape_cast %471 : vector<4x4x4x8xf32> to vector<64x8xf32>
    %c0_77 = arith.constant 0 : index
    %c0_78 = arith.constant 0 : index
    %473 = vector.load %arg22[%c0_77, %c0_78] : memref<8x32xf32, #tpu.memory_space<vmem>>, vector<8x32xf32>
    %cst_79 = arith.constant dense<0.000000e+00> : vector<64x32xf32>
    %474 = tpu.matmul %472, %473, %cst_79 {dimension_numbers = #tpu.dot_dimension_numbers<[1], [0], [0], [1], [0, 0, 1, 1], [], []>} : vector<64x8xf32>, vector<8x32xf32>, vector<64x32xf32> -> vector<64x32xf32>
    %c0_80 = arith.constant 0 : index
    %c0_81 = arith.constant 0 : index
    %475 = vector.load %arg23[%c0_80, %c0_81] : memref<1x32xf32, #tpu.memory_space<vmem>>, vector<1x32xf32>
    %476 = vector.broadcast %475 : vector<1x32xf32> to vector<64x32xf32>
    %477 = arith.mulf %474, %476 : vector<64x32xf32>
    %c0_82 = arith.constant 0 : index
    %c0_83 = arith.constant 0 : index
    %478 = vector.load %arg24[%c0_82, %c0_83] : memref<1x32xf32, #tpu.memory_space<vmem>>, vector<1x32xf32>
    %479 = vector.broadcast %478 : vector<1x32xf32> to vector<64x32xf32>
    %480 = arith.addf %477, %479 : vector<64x32xf32>
    %cst_84 = arith.constant 0.000000e+00 : f32
    %481 = vector.broadcast %cst_84 : f32 to vector<64x32xf32>
    %482 = arith.maximumf %480, %481 : vector<64x32xf32>
    %483 = vector.shape_cast %482 : vector<64x32xf32> to vector<4x4x4x32xf32>
    %cst_85 = arith.constant 0.000000e+00 : f32
    %484 = vector.broadcast %cst_85 : f32 to vector<1x4x4x32xf32>
    %485 = tpu.concatenate %484, %483, %484 in 0 : vector<1x4x4x32xf32>, vector<4x4x4x32xf32>, vector<1x4x4x32xf32> -> vector<6x4x4x32xf32>
    %cst_86 = arith.constant 0.000000e+00 : f32
    %486 = vector.broadcast %cst_86 : f32 to vector<6x1x4x32xf32>
    %487 = tpu.concatenate %486, %485, %486 in 1 : vector<6x1x4x32xf32>, vector<6x4x4x32xf32>, vector<6x1x4x32xf32> -> vector<6x6x4x32xf32>
    %cst_87 = arith.constant 0.000000e+00 : f32
    %488 = vector.broadcast %cst_87 : f32 to vector<6x6x1x32xf32>
    %489 = tpu.concatenate %488, %487, %488 in 2 : vector<6x6x1x32xf32>, vector<6x6x4x32xf32>, vector<6x6x1x32xf32> -> vector<6x6x6x32xf32>
    %c0_88 = arith.constant 0 : index
    %c0_89 = arith.constant 0 : index
    %490 = vector.load %arg25[%c0_88, %c0_89] : memref<27x32xf32, #tpu.memory_space<vmem>>, vector<27x32xf32>
    %cst_90 = arith.constant 0.000000e+00 : f32
    %491 = vector.broadcast %cst_90 : f32 to vector<2x2x4x32xf32>
    %492 = vector.extract_strided_slice %489 {offsets = [0, 0, 0, 0], sizes = [4, 4, 4, 32], strides = [1, 1, 1, 1]} : vector<6x6x6x32xf32> to vector<4x4x4x32xf32>
    %493 = vector.shape_cast %492 : vector<4x4x4x32xf32> to vector<2x2x2x2x4x32xf32>
    %494 = vector.extract_strided_slice %493 {offsets = [0, 0, 0, 0, 0, 0], sizes = [2, 1, 2, 1, 4, 32], strides = [1, 1, 1, 1, 1, 1]} : vector<2x2x2x2x4x32xf32> to vector<2x1x2x1x4x32xf32>
    %495 = vector.shape_cast %494 : vector<2x1x2x1x4x32xf32> to vector<2x2x4x32xf32>
    %496 = vector.extract_strided_slice %490 {offsets = [0, 0], sizes = [1, 32], strides = [1, 1]} : vector<27x32xf32> to vector<1x32xf32>
    %497 = vector.shape_cast %496 : vector<1x32xf32> to vector<32xf32>
    %498 = vector.shape_cast %497 : vector<32xf32> to vector<1x1x1x32xf32>
    %499 = vector.broadcast %498 : vector<1x1x1x32xf32> to vector<2x2x4x32xf32>
    %500 = arith.mulf %495, %499 : vector<2x2x4x32xf32>
    %501 = arith.addf %491, %500 : vector<2x2x4x32xf32>
    %502 = vector.extract_strided_slice %489 {offsets = [0, 1, 0, 0], sizes = [4, 4, 4, 32], strides = [1, 1, 1, 1]} : vector<6x6x6x32xf32> to vector<4x4x4x32xf32>
    %503 = vector.shape_cast %502 : vector<4x4x4x32xf32> to vector<2x2x2x2x4x32xf32>
    %504 = vector.extract_strided_slice %503 {offsets = [0, 0, 0, 0, 0, 0], sizes = [2, 1, 2, 1, 4, 32], strides = [1, 1, 1, 1, 1, 1]} : vector<2x2x2x2x4x32xf32> to vector<2x1x2x1x4x32xf32>
    %505 = vector.shape_cast %504 : vector<2x1x2x1x4x32xf32> to vector<2x2x4x32xf32>
    %506 = vector.extract_strided_slice %490 {offsets = [1, 0], sizes = [1, 32], strides = [1, 1]} : vector<27x32xf32> to vector<1x32xf32>
    %507 = vector.shape_cast %506 : vector<1x32xf32> to vector<32xf32>
    %508 = vector.shape_cast %507 : vector<32xf32> to vector<1x1x1x32xf32>
    %509 = vector.broadcast %508 : vector<1x1x1x32xf32> to vector<2x2x4x32xf32>
    %510 = arith.mulf %505, %509 : vector<2x2x4x32xf32>
    %511 = arith.addf %501, %510 : vector<2x2x4x32xf32>
    %512 = vector.extract_strided_slice %489 {offsets = [0, 2, 0, 0], sizes = [4, 4, 4, 32], strides = [1, 1, 1, 1]} : vector<6x6x6x32xf32> to vector<4x4x4x32xf32>
    %513 = vector.shape_cast %512 : vector<4x4x4x32xf32> to vector<2x2x2x2x4x32xf32>
    %514 = vector.extract_strided_slice %513 {offsets = [0, 0, 0, 0, 0, 0], sizes = [2, 1, 2, 1, 4, 32], strides = [1, 1, 1, 1, 1, 1]} : vector<2x2x2x2x4x32xf32> to vector<2x1x2x1x4x32xf32>
    %515 = vector.shape_cast %514 : vector<2x1x2x1x4x32xf32> to vector<2x2x4x32xf32>
    %516 = vector.extract_strided_slice %490 {offsets = [2, 0], sizes = [1, 32], strides = [1, 1]} : vector<27x32xf32> to vector<1x32xf32>
    %517 = vector.shape_cast %516 : vector<1x32xf32> to vector<32xf32>
    %518 = vector.shape_cast %517 : vector<32xf32> to vector<1x1x1x32xf32>
    %519 = vector.broadcast %518 : vector<1x1x1x32xf32> to vector<2x2x4x32xf32>
    %520 = arith.mulf %515, %519 : vector<2x2x4x32xf32>
    %521 = arith.addf %511, %520 : vector<2x2x4x32xf32>
    %522 = vector.extract_strided_slice %489 {offsets = [1, 0, 0, 0], sizes = [4, 4, 4, 32], strides = [1, 1, 1, 1]} : vector<6x6x6x32xf32> to vector<4x4x4x32xf32>
    %523 = vector.shape_cast %522 : vector<4x4x4x32xf32> to vector<2x2x2x2x4x32xf32>
    %524 = vector.extract_strided_slice %523 {offsets = [0, 0, 0, 0, 0, 0], sizes = [2, 1, 2, 1, 4, 32], strides = [1, 1, 1, 1, 1, 1]} : vector<2x2x2x2x4x32xf32> to vector<2x1x2x1x4x32xf32>
    %525 = vector.shape_cast %524 : vector<2x1x2x1x4x32xf32> to vector<2x2x4x32xf32>
    %526 = vector.extract_strided_slice %490 {offsets = [3, 0], sizes = [1, 32], strides = [1, 1]} : vector<27x32xf32> to vector<1x32xf32>
    %527 = vector.shape_cast %526 : vector<1x32xf32> to vector<32xf32>
    %528 = vector.shape_cast %527 : vector<32xf32> to vector<1x1x1x32xf32>
    %529 = vector.broadcast %528 : vector<1x1x1x32xf32> to vector<2x2x4x32xf32>
    %530 = arith.mulf %525, %529 : vector<2x2x4x32xf32>
    %531 = arith.addf %521, %530 : vector<2x2x4x32xf32>
    %532 = vector.extract_strided_slice %489 {offsets = [1, 1, 0, 0], sizes = [4, 4, 4, 32], strides = [1, 1, 1, 1]} : vector<6x6x6x32xf32> to vector<4x4x4x32xf32>
    %533 = vector.shape_cast %532 : vector<4x4x4x32xf32> to vector<2x2x2x2x4x32xf32>
    %534 = vector.extract_strided_slice %533 {offsets = [0, 0, 0, 0, 0, 0], sizes = [2, 1, 2, 1, 4, 32], strides = [1, 1, 1, 1, 1, 1]} : vector<2x2x2x2x4x32xf32> to vector<2x1x2x1x4x32xf32>
    %535 = vector.shape_cast %534 : vector<2x1x2x1x4x32xf32> to vector<2x2x4x32xf32>
    %536 = vector.extract_strided_slice %490 {offsets = [4, 0], sizes = [1, 32], strides = [1, 1]} : vector<27x32xf32> to vector<1x32xf32>
    %537 = vector.shape_cast %536 : vector<1x32xf32> to vector<32xf32>
    %538 = vector.shape_cast %537 : vector<32xf32> to vector<1x1x1x32xf32>
    %539 = vector.broadcast %538 : vector<1x1x1x32xf32> to vector<2x2x4x32xf32>
    %540 = arith.mulf %535, %539 : vector<2x2x4x32xf32>
    %541 = arith.addf %531, %540 : vector<2x2x4x32xf32>
    %542 = vector.extract_strided_slice %489 {offsets = [1, 2, 0, 0], sizes = [4, 4, 4, 32], strides = [1, 1, 1, 1]} : vector<6x6x6x32xf32> to vector<4x4x4x32xf32>
    %543 = vector.shape_cast %542 : vector<4x4x4x32xf32> to vector<2x2x2x2x4x32xf32>
    %544 = vector.extract_strided_slice %543 {offsets = [0, 0, 0, 0, 0, 0], sizes = [2, 1, 2, 1, 4, 32], strides = [1, 1, 1, 1, 1, 1]} : vector<2x2x2x2x4x32xf32> to vector<2x1x2x1x4x32xf32>
    %545 = vector.shape_cast %544 : vector<2x1x2x1x4x32xf32> to vector<2x2x4x32xf32>
    %546 = vector.extract_strided_slice %490 {offsets = [5, 0], sizes = [1, 32], strides = [1, 1]} : vector<27x32xf32> to vector<1x32xf32>
    %547 = vector.shape_cast %546 : vector<1x32xf32> to vector<32xf32>
    %548 = vector.shape_cast %547 : vector<32xf32> to vector<1x1x1x32xf32>
    %549 = vector.broadcast %548 : vector<1x1x1x32xf32> to vector<2x2x4x32xf32>
    %550 = arith.mulf %545, %549 : vector<2x2x4x32xf32>
    %551 = arith.addf %541, %550 : vector<2x2x4x32xf32>
    %552 = vector.extract_strided_slice %489 {offsets = [2, 0, 0, 0], sizes = [4, 4, 4, 32], strides = [1, 1, 1, 1]} : vector<6x6x6x32xf32> to vector<4x4x4x32xf32>
    %553 = vector.shape_cast %552 : vector<4x4x4x32xf32> to vector<2x2x2x2x4x32xf32>
    %554 = vector.extract_strided_slice %553 {offsets = [0, 0, 0, 0, 0, 0], sizes = [2, 1, 2, 1, 4, 32], strides = [1, 1, 1, 1, 1, 1]} : vector<2x2x2x2x4x32xf32> to vector<2x1x2x1x4x32xf32>
    %555 = vector.shape_cast %554 : vector<2x1x2x1x4x32xf32> to vector<2x2x4x32xf32>
    %556 = vector.extract_strided_slice %490 {offsets = [6, 0], sizes = [1, 32], strides = [1, 1]} : vector<27x32xf32> to vector<1x32xf32>
    %557 = vector.shape_cast %556 : vector<1x32xf32> to vector<32xf32>
    %558 = vector.shape_cast %557 : vector<32xf32> to vector<1x1x1x32xf32>
    %559 = vector.broadcast %558 : vector<1x1x1x32xf32> to vector<2x2x4x32xf32>
    %560 = arith.mulf %555, %559 : vector<2x2x4x32xf32>
    %561 = arith.addf %551, %560 : vector<2x2x4x32xf32>
    %562 = vector.extract_strided_slice %489 {offsets = [2, 1, 0, 0], sizes = [4, 4, 4, 32], strides = [1, 1, 1, 1]} : vector<6x6x6x32xf32> to vector<4x4x4x32xf32>
    %563 = vector.shape_cast %562 : vector<4x4x4x32xf32> to vector<2x2x2x2x4x32xf32>
    %564 = vector.extract_strided_slice %563 {offsets = [0, 0, 0, 0, 0, 0], sizes = [2, 1, 2, 1, 4, 32], strides = [1, 1, 1, 1, 1, 1]} : vector<2x2x2x2x4x32xf32> to vector<2x1x2x1x4x32xf32>
    %565 = vector.shape_cast %564 : vector<2x1x2x1x4x32xf32> to vector<2x2x4x32xf32>
    %566 = vector.extract_strided_slice %490 {offsets = [7, 0], sizes = [1, 32], strides = [1, 1]} : vector<27x32xf32> to vector<1x32xf32>
    %567 = vector.shape_cast %566 : vector<1x32xf32> to vector<32xf32>
    %568 = vector.shape_cast %567 : vector<32xf32> to vector<1x1x1x32xf32>
    %569 = vector.broadcast %568 : vector<1x1x1x32xf32> to vector<2x2x4x32xf32>
    %570 = arith.mulf %565, %569 : vector<2x2x4x32xf32>
    %571 = arith.addf %561, %570 : vector<2x2x4x32xf32>
    %572 = vector.extract_strided_slice %489 {offsets = [2, 2, 0, 0], sizes = [4, 4, 4, 32], strides = [1, 1, 1, 1]} : vector<6x6x6x32xf32> to vector<4x4x4x32xf32>
    %573 = vector.shape_cast %572 : vector<4x4x4x32xf32> to vector<2x2x2x2x4x32xf32>
    %574 = vector.extract_strided_slice %573 {offsets = [0, 0, 0, 0, 0, 0], sizes = [2, 1, 2, 1, 4, 32], strides = [1, 1, 1, 1, 1, 1]} : vector<2x2x2x2x4x32xf32> to vector<2x1x2x1x4x32xf32>
    %575 = vector.shape_cast %574 : vector<2x1x2x1x4x32xf32> to vector<2x2x4x32xf32>
    %576 = vector.extract_strided_slice %490 {offsets = [8, 0], sizes = [1, 32], strides = [1, 1]} : vector<27x32xf32> to vector<1x32xf32>
    %577 = vector.shape_cast %576 : vector<1x32xf32> to vector<32xf32>
    %578 = vector.shape_cast %577 : vector<32xf32> to vector<1x1x1x32xf32>
    %579 = vector.broadcast %578 : vector<1x1x1x32xf32> to vector<2x2x4x32xf32>
    %580 = arith.mulf %575, %579 : vector<2x2x4x32xf32>
    %581 = arith.addf %571, %580 : vector<2x2x4x32xf32>
    %cst_91 = arith.constant 0.000000e+00 : f32
    %582 = vector.broadcast %cst_91 : f32 to vector<2x2x4x32xf32>
    %583 = vector.extract_strided_slice %489 {offsets = [0, 0, 1, 0], sizes = [4, 4, 4, 32], strides = [1, 1, 1, 1]} : vector<6x6x6x32xf32> to vector<4x4x4x32xf32>
    %584 = vector.shape_cast %583 : vector<4x4x4x32xf32> to vector<2x2x2x2x4x32xf32>
    %585 = vector.extract_strided_slice %584 {offsets = [0, 0, 0, 0, 0, 0], sizes = [2, 1, 2, 1, 4, 32], strides = [1, 1, 1, 1, 1, 1]} : vector<2x2x2x2x4x32xf32> to vector<2x1x2x1x4x32xf32>
    %586 = vector.shape_cast %585 : vector<2x1x2x1x4x32xf32> to vector<2x2x4x32xf32>
    %587 = vector.extract_strided_slice %490 {offsets = [9, 0], sizes = [1, 32], strides = [1, 1]} : vector<27x32xf32> to vector<1x32xf32>
    %588 = vector.shape_cast %587 : vector<1x32xf32> to vector<32xf32>
    %589 = vector.shape_cast %588 : vector<32xf32> to vector<1x1x1x32xf32>
    %590 = vector.broadcast %589 : vector<1x1x1x32xf32> to vector<2x2x4x32xf32>
    %591 = arith.mulf %586, %590 : vector<2x2x4x32xf32>
    %592 = arith.addf %582, %591 : vector<2x2x4x32xf32>
    %593 = vector.extract_strided_slice %489 {offsets = [0, 1, 1, 0], sizes = [4, 4, 4, 32], strides = [1, 1, 1, 1]} : vector<6x6x6x32xf32> to vector<4x4x4x32xf32>
    %594 = vector.shape_cast %593 : vector<4x4x4x32xf32> to vector<2x2x2x2x4x32xf32>
    %595 = vector.extract_strided_slice %594 {offsets = [0, 0, 0, 0, 0, 0], sizes = [2, 1, 2, 1, 4, 32], strides = [1, 1, 1, 1, 1, 1]} : vector<2x2x2x2x4x32xf32> to vector<2x1x2x1x4x32xf32>
    %596 = vector.shape_cast %595 : vector<2x1x2x1x4x32xf32> to vector<2x2x4x32xf32>
    %597 = vector.extract_strided_slice %490 {offsets = [10, 0], sizes = [1, 32], strides = [1, 1]} : vector<27x32xf32> to vector<1x32xf32>
    %598 = vector.shape_cast %597 : vector<1x32xf32> to vector<32xf32>
    %599 = vector.shape_cast %598 : vector<32xf32> to vector<1x1x1x32xf32>
    %600 = vector.broadcast %599 : vector<1x1x1x32xf32> to vector<2x2x4x32xf32>
    %601 = arith.mulf %596, %600 : vector<2x2x4x32xf32>
    %602 = arith.addf %592, %601 : vector<2x2x4x32xf32>
    %603 = vector.extract_strided_slice %489 {offsets = [0, 2, 1, 0], sizes = [4, 4, 4, 32], strides = [1, 1, 1, 1]} : vector<6x6x6x32xf32> to vector<4x4x4x32xf32>
    %604 = vector.shape_cast %603 : vector<4x4x4x32xf32> to vector<2x2x2x2x4x32xf32>
    %605 = vector.extract_strided_slice %604 {offsets = [0, 0, 0, 0, 0, 0], sizes = [2, 1, 2, 1, 4, 32], strides = [1, 1, 1, 1, 1, 1]} : vector<2x2x2x2x4x32xf32> to vector<2x1x2x1x4x32xf32>
    %606 = vector.shape_cast %605 : vector<2x1x2x1x4x32xf32> to vector<2x2x4x32xf32>
    %607 = vector.extract_strided_slice %490 {offsets = [11, 0], sizes = [1, 32], strides = [1, 1]} : vector<27x32xf32> to vector<1x32xf32>
    %608 = vector.shape_cast %607 : vector<1x32xf32> to vector<32xf32>
    %609 = vector.shape_cast %608 : vector<32xf32> to vector<1x1x1x32xf32>
    %610 = vector.broadcast %609 : vector<1x1x1x32xf32> to vector<2x2x4x32xf32>
    %611 = arith.mulf %606, %610 : vector<2x2x4x32xf32>
    %612 = arith.addf %602, %611 : vector<2x2x4x32xf32>
    %613 = vector.extract_strided_slice %489 {offsets = [1, 0, 1, 0], sizes = [4, 4, 4, 32], strides = [1, 1, 1, 1]} : vector<6x6x6x32xf32> to vector<4x4x4x32xf32>
    %614 = vector.shape_cast %613 : vector<4x4x4x32xf32> to vector<2x2x2x2x4x32xf32>
    %615 = vector.extract_strided_slice %614 {offsets = [0, 0, 0, 0, 0, 0], sizes = [2, 1, 2, 1, 4, 32], strides = [1, 1, 1, 1, 1, 1]} : vector<2x2x2x2x4x32xf32> to vector<2x1x2x1x4x32xf32>
    %616 = vector.shape_cast %615 : vector<2x1x2x1x4x32xf32> to vector<2x2x4x32xf32>
    %617 = vector.extract_strided_slice %490 {offsets = [12, 0], sizes = [1, 32], strides = [1, 1]} : vector<27x32xf32> to vector<1x32xf32>
    %618 = vector.shape_cast %617 : vector<1x32xf32> to vector<32xf32>
    %619 = vector.shape_cast %618 : vector<32xf32> to vector<1x1x1x32xf32>
    %620 = vector.broadcast %619 : vector<1x1x1x32xf32> to vector<2x2x4x32xf32>
    %621 = arith.mulf %616, %620 : vector<2x2x4x32xf32>
    %622 = arith.addf %612, %621 : vector<2x2x4x32xf32>
    %623 = vector.extract_strided_slice %489 {offsets = [1, 1, 1, 0], sizes = [4, 4, 4, 32], strides = [1, 1, 1, 1]} : vector<6x6x6x32xf32> to vector<4x4x4x32xf32>
    %624 = vector.shape_cast %623 : vector<4x4x4x32xf32> to vector<2x2x2x2x4x32xf32>
    %625 = vector.extract_strided_slice %624 {offsets = [0, 0, 0, 0, 0, 0], sizes = [2, 1, 2, 1, 4, 32], strides = [1, 1, 1, 1, 1, 1]} : vector<2x2x2x2x4x32xf32> to vector<2x1x2x1x4x32xf32>
    %626 = vector.shape_cast %625 : vector<2x1x2x1x4x32xf32> to vector<2x2x4x32xf32>
    %627 = vector.extract_strided_slice %490 {offsets = [13, 0], sizes = [1, 32], strides = [1, 1]} : vector<27x32xf32> to vector<1x32xf32>
    %628 = vector.shape_cast %627 : vector<1x32xf32> to vector<32xf32>
    %629 = vector.shape_cast %628 : vector<32xf32> to vector<1x1x1x32xf32>
    %630 = vector.broadcast %629 : vector<1x1x1x32xf32> to vector<2x2x4x32xf32>
    %631 = arith.mulf %626, %630 : vector<2x2x4x32xf32>
    %632 = arith.addf %622, %631 : vector<2x2x4x32xf32>
    %633 = vector.extract_strided_slice %489 {offsets = [1, 2, 1, 0], sizes = [4, 4, 4, 32], strides = [1, 1, 1, 1]} : vector<6x6x6x32xf32> to vector<4x4x4x32xf32>
    %634 = vector.shape_cast %633 : vector<4x4x4x32xf32> to vector<2x2x2x2x4x32xf32>
    %635 = vector.extract_strided_slice %634 {offsets = [0, 0, 0, 0, 0, 0], sizes = [2, 1, 2, 1, 4, 32], strides = [1, 1, 1, 1, 1, 1]} : vector<2x2x2x2x4x32xf32> to vector<2x1x2x1x4x32xf32>
    %636 = vector.shape_cast %635 : vector<2x1x2x1x4x32xf32> to vector<2x2x4x32xf32>
    %637 = vector.extract_strided_slice %490 {offsets = [14, 0], sizes = [1, 32], strides = [1, 1]} : vector<27x32xf32> to vector<1x32xf32>
    %638 = vector.shape_cast %637 : vector<1x32xf32> to vector<32xf32>
    %639 = vector.shape_cast %638 : vector<32xf32> to vector<1x1x1x32xf32>
    %640 = vector.broadcast %639 : vector<1x1x1x32xf32> to vector<2x2x4x32xf32>
    %641 = arith.mulf %636, %640 : vector<2x2x4x32xf32>
    %642 = arith.addf %632, %641 : vector<2x2x4x32xf32>
    %643 = vector.extract_strided_slice %489 {offsets = [2, 0, 1, 0], sizes = [4, 4, 4, 32], strides = [1, 1, 1, 1]} : vector<6x6x6x32xf32> to vector<4x4x4x32xf32>
    %644 = vector.shape_cast %643 : vector<4x4x4x32xf32> to vector<2x2x2x2x4x32xf32>
    %645 = vector.extract_strided_slice %644 {offsets = [0, 0, 0, 0, 0, 0], sizes = [2, 1, 2, 1, 4, 32], strides = [1, 1, 1, 1, 1, 1]} : vector<2x2x2x2x4x32xf32> to vector<2x1x2x1x4x32xf32>
    %646 = vector.shape_cast %645 : vector<2x1x2x1x4x32xf32> to vector<2x2x4x32xf32>
    %647 = vector.extract_strided_slice %490 {offsets = [15, 0], sizes = [1, 32], strides = [1, 1]} : vector<27x32xf32> to vector<1x32xf32>
    %648 = vector.shape_cast %647 : vector<1x32xf32> to vector<32xf32>
    %649 = vector.shape_cast %648 : vector<32xf32> to vector<1x1x1x32xf32>
    %650 = vector.broadcast %649 : vector<1x1x1x32xf32> to vector<2x2x4x32xf32>
    %651 = arith.mulf %646, %650 : vector<2x2x4x32xf32>
    %652 = arith.addf %642, %651 : vector<2x2x4x32xf32>
    %653 = vector.extract_strided_slice %489 {offsets = [2, 1, 1, 0], sizes = [4, 4, 4, 32], strides = [1, 1, 1, 1]} : vector<6x6x6x32xf32> to vector<4x4x4x32xf32>
    %654 = vector.shape_cast %653 : vector<4x4x4x32xf32> to vector<2x2x2x2x4x32xf32>
    %655 = vector.extract_strided_slice %654 {offsets = [0, 0, 0, 0, 0, 0], sizes = [2, 1, 2, 1, 4, 32], strides = [1, 1, 1, 1, 1, 1]} : vector<2x2x2x2x4x32xf32> to vector<2x1x2x1x4x32xf32>
    %656 = vector.shape_cast %655 : vector<2x1x2x1x4x32xf32> to vector<2x2x4x32xf32>
    %657 = vector.extract_strided_slice %490 {offsets = [16, 0], sizes = [1, 32], strides = [1, 1]} : vector<27x32xf32> to vector<1x32xf32>
    %658 = vector.shape_cast %657 : vector<1x32xf32> to vector<32xf32>
    %659 = vector.shape_cast %658 : vector<32xf32> to vector<1x1x1x32xf32>
    %660 = vector.broadcast %659 : vector<1x1x1x32xf32> to vector<2x2x4x32xf32>
    %661 = arith.mulf %656, %660 : vector<2x2x4x32xf32>
    %662 = arith.addf %652, %661 : vector<2x2x4x32xf32>
    %663 = vector.extract_strided_slice %489 {offsets = [2, 2, 1, 0], sizes = [4, 4, 4, 32], strides = [1, 1, 1, 1]} : vector<6x6x6x32xf32> to vector<4x4x4x32xf32>
    %664 = vector.shape_cast %663 : vector<4x4x4x32xf32> to vector<2x2x2x2x4x32xf32>
    %665 = vector.extract_strided_slice %664 {offsets = [0, 0, 0, 0, 0, 0], sizes = [2, 1, 2, 1, 4, 32], strides = [1, 1, 1, 1, 1, 1]} : vector<2x2x2x2x4x32xf32> to vector<2x1x2x1x4x32xf32>
    %666 = vector.shape_cast %665 : vector<2x1x2x1x4x32xf32> to vector<2x2x4x32xf32>
    %667 = vector.extract_strided_slice %490 {offsets = [17, 0], sizes = [1, 32], strides = [1, 1]} : vector<27x32xf32> to vector<1x32xf32>
    %668 = vector.shape_cast %667 : vector<1x32xf32> to vector<32xf32>
    %669 = vector.shape_cast %668 : vector<32xf32> to vector<1x1x1x32xf32>
    %670 = vector.broadcast %669 : vector<1x1x1x32xf32> to vector<2x2x4x32xf32>
    %671 = arith.mulf %666, %670 : vector<2x2x4x32xf32>
    %672 = arith.addf %662, %671 : vector<2x2x4x32xf32>
    %cst_92 = arith.constant 0.000000e+00 : f32
    %673 = vector.broadcast %cst_92 : f32 to vector<2x2x4x32xf32>
    %674 = vector.extract_strided_slice %489 {offsets = [0, 0, 2, 0], sizes = [4, 4, 4, 32], strides = [1, 1, 1, 1]} : vector<6x6x6x32xf32> to vector<4x4x4x32xf32>
    %675 = vector.shape_cast %674 : vector<4x4x4x32xf32> to vector<2x2x2x2x4x32xf32>
    %676 = vector.extract_strided_slice %675 {offsets = [0, 0, 0, 0, 0, 0], sizes = [2, 1, 2, 1, 4, 32], strides = [1, 1, 1, 1, 1, 1]} : vector<2x2x2x2x4x32xf32> to vector<2x1x2x1x4x32xf32>
    %677 = vector.shape_cast %676 : vector<2x1x2x1x4x32xf32> to vector<2x2x4x32xf32>
    %678 = vector.extract_strided_slice %490 {offsets = [18, 0], sizes = [1, 32], strides = [1, 1]} : vector<27x32xf32> to vector<1x32xf32>
    %679 = vector.shape_cast %678 : vector<1x32xf32> to vector<32xf32>
    %680 = vector.shape_cast %679 : vector<32xf32> to vector<1x1x1x32xf32>
    %681 = vector.broadcast %680 : vector<1x1x1x32xf32> to vector<2x2x4x32xf32>
    %682 = arith.mulf %677, %681 : vector<2x2x4x32xf32>
    %683 = arith.addf %673, %682 : vector<2x2x4x32xf32>
    %684 = vector.extract_strided_slice %489 {offsets = [0, 1, 2, 0], sizes = [4, 4, 4, 32], strides = [1, 1, 1, 1]} : vector<6x6x6x32xf32> to vector<4x4x4x32xf32>
    %685 = vector.shape_cast %684 : vector<4x4x4x32xf32> to vector<2x2x2x2x4x32xf32>
    %686 = vector.extract_strided_slice %685 {offsets = [0, 0, 0, 0, 0, 0], sizes = [2, 1, 2, 1, 4, 32], strides = [1, 1, 1, 1, 1, 1]} : vector<2x2x2x2x4x32xf32> to vector<2x1x2x1x4x32xf32>
    %687 = vector.shape_cast %686 : vector<2x1x2x1x4x32xf32> to vector<2x2x4x32xf32>
    %688 = vector.extract_strided_slice %490 {offsets = [19, 0], sizes = [1, 32], strides = [1, 1]} : vector<27x32xf32> to vector<1x32xf32>
    %689 = vector.shape_cast %688 : vector<1x32xf32> to vector<32xf32>
    %690 = vector.shape_cast %689 : vector<32xf32> to vector<1x1x1x32xf32>
    %691 = vector.broadcast %690 : vector<1x1x1x32xf32> to vector<2x2x4x32xf32>
    %692 = arith.mulf %687, %691 : vector<2x2x4x32xf32>
    %693 = arith.addf %683, %692 : vector<2x2x4x32xf32>
    %694 = vector.extract_strided_slice %489 {offsets = [0, 2, 2, 0], sizes = [4, 4, 4, 32], strides = [1, 1, 1, 1]} : vector<6x6x6x32xf32> to vector<4x4x4x32xf32>
    %695 = vector.shape_cast %694 : vector<4x4x4x32xf32> to vector<2x2x2x2x4x32xf32>
    %696 = vector.extract_strided_slice %695 {offsets = [0, 0, 0, 0, 0, 0], sizes = [2, 1, 2, 1, 4, 32], strides = [1, 1, 1, 1, 1, 1]} : vector<2x2x2x2x4x32xf32> to vector<2x1x2x1x4x32xf32>
    %697 = vector.shape_cast %696 : vector<2x1x2x1x4x32xf32> to vector<2x2x4x32xf32>
    %698 = vector.extract_strided_slice %490 {offsets = [20, 0], sizes = [1, 32], strides = [1, 1]} : vector<27x32xf32> to vector<1x32xf32>
    %699 = vector.shape_cast %698 : vector<1x32xf32> to vector<32xf32>
    %700 = vector.shape_cast %699 : vector<32xf32> to vector<1x1x1x32xf32>
    %701 = vector.broadcast %700 : vector<1x1x1x32xf32> to vector<2x2x4x32xf32>
    %702 = arith.mulf %697, %701 : vector<2x2x4x32xf32>
    %703 = arith.addf %693, %702 : vector<2x2x4x32xf32>
    %704 = vector.extract_strided_slice %489 {offsets = [1, 0, 2, 0], sizes = [4, 4, 4, 32], strides = [1, 1, 1, 1]} : vector<6x6x6x32xf32> to vector<4x4x4x32xf32>
    %705 = vector.shape_cast %704 : vector<4x4x4x32xf32> to vector<2x2x2x2x4x32xf32>
    %706 = vector.extract_strided_slice %705 {offsets = [0, 0, 0, 0, 0, 0], sizes = [2, 1, 2, 1, 4, 32], strides = [1, 1, 1, 1, 1, 1]} : vector<2x2x2x2x4x32xf32> to vector<2x1x2x1x4x32xf32>
    %707 = vector.shape_cast %706 : vector<2x1x2x1x4x32xf32> to vector<2x2x4x32xf32>
    %708 = vector.extract_strided_slice %490 {offsets = [21, 0], sizes = [1, 32], strides = [1, 1]} : vector<27x32xf32> to vector<1x32xf32>
    %709 = vector.shape_cast %708 : vector<1x32xf32> to vector<32xf32>
    %710 = vector.shape_cast %709 : vector<32xf32> to vector<1x1x1x32xf32>
    %711 = vector.broadcast %710 : vector<1x1x1x32xf32> to vector<2x2x4x32xf32>
    %712 = arith.mulf %707, %711 : vector<2x2x4x32xf32>
    %713 = arith.addf %703, %712 : vector<2x2x4x32xf32>
    %714 = vector.extract_strided_slice %489 {offsets = [1, 1, 2, 0], sizes = [4, 4, 4, 32], strides = [1, 1, 1, 1]} : vector<6x6x6x32xf32> to vector<4x4x4x32xf32>
    %715 = vector.shape_cast %714 : vector<4x4x4x32xf32> to vector<2x2x2x2x4x32xf32>
    %716 = vector.extract_strided_slice %715 {offsets = [0, 0, 0, 0, 0, 0], sizes = [2, 1, 2, 1, 4, 32], strides = [1, 1, 1, 1, 1, 1]} : vector<2x2x2x2x4x32xf32> to vector<2x1x2x1x4x32xf32>
    %717 = vector.shape_cast %716 : vector<2x1x2x1x4x32xf32> to vector<2x2x4x32xf32>
    %718 = vector.extract_strided_slice %490 {offsets = [22, 0], sizes = [1, 32], strides = [1, 1]} : vector<27x32xf32> to vector<1x32xf32>
    %719 = vector.shape_cast %718 : vector<1x32xf32> to vector<32xf32>
    %720 = vector.shape_cast %719 : vector<32xf32> to vector<1x1x1x32xf32>
    %721 = vector.broadcast %720 : vector<1x1x1x32xf32> to vector<2x2x4x32xf32>
    %722 = arith.mulf %717, %721 : vector<2x2x4x32xf32>
    %723 = arith.addf %713, %722 : vector<2x2x4x32xf32>
    %724 = vector.extract_strided_slice %489 {offsets = [1, 2, 2, 0], sizes = [4, 4, 4, 32], strides = [1, 1, 1, 1]} : vector<6x6x6x32xf32> to vector<4x4x4x32xf32>
    %725 = vector.shape_cast %724 : vector<4x4x4x32xf32> to vector<2x2x2x2x4x32xf32>
    %726 = vector.extract_strided_slice %725 {offsets = [0, 0, 0, 0, 0, 0], sizes = [2, 1, 2, 1, 4, 32], strides = [1, 1, 1, 1, 1, 1]} : vector<2x2x2x2x4x32xf32> to vector<2x1x2x1x4x32xf32>
    %727 = vector.shape_cast %726 : vector<2x1x2x1x4x32xf32> to vector<2x2x4x32xf32>
    %728 = vector.extract_strided_slice %490 {offsets = [23, 0], sizes = [1, 32], strides = [1, 1]} : vector<27x32xf32> to vector<1x32xf32>
    %729 = vector.shape_cast %728 : vector<1x32xf32> to vector<32xf32>
    %730 = vector.shape_cast %729 : vector<32xf32> to vector<1x1x1x32xf32>
    %731 = vector.broadcast %730 : vector<1x1x1x32xf32> to vector<2x2x4x32xf32>
    %732 = arith.mulf %727, %731 : vector<2x2x4x32xf32>
    %733 = arith.addf %723, %732 : vector<2x2x4x32xf32>
    %734 = vector.extract_strided_slice %489 {offsets = [2, 0, 2, 0], sizes = [4, 4, 4, 32], strides = [1, 1, 1, 1]} : vector<6x6x6x32xf32> to vector<4x4x4x32xf32>
    %735 = vector.shape_cast %734 : vector<4x4x4x32xf32> to vector<2x2x2x2x4x32xf32>
    %736 = vector.extract_strided_slice %735 {offsets = [0, 0, 0, 0, 0, 0], sizes = [2, 1, 2, 1, 4, 32], strides = [1, 1, 1, 1, 1, 1]} : vector<2x2x2x2x4x32xf32> to vector<2x1x2x1x4x32xf32>
    %737 = vector.shape_cast %736 : vector<2x1x2x1x4x32xf32> to vector<2x2x4x32xf32>
    %738 = vector.extract_strided_slice %490 {offsets = [24, 0], sizes = [1, 32], strides = [1, 1]} : vector<27x32xf32> to vector<1x32xf32>
    %739 = vector.shape_cast %738 : vector<1x32xf32> to vector<32xf32>
    %740 = vector.shape_cast %739 : vector<32xf32> to vector<1x1x1x32xf32>
    %741 = vector.broadcast %740 : vector<1x1x1x32xf32> to vector<2x2x4x32xf32>
    %742 = arith.mulf %737, %741 : vector<2x2x4x32xf32>
    %743 = arith.addf %733, %742 : vector<2x2x4x32xf32>
    %744 = vector.extract_strided_slice %489 {offsets = [2, 1, 2, 0], sizes = [4, 4, 4, 32], strides = [1, 1, 1, 1]} : vector<6x6x6x32xf32> to vector<4x4x4x32xf32>
    %745 = vector.shape_cast %744 : vector<4x4x4x32xf32> to vector<2x2x2x2x4x32xf32>
    %746 = vector.extract_strided_slice %745 {offsets = [0, 0, 0, 0, 0, 0], sizes = [2, 1, 2, 1, 4, 32], strides = [1, 1, 1, 1, 1, 1]} : vector<2x2x2x2x4x32xf32> to vector<2x1x2x1x4x32xf32>
    %747 = vector.shape_cast %746 : vector<2x1x2x1x4x32xf32> to vector<2x2x4x32xf32>
    %748 = vector.extract_strided_slice %490 {offsets = [25, 0], sizes = [1, 32], strides = [1, 1]} : vector<27x32xf32> to vector<1x32xf32>
    %749 = vector.shape_cast %748 : vector<1x32xf32> to vector<32xf32>
    %750 = vector.shape_cast %749 : vector<32xf32> to vector<1x1x1x32xf32>
    %751 = vector.broadcast %750 : vector<1x1x1x32xf32> to vector<2x2x4x32xf32>
    %752 = arith.mulf %747, %751 : vector<2x2x4x32xf32>
    %753 = arith.addf %743, %752 : vector<2x2x4x32xf32>
    %754 = vector.extract_strided_slice %489 {offsets = [2, 2, 2, 0], sizes = [4, 4, 4, 32], strides = [1, 1, 1, 1]} : vector<6x6x6x32xf32> to vector<4x4x4x32xf32>
    %755 = vector.shape_cast %754 : vector<4x4x4x32xf32> to vector<2x2x2x2x4x32xf32>
    %756 = vector.extract_strided_slice %755 {offsets = [0, 0, 0, 0, 0, 0], sizes = [2, 1, 2, 1, 4, 32], strides = [1, 1, 1, 1, 1, 1]} : vector<2x2x2x2x4x32xf32> to vector<2x1x2x1x4x32xf32>
    %757 = vector.shape_cast %756 : vector<2x1x2x1x4x32xf32> to vector<2x2x4x32xf32>
    %758 = vector.extract_strided_slice %490 {offsets = [26, 0], sizes = [1, 32], strides = [1, 1]} : vector<27x32xf32> to vector<1x32xf32>
    %759 = vector.shape_cast %758 : vector<1x32xf32> to vector<32xf32>
    %760 = vector.shape_cast %759 : vector<32xf32> to vector<1x1x1x32xf32>
    %761 = vector.broadcast %760 : vector<1x1x1x32xf32> to vector<2x2x4x32xf32>
    %762 = arith.mulf %757, %761 : vector<2x2x4x32xf32>
    %763 = arith.addf %753, %762 : vector<2x2x4x32xf32>
    %764 = arith.addf %581, %672 : vector<2x2x4x32xf32>
    %765 = arith.addf %764, %763 : vector<2x2x4x32xf32>
    %c0_93 = arith.constant 0 : index
    %c0_94 = arith.constant 0 : index
    %766 = vector.load %arg26[%c0_93, %c0_94] : memref<1x32xf32, #tpu.memory_space<vmem>>, vector<1x32xf32>
    %767 = vector.shape_cast %766 : vector<1x32xf32> to vector<1x1x1x32xf32>
    %768 = vector.broadcast %767 : vector<1x1x1x32xf32> to vector<2x2x4x32xf32>
    %769 = arith.mulf %765, %768 : vector<2x2x4x32xf32>
    %c0_95 = arith.constant 0 : index
    %c0_96 = arith.constant 0 : index
    %770 = vector.load %arg27[%c0_95, %c0_96] : memref<1x32xf32, #tpu.memory_space<vmem>>, vector<1x32xf32>
    %771 = vector.shape_cast %770 : vector<1x32xf32> to vector<1x1x1x32xf32>
    %772 = vector.broadcast %771 : vector<1x1x1x32xf32> to vector<2x2x4x32xf32>
    %773 = arith.addf %769, %772 : vector<2x2x4x32xf32>
    %774 = vector.shape_cast %773 : vector<2x2x4x32xf32> to vector<16x32xf32>
    %cst_97 = arith.constant dense<0.000000e+00> : vector<32xf32>
    %775 = vector.multi_reduction <add>, %774, %cst_97 [0] : vector<16x32xf32> to vector<32xf32>
    %776 = vector.shape_cast %775 : vector<32xf32> to vector<1x32xf32>
    %cst_98 = arith.constant 1.600000e+01 : f32
    %777 = vector.broadcast %cst_98 : f32 to vector<1x32xf32>
    %778 = arith.divf %776, %777 : vector<1x32xf32>
    %c0_99 = arith.constant 0 : index
    %c0_100 = arith.constant 0 : index
    %779 = vector.load %arg28[%c0_99, %c0_100] : memref<32x8xf32, #tpu.memory_space<vmem>>, vector<32x8xf32>
    %cst_101 = arith.constant dense<0.000000e+00> : vector<1x8xf32>
    %780 = tpu.matmul %778, %779, %cst_101 {dimension_numbers = #tpu.dot_dimension_numbers<[1], [0], [0], [1], [0, 0, 1, 1], [], []>} : vector<1x32xf32>, vector<32x8xf32>, vector<1x8xf32> -> vector<1x8xf32>
    %c0_102 = arith.constant 0 : index
    %c0_103 = arith.constant 0 : index
    %781 = vector.load %arg29[%c0_102, %c0_103] : memref<1x8xf32, #tpu.memory_space<vmem>>, vector<1x8xf32>
    %782 = arith.addf %780, %781 : vector<1x8xf32>
    %cst_104 = arith.constant 0.000000e+00 : f32
    %783 = vector.broadcast %cst_104 : f32 to vector<1x8xf32>
    %784 = arith.maximumf %782, %783 : vector<1x8xf32>
    %c0_105 = arith.constant 0 : index
    %c0_106 = arith.constant 0 : index
    %785 = vector.load %arg30[%c0_105, %c0_106] : memref<8x32xf32, #tpu.memory_space<vmem>>, vector<8x32xf32>
    %cst_107 = arith.constant dense<0.000000e+00> : vector<1x32xf32>
    %786 = tpu.matmul %784, %785, %cst_107 {dimension_numbers = #tpu.dot_dimension_numbers<[1], [0], [0], [1], [0, 0, 1, 1], [], []>} : vector<1x8xf32>, vector<8x32xf32>, vector<1x32xf32> -> vector<1x32xf32>
    %c0_108 = arith.constant 0 : index
    %c0_109 = arith.constant 0 : index
    %787 = vector.load %arg31[%c0_108, %c0_109] : memref<1x32xf32, #tpu.memory_space<vmem>>, vector<1x32xf32>
    %788 = arith.addf %786, %787 : vector<1x32xf32>
    %789 = arith.negf %788 : vector<1x32xf32>
    %790 = math.exp %789 : vector<1x32xf32>
    %cst_110 = arith.constant 1.000000e+00 : f32
    %791 = vector.broadcast %cst_110 : f32 to vector<1x32xf32>
    %792 = arith.addf %791, %790 : vector<1x32xf32>
    %793 = arith.divf %791, %792 : vector<1x32xf32>
    %794 = vector.broadcast %793 : vector<1x32xf32> to vector<16x32xf32>
    %795 = arith.mulf %774, %794 : vector<16x32xf32>
    %796 = arith.negf %795 : vector<16x32xf32>
    %797 = math.exp %796 : vector<16x32xf32>
    %cst_111 = arith.constant 1.000000e+00 : f32
    %798 = vector.broadcast %cst_111 : f32 to vector<16x32xf32>
    %799 = arith.addf %798, %797 : vector<16x32xf32>
    %800 = arith.divf %798, %799 : vector<16x32xf32>
    %801 = arith.mulf %795, %800 : vector<16x32xf32>
    %c0_112 = arith.constant 0 : index
    %c0_113 = arith.constant 0 : index
    %802 = vector.load %arg32[%c0_112, %c0_113] : memref<32x16xf32, #tpu.memory_space<vmem>>, vector<32x16xf32>
    %cst_114 = arith.constant dense<0.000000e+00> : vector<16x16xf32>
    %803 = tpu.matmul %801, %802, %cst_114 {dimension_numbers = #tpu.dot_dimension_numbers<[1], [0], [0], [1], [0, 0, 1, 1], [], []>} : vector<16x32xf32>, vector<32x16xf32>, vector<16x16xf32> -> vector<16x16xf32>
    %c0_115 = arith.constant 0 : index
    %c0_116 = arith.constant 0 : index
    %804 = vector.load %arg33[%c0_115, %c0_116] : memref<1x16xf32, #tpu.memory_space<vmem>>, vector<1x16xf32>
    %805 = vector.broadcast %804 : vector<1x16xf32> to vector<16x16xf32>
    %806 = arith.mulf %803, %805 : vector<16x16xf32>
    %c0_117 = arith.constant 0 : index
    %c0_118 = arith.constant 0 : index
    %807 = vector.load %arg34[%c0_117, %c0_118] : memref<1x16xf32, #tpu.memory_space<vmem>>, vector<1x16xf32>
    %808 = vector.broadcast %807 : vector<1x16xf32> to vector<16x16xf32>
    %809 = arith.addf %806, %808 : vector<16x16xf32>
    %810 = vector.shape_cast %471 : vector<4x4x4x8xf32> to vector<2x2x2x2x4x8xf32>
    %811 = vector.extract_strided_slice %810 {offsets = [0, 0, 0, 0, 0, 0], sizes = [2, 1, 2, 1, 4, 8], strides = [1, 1, 1, 1, 1, 1]} : vector<2x2x2x2x4x8xf32> to vector<2x1x2x1x4x8xf32>
    %812 = vector.shape_cast %811 : vector<2x1x2x1x4x8xf32> to vector<2x2x4x8xf32>
    %813 = vector.shape_cast %812 : vector<2x2x4x8xf32> to vector<16x8xf32>
    %c0_119 = arith.constant 0 : index
    %c0_120 = arith.constant 0 : index
    %814 = vector.load %arg35[%c0_119, %c0_120] : memref<8x16xf32, #tpu.memory_space<vmem>>, vector<8x16xf32>
    %cst_121 = arith.constant dense<0.000000e+00> : vector<16x16xf32>
    %815 = tpu.matmul %813, %814, %cst_121 {dimension_numbers = #tpu.dot_dimension_numbers<[1], [0], [0], [1], [0, 0, 1, 1], [], []>} : vector<16x8xf32>, vector<8x16xf32>, vector<16x16xf32> -> vector<16x16xf32>
    %c0_122 = arith.constant 0 : index
    %c0_123 = arith.constant 0 : index
    %816 = vector.load %arg36[%c0_122, %c0_123] : memref<1x16xf32, #tpu.memory_space<vmem>>, vector<1x16xf32>
    %817 = vector.broadcast %816 : vector<1x16xf32> to vector<16x16xf32>
    %818 = arith.mulf %815, %817 : vector<16x16xf32>
    %c0_124 = arith.constant 0 : index
    %c0_125 = arith.constant 0 : index
    %819 = vector.load %arg37[%c0_124, %c0_125] : memref<1x16xf32, #tpu.memory_space<vmem>>, vector<1x16xf32>
    %820 = vector.broadcast %819 : vector<1x16xf32> to vector<16x16xf32>
    %821 = arith.addf %818, %820 : vector<16x16xf32>
    %822 = arith.addf %809, %821 : vector<16x16xf32>
    %cst_126 = arith.constant 0.000000e+00 : f32
    %823 = vector.broadcast %cst_126 : f32 to vector<16x16xf32>
    %824 = arith.maximumf %822, %823 : vector<16x16xf32>
    %825 = vector.shape_cast %824 : vector<16x16xf32> to vector<2x2x4x16xf32>
    %c0_127 = arith.constant 0 : index
    %c0_128 = arith.constant 0 : index
    %c0_129 = arith.constant 0 : index
    %c0_130 = arith.constant 0 : index
    %c0_131 = arith.constant 0 : index
    %826 = vector.load %arg38[%c0_127, %c0_128, %c0_129, %c0_130, %c0_131] : memref<1x2x2x4x16xf32, #tpu.memory_space<vmem>>, vector<1x2x2x4x16xf32>
    %827 = vector.shape_cast %826 : vector<1x2x2x4x16xf32> to vector<2x2x4x16xf32>
    %828 = vector.shape_cast %825 : vector<2x2x4x16xf32> to vector<1x2x2x4x16xf32>
    tpu.vector_store %arg38[%c0_127, %c0_128, %c0_129, %c0_130, %c0_131], %828 {strides = array<i32>} : memref<1x2x2x4x16xf32, #tpu.memory_space<vmem>>, vector<1x2x2x4x16xf32>,
    return
  }
  func.func @transform_0(%arg0: i32) -> (i32, i32, i32, i32, i32) {
    %c0_i32 = arith.constant 0 : i32
    %c0_i32_0 = arith.constant 0 : i32
    %c0_i32_1 = arith.constant 0 : i32
    %c0_i32_2 = arith.constant 0 : i32
    %c0_i32_3 = arith.constant 0 : i32
    return %arg0, %c0_i32, %c0_i32_0, %c0_i32_1, %c0_i32_2 : i32, i32, i32, i32, i32
  }
  func.func @transform_1(%arg0: i32) -> (i32, i32) {
    %c0_i32 = arith.constant 0 : i32
    %c0_i32_0 = arith.constant 0 : i32
    %c0_i32_1 = arith.constant 0 : i32
    return %c0_i32, %c0_i32_0 : i32, i32
  }
  func.func @transform_2(%arg0: i32) -> (i32, i32) {
    %c0_i32 = arith.constant 0 : i32
    %c0_i32_0 = arith.constant 0 : i32
    %c0_i32_1 = arith.constant 0 : i32
    return %c0_i32, %c0_i32_0 : i32, i32
  }
  func.func @transform_3(%arg0: i32) -> (i32, i32) {
    %c0_i32 = arith.constant 0 : i32
    %c0_i32_0 = arith.constant 0 : i32
    %c0_i32_1 = arith.constant 0 : i32
    return %c0_i32, %c0_i32_0 : i32, i32
  }
  func.func @transform_4(%arg0: i32) -> (i32, i32) {
    %c0_i32 = arith.constant 0 : i32
    %c0_i32_0 = arith.constant 0 : i32
    %c0_i32_1 = arith.constant 0 : i32
    return %c0_i32, %c0_i32_0 : i32, i32
  }
  func.func @transform_5(%arg0: i32) -> (i32, i32) {
    %c0_i32 = arith.constant 0 : i32
    %c0_i32_0 = arith.constant 0 : i32
    %c0_i32_1 = arith.constant 0 : i32
    return %c0_i32, %c0_i32_0 : i32, i32
  }
  func.func @transform_6(%arg0: i32) -> (i32, i32) {
    %c0_i32 = arith.constant 0 : i32
    %c0_i32_0 = arith.constant 0 : i32
    %c0_i32_1 = arith.constant 0 : i32
    return %c0_i32, %c0_i32_0 : i32, i32
  }
  func.func @transform_7(%arg0: i32) -> (i32, i32) {
    %c0_i32 = arith.constant 0 : i32
    %c0_i32_0 = arith.constant 0 : i32
    %c0_i32_1 = arith.constant 0 : i32
    return %c0_i32, %c0_i32_0 : i32, i32
  }
  func.func @transform_8(%arg0: i32) -> (i32, i32) {
    %c0_i32 = arith.constant 0 : i32
    %c0_i32_0 = arith.constant 0 : i32
    %c0_i32_1 = arith.constant 0 : i32
    return %c0_i32, %c0_i32_0 : i32, i32
  }
  func.func @transform_9(%arg0: i32) -> (i32, i32) {
    %c0_i32 = arith.constant 0 : i32
    %c0_i32_0 = arith.constant 0 : i32
    %c0_i32_1 = arith.constant 0 : i32
    return %c0_i32, %c0_i32_0 : i32, i32
  }
  func.func @transform_10(%arg0: i32) -> (i32, i32) {
    %c0_i32 = arith.constant 0 : i32
    %c0_i32_0 = arith.constant 0 : i32
    %c0_i32_1 = arith.constant 0 : i32
    return %c0_i32, %c0_i32_0 : i32, i32
  }
  func.func @transform_11(%arg0: i32) -> (i32, i32) {
    %c0_i32 = arith.constant 0 : i32
    %c0_i32_0 = arith.constant 0 : i32
    %c0_i32_1 = arith.constant 0 : i32
    return %c0_i32, %c0_i32_0 : i32, i32
  }
  func.func @transform_12(%arg0: i32) -> (i32, i32) {
    %c0_i32 = arith.constant 0 : i32
    %c0_i32_0 = arith.constant 0 : i32
    %c0_i32_1 = arith.constant 0 : i32
    return %c0_i32, %c0_i32_0 : i32, i32
  }
  func.func @transform_13(%arg0: i32) -> (i32, i32) {
    %c0_i32 = arith.constant 0 : i32
    %c0_i32_0 = arith.constant 0 : i32
    %c0_i32_1 = arith.constant 0 : i32
    return %c0_i32, %c0_i32_0 : i32, i32
  }
  func.func @transform_14(%arg0: i32) -> (i32, i32) {
    %c0_i32 = arith.constant 0 : i32
    %c0_i32_0 = arith.constant 0 : i32
    %c0_i32_1 = arith.constant 0 : i32
    return %c0_i32, %c0_i32_0 : i32, i32
  }
  func.func @transform_15(%arg0: i32) -> (i32, i32) {
    %c0_i32 = arith.constant 0 : i32
    %c0_i32_0 = arith.constant 0 : i32
    %c0_i32_1 = arith.constant 0 : i32
    return %c0_i32, %c0_i32_0 : i32, i32
  }
  func.func @transform_16(%arg0: i32) -> (i32, i32) {
    %c0_i32 = arith.constant 0 : i32
    %c0_i32_0 = arith.constant 0 : i32
    %c0_i32_1 = arith.constant 0 : i32
    return %c0_i32, %c0_i32_0 : i32, i32
  }
  func.func @transform_17(%arg0: i32) -> (i32, i32) {
    %c0_i32 = arith.constant 0 : i32
    %c0_i32_0 = arith.constant 0 : i32
    %c0_i32_1 = arith.constant 0 : i32
    return %c0_i32, %c0_i32_0 : i32, i32
  }
  func.func @transform_18(%arg0: i32) -> (i32, i32) {
    %c0_i32 = arith.constant 0 : i32
    %c0_i32_0 = arith.constant 0 : i32
    %c0_i32_1 = arith.constant 0 : i32
    return %c0_i32, %c0_i32_0 : i32, i32
  }
  func.func @transform_19(%arg0: i32) -> (i32, i32) {
    %c0_i32 = arith.constant 0 : i32
    %c0_i32_0 = arith.constant 0 : i32
    %c0_i32_1 = arith.constant 0 : i32
    return %c0_i32, %c0_i32_0 : i32, i32
  }
  func.func @transform_20(%arg0: i32) -> (i32, i32) {
    %c0_i32 = arith.constant 0 : i32
    %c0_i32_0 = arith.constant 0 : i32
    %c0_i32_1 = arith.constant 0 : i32
    return %c0_i32, %c0_i32_0 : i32, i32
  }
  func.func @transform_21(%arg0: i32) -> (i32, i32) {
    %c0_i32 = arith.constant 0 : i32
    %c0_i32_0 = arith.constant 0 : i32
    %c0_i32_1 = arith.constant 0 : i32
    return %c0_i32, %c0_i32_0 : i32, i32
  }
  func.func @transform_22(%arg0: i32) -> (i32, i32) {
    %c0_i32 = arith.constant 0 : i32
    %c0_i32_0 = arith.constant 0 : i32
    %c0_i32_1 = arith.constant 0 : i32
    return %c0_i32, %c0_i32_0 : i32, i32
  }
  func.func @transform_23(%arg0: i32) -> (i32, i32) {
    %c0_i32 = arith.constant 0 : i32
    %c0_i32_0 = arith.constant 0 : i32
    %c0_i32_1 = arith.constant 0 : i32
    return %c0_i32, %c0_i32_0 : i32, i32
  }
  func.func @transform_24(%arg0: i32) -> (i32, i32) {
    %c0_i32 = arith.constant 0 : i32
    %c0_i32_0 = arith.constant 0 : i32
    %c0_i32_1 = arith.constant 0 : i32
    return %c0_i32, %c0_i32_0 : i32, i32
  }
  func.func @transform_25(%arg0: i32) -> (i32, i32) {
    %c0_i32 = arith.constant 0 : i32
    %c0_i32_0 = arith.constant 0 : i32
    %c0_i32_1 = arith.constant 0 : i32
    return %c0_i32, %c0_i32_0 : i32, i32
  }
  func.func @transform_26(%arg0: i32) -> (i32, i32) {
    %c0_i32 = arith.constant 0 : i32
    %c0_i32_0 = arith.constant 0 : i32
    %c0_i32_1 = arith.constant 0 : i32
    return %c0_i32, %c0_i32_0 : i32, i32
  }
  func.func @transform_27(%arg0: i32) -> (i32, i32) {
    %c0_i32 = arith.constant 0 : i32
    %c0_i32_0 = arith.constant 0 : i32
    %c0_i32_1 = arith.constant 0 : i32
    return %c0_i32, %c0_i32_0 : i32, i32
  }
  func.func @transform_28(%arg0: i32) -> (i32, i32) {
    %c0_i32 = arith.constant 0 : i32
    %c0_i32_0 = arith.constant 0 : i32
    %c0_i32_1 = arith.constant 0 : i32
    return %c0_i32, %c0_i32_0 : i32, i32
  }
  func.func @transform_29(%arg0: i32) -> (i32, i32) {
    %c0_i32 = arith.constant 0 : i32
    %c0_i32_0 = arith.constant 0 : i32
    %c0_i32_1 = arith.constant 0 : i32
    return %c0_i32, %c0_i32_0 : i32, i32
  }
  func.func @transform_30(%arg0: i32) -> (i32, i32) {
    %c0_i32 = arith.constant 0 : i32
    %c0_i32_0 = arith.constant 0 : i32
    %c0_i32_1 = arith.constant 0 : i32
    return %c0_i32, %c0_i32_0 : i32, i32
  }
  func.func @transform_31(%arg0: i32) -> (i32, i32) {
    %c0_i32 = arith.constant 0 : i32
    %c0_i32_0 = arith.constant 0 : i32
    %c0_i32_1 = arith.constant 0 : i32
    return %c0_i32, %c0_i32_0 : i32, i32
  }
  func.func @transform_32(%arg0: i32) -> (i32, i32) {
    %c0_i32 = arith.constant 0 : i32
    %c0_i32_0 = arith.constant 0 : i32
    %c0_i32_1 = arith.constant 0 : i32
    return %c0_i32, %c0_i32_0 : i32, i32
  }
  func.func @transform_33(%arg0: i32) -> (i32, i32) {
    %c0_i32 = arith.constant 0 : i32
    %c0_i32_0 = arith.constant 0 : i32
    %c0_i32_1 = arith.constant 0 : i32
    return %c0_i32, %c0_i32_0 : i32, i32
  }
  func.func @transform_34(%arg0: i32) -> (i32, i32) {
    %c0_i32 = arith.constant 0 : i32
    %c0_i32_0 = arith.constant 0 : i32
    %c0_i32_1 = arith.constant 0 : i32
    return %c0_i32, %c0_i32_0 : i32, i32
  }
  func.func @transform_35(%arg0: i32) -> (i32, i32) {
    %c0_i32 = arith.constant 0 : i32
    %c0_i32_0 = arith.constant 0 : i32
    %c0_i32_1 = arith.constant 0 : i32
    return %c0_i32, %c0_i32_0 : i32, i32
  }
  func.func @transform_36(%arg0: i32) -> (i32, i32) {
    %c0_i32 = arith.constant 0 : i32
    %c0_i32_0 = arith.constant 0 : i32
    %c0_i32_1 = arith.constant 0 : i32
    return %c0_i32, %c0_i32_0 : i32, i32
  }
  func.func @transform_37(%arg0: i32) -> (i32, i32, i32, i32, i32) {
    %c0_i32 = arith.constant 0 : i32
    %c0_i32_0 = arith.constant 0 : i32
    %c0_i32_1 = arith.constant 0 : i32
    %c0_i32_2 = arith.constant 0 : i32
    %c0_i32_3 = arith.constant 0 : i32
    return %arg0, %c0_i32, %c0_i32_0, %c0_i32_1, %c0_i32_2 : i32, i32, i32, i32, i32
  }
}

</mosaic_0001>

<bundles_post_ra>
// kernel: video_model_forward.1
= control target key start
LH: loop header
LB: loop body
LE: loop exit
PB: predicated region body
PF: predicated region fallthrough
CT: control target
= control target key end

     0   :  { %s11411_s6 = smov 1   ;;  %s11412_s10 = smov 2   ;;  %s16041_s0 = inlined_call_operand.smem [shape: u32[38], index: -1, kind: input, shape index: {}] }
   0x1   :  { %s11459_s5 = sld [smem:[%s16041_s0]]   ;;  %s11413_s14 = smov 3  }
   0x2   :  { %s11464_s9 = sld [smem:[%s16041_s0 + %s11411_s6]]   ;;  %s11414_s18 = smov 4  }
   0x3   :  { %s11469_s13 = sld [smem:[%s16041_s0 + %s11412_s10]]   ;;  %s11415_s22 = smov 5  }
   0x4   :  { %s11474_s17 = sld [smem:[%s16041_s0 + %s11413_s14]]   ;;  %s11416_s26 = smov 6  }
   0x5   :  { %s11479_s21 = sld [smem:[%s16041_s0 + %s11414_s18]]   ;;  %s11417_s30 = smov 7  }
   0x6   :  { %s11484_s25 = sld [smem:[%s16041_s0 + %s11415_s22]]   ;;  %s11418_s4 = smov 8  }
   0x7   :  { %s11489_s29 = sld [smem:[%s16041_s0 + %s11416_s26]]   ;;  %s11419_s10 = smov 9  }
   0x8   :  { %s11494_s3 = sld [smem:[%s16041_s0 + %s11417_s30]]   ;;  %s11420_s15 = smov 10  }
   0x9   :  { %s11499_s8 = sld [smem:[%s16041_s0 + %s11418_s4]]   ;;  %s11421_s20 = smov 11  }
   0xa   :  { %s11504_s14 = sld [smem:[%s16041_s0 + %s11419_s10]]   ;;  %s11422_s26 = smov 12  }
   0xb   :  { %s11509_s19 = sld [smem:[%s16041_s0 + %s11420_s15]]   ;;  %s11423_s1 = smov 13  }
   0xc   :  { %s11514_s24 = sld [smem:[%s16041_s0 + %s11421_s20]]   ;;  %s11424_s7 = smov 14  }
   0xd   :  { %s11519_s30 = sld [smem:[%s16041_s0 + %s11422_s26]]   ;;  %s11425_s15 = smov 15  }
   0xe   :  { %s11524_s6 = sld [smem:[%s16041_s0 + %s11423_s1]]   ;;  %s11426_s22 = smov 16  }
   0xf   :  { %s11529_s12 = sld [smem:[%s16041_s0 + %s11424_s7]]   ;;  %s11427_s28 = smov 17  }
  0x10   :  { %s11534_s20 = sld [smem:[%s16041_s0 + %s11425_s15]]   ;;  %s11428_s7 = smov 18  }
  0x11   :  { %s11539_s27 = sld [smem:[%s16041_s0 + %s11426_s22]]   ;;  %s11429_s15 = smov 19  }
  0x12   :  { %s11544_s4 = sld [smem:[%s16041_s0 + %s11427_s28]]   ;;  %s11430_s22 = smov 20  }
  0x13   :  { %s11431_s28 = smov 21  }
  0x15   :  { %16298 = sst [smem:[#allocation2_spill]] %s11529_s12 }
  0x16   :  { %16299 = sst [smem:[#allocation3_spill]] %s11534_s20 }
  0x17   :  { %16300 = sst [smem:[#allocation4_spill]] %s11539_s27 }
  0x18   :  { %16301 = sst [smem:[#allocation5_spill]] %s11544_s4 }
  0x19   :  { %s11549_s12 = sld [smem:[%s16041_s0 + %s11428_s7]]   ;;  %s11432_s7 = smov 22  }
  0x1a   :  { %s11554_s20 = sld [smem:[%s16041_s0 + %s11429_s15]]   ;;  %s11433_s15 = smov 23  }
  0x1b   :  { %s11559_s27 = sld [smem:[%s16041_s0 + %s11430_s22]]   ;;  %s11434_s22 = smov 24  }
  0x1c   :  { %s11564_s4 = sld [smem:[%s16041_s0 + %s11431_s28]]   ;;  %s11435_s28 = smov 25  }
  0x1f   :  { %16302 = sst [smem:[#allocation6_spill]] %s11549_s12 }
  0x20   :  { %16303 = sst [smem:[#allocation7_spill]] %s11554_s20 }
  0x21   :  { %16304 = sst [smem:[#allocation8_spill]] %s11559_s27 }
  0x22   :  { %16305 = sst [smem:[#allocation9_spill]] %s11564_s4 }
  0x23   :  { %s11569_s12 = sld [smem:[%s16041_s0 + %s11432_s7]]   ;;  %s11436_s7 = smov 26  }
  0x24   :  { %s11574_s20 = sld [smem:[%s16041_s0 + %s11433_s15]]   ;;  %s11437_s15 = smov 27  }
  0x25   :  { %s11579_s27 = sld [smem:[%s16041_s0 + %s11434_s22]]   ;;  %s11438_s22 = smov 28  }
  0x26   :  { %s11584_s4 = sld [smem:[%s16041_s0 + %s11435_s28]]   ;;  %s11439_s28 = smov 29  }
  0x29   :  { %16306 = sst [smem:[#allocation10_spill]] %s11569_s12 }
  0x2a   :  { %16307 = sst [smem:[#allocation11_spill]] %s11574_s20 }
  0x2b   :  { %16308 = sst [smem:[#allocation12_spill]] %s11579_s27 }
  0x2c   :  { %16309 = sst [smem:[#allocation13_spill]] %s11584_s4 }
  0x2d   :  { %s11589_s12 = sld [smem:[%s16041_s0 + %s11436_s7]]   ;;  %s11440_s7 = smov 30  }
  0x2e   :  { %s11594_s20 = sld [smem:[%s16041_s0 + %s11437_s15]]   ;;  %s11441_s15 = smov 31  }
  0x2f   :  { %s11599_s27 = sld [smem:[%s16041_s0 + %s11438_s22]]   ;;  %s11442_s22 = smov 32  }
  0x30   :  { %s11604_s4 = sld [smem:[%s16041_s0 + %s11439_s28]]   ;;  %s11443_s28 = smov 33  }
  0x33   :  { %16310 = sst [smem:[#allocation14_spill]] %s11589_s12 }
  0x34   :  { %16311 = sst [smem:[#allocation15_spill]] %s11594_s20 }
  0x35   :  { %16312 = sst [smem:[#allocation16_spill]] %s11599_s27 }
  0x36   :  { %16313 = sst [smem:[#allocation17_spill]] %s11604_s4 }
  0x37   :  { %s11609_s12 = sld [smem:[%s16041_s0 + %s11440_s7]]   ;;  %s11444_s7 = smov 34  }
  0x38   :  { %s11614_s20 = sld [smem:[%s16041_s0 + %s11441_s15]]   ;;  %s11445_s15 = smov 35  }
  0x39   :  { %s11619_s27 = sld [smem:[%s16041_s0 + %s11442_s22]]   ;;  %s11446_s22 = smov 36  }
  0x3a   :  { %s11624_s4 = sld [smem:[%s16041_s0 + %s11443_s28]]   ;;  %s11447_s28 = smov 37  }
  0x3d   :  { %16314 = sst [smem:[#allocation18_spill]] %s11609_s12 }
  0x3e   :  { %16315 = sst [smem:[#allocation19_spill]] %s11614_s20 }
  0x3f   :  { %16316 = sst [smem:[#allocation20_spill]] %s11619_s27 }
  0x40   :  { %16317 = sst [smem:[#allocation21_spill]] %s11624_s4 }
  0x41   :  { %s11629_s12 = sld [smem:[%s16041_s0 + %s11444_s7]]   ;;  %s11646_s7 = smov 0  }
  0x42   :  { %s11634_s20 = sld [smem:[%s16041_s0 + %s11445_s15]]  }
  0x43   :  { %s11639_s27 = sld [smem:[%s16041_s0 + %s11446_s22]]  }
  0x44   :  { %s11644_s4 = sld [smem:[%s16041_s0 + %s11447_s28]]  }
  0x45 LB: > { %s9410_s10 = sadd.s32 4294967295, %s11409_s7   ;;  %p9414_p0 = scmp.ge.s32.totalorder %s11409_s7, 1  ;;  %s11409_s7 = sphi %s11646_s7, %s85_s7  }
  0x46   : > { %p1025_p1 = scmp.lt.s32.totalorder %s11409_s7, 3 }
  0x48   : > { %p1026_p2 = pnand %p9414_p0, %p1025_p1 }
  0x4a   : > { %1029 = sbr.rel (%p1026_p2) target bundleno = 2995 (0xbb3), region = 168 }
  0x51   : > { %v1383_v0 = vld [vmem:[%s11464_s9] sm:$0xff]  ;;  %vm1534_vm0 = vcmask 1042432   ;;  %vm1475_vm1 = vcmask 23552   ;;  %v1384_v1 = vld [vmem:[%s11464_s9 + $0x8] sm:$0xff]  ;;  %p1117_p3 = scmp.lt.s32.totalorder %s9410_s10, 1  ;;  %v16048_v3 = vmov 0.0  }
  0x52   : > { %v1474_v2 = vrot.slane %v1383_v0, 3  ;;  %v11658_v4 = vcombine.low %v16048_v3, %v16048_v3  ;;  %v11660_v5 = vrot.slane %v1384_v1, 4  ;;  %v11663_v6 = vld [vmem:[%s11464_s9 + $0x10] sm:$0xff]  ;;  %v2953_v7 = vrot.slane %v1384_v1, 1  ;;  %s16721_s15 = sld [smem:[#allocation3_spill]]  ;;  %s16722_s16 = sld [smem:[#allocation6_spill]] }
  0x53   : > { %s16816_s10 = smov (!%p1117_p3, %s9410_s10), 1  ;;  %v3287_v8 = vrot.slane %v1384_v1, 7  ;;  %v3288_v9 = vrot.slane %v11663_v6, 7  ;;  %v2159_v10 = vrot.slane %v1383_v0, 6  ;;  %v2160_v11 = vrot.slane %v1384_v1, 6  ;;  %s16723_s18 = sld [smem:[#allocation2_spill]] }
  0x54   : > { %10204 = vmatprep.subr.msk.mxu1 %vm1534_vm0, %v1474_v2  ;;  %10206 = vmatprep.mubr.msk.f32.mxu1 %vm1475_vm1, %v11658_v4  ;;  %s9823_s0 = sshll.u32 %s16816_s10, 10  ;;  %vm3286_vm2 = vcmask 1040384   ;;  %v16046_v12 = vrot.slane %v11663_v6, 5  ;;  %vm2158_vm3 = vcmask 1041408   ;;  %vm4702_vm4 = vcmask 1044480   ;;  %s16725_s22 = sld [smem:[#allocation9_spill]] }
  0x55   : > { %10205 = vmatpush3.msk.msra.mxu1 %vm1534_vm0, %v1474_v2  ;;  %10354 = vmatprep.subr.msk.mxu0 %vm1534_vm0, %v11660_v5  ;;  %s11680_s11 = scalar_lea.vmem %s11459_s5, %s9823_s0  ;;  %v11692_v16 = vsel %vm3286_vm2, %v3287_v8, %v3288_v9  ;;  %v11695_v17 = vsel %vm2158_vm3, %v2159_v10, %v2160_v11  ;;  %vm5786_vm5 = vcmask 64512   ;;  %vm7602_vm6 = vcmask 130048   ;;  %s16739_s23 = sld [smem:[#allocation4_spill]] }
  0x56   : > { %10207 = vmatmul.mubr.msk.f32.vlgmr.msra.gmra.mrb[0].mxu1 %vm1475_vm1, %v11658_v4  ;;  %10355 = vmatpush3.msk.msra.mxu0 %vm1534_vm0, %v11660_v5  ;;  %v11119_v13 = vld [vmem:[%s11680_s11] ss:$8 sps:$4 sm:$0xff]   ;;  %v11120_v14 = vld [vmem:[%s11680_s11 + $0x10] ss:$8 sps:$4 sm:$0xff]   ;;  %v11797_v55 = vld [vmem:[%s11680_s11 + $0x4] sm:$0xf] }
  0x57   : > { %10209 = vmatprep.mubr.msk.f32.mxu1 %vm1475_vm1, %v11658_v4  ;;  %10404 = vmatprep.subr.msk.mxu0 %vm1534_vm0, %v2953_v7  ;;  %v11121_v15 = vld [vmem:[%s11680_s11 + $0x40] ss:$8 sps:$4 sm:$0xff]   ;;  %v11122_v18 = vld [vmem:[%s11680_s11 + $0x50] ss:$8 sps:$4 sm:$0xff]   ;;  %v11800_v56 = vld [vmem:[%s11680_s11 + $0xc] sm:$0xf]  ;;  %v2921_v58 = vcombine.low %v16048_v3, %v11797_v55 }
  0x58   : > { %10254 = vmatprep.subr.msk.mxu1 %vm1534_vm0, %v1383_v0  ;;  %10356 = vmatprep.mubr.msk.f32.mxu0 %vm1475_vm1, %v11119_v13  ;;  %v11123_v19 = vld [vmem:[%s11680_s11 + $0x20] ss:$8 sps:$4 sm:$0xff]   ;;  %v11124_v20 = vld [vmem:[%s11680_s11 + $0x30] ss:$8 sps:$4 sm:$0xff]   ;;  %v11803_v57 = vld [vmem:[%s11680_s11 + $0x14] sm:$0xf] }
  0x59   : > { %10255 = vmatpush3.msk.msra.mxu1 %vm1534_vm0, %v1383_v0  ;;  %10357 = vmatmul.mubr.msk.f32.vlgmr.msra.gmra.mrb[0].mxu0 %vm1475_vm1, %v11120_v14  ;;  %v11125_v21 = vld [vmem:[%s11680_s11 + $0x60] ss:$8 sps:$4 sm:$0xff]   ;;  %v11126_v22 = vld [vmem:[%s11680_s11 + $0x70] ss:$8 sps:$4 sm:$0xff]   ;;  %v2922_v59 = vcombine.low %v11800_v56, %v11803_v57  ;;  %v11819_v62 = vld [vmem:[%s11680_s11 + $0x1c] sm:$0xf] }
  0x5a   : > { %10210 = vmatmul.mubr.msk.f32.gmra.mrb[2].mxu1 %vm1475_vm1, %v11658_v4  ;;  %10405 = vmatpush3.msk.msra.mxu0 %vm1534_vm0, %v2953_v7  ;;  %v11127_v23 = vld [vmem:[%s11680_s11 + $0x80] ss:$8 sps:$4 sm:$0xff]   ;;  %v11128_v24 = vld [vmem:[%s11680_s11 + $0x90] ss:$8 sps:$4 sm:$0xff]   ;;  %v11822_v63 = vld [vmem:[%s11680_s11 + $0x24] sm:$0xf] }
  0x5b   : > { %10212 = vmatprep.mubr.msk.f32.mxu1 %vm1475_vm1, %v11121_v15  ;;  %10454 = vmatprep.subr.msk.mxu0 %vm1534_vm0, %v11692_v16  ;;  %v11129_v25 = vld [vmem:[%s11680_s11 + $0xc0] ss:$8 sps:$4 sm:$0xff]   ;;  %v11130_v26 = vld [vmem:[%s11680_s11 + $0xd0] ss:$8 sps:$4 sm:$0xff]   ;;  %v11825_v0 = vld [vmem:[%s11680_s11 + $0x2c] sm:$0xf]  ;;  %v2923_v1 = vcombine.low %v11819_v62, %v11822_v63 }
  0x5c   : > { %10304 = vmatprep.subr.msk.mxu1 %vm1534_vm0, %v11695_v17  ;;  %10359 = vmatprep.mubr.msk.f32.mxu0 %vm1475_vm1, %v11123_v19  ;;  %v11131_v27 = vld [vmem:[%s11680_s11 + $0xa0] ss:$8 sps:$4 sm:$0xff]   ;;  %v11132_v28 = vld [vmem:[%s11680_s11 + $0xb0] ss:$8 sps:$4 sm:$0xff]   ;;  %v11833_v2 = vld [vmem:[%s11680_s11 + $0x34] sm:$0xf] }
  0x5d   : > { %10360 = vmatmul.mubr.msk.f32.gmra.mrb[2].mxu0 %vm1475_vm1, %v11124_v20  ;;  %v11133_v29 = vld [vmem:[%s11680_s11 + $0xe0] ss:$8 sps:$4 sm:$0xff]   ;;  %v11134_v30 = vld [vmem:[%s11680_s11 + $0xf0] ss:$8 sps:$4 sm:$0xff]   ;;  %v2924_v7 = vcombine.low %v11825_v0, %v11833_v2  ;;  %v11847_v10 = vld [vmem:[%s11680_s11 + $0x84] sm:$0xf] }
  0x5e   : > { %10213 = vmatmul.mubr.msk.f32.gmra.mrb[4].mxu1 %vm1475_vm1, %v11122_v18  ;;  %10362 = vmatprep.mubr.msk.f32.mxu0 %vm1475_vm1, %v11127_v23  ;;  %v11135_v31 = vld [vmem:[%s11680_s11 + $0x100] ss:$8 sps:$4 sm:$0xff]   ;;  %v11136_v32 = vld [vmem:[%s11680_s11 + $0x110] ss:$8 sps:$4 sm:$0xff]   ;;  %v11850_v11 = vld [vmem:[%s11680_s11 + $0x8c] sm:$0xf]  ;;  %v2925_v13 = vcombine.low %v16048_v3, %v11847_v10 }
  0x5f   : > { %10215 = vmatprep.mubr.msk.f32.mxu1 %vm1475_vm1, %v11125_v21  ;;  %v11137_v33 = vld [vmem:[%s11680_s11 + $0x140] ss:$8 sps:$4 sm:$0xff]   ;;  %v11138_v34 = vld [vmem:[%s11680_s11 + $0x150] ss:$8 sps:$4 sm:$0xff]   ;;  %v11860_v14 = vld [vmem:[%s11680_s11 + $0x94] sm:$0xf] }
  0x60   : > { %v11139_v35 = vld [vmem:[%s11680_s11 + $0x120] ss:$8 sps:$4 sm:$0xff]   ;;  %v11140_v36 = vld [vmem:[%s11680_s11 + $0x130] ss:$8 sps:$4 sm:$0xff]   ;;  %v2926_v15 = vcombine.low %v11850_v11, %v11860_v14  ;;  %v11872_v18 = vld [vmem:[%s11680_s11 + $0x9c] sm:$0xf] }
  0x61   : > { %10363 = vmatmul.mubr.msk.f32.gmra.mrb[4].mxu0 %vm1475_vm1, %v11128_v24  ;;  %v11141_v37 = vld [vmem:[%s11680_s11 + $0x160] ss:$8 sps:$4 sm:$0xff]   ;;  %v11142_v38 = vld [vmem:[%s11680_s11 + $0x170] ss:$8 sps:$4 sm:$0xff]   ;;  %v11875_v19 = vld [vmem:[%s11680_s11 + $0xa4] sm:$0xf] }
  0x62   : > { %10216 = vmatmul.mubr.msk.f32.gmra.mrb[6].mxu1 %vm1475_vm1, %v11126_v22  ;;  %10365 = vmatprep.mubr.msk.f32.mxu0 %vm1475_vm1, %v11131_v27  ;;  %v11143_v39 = vld [vmem:[%s11680_s11 + $0x180] ss:$8 sps:$4 sm:$0xff]   ;;  %v11144_v40 = vld [vmem:[%s11680_s11 + $0x190] ss:$8 sps:$4 sm:$0xff]   ;;  %v2927_v20 = vcombine.low %v11872_v18, %v11875_v19  ;;  %v11880_v21 = vld [vmem:[%s11680_s11 + $0xac] sm:$0xf] }
  0x63   : > { %10218 = vmatprep.mubr.msk.f32.mxu1 %vm1475_vm1, %v11129_v25  ;;  %v11145_v41 = vld [vmem:[%s11680_s11 + $0x1c0] ss:$8 sps:$4 sm:$0xff]   ;;  %v11146_v42 = vld [vmem:[%s11680_s11 + $0x1d0] ss:$8 sps:$4 sm:$0xff]   ;;  %v11883_v22 = vld [vmem:[%s11680_s11 + $0xb4] sm:$0xf] }
  0x64   : > { %v11147_v43 = vld [vmem:[%s11680_s11 + $0x1a0] ss:$8 sps:$4 sm:$0xff]   ;;  %v11148_v44 = vld [vmem:[%s11680_s11 + $0x1b0] ss:$8 sps:$4 sm:$0xff]   ;;  %v2928_v24 = vcombine.low %v11880_v21, %v11883_v22  ;;  %vm11450_vm7 = vmmov 0   ;;  %vm7709_vm8 = vcmask 1043456  }
  0x65   : > { %10366 = vmatmul.mubr.msk.f32.gmra.mrb[6].mxu0 %vm1475_vm1, %v11132_v28  ;;  %v11759_v45 = vld [vmem:[%s11680_s11 + $0x1e0] ss:$8 sps:$4 sm:$0xff]   ;;  %v11764_v46 = vld [vmem:[%s11680_s11 + $0x1f0] ss:$8 sps:$4 sm:$0xff]   ;;  %v11905_v28 = vld [vmem:[%s11680_s11 + $0x10c] sm:$0xf] }
  0x66   : > { %10219 = vmatmul.mubr.msk.f32.gmra.mrb[8].mxu1 %vm1475_vm1, %v11130_v26  ;;  %10368 = vmatprep.mubr.msk.f32.mxu0 %vm1475_vm1, %v11135_v31  ;;  %16318 = vst [vmem:[#allocation22_spill] sm:$0xff] %v11759_v45  ;;  %16319 = vst [vmem:[#allocation23_spill] sm:$0xff] %v11764_v46  ;;  %v11151_v47 = vld [vmem:[%s11680_s11 + $0x200] ss:$8 sps:$4 sm:$0xff]   ;;  %v11152_v48 = vld [vmem:[%s11680_s11 + $0x210] ss:$8 sps:$4 sm:$0xff]  }
  0x67   : > { %10221 = vmatprep.mubr.msk.f32.mxu1 %vm1475_vm1, %v11133_v29  ;;  %v11772_v49 = vld [vmem:[%s11680_s11 + $0x240] ss:$8 sps:$4 sm:$0xff]   ;;  %v11778_v50 = vld [vmem:[%s11680_s11 + $0x250] ss:$8 sps:$4 sm:$0xff]   ;;  %v11899_v26 = vld [vmem:[%s11680_s11 + $0x104] sm:$0xf] }
  0x68   : > { %16320 = vst [vmem:[#allocation24_spill] sm:$0xff] %v11772_v49  ;;  %16321 = vst [vmem:[#allocation25_spill] sm:$0xff] %v11778_v50  ;;  %v11155_v51 = vld [vmem:[%s11680_s11 + $0x220] ss:$8 sps:$4 sm:$0xff]   ;;  %v11156_v52 = vld [vmem:[%s11680_s11 + $0x230] ss:$8 sps:$4 sm:$0xff]   ;;  %v2929_v27 = vcombine.low %v16048_v3, %v11899_v26 }
  0x69   : > { %10369 = vmatmul.mubr.msk.f32.gmra.mrb[8].mxu0 %vm1475_vm1, %v11136_v32  ;;  %v11786_v53 = vld [vmem:[%s11680_s11 + $0x260] ss:$8 sps:$4 sm:$0xff]   ;;  %v11792_v54 = vld [vmem:[%s11680_s11 + $0x270] ss:$8 sps:$4 sm:$0xff]   ;;  %v11908_v29 = vld [vmem:[%s11680_s11 + $0x114] sm:$0xf] }
  0x6a   : > { %10222 = vmatmul.mubr.msk.f32.gmra.mrb[10].mxu1 %vm1475_vm1, %v11134_v30  ;;  %10371 = vmatprep.mubr.msk.f32.mxu0 %vm1475_vm1, %v11139_v35  ;;  %16322 = vst [vmem:[#allocation26_spill] sm:$0xff] %v11786_v53  ;;  %16323 = vst [vmem:[#allocation27_spill] sm:$0xff] %v11792_v54  ;;  %v11810_v60 = vld [vmem:[%s11680_s11 + $0x2c0] ss:$8 sps:$4 sm:$0xff]   ;;  %v11813_v61 = vld [vmem:[%s11680_s11 + $0x2d0] ss:$8 sps:$4 sm:$0xff]  }
  0x6b   : > { %10224 = vmatprep.mubr.msk.f32.mxu1 %vm1475_vm1, %v11137_v33  ;;  %16324 = vst [vmem:[#allocation28_spill] sm:$0xff] %v11810_v60  ;;  %16325 = vst [vmem:[#allocation29_spill] sm:$0xff] %v11813_v61  ;;  %v11840_v8 = vld [vmem:[%s11680_s11 + $0x2e0] ss:$8 sps:$4 sm:$0xff]   ;;  %v11844_v9 = vld [vmem:[%s11680_s11 + $0x2f0] ss:$8 sps:$4 sm:$0xff]   ;;  %v2930_v33 = vcombine.low %v11905_v28, %v11908_v29 }
  0x6c   : > { %16326 = vst [vmem:[#allocation30_spill] sm:$0xff] %v11840_v8  ;;  %16327 = vst [vmem:[#allocation31_spill] sm:$0xff] %v11844_v9  ;;  %v11888_v23 = vld [vmem:[%s11680_s11 + $0x350] ss:$8 sps:$4 sm:$0xff]   ;;  %v11896_v25 = vld [vmem:[%s11680_s11 + $0x360] ss:$8 sps:$4 sm:$0xff]  }
  0x6d   : > { %10372 = vmatmul.mubr.msk.f32.gmra.mrb[10].mxu0 %vm1475_vm1, %v11140_v36  ;;  %16329 = vst [vmem:[#allocation33_spill] sm:$0xff] %v11888_v23  ;;  %16330 = vst [vmem:[#allocation34_spill] sm:$0xff] %v11896_v25  ;;  %v11911_v30 = vld [vmem:[%s11680_s11 + $0x11c] sm:$0xf]  ;;  %v11914_v31 = vld [vmem:[%s11680_s11 + $0x124] sm:$0xf] }
  0x6e   : > { %10225 = vmatmul.mubr.msk.f32.gmra.mrb[12].mxu1 %vm1475_vm1, %v11138_v34  ;;  %10374 = vmatprep.mubr.msk.f32.mxu0 %vm1475_vm1, %v11143_v39  ;;  %v11919_v32 = vld [vmem:[%s11680_s11 + $0x370] ss:$8 sps:$4 sm:$0xff]   ;;  %v2931_v34 = vcombine.low %v11911_v30, %v11914_v31  ;;  %v11930_v35 = vld [vmem:[%s11680_s11 + $0x12c] sm:$0xf]  ;;  %v11933_v36 = vld [vmem:[%s11680_s11 + $0x134] sm:$0xf] }
  0x6f   : > { %10227 = vmatprep.mubr.msk.f32.mxu1 %vm1475_vm1, %v11141_v37  ;;  %16331 = vst [vmem:[#allocation35_spill] sm:$0xff] %v11919_v32  ;;  %v11936_v37 = vld [vmem:[%s11680_s11 + $0x184] sm:$0xf]  ;;  %vm7705_vm9 = vcmask 31744   ;;  %s16743_s26 = sld [smem:[#allocation7_spill]]  ;;  %s16745_s28 = sld [smem:[#allocation5_spill]] }
  0x70   : > { %v2933_v39 = vcombine.low %v16048_v3, %v11936_v37  ;;  %s16747_s1 = sld [smem:[#allocation8_spill]]  ;;  %s16749_s2 = sld [smem:[#allocation15_spill]]  ;;  %vm8885_vm10 = vcmask 261120   ;;  %vm9313_vm11 = vcmask 125952  }
  0x71   : > { %10375 = vmatmul.mubr.msk.f32.gmra.mrb[12].mxu0 %vm1475_vm1, %v11144_v40  ;;  %v11949_v40 = vld [vmem:[%s11680_s11 + $0x18c] sm:$0xf]  ;;  %s16751_s0 = sld [smem:[#allocation12_spill]] }
  0x72   : > { %10228 = vmatmul.mubr.msk.f32.gmra.mrb[14].mxu1 %vm1475_vm1, %v11142_v38  ;;  %10377 = vmatprep.mubr.msk.f32.mxu0 %vm1475_vm1, %v11147_v43  ;;  %v2932_v38 = vcombine.low %v11930_v35, %v11933_v36  ;;  %v11958_v43 = vld [vmem:[%s11680_s11 + $0x19c] sm:$0xf] }
  0x73   : > { %10230 = vmatprep.mubr.msk.f32.mxu1 %vm1475_vm1, %v11145_v41  ;;  %v11952_v41 = vld [vmem:[%s11680_s11 + $0x194] sm:$0xf] }
  0x75   : > { %10378 = vmatmul.mubr.msk.f32.gmra.mrb[14].mxu0 %vm1475_vm1, %v11148_v44  ;;  %v11961_v44 = vld [vmem:[%s11680_s11 + $0x1a4] sm:$0xf] }
  0x76   : > { %10231 = vmatmul.mubr.msk.f32.gmra.mrb[16].mxu1 %vm1475_vm1, %v11146_v42  ;;  %10380 = vmatprep.mubr.msk.f32.mxu0 %vm1475_vm1, %v11151_v47  ;;  %v11955_v42 = vld [vmem:[%s11680_s11 + $0x44] sm:$0xf]  ;;  %v2934_v47 = vcombine.low %v11949_v40, %v11952_v41 }
  0x77   : > { %10233 = vmatprep.mubr.msk.f32.mxu1 %vm1475_vm1, %v11759_v45  ;;  %v12117_v45 = vld [vmem:[%s11680_s11 + $0x2a4] sm:$0xf] }
  0x78   : > { %16352 = vst [vmem:[#allocation55_spill] sm:$0xff] %v12117_v45 }
  0x79   : > { %10381 = vmatmul.mubr.msk.f32.gmra.mrb[16].mxu0 %vm1475_vm1, %v11152_v48  ;;  %v11972_v48 = vcombine.low %v16048_v3, %v11955_v42 }
  0x7a   : > { %10234 = vmatmul.mubr.msk.f32.gmra.mrb[18].mxu1 %vm1475_vm1, %v11764_v46  ;;  %10383 = vmatprep.mubr.msk.f32.mxu0 %vm1475_vm1, %v11155_v51  ;;  %v11975_v51 = vld [vmem:[%s11680_s11 + $0x4c] sm:$0xf]  ;;  %v12114_v46 = vld [vmem:[%s11680_s11 + $0x29c] sm:$0xf] }
  0x7b   : > { %10236 = vmatprep.mubr.msk.f32.mxu1 %vm1475_vm1, %v11772_v49  ;;  %16332 = vst [vmem:[#allocation36_spill] sm:$0xff] %v11972_v48  ;;  %v12111_v49 = vld [vmem:[%s11680_s11 + $0x144] sm:$0xf]  ;;  %16351 = vst [vmem:[#allocation54_spill] sm:$0xff] %v12114_v46 }
  0x7c   : > { %16350 = vst [vmem:[#allocation53_spill] sm:$0xff] %v12111_v49 }
  0x7d   : > { %10384 = vmatmul.mubr.msk.f32.gmra.mrb[18].mxu0 %vm1475_vm1, %v11156_v52  ;;  %v11978_v52 = vld [vmem:[%s11680_s11 + $0x54] sm:$0xf] }
  0x7e   : > { %10237 = vmatmul.mubr.msk.f32.gmra.mrb[20].mxu1 %vm1475_vm1, %v11778_v50  ;;  %10406 = vmatprep.mubr.msk.f32.mxu0 %vm1475_vm1, %v2921_v58  ;;  %v11981_v58 = vld [vmem:[%s11680_s11 + $0x1ac] sm:$0xf]  ;;  %v12108_v50 = vld [vmem:[%s11680_s11 + $0x294] sm:$0xf] }
  0x7f   : > { %10239 = vmatprep.mubr.msk.f32.mxu1 %vm1475_vm1, %v11786_v53  ;;  %v12096_v53 = vld [vmem:[%s11680_s11 + $0xec] sm:$0xf]  ;;  %16349 = vst [vmem:[#allocation52_spill] sm:$0xff] %v12108_v50 }
  0x80   : > { %16346 = vst [vmem:[#allocation49_spill] sm:$0xff] %v12096_v53 }
  0x81   : > { %10407 = vmatmul.mubr.msk.f32.vlgmr.msra.gmra.mrb[0].mxu0 %vm1475_vm1, %v2922_v59  ;;  %v2935_v59 = vcombine.low %v11958_v43, %v11961_v44 }
  0x82   : > { %10240 = vmatmul.mubr.msk.f32.gmra.mrb[22].mxu1 %vm1475_vm1, %v11792_v54  ;;  %10455 = vmatpush3.msk.msra.mxu0 %vm1534_vm0, %v11692_v16  ;;  %v11868_v16 = vld [vmem:[%s11680_s11 + $0x340] ss:$8 sps:$4 sm:$0xff]  }
  0x83   : > { %10242 = vmatprep.mubr.msk.f32.mxu1 %vm1475_vm1, %v11810_v60  ;;  %10409 = vmatprep.mubr.msk.f32.mxu0 %vm1475_vm1, %v2923_v1  ;;  %16328 = vst [vmem:[#allocation32_spill] sm:$0xff] %v11868_v16  ;;  %v11987_v1 = vld [vmem:[%s11680_s11 + $0x1b4] sm:$0xf] }
  0x84   : > { %10504 = vmatprep.subr.msk.mxu0 %vm1534_vm0, %v16046_v12  ;;  %v12036_v12 = vld [vmem:[%s11680_s11 + $0x21c] sm:$0xf] }
  0x85   : > { %10410 = vmatmul.mubr.msk.f32.gmra.mrb[2].mxu0 %vm1475_vm1, %v2924_v7  ;;  %v11990_v7 = vld [vmem:[%s11680_s11 + $0x5c] sm:$0xf] }
  0x86   : > { %10243 = vmatmul.mubr.msk.f32.gmra.mrb[24].mxu1 %vm1475_vm1, %v11813_v61  ;;  %10412 = vmatprep.mubr.msk.f32.mxu0 %vm1475_vm1, %v2925_v13  ;;  %v11993_v13 = vld [vmem:[%s11680_s11 + $0x64] sm:$0xf] }
  0x87   : > { %10245 = vmatprep.mubr.msk.f32.mxu1 %vm1475_vm1, %v11840_v8  ;;  %v12075_v8 = vld [vmem:[%s11680_s11 + $0xe4] sm:$0xf] }
  0x88   : > { %16342 = vst [vmem:[#allocation45_spill] sm:$0xff] %v12075_v8  ;;  %v12078_v61 = vld [vmem:[%s11680_s11 + $0x284] sm:$0xf] }
  0x89   : > { %10413 = vmatmul.mubr.msk.f32.gmra.mrb[4].mxu0 %vm1475_vm1, %v2926_v15  ;;  %v11998_v15 = vld [vmem:[%s11680_s11 + $0x204] sm:$0xf]  ;;  %16343 = vst [vmem:[#allocation46_spill] sm:$0xff] %v12078_v61 }
  0x8a   : > { %10246 = vmatmul.mubr.msk.f32.gmra.mrb[26].mxu1 %vm1475_vm1, %v11844_v9  ;;  %10415 = vmatprep.mubr.msk.f32.mxu0 %vm1475_vm1, %v2927_v20  ;;  %v12006_v20 = vcombine.low %v11975_v51, %v11978_v52  ;;  %v12072_v9 = vld [vmem:[%s11680_s11 + $0xdc] sm:$0xf] }
  0x8b   : > { %10248 = vmatprep.mubr.msk.f32.mxu1 %vm1475_vm1, %v11868_v16  ;;  %v12063_v16 = vld [vmem:[%s11680_s11 + $0x22c] sm:$0xf]  ;;  %16341 = vst [vmem:[#allocation44_spill] sm:$0xff] %v12072_v9  ;;  %v12093_v54 = vcombine.low %v12072_v9, %v12075_v8 }
  0x8c   : > { %16333 = vst [vmem:[#allocation37_spill] sm:$0xff] %v12006_v20 }
  0x8d   : > { %10416 = vmatmul.mubr.msk.f32.gmra.mrb[6].mxu0 %vm1475_vm1, %v2928_v24  ;;  %v12015_v24 = vcombine.low %v11990_v7, %v11993_v13  ;;  %16345 = vst [vmem:[#allocation48_spill] sm:$0xff] %v12093_v54 }
  0x8e   : > { %10249 = vmatmul.mubr.msk.f32.gmra.mrb[28].mxu1 %vm1475_vm1, %v11888_v23  ;;  %10418 = vmatprep.mubr.msk.f32.mxu0 %vm1475_vm1, %v2929_v27  ;;  %v12018_v27 = vld [vmem:[%s11680_s11 + $0x6c] sm:$0xf] }
  0x8f   : > { %10251 = vmatprep.mubr.msk.f32.mxu1 %vm1475_vm1, %v11896_v25  ;;  %16334 = vst [vmem:[#allocation38_spill] sm:$0xff] %v12015_v24  ;;  %v12057_v23 = vld [vmem:[%s11680_s11 + $0xcc] sm:$0xf] }
  0x91   : > { %10419 = vmatmul.mubr.msk.f32.gmra.mrb[8].mxu0 %vm1475_vm1, %v2930_v33  ;;  %v12021_v33 = vld [vmem:[%s11680_s11 + $0x74] sm:$0xf] }
  0x92   : > { %10252 = vmatmul.mubr.msk.f32.gmra.mrb[30].mxu1 %vm1475_vm1, %v11919_v32  ;;  %10421 = vmatprep.mubr.msk.f32.mxu0 %vm1475_vm1, %v2931_v34  ;;  %v2937_v34 = vcombine.low %v16048_v3, %v11998_v15  ;;  %v16337_v32 = vmov 0.0  }
  0x93   : > { %10256 = vmatprep.mubr.msk.f32.mxu1 %vm1475_vm1, %v11658_v4  ;;  %v12132_v8 = vcombine.low %v16337_v32, %v12111_v49  ;;  %v12150_v49 = vld [vmem:[%s11680_s11 + $0x15c] sm:$0xf] }
  0x94   : > { %16359 = vst [vmem:[#allocation62_spill] sm:$0xff] %v12150_v49 }
  0x95   : > { %10422 = vmatmul.mubr.msk.f32.gmra.mrb[10].mxu0 %vm1475_vm1, %v2932_v38  ;;  %v12027_v38 = vld [vmem:[%s11680_s11 + $0x20c] sm:$0xf]  ;;  %16354 = vst [vmem:[#allocation57_spill] sm:$0xff] %v12132_v8 }
  0x96   : > { %10257 = vmatmul.mubr.msk.f32.vlgmr.msra.gmra.mrb[0].mxu1 %vm1475_vm1, %v11658_v4  ;;  %10424 = vmatprep.mubr.msk.f32.mxu0 %vm1475_vm1, %v2933_v39  ;;  %v12030_v39 = vld [vmem:[%s11680_s11 + $0x214] sm:$0xf] }
  0x97   : > { %10259 = vmatprep.mubr.msk.f32.mxu1 %vm1475_vm1, %v11658_v4  ;;  %10305 = vmatpush3.msk.msra.mxu1 %vm1534_vm0, %v11695_v17  ;;  %v2936_v17 = vcombine.low %v11981_v58, %v11987_v1  ;;  %v2938_v3 = vcombine.low %v12027_v38, %v12030_v39 }
  0x98   : > { %10813 = vmatprep.subr.msk.mxu1 %vm1534_vm0, %v11660_v5 }
  0x99   : > { %10425 = vmatmul.mubr.msk.f32.gmra.mrb[12].mxu0 %vm1475_vm1, %v2934_v47  ;;  %v12033_v47 = vld [vmem:[%s11680_s11 + $0xc4] sm:$0xf] }
  0x9a   : > { %10260 = vmatmul.mubr.msk.f32.gmra.mrb[2].mxu1 %vm1475_vm1, %v11658_v4  ;;  %10427 = vmatprep.mubr.msk.f32.mxu0 %vm1475_vm1, %v2935_v59  ;;  %v12045_v59 = vcombine.low %v12018_v27, %v12021_v33  ;;  %v12054_v25 = vcombine.low %v16337_v32, %v12033_v47 }
  0x9b   : > { %10262 = vmatprep.mubr.msk.f32.mxu1 %vm1475_vm1, %v11972_v48  ;;  %v12039_v48 = vld [vmem:[%s11680_s11 + $0x224] sm:$0xf] }
  0x9c   : > { %16335 = vst [vmem:[#allocation39_spill] sm:$0xff] %v12039_v48  ;;  %16336 = vst [vmem:[#allocation40_spill] sm:$0xff] %v12045_v59 }
  0x9d   : > { %10428 = vmatmul.mubr.msk.f32.gmra.mrb[14].mxu0 %vm1475_vm1, %v2936_v17  ;;  %16338 = vst [vmem:[#allocation41_spill] sm:$0xff] %v12054_v25  ;;  %v2939_v17 = vcombine.low %v12036_v12, %v12039_v48  ;;  %v12273_v48 = vld [vmem:[%s11680_s11 + $0x24c] sm:$0xf] }
  0x9e   : > { %10263 = vmatmul.mubr.msk.f32.gmra.mrb[4].mxu1 %vm1475_vm1, %v12006_v20  ;;  %v12060_v20 = vld [vmem:[%s11680_s11 + $0xd4] sm:$0xf]  ;;  %10430 = vmatprep.mubr.msk.f32.mxu0 %vm1475_vm1, %v2937_v34 }
  0x9f   : > { %10265 = vmatprep.mubr.msk.f32.mxu1 %vm1475_vm1, %v12015_v24  ;;  %16339 = vst [vmem:[#allocation42_spill] sm:$0xff] %v12060_v20  ;;  %v12069_v24 = vld [vmem:[%s11680_s11 + $0x234] sm:$0xf]  ;;  %v12084_v34 = vcombine.low %v12057_v23, %v12060_v20 }
  0xa0   : > { %16340 = vst [vmem:[#allocation43_spill] sm:$0xff] %v12069_v24  ;;  %v2940_v60 = vcombine.low %v12063_v16, %v12069_v24  ;;  %v12135_v24 = vld [vmem:[%s11680_s11 + $0x14c] sm:$0xf]  ;;  %v12213_v20 = vld [vmem:[%s11680_s11 + $0x334] sm:$0xf] }
  0xa1   : > { %16344 = vst [vmem:[#allocation47_spill] sm:$0xff] %v12084_v34  ;;  %10431 = vmatmul.mubr.msk.f32.gmra.mrb[16].mxu0 %vm1475_vm1, %v2938_v3  ;;  %v2941_v3 = vcombine.low %v16337_v32, %v12078_v61  ;;  %16355 = vst [vmem:[#allocation58_spill] sm:$0xff] %v12135_v24 }
  0xa2   : > { %10266 = vmatmul.mubr.msk.f32.gmra.mrb[6].mxu1 %vm1475_vm1, %v12045_v59  ;;  %v12099_v59 = vld [vmem:[%s11680_s11 + $0xf4] sm:$0xf]  ;;  %10433 = vmatprep.mubr.msk.f32.mxu0 %vm1475_vm1, %v2939_v17  ;;  %16375 = vst [vmem:[#allocation78_spill] sm:$0xff] %v12213_v20 }
  0xa3   : > { %10268 = vmatprep.mubr.msk.f32.mxu1 %vm1475_vm1, %v12054_v25  ;;  %16347 = vst [vmem:[#allocation50_spill] sm:$0xff] %v12099_v59  ;;  %v12105_v25 = vld [vmem:[%s11680_s11 + $0x28c] sm:$0xf]  ;;  %v12123_v17 = vcombine.low %v12096_v53, %v12099_v59  ;;  %v12177_v53 = vld [vmem:[%s11680_s11 + $0x174] sm:$0xf] }
  0xa4   : > { %16348 = vst [vmem:[#allocation51_spill] sm:$0xff] %v12105_v25  ;;  %v2942_v61 = vcombine.low %v12105_v25, %v12108_v50  ;;  %v12141_v59 = vld [vmem:[%s11680_s11 + $0x2ac] sm:$0xf]  ;;  %v12153_v50 = vld [vmem:[%s11680_s11 + $0x164] sm:$0xf]  ;;  %16365 = vst [vmem:[#allocation68_spill] sm:$0xff] %v12177_v53 }
  0xa5   : > { %16353 = vst [vmem:[#allocation56_spill] sm:$0xff] %v12123_v17  ;;  %10434 = vmatmul.mubr.msk.f32.gmra.mrb[18].mxu0 %vm1475_vm1, %v2940_v60  ;;  %16357 = vst [vmem:[#allocation60_spill] sm:$0xff] %v12141_v59  ;;  %v2943_v60 = vcombine.low %v12114_v46, %v12117_v45  ;;  %v12156_v25 = vld [vmem:[%s11680_s11 + $0x304] sm:$0xf]  ;;  %v12171_v46 = vcombine.low %v12150_v49, %v12153_v50 }
  0xa6   : > { %10269 = vmatmul.mubr.msk.f32.gmra.mrb[8].mxu1 %vm1475_vm1, %v12084_v34  ;;  %v12138_v34 = vld [vmem:[%s11680_s11 + $0x154] sm:$0xf]  ;;  %10436 = vmatprep.mubr.msk.f32.mxu0 %vm1475_vm1, %v2941_v3  ;;  %16360 = vst [vmem:[#allocation63_spill] sm:$0xff] %v12153_v50  ;;  %16361 = vst [vmem:[#allocation64_spill] sm:$0xff] %v12156_v25  ;;  %v12195_v50 = vld [vmem:[%s11680_s11 + $0x31c] sm:$0xf] }
  0xa7   : > { %10271 = vmatprep.mubr.msk.f32.mxu1 %vm1475_vm1, %v12093_v54  ;;  %16356 = vst [vmem:[#allocation59_spill] sm:$0xff] %v12138_v34  ;;  %v12147_v54 = vld [vmem:[%s11680_s11 + $0x2b4] sm:$0xf]  ;;  %v12162_v3 = vcombine.low %v12135_v24, %v12138_v34  ;;  %16363 = vst [vmem:[#allocation66_spill] sm:$0xff] %v12171_v46  ;;  %v12198_v49 = vld [vmem:[%s11680_s11 + $0x324] sm:$0xf] }
  0xa8   : > { %16358 = vst [vmem:[#allocation61_spill] sm:$0xff] %v12147_v54  ;;  %v2944_v45 = vcombine.low %v12141_v59, %v12147_v54  ;;  %v12186_v34 = vld [vmem:[%s11680_s11 + $0x314] sm:$0xf]  ;;  %v12189_v54 = vld [vmem:[%s11680_s11 + $0x1c4] sm:$0xf]  ;;  %16370 = vst [vmem:[#allocation73_spill] sm:$0xff] %v12195_v50  ;;  %v2947_v9 = vcombine.low %v12195_v50, %v12198_v49 }
  0xa9   : > { %16362 = vst [vmem:[#allocation65_spill] sm:$0xff] %v12162_v3  ;;  %10437 = vmatmul.mubr.msk.f32.gmra.mrb[20].mxu0 %vm1475_vm1, %v2942_v61  ;;  %v2945_v61 = vcombine.low %v16337_v32, %v12156_v25  ;;  %16367 = vst [vmem:[#allocation70_spill] sm:$0xff] %v12186_v34  ;;  %v12192_v59 = vld [vmem:[%s11680_s11 + $0x1cc] sm:$0xf]  ;;  %v12207_v25 = vld [vmem:[%s11680_s11 + $0x1d4] sm:$0xf] }
  0xaa   : > { %10272 = vmatmul.mubr.msk.f32.gmra.mrb[10].mxu1 %vm1475_vm1, %v12123_v17  ;;  %v12174_v17 = vld [vmem:[%s11680_s11 + $0x16c] sm:$0xf]  ;;  %10439 = vmatprep.mubr.msk.f32.mxu0 %vm1475_vm1, %v2943_v60  ;;  %16368 = vst [vmem:[#allocation71_spill] sm:$0xff] %v12189_v54  ;;  %16369 = vst [vmem:[#allocation72_spill] sm:$0xff] %v12192_v59  ;;  %v12252_v50 = vld [vmem:[%s11680_s11 + $0x394] sm:$0xf] }
  0xab   : > { %10274 = vmatprep.mubr.msk.f32.mxu1 %vm1475_vm1, %v12132_v8  ;;  %16364 = vst [vmem:[#allocation67_spill] sm:$0xff] %v12174_v17  ;;  %v12183_v8 = vld [vmem:[%s11680_s11 + $0x30c] sm:$0xf]  ;;  %16371 = vst [vmem:[#allocation74_spill] sm:$0xff] %v12198_v49  ;;  %v12204_v60 = vcombine.low %v12174_v17, %v12177_v53  ;;  %v12222_v53 = vcombine.low %v16337_v32, %v12189_v54  ;;  %v12225_v17 = vld [vmem:[%s11680_s11 + $0x1dc] sm:$0xf] }
  0xac   : > { %16366 = vst [vmem:[#allocation69_spill] sm:$0xff] %v12183_v8  ;;  %16373 = vst [vmem:[#allocation76_spill] sm:$0xff] %v12207_v25  ;;  %v12210_v24 = vld [vmem:[%s11680_s11 + $0x32c] sm:$0xf]  ;;  %v12240_v54 = vld [vmem:[%s11680_s11 + $0x384] sm:$0xf] }
  0xad   : > { %16372 = vst [vmem:[#allocation75_spill] sm:$0xff] %v12204_v60  ;;  %16374 = vst [vmem:[#allocation77_spill] sm:$0xff] %v12210_v24  ;;  %10440 = vmatmul.mubr.msk.f32.gmra.mrb[22].mxu0 %vm1475_vm1, %v2944_v45  ;;  %v12231_v45 = vld [vmem:[%s11680_s11 + $0x1e4] sm:$0xf]  ;;  %v12249_v49 = vld [vmem:[%s11680_s11 + $0x38c] sm:$0xf] }
  0xae   : > { %10275 = vmatmul.mubr.msk.f32.gmra.mrb[12].mxu1 %vm1475_vm1, %v12162_v3  ;;  %v2946_v3 = vcombine.low %v12183_v8, %v12186_v34  ;;  %16376 = vst [vmem:[#allocation79_spill] sm:$0xff] %v12222_v53  ;;  %16377 = vst [vmem:[#allocation80_spill] sm:$0xff] %v12225_v17  ;;  %10442 = vmatprep.mubr.msk.f32.mxu0 %vm1475_vm1, %v2945_v61  ;;  %v12237_v34 = vld [vmem:[%s11680_s11 + $0x1f4] sm:$0xf]  ;;  %v12246_v61 = vcombine.low %v12192_v59, %v12207_v25  ;;  %v12264_v25 = vld [vmem:[%s11680_s11 + $0x244] sm:$0xf] }
  0xaf   : > { %10277 = vmatprep.mubr.msk.f32.mxu1 %vm1475_vm1, %v12171_v46  ;;  %16378 = vst [vmem:[#allocation81_spill] sm:$0xff] %v12231_v45  ;;  %v12234_v46 = vld [vmem:[%s11680_s11 + $0x1ec] sm:$0xf]  ;;  %16380 = vst [vmem:[#allocation83_spill] sm:$0xff] %v12237_v34  ;;  %v2948_v8 = vcombine.low %v12210_v24, %v12213_v20  ;;  %v2949_v59 = vcombine.low %v16337_v32, %v12240_v54  ;;  %v12279_v20 = vld [vmem:[%s11680_s11 + $0x3a4] sm:$0xf] }
  0xb0   : > { %16379 = vst [vmem:[#allocation82_spill] sm:$0xff] %v12234_v46  ;;  %16381 = vst [vmem:[#allocation84_spill] sm:$0xff] %v12240_v54  ;;  %v12291_v54 = vld [vmem:[%s11680_s11 + $0x3b4] sm:$0xf]  ;;  %v12309_v24 = vld [vmem:[%s11680_s11 + $0x264] sm:$0xf] }
  0xb1   : > { %16382 = vst [vmem:[#allocation85_spill] sm:$0xff] %v12246_v61  ;;  %10443 = vmatmul.mubr.msk.f32.gmra.mrb[24].mxu0 %vm1475_vm1, %v2946_v3  ;;  %v12270_v3 = vld [vmem:[%s11680_s11 + $0x39c] sm:$0xf]  ;;  %16385 = vst [vmem:[#allocation88_spill] sm:$0xff] %v12279_v20 }
  0xb2   : > { %10278 = vmatmul.mubr.msk.f32.gmra.mrb[14].mxu1 %vm1475_vm1, %v12204_v60  ;;  %v12261_v60 = vcombine.low %v12225_v17, %v12231_v45  ;;  %10445 = vmatprep.mubr.msk.f32.mxu0 %vm1475_vm1, %v2947_v9  ;;  %v12285_v45 = vcombine.low %v12234_v46, %v12237_v34  ;;  %v12288_v9 = vld [vmem:[%s11680_s11 + $0x3ac] sm:$0xf]  ;;  %v2950_v17 = vcombine.low %v12249_v49, %v12252_v50  ;;  %v12303_v34 = vld [vmem:[%s11680_s11 + $0x25c] sm:$0xf] }
  0xb3   : > { %10280 = vmatprep.mubr.msk.f32.mxu1 %vm1475_vm1, %v12222_v53  ;;  %v12276_v53 = vld [vmem:[%s11680_s11 + $0x254] sm:$0xf]  ;;  %v2951_v46 = vcombine.low %v12270_v3, %v12279_v20  ;;  %16388 = vst [vmem:[#allocation91_spill] sm:$0xff] %v12309_v24  ;;  %v12336_v20 = vld [vmem:[%s11680_s11 + $0x2c4] sm:$0xf] }
  0xb4   : > { %16383 = vst [vmem:[#allocation86_spill] sm:$0xff] %v12261_v60  ;;  %16384 = vst [vmem:[#allocation87_spill] sm:$0xff] %v12276_v53 }
  0xb5   : > { %16386 = vst [vmem:[#allocation89_spill] sm:$0xff] %v12285_v45  ;;  %10446 = vmatmul.mubr.msk.f32.gmra.mrb[26].mxu0 %vm1475_vm1, %v2948_v8  ;;  %v12315_v8 = vcombine.low %v12273_v48, %v12276_v53  ;;  %v12330_v53 = vld [vmem:[%s11680_s11 + $0x274] sm:$0xf]  ;;  %16391 = vst [vmem:[#allocation94_spill] sm:$0xff] %v12336_v20 }
  0xb6   : > { %10281 = vmatmul.mubr.msk.f32.gmra.mrb[16].mxu1 %vm1475_vm1, %v12246_v61  ;;  %v12300_v61 = vcombine.low %v16337_v32, %v12264_v25  ;;  %10448 = vmatprep.mubr.msk.f32.mxu0 %vm1475_vm1, %v2949_v59  ;;  %v2952_v59 = vcombine.low %v12288_v9, %v12291_v54 }
  0xb7   : > { %10283 = vmatprep.mubr.msk.f32.mxu1 %vm1475_vm1, %v12261_v60  ;;  %16389 = vst [vmem:[#allocation92_spill] sm:$0xff] %v12315_v8  ;;  %v12318_v60 = vld [vmem:[%s11680_s11 + $0x26c] sm:$0xf] }
  0xb8   : > { %16387 = vst [vmem:[#allocation90_spill] sm:$0xff] %v12300_v61 }
  0xb9   : > { %10449 = vmatmul.mubr.msk.f32.gmra.mrb[28].mxu0 %vm1475_vm1, %v2950_v17  ;;  %v3253_v17 = vcombine.low %v11797_v55, %v11800_v56  ;;  %v12354_v55 = vld [vmem:[%s11680_s11 + $0x2cc] sm:$0xf]  ;;  %v12357_v56 = vld [vmem:[%s11680_s11 + $0x2d4] sm:$0xf] }
  0xba   : > { %10284 = vmatmul.mubr.msk.f32.gmra.mrb[18].mxu1 %vm1475_vm1, %v12285_v45  ;;  %v12327_v45 = vcombine.low %v12303_v34, %v12309_v24  ;;  %10451 = vmatprep.mubr.msk.f32.mxu0 %vm1475_vm1, %v2951_v46  ;;  %v3254_v24 = vcombine.low %v11803_v57, %v11819_v62  ;;  %v12351_v46 = vcombine.low %v16337_v32, %v12336_v20  ;;  %v1142_v62 = vld [vmem:[%s11680_s11 + $0x3c] sm:$0xf] }
  0xbb   : > { %10286 = vmatprep.mubr.msk.f32.mxu1 %vm1475_vm1, %v12300_v61  ;;  %v12342_v61 = vcombine.low %v12318_v60, %v12330_v53  ;;  %v3255_v57 = vcombine.low %v11822_v63, %v11825_v0  ;;  %v12374_v20 = vcombine.low %v12354_v55, %v12357_v56  ;;  %v3256_v63 = vcombine.low %v11833_v2, %v1142_v62 }
  0xbc   : > { %16390 = vst [vmem:[#allocation93_spill] sm:$0xff] %v12327_v45  ;;  %16393 = vst [vmem:[#allocation96_spill] sm:$0xff] %v12351_v46  ;;  %v3257_v2 = vcombine.low %v11847_v10, %v11850_v11  ;;  %v16397_v62 = vrot.slane %v11663_v6, 2  ;;  %v3258_v10 = vcombine.low %v11860_v14, %v11872_v18 }
  0xbd   : > { %16392 = vst [vmem:[#allocation95_spill] sm:$0xff] %v12342_v61  ;;  %10452 = vmatmul.mubr.msk.f32.gmra.mrb[30].mxu0 %vm1475_vm1, %v2952_v59  ;;  %v12364_v59 = vld [vmem:[%s11680_s11 + $0x2dc] sm:$0xf]  ;;  %16394 = vst [vmem:[#allocation97_spill] sm:$0xff] %v12374_v20 }
  0xbe   : > { %10287 = vmatmul.mubr.msk.f32.gmra.mrb[20].mxu1 %vm1475_vm1, %v12315_v8  ;;  %10456 = vmatprep.mubr.msk.f32.mxu0 %vm1475_vm1, %v3253_v17  ;;  %v12385_v17 = vld [vmem:[%s11680_s11 + $0x2ec] sm:$0xf]  ;;  %v12388_v8 = vld [vmem:[%s11680_s11 + $0x2f4] sm:$0xf] }
  0xbf   : > { %10289 = vmatprep.mubr.msk.f32.mxu1 %vm1475_vm1, %v12327_v45  ;;  %v12367_v45 = vld [vmem:[%s11680_s11 + $0x2e4] sm:$0xf] }
  0xc0   : > { %v12382_v0 = vcombine.low %v12364_v59, %v12367_v45 }
  0xc1   : > { %10457 = vmatmul.mubr.msk.f32.vlgmr.msra.gmra.mrb[0].mxu0 %vm1475_vm1, %v3254_v24  ;;  %v12397_v24 = vld [vmem:[%s11680_s11 + $0x344] sm:$0xf] }
  0xc2   : > { %10290 = vmatmul.mubr.msk.f32.gmra.mrb[22].mxu1 %vm1475_vm1, %v12342_v61  ;;  %16395 = vst [vmem:[#allocation98_spill] sm:$0xff] %v12382_v0  ;;  %v16396_v61 = vrot.slane %v11663_v6, 5  ;;  %10459 = vmatprep.mubr.msk.f32.mxu0 %vm1475_vm1, %v3255_v57  ;;  %v12415_v11 = vcombine.low %v16337_v32, %v12397_v24  ;;  %v12421_v57 = vld [vmem:[%s11680_s11 + $0x354] sm:$0xf]  ;;  %v3261_v32 = vcombine.low %v11899_v26, %v11905_v28  ;;  %v1206_v28 = vld [vmem:[%s11680_s11 + $0x13c] sm:$0xf] }
  0xc3   : > { %10292 = vmatprep.mubr.msk.f32.mxu1 %vm1475_vm1, %v12351_v46  ;;  %v12406_v46 = vcombine.low %v12385_v17, %v12388_v8  ;;  %v3263_v26 = vcombine.low %v11914_v31, %v11930_v35  ;;  %v12489_v31 = vcombine.low %v11955_v42, %v11975_v51  ;;  %v1238_v35 = vld [vmem:[%s11680_s11 + $0x1bc] sm:$0xf]  ;;  %v3270_v42 = vcombine.low %v12030_v39, %v12036_v12  ;;  %v16401_v12 = vld [vmem:[#allocation43_spill] sm:$0xff] }
  0xc4   : > { %10505 = vmatpush3.msk.msra.mxu0 %vm1534_vm0, %v16396_v61  ;;  %v12418_v61 = vld [vmem:[%s11680_s11 + $0x34c] sm:$0xf] }
  0xc5   : > { %10554 = vmatprep.subr.msk.mxu0 %vm1534_vm0, %v16397_v62  ;;  %10460 = vmatmul.mubr.msk.f32.gmra.mrb[2].mxu0 %vm1475_vm1, %v3256_v63  ;;  %v3259_v63 = vcombine.low %v11875_v19, %v11880_v21  ;;  %v1174_v62 = vld [vmem:[%s11680_s11 + $0xbc] sm:$0xf]  ;;  %v12437_v14 = vcombine.low %v12418_v61, %v12421_v57  ;;  %v12448_v21 = vld [vmem:[%s11680_s11 + $0x36c] sm:$0xf] }
  0xc6   : > { %10293 = vmatmul.mubr.msk.f32.gmra.mrb[24].mxu1 %vm1475_vm1, %v12374_v20  ;;  %10462 = vmatprep.mubr.msk.f32.mxu0 %vm1475_vm1, %v3257_v2  ;;  %v12431_v20 = vld [vmem:[%s11680_s11 + $0x364] sm:$0xf]  ;;  %v3260_v18 = vcombine.low %v11883_v22, %v1174_v62  ;;  %v12451_v2 = vld [vmem:[%s11680_s11 + $0x374] sm:$0xf]  ;;  %v3262_v22 = vcombine.low %v11908_v29, %v11911_v30  ;;  %v3265_v29 = vcombine.low %v11936_v37, %v11949_v40 }
  0xc7   : > { %10295 = vmatprep.mubr.msk.f32.mxu1 %vm1475_vm1, %v12382_v0  ;;  %v12428_v0 = vld [vmem:[%s11680_s11 + $0x35c] sm:$0xf]  ;;  %v3266_v30 = vcombine.low %v11952_v41, %v11958_v43  ;;  %v3268_v37 = vcombine.low %v11987_v1, %v1238_v35  ;;  %v12509_v40 = vcombine.low %v11993_v13, %v12018_v27  ;;  %v12527_v43 = vcombine.low %v12033_v47, %v12057_v23  ;;  %v16400_v1 = vld [vmem:[#allocation42_spill] sm:$0xff] }
  0xc8   : > { %v12445_v19 = vcombine.low %v12428_v0, %v12431_v20  ;;  %v16402_v13 = vld [vmem:[#allocation49_spill] sm:$0xff]  ;;  %v16406_v47 = vld [vmem:[#allocation50_spill] sm:$0xff] }
  0xc9   : > { %10463 = vmatmul.mubr.msk.f32.gmra.mrb[4].mxu0 %vm1475_vm1, %v3258_v10  ;;  %v12460_v10 = vcombine.low %v12448_v21, %v12451_v2 }
  0xca   : > { %10296 = vmatmul.mubr.msk.f32.gmra.mrb[26].mxu1 %vm1475_vm1, %v12406_v46  ;;  %10465 = vmatprep.mubr.msk.f32.mxu0 %vm1475_vm1, %v3259_v63  ;;  %v3264_v63 = vcombine.low %v11933_v36, %v1206_v28  ;;  %v12501_v36 = vcombine.low %v11978_v52, %v11990_v7  ;;  %v1270_v52 = vld [vmem:[%s11680_s11 + $0x23c] sm:$0xf]  ;;  %v16409_v28 = vld [vmem:[#allocation58_spill] sm:$0xff] }
  0xcb   : > { %10298 = vmatprep.mubr.msk.f32.mxu1 %vm1475_vm1, %v12415_v11  ;;  %v3272_v23 = vcombine.low %v16401_v12, %v1270_v52  ;;  %v16416_v52 = vld [vmem:[#allocation67_spill] sm:$0xff]  ;;  %v1222_v12 = vld [vmem:[%s11680_s11 + $0x17c] sm:$0xf] }
  0xcd   : > { %10466 = vmatmul.mubr.msk.f32.gmra.mrb[6].mxu0 %vm1475_vm1, %v3260_v18  ;;  %v16407_v18 = vld [vmem:[#allocation54_spill] sm:$0xff] }
  0xce   : > { %10299 = vmatmul.mubr.msk.f32.gmra.mrb[28].mxu1 %vm1475_vm1, %v12437_v14  ;;  %10468 = vmatprep.mubr.msk.f32.mxu0 %vm1475_vm1, %v3261_v32  ;;  %v3267_v32 = vcombine.low %v11961_v44, %v11981_v58  ;;  %v16398_v44 = vld [vmem:[#allocation39_spill] sm:$0xff]  ;;  %v16399_v58 = vld [vmem:[#allocation44_spill] sm:$0xff] }
  0xcf   : > { %10301 = vmatprep.mubr.msk.f32.mxu1 %vm1475_vm1, %v12445_v19  ;;  %v3271_v51 = vcombine.low %v16398_v44, %v12063_v16  ;;  %v12537_v7 = vcombine.low %v16400_v1, %v16399_v58  ;;  %v1190_v16 = vld [vmem:[%s11680_s11 + $0xfc] sm:$0xf]  ;;  %v16417_v58 = vld [vmem:[#allocation63_spill] sm:$0xff] }
  0xd0   : > { %v12554_v62 = vcombine.low %v16406_v47, %v1190_v16  ;;  %v16415_v44 = vld [vmem:[#allocation61_spill] sm:$0xff]  ;;  %v12581_v1 = vcombine.low %v16417_v58, %v16416_v52  ;;  %v16420_v16 = vld [vmem:[#allocation68_spill] sm:$0xff] }
  0xd1   : > { %10469 = vmatmul.mubr.msk.f32.gmra.mrb[8].mxu0 %vm1475_vm1, %v3262_v22  ;;  %v16408_v22 = vld [vmem:[#allocation52_spill] sm:$0xff]  ;;  %v16431_v52 = vld [vmem:[#allocation81_spill] sm:$0xff] }
  0xd2   : > { %10302 = vmatmul.mubr.msk.f32.gmra.mrb[30].mxu1 %vm1475_vm1, %v12460_v10  ;;  %10471 = vmatprep.mubr.msk.f32.mxu0 %vm1475_vm1, %v3263_v26  ;;  %v3274_v26 = vcombine.low %v16408_v22, %v16407_v18  ;;  %v16423_v18 = vld [vmem:[#allocation72_spill] sm:$0xff]  ;;  %v16424_v22 = vld [vmem:[#allocation71_spill] sm:$0xff] }
  0xd3   : > { %10306 = vmatprep.mubr.msk.f32.mxu1 %vm1475_vm1, %v11658_v4 }
  0xd5   : > { %10472 = vmatmul.mubr.msk.f32.gmra.mrb[10].mxu0 %vm1475_vm1, %v3264_v63  ;;  %v16410_v63 = vld [vmem:[#allocation53_spill] sm:$0xff] }
  0xd6   : > { %10307 = vmatmul.mubr.msk.f32.vlgmr.msra.gmra.mrb[0].mxu1 %vm1475_vm1, %v11658_v4  ;;  %10474 = vmatprep.mubr.msk.f32.mxu0 %vm1475_vm1, %v3265_v29  ;;  %v12563_v29 = vcombine.low %v16410_v63, %v16409_v28  ;;  %v16425_v28 = vld [vmem:[#allocation77_spill] sm:$0xff]  ;;  %v16426_v63 = vld [vmem:[#allocation74_spill] sm:$0xff] }
  0xd7   : > { %10309 = vmatprep.mubr.msk.f32.mxu1 %vm1475_vm1, %v11658_v4  ;;  %10814 = vmatpush3.msk.msra.mxu1 %vm1534_vm0, %v11660_v5  ;;  %v1158_v5 = vld [vmem:[%s11680_s11 + $0x7c] sm:$0xf] }
  0xd8   : > { %v12518_v41 = vcombine.low %v12021_v33, %v1158_v5  ;;  %v16404_v33 = vld [vmem:[#allocation51_spill] sm:$0xff]  ;;  %v16413_v5 = vld [vmem:[#allocation62_spill] sm:$0xff] }
  0xd9   : > { %10475 = vmatmul.mubr.msk.f32.gmra.mrb[12].mxu0 %vm1475_vm1, %v3266_v30  ;;  %v16411_v30 = vld [vmem:[#allocation60_spill] sm:$0xff] }
  0xda   : > { %10310 = vmatmul.mubr.msk.f32.gmra.mrb[2].mxu1 %vm1475_vm1, %v11658_v4  ;;  %10477 = vmatprep.mubr.msk.f32.mxu0 %vm1475_vm1, %v3267_v32  ;;  %v3269_v4 = vcombine.low %v11998_v15, %v12027_v38  ;;  %v16403_v15 = vld [vmem:[#allocation45_spill] sm:$0xff]  ;;  %v16405_v38 = vld [vmem:[#allocation46_spill] sm:$0xff]  ;;  %v16412_v32 = vld [vmem:[#allocation55_spill] sm:$0xff] }
  0xdb   : > { %10312 = vmatprep.mubr.msk.f32.mxu1 %vm1475_vm1, %v12489_v31  ;;  %v12545_v27 = vcombine.low %v16403_v15, %v16402_v13  ;;  %v3273_v39 = vcombine.low %v16405_v38, %v16404_v33  ;;  %v3275_v35 = vcombine.low %v16412_v32, %v16411_v30  ;;  %v16419_v13 = vld [vmem:[#allocation64_spill] sm:$0xff]  ;;  %v12590_v33 = vcombine.low %v16420_v16, %v1222_v12  ;;  %v16421_v38 = vld [vmem:[#allocation73_spill] sm:$0xff] }
  0xdc   : > { %v3279_v30 = vcombine.low %v16426_v63, %v16425_v28  ;;  %v1334_v32 = vld [vmem:[%s11680_s11 + $0x33c] sm:$0xf]  ;;  %v12678_v63 = vld [vmem:[%s11464_s9 + $0x18] sm:$0x7] }
  0xdd   : > { %10478 = vmatmul.mubr.msk.f32.gmra.mrb[14].mxu0 %vm1475_vm1, %v3268_v37  ;;  %v1302_v37 = vld [vmem:[%s11680_s11 + $0x2bc] sm:$0xf] }
  0xde   : > { %10313 = vmatmul.mubr.msk.f32.gmra.mrb[4].mxu1 %vm1475_vm1, %v12501_v36  ;;  %10480 = vmatprep.mubr.msk.f32.mxu0 %vm1475_vm1, %v3269_v4  ;;  %v16414_v4 = vld [vmem:[#allocation59_spill] sm:$0xff]  ;;  %v1254_v12 = vld [vmem:[%s11680_s11 + $0x1fc] sm:$0xf] }
  0xdf   : > { %10315 = vmatprep.mubr.msk.f32.mxu1 %vm1475_vm1, %v12509_v40 }
  0xe1   : > { %10481 = vmatmul.mubr.msk.f32.gmra.mrb[16].mxu0 %vm1475_vm1, %v3270_v42  ;;  %v12573_v42 = vcombine.low %v16414_v4, %v16413_v5  ;;  %v16429_v4 = vld [vmem:[#allocation78_spill] sm:$0xff] }
  0xe2   : > { %10316 = vmatmul.mubr.msk.f32.gmra.mrb[6].mxu1 %vm1475_vm1, %v12518_v41  ;;  %10483 = vmatprep.mubr.msk.f32.mxu0 %vm1475_vm1, %v3271_v51  ;;  %v3276_v51 = vcombine.low %v16415_v44, %v1302_v37  ;;  %v16428_v37 = vld [vmem:[#allocation76_spill] sm:$0xff]  ;;  %v3280_v44 = vcombine.low %v16429_v4, %v1334_v32  ;;  %v1318_v32 = vld [vmem:[%s11680_s11 + $0x2fc] sm:$0xf]  ;;  %v11389_v4 = vld [vmem:[%s11680_s11 + $0xe0] ss:$8 sps:$4 sm:$0xff]  }
  0xe3   : > { %10318 = vmatprep.mubr.msk.f32.mxu1 %vm1475_vm1, %v12527_v43 }
  0xe5   : > { %10484 = vmatmul.mubr.msk.f32.gmra.mrb[18].mxu0 %vm1475_vm1, %v3272_v23  ;;  %v16418_v23 = vld [vmem:[#allocation69_spill] sm:$0xff] }
  0xe6   : > { %10319 = vmatmul.mubr.msk.f32.gmra.mrb[8].mxu1 %vm1475_vm1, %v12537_v7  ;;  %10486 = vmatprep.mubr.msk.f32.mxu0 %vm1475_vm1, %v3273_v39  ;;  %v3277_v15 = vcombine.low %v16419_v13, %v16418_v23  ;;  %v16422_v39 = vld [vmem:[#allocation70_spill] sm:$0xff]  ;;  %v16432_v23 = vld [vmem:[#allocation84_spill] sm:$0xff] }
  0xe7   : > { %10321 = vmatprep.mubr.msk.f32.mxu1 %vm1475_vm1, %v12545_v27  ;;  %v3278_v47 = vcombine.low %v16422_v39, %v16421_v38  ;;  %v3281_v13 = vcombine.low %v16432_v23, %v12249_v49  ;;  %v3282_v38 = vcombine.low %v12252_v50, %v12270_v3  ;;  %v12635_v39 = vcombine.low %v12264_v25, %v12273_v48  ;;  %v16434_v49 = vld [vmem:[#allocation88_spill] sm:$0xff]  ;;  %v16436_v25 = vld [vmem:[#allocation91_spill] sm:$0xff]  ;;  %v1286_v3 = vld [vmem:[%s11680_s11 + $0x27c] sm:$0xf] }
  0xe8   : > { %v12653_v48 = vcombine.low %v16436_v25, %v12318_v60  ;;  %v11394_v23 = vld [vmem:[%s11680_s11 + $0x170] ss:$8 sps:$4 sm:$0xff]   ;;  %v11280_v25 = vld [vmem:[%s11680_s11 + $0x380] ss:$8 sps:$4 sm:$0xff]  }
  0xe9   : > { %10487 = vmatmul.mubr.msk.f32.gmra.mrb[20].mxu0 %vm1475_vm1, %v3274_v26  ;;  %v12599_v26 = vcombine.low %v16424_v22, %v16423_v18  ;;  %v1366_v18 = vld [vmem:[%s11680_s11 + $0x3bc] sm:$0xf]  ;;  %v16435_v22 = vld [vmem:[#allocation87_spill] sm:$0xff] }
  0xea   : > { %10322 = vmatmul.mubr.msk.f32.gmra.mrb[10].mxu1 %vm1475_vm1, %v12554_v62  ;;  %10489 = vmatprep.mubr.msk.f32.mxu0 %vm1475_vm1, %v3275_v35  ;;  %v16427_v35 = vld [vmem:[#allocation80_spill] sm:$0xff]  ;;  %v12645_v28 = vcombine.low %v16435_v22, %v12303_v34  ;;  %v3284_v50 = vcombine.low %v12291_v54, %v1366_v18  ;;  %v12660_v34 = vcombine.low %v12330_v53, %v1286_v3  ;;  %v16437_v54 = vld [vmem:[#allocation94_spill] sm:$0xff] }
  0xeb   : > { %10324 = vmatprep.mubr.msk.f32.mxu1 %vm1475_vm1, %v12563_v29  ;;  %v12609_v5 = vcombine.low %v16428_v37, %v16427_v35  ;;  %v12667_v60 = vcombine.low %v16437_v54, %v12354_v55  ;;  %v12675_v53 = vcombine.low %v12357_v56, %v12364_v59  ;;  %v12686_v55 = vcombine.low %v12367_v45, %v12385_v17  ;;  %v11385_v56 = vld [vmem:[%s11680_s11 + $0x60] ss:$8 sps:$4 sm:$0xff]   ;;  %v11386_v59 = vld [vmem:[%s11680_s11 + $0x70] ss:$8 sps:$4 sm:$0xff]  }
  0xec   : > { %v16438_v35 = vrot.slane %v11663_v6, 2  ;;  %v12699_v45 = vcombine.low %v12388_v8, %v1318_v32  ;;  %v12707_v6 = vcombine.low %v12397_v24, %v12418_v61  ;;  %v11387_v17 = vld [vmem:[%s11680_s11 + $0xc0] ss:$8 sps:$4 sm:$0xff]   ;;  %v12715_v8 = vcombine.low %v12421_v57, %v12428_v0  ;;  %v11388_v37 = vld [vmem:[%s11680_s11 + $0xd0] ss:$8 sps:$4 sm:$0xff]  }
  0xed   : > { %10490 = vmatmul.mubr.msk.f32.gmra.mrb[22].mxu0 %vm1475_vm1, %v3276_v51  ;;  %v16430_v51 = vld [vmem:[#allocation82_spill] sm:$0xff]  ;;  %v12723_v24 = vcombine.low %v12431_v20, %v12448_v21  ;;  %v1350_v61 = vld [vmem:[%s11680_s11 + $0x37c] sm:$0xf]  ;;  %v11390_v57 = vld [vmem:[%s11680_s11 + $0xf0] ss:$8 sps:$4 sm:$0xff]  }
  0xee   : > { %10325 = vmatmul.mubr.msk.f32.gmra.mrb[12].mxu1 %vm1475_vm1, %v12573_v42  ;;  %10492 = vmatprep.mubr.msk.f32.mxu0 %vm1475_vm1, %v3277_v15  ;;  %v12617_v58 = vcombine.low %v16431_v52, %v16430_v51  ;;  %v16433_v15 = vld [vmem:[#allocation83_spill] sm:$0xff]  ;;  %v12731_v0 = vcombine.low %v12451_v2, %v1350_v61  ;;  %v11392_v2 = vld [vmem:[%s11680_s11 + $0x150] ss:$8 sps:$4 sm:$0xff]   ;;  %v16439_v18 = vld [vmem:[#allocation22_spill] sm:$0xff] }
  0xef   : > { %10327 = vmatprep.mubr.msk.f32.mxu1 %vm1475_vm1, %v12581_v1  ;;  %v12626_v16 = vcombine.low %v16433_v15, %v1254_v12  ;;  %v11272_v20 = vld [vmem:[%s11680_s11 + $0x280] ss:$8 sps:$4 sm:$0xff]   ;;  %v11275_v12 = vld [vmem:[%s11680_s11 + $0x2b0] ss:$8 sps:$4 sm:$0xff]  }
  0xf0   : > { %v11391_v21 = vld [vmem:[%s11680_s11 + $0x140] ss:$8 sps:$4 sm:$0xff]   ;;  %v11279_v22 = vld [vmem:[%s11680_s11 + $0x330] ss:$8 sps:$4 sm:$0xff]  }
  0xf1   : > { %10493 = vmatmul.mubr.msk.f32.gmra.mrb[24].mxu0 %vm1475_vm1, %v3278_v47  ;;  %v3283_v47 = vcombine.low %v16434_v49, %v12288_v9  ;;  %v11383_v9 = vld [vmem:[%s11680_s11 + $0x40] ss:$8 sps:$4 sm:$0xff]   ;;  %v11396_v49 = vld [vmem:[%s11680_s11 + $0x1d0] ss:$8 sps:$4 sm:$0xff]  }
  0xf2   : > { %10328 = vmatmul.mubr.msk.f32.gmra.mrb[14].mxu1 %vm1475_vm1, %v12590_v33  ;;  %10495 = vmatprep.mubr.msk.f32.mxu0 %vm1475_vm1, %v3279_v30  ;;  %v11384_v30 = vld [vmem:[%s11680_s11 + $0x50] ss:$8 sps:$4 sm:$0xff]   ;;  %v11274_v51 = vld [vmem:[%s11680_s11 + $0x2a0] ss:$8 sps:$4 sm:$0xff]  }
  0xf3   : > { %10330 = vmatprep.mubr.msk.f32.mxu1 %vm1475_vm1, %v12599_v26  ;;  %v11393_v52 = vld [vmem:[%s11680_s11 + $0x160] ss:$8 sps:$4 sm:$0xff]   ;;  %v16441_v3 = vld [vmem:[#allocation24_spill] sm:$0xff] }
  0xf4   : > { %v11395_v15 = vld [vmem:[%s11680_s11 + $0x1c0] ss:$8 sps:$4 sm:$0xff]   ;;  %v11281_v54 = vld [vmem:[%s11680_s11 + $0x390] ss:$8 sps:$4 sm:$0xff]  }
  0xf5   : > { %10496 = vmatmul.mubr.msk.f32.gmra.mrb[26].mxu0 %vm1475_vm1, %v3280_v44  ;;  %v11273_v44 = vld [vmem:[%s11680_s11 + $0x290] ss:$8 sps:$4 sm:$0xff]   ;;  %v16443_v32 = vld [vmem:[#allocation26_spill] sm:$0xff]  ;;  %v16448_v61 = vld [vmem:[#allocation31_spill] sm:$0xff] }
  0xf6   : > { %10331 = vmatmul.mubr.msk.f32.gmra.mrb[16].mxu1 %vm1475_vm1, %v12609_v5  ;;  %10498 = vmatprep.mubr.msk.f32.mxu0 %vm1475_vm1, %v3281_v13  ;;  %v11276_v13 = vld [vmem:[%s11680_s11 + $0x300] ss:$8 sps:$4 sm:$0xff]  }
  0xf7   : > { %10333 = vmatprep.mubr.msk.f32.mxu1 %vm1475_vm1, %v12617_v58 }
  0xf9   : > { %10499 = vmatmul.mubr.msk.f32.gmra.mrb[28].mxu0 %vm1475_vm1, %v3282_v38  ;;  %v11277_v38 = vld [vmem:[%s11680_s11 + $0x310] ss:$8 sps:$4 sm:$0xff]  }
  0xfa   : > { %10334 = vmatmul.mubr.msk.f32.gmra.mrb[18].mxu1 %vm1475_vm1, %v12626_v16  ;;  %10501 = vmatprep.mubr.msk.f32.mxu0 %vm1475_vm1, %v3283_v47  ;;  %v11278_v47 = vld [vmem:[%s11680_s11 + $0x320] ss:$8 sps:$4 sm:$0xff]  }
  0xfb   : > { %10336 = vmatprep.mubr.msk.f32.mxu1 %vm1475_vm1, %v12635_v39 }
  0xfd   : > { %10502 = vmatmul.mubr.msk.f32.gmra.mrb[30].mxu0 %vm1475_vm1, %v3284_v50  ;;  %v16440_v50 = vld [vmem:[#allocation23_spill] sm:$0xff] }
  0xfe   : > { %10337 = vmatmul.mubr.msk.f32.gmra.mrb[20].mxu1 %vm1475_vm1, %v12645_v28  ;;  %10506 = vmatprep.mubr.msk.f32.mxu0 %vm1475_vm1, %v11383_v9  ;;  %v16442_v9 = vld [vmem:[#allocation25_spill] sm:$0xff] }
  0xff   : > { %10339 = vmatprep.mubr.msk.f32.mxu1 %vm1475_vm1, %v12653_v48 }
 0x101   : > { %10507 = vmatmul.mubr.msk.f32.vlgmr.msra.gmra.mrb[0].mxu0 %vm1475_vm1, %v11384_v30  ;;  %v11282_v30 = vld [vmem:[%s11680_s11 + $0x3a0] ss:$8 sps:$4 sm:$0xff]  }
 0x102   : > { %10340 = vmatmul.mubr.msk.f32.gmra.mrb[22].mxu1 %vm1475_vm1, %v12660_v34  ;;  %10555 = vmatpush3.msk.msra.mxu0 %vm1534_vm0, %v16438_v35  ;;  %v11283_v35 = vld [vmem:[%s11680_s11 + $0x3b0] ss:$8 sps:$4 sm:$0xff]  }
 0x103   : > { %10342 = vmatprep.mubr.msk.f32.mxu1 %vm1475_vm1, %v12667_v60  ;;  %10509 = vmatprep.mubr.msk.f32.mxu0 %vm1475_vm1, %v11385_v56  ;;  %v16444_v56 = vld [vmem:[#allocation27_spill] sm:$0xff] }
 0x104   : > { %10604 = vmatprep.subr.msk.mxu0 %vm1534_vm0, %v12678_v63 }
 0x105   : > { %10510 = vmatmul.mubr.msk.f32.gmra.mrb[2].mxu0 %vm1475_vm1, %v11386_v59  ;;  %v16445_v59 = vld [vmem:[#allocation28_spill] sm:$0xff] }
 0x106   : > { %10343 = vmatmul.mubr.msk.f32.gmra.mrb[24].mxu1 %vm1475_vm1, %v12675_v53  ;;  %10512 = vmatprep.mubr.msk.f32.mxu0 %vm1475_vm1, %v11387_v17  ;;  %v16446_v17 = vld [vmem:[#allocation29_spill] sm:$0xff] }
 0x107   : > { %10345 = vmatprep.mubr.msk.f32.mxu1 %vm1475_vm1, %v12686_v55 }
 0x109   : > { %10513 = vmatmul.mubr.msk.f32.gmra.mrb[4].mxu0 %vm1475_vm1, %v11388_v37  ;;  %v16447_v37 = vld [vmem:[#allocation30_spill] sm:$0xff] }
 0x10a   : > { %10346 = vmatmul.mubr.msk.f32.gmra.mrb[26].mxu1 %vm1475_vm1, %v12699_v45  ;;  %10515 = vmatprep.mubr.msk.f32.mxu0 %vm1475_vm1, %v11389_v4  ;;  %v16449_v4 = vld [vmem:[#allocation32_spill] sm:$0xff] }
 0x10b   : > { %10348 = vmatprep.mubr.msk.f32.mxu1 %vm1475_vm1, %v12707_v6 }
 0x10d   : > { %10516 = vmatmul.mubr.msk.f32.gmra.mrb[6].mxu0 %vm1475_vm1, %v11390_v57  ;;  %v16450_v57 = vld [vmem:[#allocation33_spill] sm:$0xff] }
 0x10e   : > { %10349 = vmatmul.mubr.msk.f32.gmra.mrb[28].mxu1 %vm1475_vm1, %v12715_v8  ;;  %10518 = vmatprep.mubr.msk.f32.mxu0 %vm1475_vm1, %v11391_v21  ;;  %v11284_v21 = vld [vmem:[%s11680_s11 + $0x3c0] ss:$8 sps:$4 sm:$0xff]  }
 0x10f   : > { %10351 = vmatprep.mubr.msk.f32.mxu1 %vm1475_vm1, %v12723_v24 }
 0x111   : > { %10519 = vmatmul.mubr.msk.f32.gmra.mrb[8].mxu0 %vm1475_vm1, %v11392_v2  ;;  %v11285_v2 = vld [vmem:[%s11680_s11 + $0x3d0] ss:$8 sps:$4 sm:$0xff]  }
 0x112   : > { %10352 = vmatmul.mubr.msk.f32.gmra.mrb[30].mxu1 %vm1475_vm1, %v12731_v0  ;;  %10521 = vmatprep.mubr.msk.f32.mxu0 %vm1475_vm1, %v11393_v52  ;;  %v11287_v52 = vld [vmem:[%s11680_s11 + $0x3f0] ss:$8 sps:$4 sm:$0xff]  }
 0x113   : > { %10386 = vmatprep.mubr.msk.f32.mxu1 %vm1475_vm1, %v11272_v20  ;;  %v16451_v20 = vld [vmem:[#allocation34_spill] sm:$0xff] }
 0x115   : > { %10522 = vmatmul.mubr.msk.f32.gmra.mrb[10].mxu0 %vm1475_vm1, %v11394_v23  ;;  %v16454_v23 = vld [vmem:[#allocation37_spill] sm:$0xff] }
 0x116   : > { %10387 = vmatmul.mubr.msk.f32.vlgmr.msra.gmra.mrb[20].mxu1 %vm1475_vm1, %v11273_v44  ;;  %10524 = vmatprep.mubr.msk.f32.mxu0 %vm1475_vm1, %v11395_v15  ;;  %v16452_v44 = vld [vmem:[#allocation35_spill] sm:$0xff]  ;;  %v16456_v15 = vld [vmem:[#allocation40_spill] sm:$0xff] }
 0x117   : > { %10389 = vmatprep.mubr.msk.f32.mxu1 %vm1475_vm1, %v11274_v51  ;;  %v11286_v51 = vld [vmem:[%s11680_s11 + $0x3e0] ss:$8 sps:$4 sm:$0xff]  }
 0x119   : > { %10525 = vmatmul.mubr.msk.f32.gmra.mrb[12].mxu0 %vm1475_vm1, %v11396_v49  ;;  %v16458_v49 = vld [vmem:[#allocation47_spill] sm:$0xff] }
 0x11a   : > { %10390 = vmatmul.mubr.msk.f32.gmra.mrb[22].mxu1 %vm1475_vm1, %v11275_v12  ;;  %10527 = vmatprep.mubr.msk.f32.mxu0 %vm1475_vm1, %v16439_v18  ;;  %v16453_v12 = vld [vmem:[#allocation36_spill] sm:$0xff] }
 0x11b   : > { %10392 = vmatprep.mubr.msk.f32.mxu1 %vm1475_vm1, %v11276_v13  ;;  %v16455_v13 = vld [vmem:[#allocation38_spill] sm:$0xff]  ;;  %v16460_v18 = vld [vmem:[#allocation56_spill] sm:$0xff] }
 0x11d   : > { %10528 = vmatmul.mubr.msk.f32.gmra.mrb[14].mxu0 %vm1475_vm1, %v16440_v50  ;;  %v16463_v50 = vld [vmem:[#allocation66_spill] sm:$0xff] }
 0x11e   : > { %10393 = vmatmul.mubr.msk.f32.gmra.mrb[24].mxu1 %vm1475_vm1, %v11277_v38  ;;  %10530 = vmatprep.mubr.msk.f32.mxu0 %vm1475_vm1, %v16441_v3  ;;  %v16457_v38 = vld [vmem:[#allocation41_spill] sm:$0xff]  ;;  %v16465_v3 = vld [vmem:[#allocation79_spill] sm:$0xff] }
 0x11f   : > { %10395 = vmatprep.mubr.msk.f32.mxu1 %vm1475_vm1, %v11278_v47  ;;  %v16459_v47 = vld [vmem:[#allocation48_spill] sm:$0xff] }
 0x121   : > { %10531 = vmatmul.mubr.msk.f32.gmra.mrb[16].mxu0 %vm1475_vm1, %v16442_v9  ;;  %v16467_v9 = vld [vmem:[#allocation86_spill] sm:$0xff] }
 0x122   : > { %10396 = vmatmul.mubr.msk.f32.gmra.mrb[26].mxu1 %vm1475_vm1, %v11279_v22  ;;  %10533 = vmatprep.mubr.msk.f32.mxu0 %vm1475_vm1, %v16443_v32  ;;  %v16461_v22 = vld [vmem:[#allocation57_spill] sm:$0xff]  ;;  %v16469_v32 = vld [vmem:[#allocation90_spill] sm:$0xff] }
 0x123   : > { %10398 = vmatprep.mubr.msk.f32.mxu1 %vm1475_vm1, %v11280_v25  ;;  %v16464_v25 = vld [vmem:[#allocation75_spill] sm:$0xff] }
 0x125   : > { %10534 = vmatmul.mubr.msk.f32.gmra.mrb[18].mxu0 %vm1475_vm1, %v16444_v56  ;;  %v16471_v56 = vld [vmem:[#allocation93_spill] sm:$0xff] }
 0x126   : > { %10399 = vmatmul.mubr.msk.f32.gmra.mrb[28].mxu1 %vm1475_vm1, %v11281_v54  ;;  %10536 = vmatprep.mubr.msk.f32.mxu0 %vm1475_vm1, %v16445_v59  ;;  %v16466_v54 = vld [vmem:[#allocation85_spill] sm:$0xff]  ;;  %v16472_v59 = vld [vmem:[#allocation95_spill] sm:$0xff] }
 0x127   : > { %10401 = vmatprep.mubr.msk.f32.mxu1 %vm1475_vm1, %v11282_v30  ;;  %v16468_v30 = vld [vmem:[#allocation89_spill] sm:$0xff] }
 0x129   : > { %10537 = vmatmul.mubr.msk.f32.gmra.mrb[20].mxu0 %vm1475_vm1, %v16446_v17  ;;  %v16473_v17 = vld [vmem:[#allocation96_spill] sm:$0xff] }
 0x12a   : > { %10402 = vmatmul.mubr.msk.f32.gmra.mrb[30].mxu1 %vm1475_vm1, %v11283_v35  ;;  %10539 = vmatprep.mubr.msk.f32.mxu0 %vm1475_vm1, %v16447_v37  ;;  %v16470_v35 = vld [vmem:[#allocation92_spill] sm:$0xff]  ;;  %v16474_v37 = vld [vmem:[#allocation97_spill] sm:$0xff] }
 0x12d   : > { %10540 = vmatmul.mubr.msk.f32.gmra.mrb[22].mxu0 %vm1475_vm1, %v16448_v61  ;;  %v16475_v61 = vld [vmem:[#allocation98_spill] sm:$0xff] }
 0x12e   : > { %10542 = vmatprep.mubr.msk.f32.mxu0 %vm1475_vm1, %v16449_v4  ;;  %v1368_v4 = vld [vmem:[%s11680_s11 + $0x3c4] sm:$0xf] }
 0x131   : > { %10543 = vmatmul.mubr.msk.f32.gmra.mrb[24].mxu0 %vm1475_vm1, %v16450_v57  ;;  %v16476_v57 = vmov 0.0  }
 0x132   : > { %10545 = vmatprep.mubr.msk.f32.mxu0 %vm1475_vm1, %v16451_v20  ;;  %v3868_v20 = vcombine.low %v16476_v57, %v1368_v4 }
 0x135   : > { %10546 = vmatmul.mubr.msk.f32.gmra.mrb[26].mxu0 %vm1475_vm1, %v16452_v44  ;;  %v1372_v44 = vld [vmem:[%s11680_s11 + $0x3d4] sm:$0xf] }
 0x136   : > { %10548 = vmatprep.mubr.msk.f32.mxu0 %vm1475_vm1, %v11284_v21  ;;  %v1370_v21 = vld [vmem:[%s11680_s11 + $0x3cc] sm:$0xf] }
 0x139   : > { %10549 = vmatmul.mubr.msk.f32.gmra.mrb[28].mxu0 %vm1475_vm1, %v11285_v2  ;;  %v1374_v2 = vld [vmem:[%s11680_s11 + $0x3dc] sm:$0xf] }
 0x13a   : > { %10551 = vmatprep.mubr.msk.f32.mxu0 %vm1475_vm1, %v11286_v51  ;;  %v1376_v51 = vld [vmem:[%s11680_s11 + $0x3e4] sm:$0xf] }
 0x13d   : > { %10552 = vmatmul.mubr.msk.f32.gmra.mrb[30].mxu0 %vm1475_vm1, %v11287_v52  ;;  %v1378_v52 = vld [vmem:[%s11680_s11 + $0x3ec] sm:$0xf] }
 0x13e   : > { %10556 = vmatprep.mubr.msk.f32.mxu0 %vm1475_vm1, %v16453_v12  ;;  %v1380_v12 = vld [vmem:[%s11680_s11 + $0x3f4] sm:$0xf] }
 0x141   : > { %10557 = vmatmul.mubr.msk.f32.vlgmr.msra.gmra.mrb[0].mxu0 %vm1475_vm1, %v16454_v23 }
 0x142   : > { %10605 = vmatpush3.msk.msra.mxu0 %vm1534_vm0, %v12678_v63  ;;  %10559 = vmatprep.mubr.msk.f32.mxu0 %vm1475_vm1, %v16455_v13  ;;  %v16462_v63 = vld [vmem:[#allocation65_spill] sm:$0xff] }
 0x145   : > { %10560 = vmatmul.mubr.msk.f32.gmra.mrb[2].mxu0 %vm1475_vm1, %v16456_v15 }
 0x146   : > { %10562 = vmatprep.mubr.msk.f32.mxu0 %vm1475_vm1, %v16457_v38 }
 0x149   : > { %10563 = vmatmul.mubr.msk.f32.gmra.mrb[4].mxu0 %vm1475_vm1, %v16458_v49 }
 0x14a   : > { %10565 = vmatprep.mubr.msk.f32.mxu0 %vm1475_vm1, %v16459_v47 }
 0x14d   : > { %10566 = vmatmul.mubr.msk.f32.gmra.mrb[6].mxu0 %vm1475_vm1, %v16460_v18 }
 0x14e   : > { %10568 = vmatprep.mubr.msk.f32.mxu0 %vm1475_vm1, %v16461_v22 }
 0x151   : > { %10569 = vmatmul.mubr.msk.f32.gmra.mrb[8].mxu0 %vm1475_vm1, %v16462_v63  ;;  %v4767_v63 = vlaneseq }
 0x152   : > { %10571 = vmatprep.mubr.msk.f32.mxu0 %vm1475_vm1, %v16463_v50 }
 0x153   : > { %v13003_v50 = vshrl.u32 %v4767_v63, 7 }
 0x155   : > { %10572 = vmatmul.mubr.msk.f32.gmra.mrb[10].mxu0 %vm1475_vm1, %v16464_v25  ;;  %16488 = vst [vmem:[#allocation58_spill] sm:$0xff] %v13003_v50  ;;  %v13006_v25 = vsub.s32 1, %v13003_v50 }
 0x156   : > { %10574 = vmatprep.mubr.msk.f32.mxu0 %vm1475_vm1, %v16465_v3  ;;  %v13009_v3 = vsub.s32 2, %v13003_v50 }
 0x157   : > { %16489 = vst [vmem:[#allocation53_spill] sm:$0xff] %v13006_v25 }
 0x158   : > { %16490 = vst [vmem:[#allocation60_spill] sm:$0xff] %v13009_v3 }
 0x159   : > { %10575 = vmatmul.mubr.msk.f32.gmra.mrb[12].mxu0 %vm1475_vm1, %v16466_v54 }
 0x15a   : > { %10577 = vmatprep.mubr.msk.f32.mxu0 %vm1475_vm1, %v16467_v9  ;;  %v4509_v9 = vld [vmem:[%s11469_s13] sm:$0x7] }
 0x15d   : > { %10578 = vmatmul.mubr.msk.f32.gmra.mrb[14].mxu0 %vm1475_vm1, %v16468_v30  ;;  %v13013_v30 = vsub.s32 0, %v13003_v50 }
 0x15e   : > { %10580 = vmatprep.mubr.msk.f32.mxu0 %vm1475_vm1, %v16469_v32 }
 0x15f   : > { %16491 = vst [vmem:[#allocation55_spill] sm:$0xff] %v13013_v30 }
 0x161   : > { %10581 = vmatmul.mubr.msk.f32.gmra.mrb[16].mxu0 %vm1475_vm1, %v16470_v35 }
 0x162   : > { %10583 = vmatprep.mubr.msk.f32.mxu0 %vm1475_vm1, %v16471_v56 }
 0x165   : > { %10584 = vmatmul.mubr.msk.f32.gmra.mrb[18].mxu0 %vm1475_vm1, %v16472_v59 }
 0x166   : > { %10586 = vmatprep.mubr.msk.f32.mxu0 %vm1475_vm1, %v16473_v17 }
 0x169   : > { %10587 = vmatmul.mubr.msk.f32.gmra.mrb[20].mxu0 %vm1475_vm1, %v16474_v37  ;;  %v13016_v37 = vrot.slane %v4509_v9, %v13006_v25 }
 0x16a   : > { %10589 = vmatprep.mubr.msk.f32.mxu0 %vm1475_vm1, %v16475_v61  ;;  %v13019_v61 = vrot.slane %v4509_v9, %v13009_v3 }
 0x16d   : > { %10590 = vmatmul.mubr.msk.f32.gmra.mrb[22].mxu0 %vm1475_vm1, %v12406_v46  ;;  %v3869_v46 = vcombine.low %v1370_v21, %v1372_v44 }
 0x16e   : > { %10592 = vmatprep.mubr.msk.f32.mxu0 %vm1475_vm1, %v12415_v11  ;;  %v3870_v11 = vcombine.low %v1374_v2, %v1376_v51 }
 0x171   : > { %10593 = vmatmul.mubr.msk.f32.gmra.mrb[24].mxu0 %vm1475_vm1, %v12437_v14  ;;  %v3871_v14 = vcombine.low %v1378_v52, %v1380_v12 }
 0x172   : > { %10595 = vmatprep.mubr.msk.f32.mxu0 %vm1475_vm1, %v12445_v19 }
 0x175   : > { %10596 = vmatmul.mubr.msk.f32.gmra.mrb[26].mxu0 %vm1475_vm1, %v12460_v10 }
 0x176   : > { %10598 = vmatprep.mubr.msk.f32.mxu0 %vm1475_vm1, %v3868_v20 }
 0x179   : > { %10599 = vmatmul.mubr.msk.f32.gmra.mrb[28].mxu0 %vm1475_vm1, %v3869_v46 }
 0x17a   : > { %10601 = vmatprep.mubr.msk.f32.mxu0 %vm1475_vm1, %v3870_v11 }
 0x17d   : > { %10602 = vmatmul.mubr.msk.f32.gmra.mrb[30].mxu0 %vm1475_vm1, %v3871_v14 }
 0x17e   : > { %10606 = vmatprep.mubr.msk.f32.mxu0 %vm1475_vm1, %v12489_v31 }
 0x181   : > { %10607 = vmatmul.mubr.msk.f32.vlgmr.msra.gmra.mrb[0].mxu0 %vm1475_vm1, %v12501_v36 }
 0x182   : > { %10609 = vmatprep.mubr.msk.f32.mxu0 %vm1475_vm1, %v12509_v40 }
 0x185   : > { %10610 = vmatmul.mubr.msk.f32.gmra.mrb[2].mxu0 %vm1475_vm1, %v12518_v41 }
 0x186   : > { %10612 = vmatprep.mubr.msk.f32.mxu0 %vm1475_vm1, %v12527_v43  ;;  %v4109_v43 = vcombine.low %v1368_v4, %v1370_v21  ;;  %v13022_v4 = vrot.slane %v4509_v9, %v13013_v30 }
 0x189   : > { %10613 = vmatmul.mubr.msk.f32.gmra.mrb[4].mxu0 %vm1475_vm1, %v12537_v7 }
 0x18a   : > { %10615 = vmatprep.mubr.msk.f32.mxu0 %vm1475_vm1, %v12545_v27 }
 0x18d   : > { %10616 = vmatmul.mubr.msk.f32.gmra.mrb[6].mxu0 %vm1475_vm1, %v12554_v62  ;;  %v4110_v62 = vcombine.low %v1372_v44, %v1374_v2 }
 0x18e   : > { %10618 = vmatprep.mubr.msk.f32.mxu0 %vm1475_vm1, %v12563_v29  ;;  %v4111_v29 = vcombine.low %v1376_v51, %v1378_v52 }
 0x191   : > { %10619 = vmatmul.mubr.msk.f32.gmra.mrb[8].mxu0 %vm1475_vm1, %v12573_v42  ;;  %v1382_v42 = vld [vmem:[%s11680_s11 + $0x3fc] sm:$0xf]  ;;  %s16756_s11 = sld [smem:[#allocation10_spill]] }
 0x192   : > { %10621 = vmatprep.mubr.msk.f32.mxu0 %vm1475_vm1, %v12581_v1 }
 0x195   : > { %10622 = vmatmul.mubr.msk.f32.gmra.mrb[10].mxu0 %vm1475_vm1, %v12590_v33 }
 0x196   : > { %10624 = vmatprep.mubr.msk.f32.mxu0 %vm1475_vm1, %v12599_v26  ;;  %v4112_v26 = vcombine.low %v1380_v12, %v1382_v42 }
 0x199   : > { %10625 = vmatmul.mubr.msk.f32.gmra.mrb[12].mxu0 %vm1475_vm1, %v12609_v5 }
 0x19a   : > { %10627 = vmatprep.mubr.msk.f32.mxu0 %vm1475_vm1, %v12617_v58 }
 0x19d   : > { %10628 = vmatmul.mubr.msk.f32.gmra.mrb[14].mxu0 %vm1475_vm1, %v12626_v16 }
 0x19e   : > { %10630 = vmatprep.mubr.msk.f32.mxu0 %vm1475_vm1, %v12635_v39 }
 0x1a1   : > { %10631 = vmatmul.mubr.msk.f32.gmra.mrb[16].mxu0 %vm1475_vm1, %v12645_v28 }
 0x1a2   : > { %10633 = vmatprep.mubr.msk.f32.mxu0 %vm1475_vm1, %v12653_v48 }
 0x1a5   : > { %10634 = vmatmul.mubr.msk.f32.gmra.mrb[18].mxu0 %vm1475_vm1, %v12660_v34 }
 0x1a6   : > { %10636 = vmatprep.mubr.msk.f32.mxu0 %vm1475_vm1, %v12667_v60 }
 0x1a9   : > { %v10308_v19 = vpop.f32.mrb[0].mxu1  ;;  %10637 = vmatmul.mubr.msk.f32.gmra.mrb[20].mxu0 %vm1475_vm1, %v12675_v53 }
 0x1aa   : > { %v2286_v10 = vpop.f32.mrb[1].mxu1  ;;  %10639 = vmatprep.mubr.msk.f32.mxu0 %vm1475_vm1, %v12686_v55 }
 0x1ad   : > { %v12927_v31 = vpop.f32.mrb[2].mxu1  ;;  %10640 = vmatmul.mubr.msk.f32.gmra.mrb[22].mxu0 %vm1475_vm1, %v12699_v45 }
 0x1ae   : > { %v12929_v36 = vpop.f32.mrb[3].mxu1  ;;  %10642 = vmatprep.mubr.msk.f32.mxu0 %vm1475_vm1, %v12707_v6 }
 0x1b1   : > { %v12935_v40 = vpop.f32.mrb[4].mxu1  ;;  %10643 = vmatmul.mubr.msk.f32.gmra.mrb[24].mxu0 %vm1475_vm1, %v12715_v8 }
 0x1b2   : > { %v12937_v41 = vpop.f32.mrb[5].mxu1  ;;  %10645 = vmatprep.mubr.msk.f32.mxu0 %vm1475_vm1, %v12723_v24  ;;  %v5689_v24 = vld [vmem:[%s11484_s25] sm:$0xff] }
 0x1b3   : > { %10654 = vmatprep.subr.mxu1 %v5689_v24 }
 0x1b4   : > { %10655 = vmatpush3.msra.mxu1 %v5689_v24 }
 0x1b5   : > { %v12943_v7 = vpop.f32.mrb[6].mxu1  ;;  %10646 = vmatmul.mubr.msk.f32.gmra.mrb[26].mxu0 %vm1475_vm1, %v12731_v0 }
 0x1b6   : > { %v12945_v27 = vpop.f32.mrb[7].mxu1  ;;  %10648 = vmatprep.mubr.msk.f32.mxu0 %vm1475_vm1, %v4109_v43 }
 0x1b9   : > { %v12951_v1 = vpop.f32.mrb[8].mxu1  ;;  %10649 = vmatmul.mubr.msk.f32.gmra.mrb[28].mxu0 %vm1475_vm1, %v4110_v62 }
 0x1ba   : > { %v12953_v33 = vpop.f32.mrb[9].mxu1  ;;  %10651 = vmatprep.mubr.msk.f32.mxu0 %vm1475_vm1, %v4111_v29 }
 0x1bd   : > { %v12957_v5 = vpop.f32.mrb[10].mxu1  ;;  %10652 = vmatmul.mubr.msk.f32.gmra.mrb[30].mxu0 %vm1475_vm1, %v4112_v26 }
 0x1be   : > { %v12959_v58 = vpop.f32.mrb[11].mxu1 }
 0x1c1   : > { %v12962_v16 = vpop.f32.mrb[12].mxu1 }
 0x1c2   : > { %v12964_v39 = vpop.f32.mrb[13].mxu1 }
 0x1c5   : > { %v12966_v28 = vpop.f32.mrb[14].mxu1 }
 0x1c6   : > { %v12968_v48 = vpop.f32.mrb[15].mxu1 }
 0x1c9   : > { %v12970_v34 = vpop.f32.mrb[16].mxu1 }
 0x1ca   : > { %v12972_v60 = vpop.f32.mrb[17].mxu1 }
 0x1cd   : > { %v12974_v53 = vpop.f32.mrb[18].mxu1 }
 0x1ce   : > { %v12976_v55 = vpop.f32.mrb[19].mxu1 }
 0x1e9   : > { %v12978_v45 = vpop.f32.mrb[20].mxu1 }
 0x1ea   : > { %v12980_v6 = vpop.f32.mrb[21].mxu1 }
 0x1eb   : > { %16477 = vst [vmem:[#allocation39_spill] sm:$0xff] %v12980_v6 }
 0x1ed   : > { %v12982_v8 = vpop.f32.mrb[22].mxu1 }
 0x1ee   : > { %16478 = vst [vmem:[#allocation44_spill] sm:$0xff] %v12982_v8  ;;  %v12985_v0 = vpop.f32.mrb[23].mxu1 }
 0x1ef   : > { %16479 = vst [vmem:[#allocation42_spill] sm:$0xff] %v12985_v0 }
 0x1f1   : > { %v12987_v23 = vpop.f32.mrb[24].mxu1 }
 0x1f2   : > { %16480 = vst [vmem:[#allocation43_spill] sm:$0xff] %v12987_v23  ;;  %v12989_v13 = vpop.f32.mrb[25].mxu1 }
 0x1f3   : > { %16481 = vst [vmem:[#allocation49_spill] sm:$0xff] %v12989_v13 }
 0x1f5   : > { %v12991_v15 = vpop.f32.mrb[26].mxu1 }
 0x1f6   : > { %16482 = vst [vmem:[#allocation45_spill] sm:$0xff] %v12991_v15  ;;  %v12993_v38 = vpop.f32.mrb[27].mxu1 }
 0x1f7   : > { %16483 = vst [vmem:[#allocation51_spill] sm:$0xff] %v12993_v38 }
 0x1f9   : > { %v12995_v49 = vpop.f32.mrb[28].mxu1 }
 0x1fa   : > { %16484 = vst [vmem:[#allocation46_spill] sm:$0xff] %v12995_v49  ;;  %v12997_v47 = vpop.f32.mrb[29].mxu1 }
 0x1fb   : > { %16485 = vst [vmem:[#allocation50_spill] sm:$0xff] %v12997_v47 }
 0x1fd   : > { %v12999_v18 = vpop.f32.mrb[30].mxu1 }
 0x1fe   : > { %16486 = vst [vmem:[#allocation54_spill] sm:$0xff] %v12999_v18  ;;  %v13001_v22 = vpop.f32.mrb[31].mxu1 }
 0x1ff   : > { %16487 = vst [vmem:[#allocation52_spill] sm:$0xff] %v13001_v22 }
 0x254   : > { %v10608_v54 = vpop.f32.mrb[0].mxu0 }
 0x255   : > { %v10815_v32 = vadd.f32 %v10608_v54, %v10308_v19  ;;  %v4190_v35 = vpop.f32.mrb[1].mxu0 }
 0x256   : > { %v10816_v56 = vadd.f32 %v4190_v35, %v2286_v10 }
 0x257   : > { %v4478_v59 = vcombine.high %v10815_v32, %v10815_v32  ;;  %v4512_v17 = vrot.slane %v10815_v32, 7 }
 0x258   : > { %v4477_v20 = vcombine.high %v10816_v56, %v10816_v56  ;;  %v4510_v21 = vrot.slane %v10816_v56, 7  ;;  %v10611_v44 = vpop.f32.mrb[2].mxu0 }
 0x259   : > { %v4513_v2 = vrot.slane %v4478_v59, 7  ;;  %v4640_v51 = vsel %vm3286_vm2, 0.0, %v4512_v17  ;;  %v10817_v46 = vadd.f32 %v10611_v44, %v12927_v31  ;;  %v4200_v11 = vpop.f32.mrb[3].mxu0 }
 0x25a   : > { %v4705_v52 = vsel %vm4702_vm4, %v4640_v51, 0.0  ;;  %v4511_v12 = vrot.slane %v4477_v20, 7  ;;  %v4638_v14 = vsel %vm3286_vm2, 0.0, %v4510_v21  ;;  %v13029_v19 = vadd.f32 %v4200_v11, %v12929_v36  ;;  %v13045_v51 = vld [vmem:[%s11474_s17] ss:$0 sm:$0xff] }
 0x25b   : > { %v4641_v10 = vsel %vm3286_vm2, 0.0, %v4513_v2  ;;  %v4841_v43 = vmul.f32 %v13016_v37, %v4705_v52  ;;  %v5165_v62 = vmul.f32 %v13019_v61, %v4705_v52  ;;  %v4773_v42 = vmul.f32 %v13022_v4, %v4705_v52 }
 0x25c   : > { %v4706_v29 = vsel %vm4702_vm4, %v4641_v10, 0.0  ;;  %v4639_v31 = vsel %vm3286_vm2, 0.0, %v4511_v12  ;;  %v4703_v26 = vsel %vm4702_vm4, %v4638_v14, 0.0  ;;  %v10614_v24 = vpop.f32.mrb[4].mxu0  ;;  %v4480_v9 = vcombine.high %v10817_v46, %v10817_v46 }
 0x25d   : > { %v4842_v63 = vmul.f32 %v13016_v37, %v4706_v29  ;;  %v4969_v36 = vrot.slane %v4841_v43, 1  ;;  %v5166_v54 = vmul.f32 %v13019_v61, %v4706_v29  ;;  %v4210_v32 = vpop.f32.mrb[5].mxu0  ;;  %v4774_v35 = vmul.f32 %v13022_v4, %v4706_v29 }
 0x25e   : > { %v5293_v56 = vrot.slane %v5165_v62, 2  ;;  %v4704_v59 = vsel %vm4702_vm4, %v4639_v31, 0.0  ;;  %v4839_v17 = vmul.f32 %v13016_v37, %v4703_v26  ;;  %v4771_v2 = vmul.f32 %v13022_v4, %v4703_v26 }
 0x25f   : > { %v4970_v20 = vrot.slane %v4842_v63, 1  ;;  %v5097_v21 = vadd.f32 %v4969_v36, %v4773_v42  ;;  %v5294_v44 = vrot.slane %v5166_v54, 2  ;;  %v4840_v11 = vmul.f32 %v13016_v37, %v4704_v59  ;;  %v13055_v42 = vld [vmem:[%s11479_s21] ss:$0 sm:$0xff] }
 0x260   : > { %v4967_v52 = vrot.slane %v4839_v17, 1  ;;  %v5163_v12 = vmul.f32 %v13019_v61, %v4703_v26  ;;  %v5164_v14 = vmul.f32 %v13019_v61, %v4704_v59  ;;  %v13050_v10 = vpop.f32.mrb[6].mxu0  ;;  %v4516_v29 = vrot.slane %v10817_v46, 7 }
 0x261   : > { %v5098_v43 = vadd.f32 %v4970_v20, %v4774_v35  ;;  %v5421_v62 = vadd.f32 %v5293_v56, %v5097_v21  ;;  %v4517_v31 = vrot.slane %v4480_v9, 7  ;;  %v13052_v63 = vpop.f32.mrb[7].mxu0  ;;  %v4772_v36 = vmul.f32 %v13022_v4, %v4704_v59 }
 0x262   : > { %v4968_v54 = vrot.slane %v4840_v11, 1  ;;  %v5095_v50 = vadd.f32 %v4967_v52, %v4771_v2  ;;  %v5291_v3 = vrot.slane %v5163_v12, 2  ;;  %v4644_v25 = vsel %vm3286_vm2, 0.0, %v4516_v29 }
 0x263   : > { %v5422_v17 = vadd.f32 %v5294_v44, %v5098_v43  ;;  %v5492_v26 = vmul.f32 %v13045_v51, %v5421_v62  ;;  %v4645_v30 = vsel %vm3286_vm2, 0.0, %v4517_v31  ;;  %v5292_v35 = vrot.slane %v5164_v14, 2 }
 0x264   : > { %v4709_v46 = vsel %vm4702_vm4, %v4644_v25, 0.0  ;;  %v4710_v9 = vsel %vm4702_vm4, %v4645_v30, 0.0  ;;  %v13063_v56 = vpop.f32.mrb[8].mxu0  ;;  %v5096_v21 = vadd.f32 %v4968_v54, %v4772_v36  ;;  %v13069_v44 = vadd.f32 %v5291_v3, %v5095_v50 }
 0x265   : > { %v5493_v20 = vmul.f32 %v13045_v51, %v5422_v17  ;;  %v13067_v59 = vadd.f32 %v13055_v42, %v5492_v26  ;;  %v13071_v2 = vpop.f32.mrb[9].mxu0  ;;  %v4777_v11 = vmul.f32 %v13022_v4, %v4709_v46  ;;  %v4845_v52 = vmul.f32 %v13016_v37, %v4709_v46 }
 0x266   : > { %v4846_v25 = vmul.f32 %v13016_v37, %v4710_v9  ;;  %v5169_v30 = vmul.f32 %v13019_v61, %v4709_v46  ;;  %v4778_v14 = vmul.f32 %v13022_v4, %v4710_v9  ;;  %v5170_v43 = vmul.f32 %v13019_v61, %v4710_v9 }
 0x267   : > { %16492 = vst [vmem:[#allocation62_spill] sm:$0xff] %v13067_v59  ;;  %v5564_v12 = vadd.f32 %v13055_v42, %v5493_v20  ;;  %v4479_v50 = vcombine.high %v13029_v19, %v13029_v19  ;;  %v4973_v62 = vrot.slane %v4845_v52, 1  ;;  %v4514_v31 = vrot.slane %v13029_v19, 7 }
 0x268   : > { %v4974_v29 = vrot.slane %v4846_v25, 1  ;;  %v13084_v36 = vpop.f32.mrb[10].mxu0  ;;  %v5297_v17 = vrot.slane %v5169_v30, 2  ;;  %v10819_v46 = vadd.f32 %v10614_v24, %v12935_v40  ;;  %v10820_v18 = vadd.f32 %v4210_v32, %v12937_v41 }
 0x269   : > { %v5628_v54 = vmax.f32 %v5564_v12, 0.0  ;;  %v4515_v26 = vrot.slane %v4479_v50, 7  ;;  %v13087_v20 = vpop.f32.mrb[11].mxu0  ;;  %v5101_v57 = vadd.f32 %v4973_v62, %v4777_v11  ;;  %v4642_v22 = vsel %vm3286_vm2, 0.0, %v4514_v31 }
 0x26a   : > { %v5102_v9 = vadd.f32 %v4974_v29, %v4778_v14  ;;  %v5298_v3 = vrot.slane %v5170_v43, 2  ;;  %v4707_v19 = vsel %vm4702_vm4, %v4642_v22, 0.0  ;;  %v4482_v25 = vcombine.high %v10819_v46, %v10819_v46 }
 0x26b   : > { %v4643_v52 = vsel %vm3286_vm2, 0.0, %v4515_v26  ;;  %v16493_v12 = vmax.f32 %v13067_v59, 0.0  ;;  %v13097_v50 = vadd.f32 %v5292_v35, %v5096_v21  ;;  %v13099_v40 = vadd.f32 %v5297_v17, %v5101_v57 }
 0x26c   : > { %v4708_v24 = vsel %vm4702_vm4, %v4643_v52, 0.0  ;;  %v13102_v11 = vpop.f32.mrb[12].mxu0  ;;  %v13104_v14 = vadd.f32 %v5298_v3, %v5102_v9  ;;  %v4843_v41 = vmul.f32 %v13016_v37, %v4707_v19  ;;  %v5167_v22 = vmul.f32 %v13019_v61, %v4707_v19 }
 0x26d   : > { %v13095_v30 = vcombine.low %v16493_v12, %v5628_v54  ;;  %v4844_v32 = vmul.f32 %v13016_v37, %v4708_v24  ;;  %v13109_v43 = vpop.f32.mrb[13].mxu0  ;;  %v5168_v62 = vmul.f32 %v13019_v61, %v4708_v24  ;;  %v4520_v35 = vrot.slane %v10819_v46, 7 }
 0x26e   : > { %v4521_v21 = vrot.slane %v4482_v25, 7  ;;  %v4481_v57 = vcombine.high %v10820_v18, %v10820_v18  ;;  %v4775_v29 = vmul.f32 %v13022_v4, %v4707_v19  ;;  %v4776_v31 = vmul.f32 %v13022_v4, %v4708_v24 }
 0x26f   : > { %v4971_v54 = vrot.slane %v4843_v41, 1  ;;  %v4972_v3 = vrot.slane %v4844_v32, 1  ;;  %v4648_v17 = vsel %vm3286_vm2, 0.0, %v4520_v35  ;;  %v4518_v9 = vrot.slane %v10820_v18, 7 }
 0x270   : > { %v4649_v26 = vsel %vm3286_vm2, 0.0, %v4521_v21  ;;  %v4519_v52 = vrot.slane %v4481_v57, 7  ;;  %v13116_v12 = vpop.f32.mrb[14].mxu0  ;;  %v4713_v46 = vsel %vm4702_vm4, %v4648_v17, 0.0  ;;  %v5295_v19 = vrot.slane %v5167_v22, 2 }
 0x271   : > { %v5099_v59 = vadd.f32 %v4971_v54, %v4775_v29  ;;  %v5100_v47 = vadd.f32 %v4972_v3, %v4776_v31  ;;  %v4714_v25 = vsel %vm4702_vm4, %v4649_v26, 0.0  ;;  %v13120_v49 = vpop.f32.mrb[15].mxu0  ;;  %v5296_v24 = vrot.slane %v5168_v62, 2 }
 0x272   : > { %v4849_v41 = vmul.f32 %v13016_v37, %v4713_v46  ;;  %v4850_v32 = vmul.f32 %v13016_v37, %v4714_v25  ;;  %v4781_v35 = vmul.f32 %v13022_v4, %v4713_v46  ;;  %v4782_v18 = vmul.f32 %v13022_v4, %v4714_v25 }
 0x273   : > { %v5173_v21 = vmul.f32 %v13019_v61, %v4713_v46  ;;  %v5174_v57 = vmul.f32 %v13019_v61, %v4714_v25  ;;  %v4646_v54 = vsel %vm3286_vm2, 0.0, %v4518_v9  ;;  %v4647_v3 = vsel %vm3286_vm2, 0.0, %v4519_v52 }
 0x274   : > { %v4977_v29 = vrot.slane %v4849_v41, 1  ;;  %v4978_v31 = vrot.slane %v4850_v32, 1  ;;  %v13130_v22 = vpop.f32.mrb[16].mxu0  ;;  %v13132_v62 = vadd.f32 %v5295_v19, %v5099_v59  ;;  %v13134_v17 = vadd.f32 %v5296_v24, %v5100_v47 }
 0x275   : > { %v4711_v26 = vsel %vm4702_vm4, %v4646_v54, 0.0  ;;  %v4712_v38 = vsel %vm4702_vm4, %v4647_v3, 0.0  ;;  %v13138_v15 = vpop.f32.mrb[17].mxu0  ;;  %v5301_v41 = vrot.slane %v5173_v21, 2  ;;  %v5302_v32 = vrot.slane %v5174_v57, 2 }
 0x276   : > { %v5105_v46 = vadd.f32 %v4977_v29, %v4781_v35  ;;  %v5106_v25 = vadd.f32 %v4978_v31, %v4782_v18  ;;  %v4779_v9 = vmul.f32 %v13022_v4, %v4711_v26  ;;  %v4847_v52 = vmul.f32 %v13016_v37, %v4711_v26 }
 0x277   : > { %v4848_v13 = vmul.f32 %v13016_v37, %v4712_v38  ;;  %v5171_v59 = vmul.f32 %v13019_v61, %v4711_v26  ;;  %v4780_v47 = vmul.f32 %v13022_v4, %v4712_v38  ;;  %v5172_v19 = vmul.f32 %v13019_v61, %v4712_v38 }
 0x278   : > { %v10821_v24 = vadd.f32 %v13050_v10, %v12943_v7  ;;  %v10822_v35 = vadd.f32 %v13052_v63, %v12945_v27  ;;  %v13150_v18 = vpop.f32.mrb[18].mxu0  ;;  %v13152_v21 = vadd.f32 %v5301_v41, %v5105_v46  ;;  %v4975_v57 = vrot.slane %v4847_v52, 1 }
 0x279   : > { %v4976_v29 = vrot.slane %v4848_v13, 1  ;;  %v5299_v31 = vrot.slane %v5171_v59, 2  ;;  %v13154_v54 = vpop.f32.mrb[19].mxu0  ;;  %v10823_v7 = vadd.f32 %v13063_v56, %v12951_v1  ;;  %v13160_v27 = vadd.f32 %v13071_v2, %v12953_v33 }
 0x27a   : > { %v4484_v3 = vcombine.high %v10821_v24, %v10821_v24  ;;  %v4524_v26 = vrot.slane %v10821_v24, 7  ;;  %v4483_v23 = vcombine.high %v10822_v35, %v10822_v35  ;;  %v4522_v0 = vrot.slane %v10822_v35, 7 }
 0x27b   : > { %v5103_v38 = vadd.f32 %v4975_v57, %v4779_v9  ;;  %v5104_v8 = vadd.f32 %v4976_v29, %v4780_v47  ;;  %v13166_v52 = vadd.f32 %v5302_v32, %v5106_v25  ;;  %v5300_v59 = vrot.slane %v5172_v19, 2 }
 0x27c   : > { %v4525_v10 = vrot.slane %v4484_v3, 7  ;;  %v4652_v63 = vsel %vm3286_vm2, 0.0, %v4524_v26  ;;  %v4523_v13 = vrot.slane %v4483_v23, 7  ;;  %v4650_v46 = vsel %vm3286_vm2, 0.0, %v4522_v0  ;;  %v13164_v41 = vpop.f32.mrb[20].mxu0 }
 0x27d   : > { %16494 = vst [vmem:[#allocation59_spill] sm:$0xff] %v13164_v41  ;;  %v4717_v9 = vsel %vm4702_vm4, %v4652_v63, 0.0  ;;  %v4715_v47 = vsel %vm4702_vm4, %v4650_v46, 0.0  ;;  %v13170_v1 = vpop.f32.mrb[21].mxu0  ;;  %v13172_v56 = vadd.f32 %v5299_v31, %v5103_v38  ;;  %v13177_v0 = vadd.f32 %v5300_v59, %v5104_v8 }
 0x27e   : > { %16495 = vst [vmem:[#allocation61_spill] sm:$0xff] %v13170_v1  ;;  %v4653_v33 = vsel %vm3286_vm2, 0.0, %v4525_v10  ;;  %v4853_v2 = vmul.f32 %v13016_v37, %v4717_v9  ;;  %v5177_v23 = vmul.f32 %v13019_v61, %v4717_v9  ;;  %v4651_v32 = vsel %vm3286_vm2, 0.0, %v4523_v13 }
 0x27f   : > { %v4718_v25 = vsel %vm4702_vm4, %v4653_v33, 0.0  ;;  %v4851_v19 = vmul.f32 %v13016_v37, %v4715_v47  ;;  %v4785_v24 = vmul.f32 %v13022_v4, %v4717_v9  ;;  %v4716_v3 = vsel %vm4702_vm4, %v4651_v32, 0.0 }
 0x280   : > { %v4854_v35 = vmul.f32 %v13016_v37, %v4718_v25  ;;  %v4981_v57 = vrot.slane %v4853_v2, 1  ;;  %v5178_v29 = vmul.f32 %v13019_v61, %v4718_v25  ;;  %v13185_v31 = vpop.f32.mrb[22].mxu0  ;;  %v4783_v8 = vmul.f32 %v13022_v4, %v4715_v47 }
 0x281   : > { %16496 = vst [vmem:[#allocation67_spill] sm:$0xff] %v13185_v31  ;;  %v4979_v26 = vrot.slane %v4851_v19, 1  ;;  %v5175_v38 = vmul.f32 %v13019_v61, %v4715_v47  ;;  %v13190_v10 = vpop.f32.mrb[23].mxu0  ;;  %v4786_v63 = vmul.f32 %v13022_v4, %v4718_v25  ;;  %v5305_v59 = vrot.slane %v5177_v23, 2 }
 0x282   : > { %16497 = vst [vmem:[#allocation63_spill] sm:$0xff] %v13190_v10  ;;  %v4982_v13 = vrot.slane %v4854_v35, 1  ;;  %v5109_v46 = vadd.f32 %v4981_v57, %v4785_v24  ;;  %v5306_v9 = vrot.slane %v5178_v29, 2  ;;  %v4784_v33 = vmul.f32 %v13022_v4, %v4716_v3 }
 0x283   : > { %v4852_v2 = vmul.f32 %v13016_v37, %v4716_v3  ;;  %v5176_v31 = vmul.f32 %v13019_v61, %v4716_v3  ;;  %v5107_v32 = vadd.f32 %v4979_v26, %v4783_v8  ;;  %v5303_v1 = vrot.slane %v5175_v38, 2 }
 0x284   : > { %v4486_v6 = vcombine.high %v10823_v7, %v10823_v7  ;;  %v4528_v19 = vrot.slane %v10823_v7, 7  ;;  %v13196_v41 = vpop.f32.mrb[24].mxu0  ;;  %v5110_v47 = vadd.f32 %v4982_v13, %v4786_v63  ;;  %v13198_v10 = vadd.f32 %v5305_v59, %v5109_v46 }
 0x285   : > { %16498 = vst [vmem:[#allocation69_spill] sm:$0xff] %v13196_v41  ;;  %v4980_v25 = vrot.slane %v4852_v2, 1  ;;  %v4485_v23 = vcombine.high %v13160_v27, %v13160_v27  ;;  %v13202_v24 = vpop.f32.mrb[25].mxu0  ;;  %v5304_v35 = vrot.slane %v5176_v31, 2  ;;  %v4526_v3 = vrot.slane %v13160_v27, 7 }
 0x286   : > { %16499 = vst [vmem:[#allocation64_spill] sm:$0xff] %v13202_v24  ;;  %v4529_v57 = vrot.slane %v4486_v6, 7  ;;  %v4656_v29 = vsel %vm3286_vm2, 0.0, %v4528_v19  ;;  %v10825_v38 = vadd.f32 %v13084_v36, %v12957_v5  ;;  %v13209_v63 = vadd.f32 %v5303_v1, %v5107_v32 }
 0x287   : > { %v5108_v8 = vadd.f32 %v4980_v25, %v4784_v33  ;;  %v4721_v7 = vsel %vm4702_vm4, %v4656_v29, 0.0  ;;  %v4527_v26 = vrot.slane %v4485_v23, 7  ;;  %v13216_v59 = vadd.f32 %v5306_v9, %v5110_v47 }
 0x288   : > { %v4657_v13 = vsel %vm3286_vm2, 0.0, %v4529_v57  ;;  %v4857_v46 = vmul.f32 %v13016_v37, %v4721_v7  ;;  %v5181_v31 = vmul.f32 %v13019_v61, %v4721_v7  ;;  %v13214_v6 = vpop.f32.mrb[26].mxu0  ;;  %v4654_v33 = vsel %vm3286_vm2, 0.0, %v4526_v3 }
 0x289   : > { %16500 = vst [vmem:[#allocation68_spill] sm:$0xff] %v13214_v6  ;;  %v4722_v27 = vsel %vm4702_vm4, %v4657_v13, 0.0  ;;  %v4655_v2 = vsel %vm3286_vm2, 0.0, %v4527_v26  ;;  %v13221_v19 = vpop.f32.mrb[27].mxu0  ;;  %v4789_v5 = vmul.f32 %v13022_v4, %v4721_v7  ;;  %v13226_v25 = vadd.f32 %v5304_v35, %v5108_v8 }
 0x28a   : > { %16501 = vst [vmem:[#allocation73_spill] sm:$0xff] %v13221_v19  ;;  %v4858_v36 = vmul.f32 %v13016_v37, %v4722_v27  ;;  %v4985_v1 = vrot.slane %v4857_v46, 1  ;;  %v5182_v32 = vmul.f32 %v13019_v61, %v4722_v27  ;;  %v4719_v9 = vsel %vm4702_vm4, %v4654_v33, 0.0 }
 0x28b   : > { %v4720_v47 = vsel %vm4702_vm4, %v4655_v2, 0.0  ;;  %v4488_v23 = vcombine.high %v10825_v38, %v10825_v38  ;;  %v4790_v57 = vmul.f32 %v13022_v4, %v4722_v27  ;;  %v5309_v26 = vrot.slane %v5181_v31, 2 }
 0x28c   : > { %v4986_v29 = vrot.slane %v4858_v36, 1  ;;  %v5113_v3 = vadd.f32 %v4985_v1, %v4789_v5  ;;  %v5310_v13 = vrot.slane %v5182_v32, 2  ;;  %v4855_v7 = vmul.f32 %v13016_v37, %v4719_v9 }
 0x28d   : > { %v4856_v19 = vmul.f32 %v13016_v37, %v4720_v47  ;;  %v5179_v46 = vmul.f32 %v13019_v61, %v4719_v9  ;;  %v4787_v35 = vmul.f32 %v13022_v4, %v4719_v9  ;;  %v4788_v8 = vmul.f32 %v13022_v4, %v4720_v47 }
 0x28e   : > { %v5114_v6 = vadd.f32 %v4986_v29, %v4790_v57  ;;  %v4532_v33 = vrot.slane %v10825_v38, 7  ;;  %v4983_v2 = vrot.slane %v4855_v7, 1  ;;  %v5180_v27 = vmul.f32 %v13019_v61, %v4720_v47 }
 0x28f   : > { %v4984_v24 = vrot.slane %v4856_v19, 1  ;;  %v4533_v36 = vrot.slane %v4488_v23, 7  ;;  %v13237_v5 = vadd.f32 %v5309_v26, %v5113_v3  ;;  %v5307_v31 = vrot.slane %v5179_v46, 2 }
 0x290   : > { %v4660_v1 = vsel %vm3286_vm2, 0.0, %v4532_v33  ;;  %v10826_v32 = vadd.f32 %v13087_v20, %v12959_v58  ;;  %v13242_v41 = vadd.f32 %v5310_v13, %v5114_v6  ;;  %v5111_v57 = vadd.f32 %v4983_v2, %v4787_v35  ;;  %v13253_v20 = vpop.f32.mrb[28].mxu0 }
 0x291   : > { %v4661_v9 = vsel %vm3286_vm2, 0.0, %v4533_v36  ;;  %v4725_v38 = vsel %vm4702_vm4, %v4660_v1, 0.0  ;;  %v5112_v29 = vadd.f32 %v4984_v24, %v4788_v8  ;;  %v5308_v3 = vrot.slane %v5180_v27, 2  ;;  %16502 = vst [vmem:[#allocation70_spill] sm:$0xff] %v13253_v20 }
 0x292   : > { %v4726_v19 = vsel %vm4702_vm4, %v4661_v9, 0.0  ;;  %v4861_v47 = vmul.f32 %v13016_v37, %v4725_v38  ;;  %v5185_v23 = vmul.f32 %v13019_v61, %v4725_v38  ;;  %v13249_v26 = vadd.f32 %v5307_v31, %v5111_v57 }
 0x293   : > { %v4793_v7 = vmul.f32 %v13022_v4, %v4725_v38  ;;  %v4862_v58 = vmul.f32 %v13016_v37, %v4726_v19  ;;  %v4794_v6 = vmul.f32 %v13022_v4, %v4726_v19  ;;  %v5186_v24 = vmul.f32 %v13019_v61, %v4726_v19 }
 0x294   : > { %v4989_v13 = vrot.slane %v4861_v47, 1  ;;  %v4487_v46 = vcombine.high %v10826_v32, %v10826_v32  ;;  %v4530_v8 = vrot.slane %v10826_v32, 7  ;;  %v10827_v33 = vadd.f32 %v13102_v11, %v12962_v16 }
 0x295   : > { %v4990_v35 = vrot.slane %v4862_v58, 1  ;;  %v10828_v2 = vadd.f32 %v13109_v43, %v12964_v39  ;;  %v13261_v27 = vadd.f32 %v5308_v3, %v5112_v29  ;;  %v5313_v31 = vrot.slane %v5185_v23, 2  ;;  %v13272_v23 = vpop.f32.mrb[29].mxu0 }
 0x296   : > { %v5117_v36 = vadd.f32 %v4989_v13, %v4793_v7  ;;  %v4531_v1 = vrot.slane %v4487_v46, 7  ;;  %v4658_v9 = vsel %vm3286_vm2, 0.0, %v4530_v8  ;;  %v4490_v38 = vcombine.high %v10827_v33, %v10827_v33  ;;  %16503 = vst [vmem:[#allocation72_spill] sm:$0xff] %v13272_v23 }
 0x297   : > { %v5118_v57 = vadd.f32 %v4990_v35, %v4794_v6  ;;  %v4536_v47 = vrot.slane %v10827_v33, 7  ;;  %v5314_v19 = vrot.slane %v5186_v24, 2  ;;  %v4723_v32 = vsel %vm4702_vm4, %v4658_v9, 0.0 }
 0x298   : > { %v4659_v58 = vsel %vm3286_vm2, 0.0, %v4531_v1  ;;  %v5490_v16 = vmul.f32 %v13045_v51, %v13069_v44  ;;  %v13268_v11 = vadd.f32 %v5313_v31, %v5117_v36  ;;  %v4859_v43 = vmul.f32 %v13016_v37, %v4723_v32 }
 0x299   : > { %v4724_v39 = vsel %vm4702_vm4, %v4659_v58, 0.0  ;;  %v4489_v29 = vcombine.high %v10828_v2, %v10828_v2  ;;  %v13274_v3 = vadd.f32 %v5314_v19, %v5118_v57  ;;  %v4791_v7 = vmul.f32 %v13022_v4, %v4723_v32 }
 0x29a   : > { %v4860_v6 = vmul.f32 %v13016_v37, %v4724_v39  ;;  %v5183_v13 = vmul.f32 %v13019_v61, %v4723_v32  ;;  %v4987_v24 = vrot.slane %v4859_v43, 1  ;;  %v5184_v44 = vmul.f32 %v13019_v61, %v4724_v39 }
 0x29b   : > { %v4537_v46 = vrot.slane %v4490_v38, 7  ;;  %v4664_v35 = vsel %vm3286_vm2, 0.0, %v4536_v47  ;;  %v4792_v8 = vmul.f32 %v13022_v4, %v4724_v39  ;;  %v4534_v31 = vrot.slane %v10828_v2, 7 }
 0x29c   : > { %v4988_v33 = vrot.slane %v4860_v6, 1  ;;  %v4729_v36 = vsel %vm4702_vm4, %v4664_v35, 0.0  ;;  %v5115_v1 = vadd.f32 %v4987_v24, %v4791_v7  ;;  %v5311_v57 = vrot.slane %v5183_v13, 2 }
 0x29d   : > { %v4665_v9 = vsel %vm3286_vm2, 0.0, %v4537_v46  ;;  %v4865_v19 = vmul.f32 %v13016_v37, %v4729_v36  ;;  %v5189_v43 = vmul.f32 %v13019_v61, %v4729_v36  ;;  %v4535_v38 = vrot.slane %v4489_v29, 7 }
 0x29e   : > { %v5116_v58 = vadd.f32 %v4988_v33, %v4792_v8  ;;  %v4730_v32 = vsel %vm4702_vm4, %v4665_v9, 0.0  ;;  %v5312_v23 = vrot.slane %v5184_v44, 2  ;;  %v4797_v47 = vmul.f32 %v13022_v4, %v4729_v36 }
 0x29f   : > { %v4866_v39 = vmul.f32 %v13016_v37, %v4730_v32  ;;  %v4993_v6 = vrot.slane %v4865_v19, 1  ;;  %v13289_v35 = vadd.f32 %v5311_v57, %v5115_v1  ;;  %v4798_v2 = vmul.f32 %v13022_v4, %v4730_v32  ;;  %v13300_v57 = vpop.f32.mrb[30].mxu0 }
 0x2a0   : > { %v5190_v7 = vmul.f32 %v13019_v61, %v4730_v32  ;;  %v4662_v13 = vsel %vm3286_vm2, 0.0, %v4534_v31  ;;  %v13294_v24 = vadd.f32 %v5312_v23, %v5116_v58  ;;  %v4663_v8 = vsel %vm3286_vm2, 0.0, %v4535_v38  ;;  %16504 = vst [vmem:[#allocation71_spill] sm:$0xff] %v13300_v57 }
 0x2a1   : > { %v4994_v46 = vrot.slane %v4866_v39, 1  ;;  %v4727_v29 = vsel %vm4702_vm4, %v4662_v13, 0.0  ;;  %v5121_v44 = vadd.f32 %v4993_v6, %v4797_v47  ;;  %v5317_v33 = vrot.slane %v5189_v43, 2 }
 0x2a2   : > { %v4728_v36 = vsel %vm4702_vm4, %v4663_v8, 0.0  ;;  %v4863_v1 = vmul.f32 %v13016_v37, %v4727_v29  ;;  %v5318_v19 = vrot.slane %v5190_v7, 2  ;;  %v4795_v31 = vmul.f32 %v13022_v4, %v4727_v29 }
 0x2a3   : > { %v5122_v9 = vadd.f32 %v4994_v46, %v4798_v2  ;;  %v4864_v23 = vmul.f32 %v13016_v37, %v4728_v36  ;;  %v5187_v32 = vmul.f32 %v13019_v61, %v4727_v29  ;;  %v5188_v38 = vmul.f32 %v13019_v61, %v4728_v36  ;;  %v13319_v29 = vpop.f32.mrb[31].mxu0 }
 0x2a4   : > { %v4991_v58 = vrot.slane %v4863_v1, 1  ;;  %v5491_v43 = vmul.f32 %v13045_v51, %v13097_v50  ;;  %v4796_v47 = vmul.f32 %v13022_v4, %v4728_v36  ;;  %v13310_v6 = vadd.f32 %v13055_v42, %v5490_v16 }
 0x2a5   : > { %v4992_v39 = vrot.slane %v4864_v23, 1  ;;  %v10829_v2 = vadd.f32 %v13116_v12, %v12966_v28  ;;  %v13314_v7 = vadd.f32 %v5317_v33, %v5121_v44  ;;  %v13316_v13 = vadd.f32 %v5318_v19, %v5122_v9 }
 0x2a6   : > { %16505 = vst [vmem:[#allocation77_spill] sm:$0xff] %v13310_v6  ;;  %v5119_v46 = vadd.f32 %v4991_v58, %v4795_v31  ;;  %v5562_v8 = vadd.f32 %v13055_v42, %v5491_v43  ;;  %v5315_v50 = vrot.slane %v5187_v32, 2  ;;  %v5316_v23 = vrot.slane %v5188_v38, 2 }
 0x2a7   : > { %v5120_v1 = vadd.f32 %v4992_v39, %v4796_v47  ;;  %v4492_v57 = vcombine.high %v10829_v2, %v10829_v2  ;;  %v4540_v36 = vrot.slane %v10829_v2, 7  ;;  %v16140_v16 = vmax.f32 %v13310_v6, 0.0 }
 0x2a8   : > { %v5626_v20 = vmax.f32 %v5562_v8, 0.0  ;;  %v10830_v28 = vadd.f32 %v13120_v49, %v12968_v48  ;;  %v5494_v33 = vmul.f32 %v13045_v51, %v13132_v62  ;;  %v5495_v9 = vmul.f32 %v13045_v51, %v13134_v17 }
 0x2a9   : > { %v4541_v12 = vrot.slane %v4492_v57, 7  ;;  %v4668_v44 = vsel %vm3286_vm2, 0.0, %v4540_v36  ;;  %v13332_v38 = vadd.f32 %v5315_v50, %v5119_v46  ;;  %v13334_v43 = vadd.f32 %v5316_v23, %v5120_v1 }
 0x2aa   : > { %v5754_v19 = vcombine.low %v16140_v16, %v5626_v20  ;;  %v4733_v31 = vsel %vm4702_vm4, %v4668_v44, 0.0  ;;  %v4491_v58 = vcombine.high %v10830_v28, %v10830_v28  ;;  %v4538_v32 = vrot.slane %v10830_v28, 7 }
 0x2ab   : > { %v4669_v48 = vsel %vm3286_vm2, 0.0, %v4541_v12  ;;  %v4869_v49 = vmul.f32 %v13016_v37, %v4733_v31  ;;  %v5193_v17 = vmul.f32 %v13019_v61, %v4733_v31  ;;  %v4801_v47 = vmul.f32 %v13022_v4, %v4733_v31 }
 0x2ac   : > { %10656 = vmatprep.mubr.msk.f32.mxu1 %vm5786_vm5, %v5754_v19  ;;  %v4734_v62 = vsel %vm4702_vm4, %v4669_v48, 0.0  ;;  %v4539_v57 = vrot.slane %v4491_v58, 7  ;;  %v4666_v20 = vsel %vm3286_vm2, 0.0, %v4538_v32  ;;  %v5565_v50 = vadd.f32 %v13055_v42, %v5494_v33 }
 0x2ad   : > { %10657 = vmatmul.mubr.msk.f32.vlgmr.msra.gmra.mrb[32].mxu1 %vm5786_vm5, %v13095_v30  ;;  %v4870_v39 = vmul.f32 %v13016_v37, %v4734_v62  ;;  %v4997_v2 = vrot.slane %v4869_v49, 1  ;;  %v5194_v46 = vmul.f32 %v13019_v61, %v4734_v62  ;;  %v4731_v1 = vsel %vm4702_vm4, %v4666_v20, 0.0 }
 0x2ae   : > { %v4667_v8 = vsel %vm3286_vm2, 0.0, %v4539_v57  ;;  %v5566_v36 = vadd.f32 %v13055_v42, %v5495_v9  ;;  %v4802_v23 = vmul.f32 %v13022_v4, %v4734_v62  ;;  %v5321_v44 = vrot.slane %v5193_v17, 2 }
 0x2af   : > { %v4998_v28 = vrot.slane %v4870_v39, 1  ;;  %v5125_v12 = vadd.f32 %v4997_v2, %v4801_v47  ;;  %v4732_v30 = vsel %vm4702_vm4, %v4667_v8, 0.0  ;;  %v5322_v19 = vrot.slane %v5194_v46, 2 }
 0x2b0   : > { %v4867_v31 = vmul.f32 %v13016_v37, %v4731_v1  ;;  %v4868_v58 = vmul.f32 %v13016_v37, %v4732_v30  ;;  %v4799_v48 = vmul.f32 %v13022_v4, %v4731_v1  ;;  %v5191_v49 = vmul.f32 %v13019_v61, %v4731_v1 }
 0x2b1   : > { %v5126_v32 = vadd.f32 %v4998_v28, %v4802_v23  ;;  %v5192_v33 = vmul.f32 %v13019_v61, %v4732_v30  ;;  %v5629_v62 = vmax.f32 %v5565_v50, 0.0  ;;  %v5630_v20 = vmax.f32 %v5566_v36, 0.0 }
 0x2b2   : > { %v4995_v9 = vrot.slane %v4867_v31, 1  ;;  %v4996_v57 = vrot.slane %v4868_v58, 1  ;;  %v13358_v47 = vadd.f32 %v5321_v44, %v5125_v12  ;;  %v4800_v17 = vmul.f32 %v13022_v4, %v4732_v30 }
 0x2b3   : > { %v13360_v39 = vadd.f32 %v5322_v19, %v5126_v32  ;;  %v5496_v2 = vmul.f32 %v13045_v51, %v13099_v40  ;;  %v5319_v8 = vrot.slane %v5191_v49, 2  ;;  %v5756_v23 = vcombine.low %v5629_v62, %v5630_v20 }
 0x2b4   : > { %v5123_v46 = vadd.f32 %v4995_v9, %v4799_v48  ;;  %v5497_v1 = vmul.f32 %v13045_v51, %v13104_v14  ;;  %v5320_v28 = vrot.slane %v5192_v33, 2  ;;  %v10831_v50 = vadd.f32 %v13130_v22, %v12970_v34 }
 0x2b5   : > { %v5567_v31 = vadd.f32 %v13055_v42, %v5496_v2  ;;  %v10832_v36 = vadd.f32 %v13138_v15, %v12972_v60  ;;  %v5124_v12 = vadd.f32 %v4996_v57, %v4800_v17  ;;  %10659 = vmatprep.mubr.msk.f32.mxu1 %vm5786_vm5, %v5756_v23  ;;  %v5498_v30 = vmul.f32 %v13045_v51, %v13172_v56 }
 0x2b6   : > { %v5568_v40 = vadd.f32 %v13055_v42, %v5497_v1  ;;  %v5499_v14 = vmul.f32 %v13045_v51, %v13177_v0  ;;  %v4494_v19 = vcombine.high %v10831_v50, %v10831_v50  ;;  %v4544_v58 = vrot.slane %v10831_v50, 7 }
 0x2b7   : > { %v5631_v44 = vmax.f32 %v5567_v31, 0.0  ;;  %v4493_v32 = vcombine.high %v10832_v36, %v10832_v36  ;;  %v13378_v48 = vadd.f32 %v5319_v8, %v5123_v46  ;;  %v4542_v22 = vrot.slane %v10832_v36, 7 }
 0x2b8   : > { %v5632_v34 = vmax.f32 %v5568_v40, 0.0  ;;  %v5570_v60 = vadd.f32 %v13055_v42, %v5499_v14  ;;  %v4545_v49 = vrot.slane %v4494_v19, 7  ;;  %v4672_v33 = vsel %vm3286_vm2, 0.0, %v4544_v58 }
 0x2b9   : > { %v13381_v15 = vcombine.low %v5629_v62, %v5631_v44  ;;  %v4543_v9 = vrot.slane %v4493_v32, 7  ;;  %v4737_v57 = vsel %vm4702_vm4, %v4672_v33, 0.0  ;;  %v4670_v0 = vsel %vm3286_vm2, 0.0, %v4542_v22 }
 0x2ba   : > { %v5757_v56 = vcombine.low %v5631_v44, %v5632_v34  ;;  %v5569_v20 = vadd.f32 %v13055_v42, %v5498_v30  ;;  %v13387_v17 = vadd.f32 %v5320_v28, %v5124_v12  ;;  %v4673_v2 = vsel %vm3286_vm2, 0.0, %v4545_v49 }
 0x2bb   : > { %16506 = vst [vmem:[#allocation74_spill] sm:$0xff] %v13381_v15  ;;  %v4873_v46 = vmul.f32 %v13016_v37, %v4737_v57  ;;  %v5197_v62 = vmul.f32 %v13019_v61, %v4737_v57  ;;  %v4738_v8 = vsel %vm4702_vm4, %v4673_v2, 0.0  ;;  %v4805_v23 = vmul.f32 %v13022_v4, %v4737_v57 }
 0x2bc   : > { %10660 = vmatmul.mubr.msk.f32.gmra.mrb[34].mxu1 %vm5786_vm5, %v5757_v56  ;;  %v4671_v1 = vsel %vm3286_vm2, 0.0, %v4543_v9  ;;  %v4735_v31 = vsel %vm4702_vm4, %v4670_v0, 0.0  ;;  %v4874_v50 = vmul.f32 %v13016_v37, %v4738_v8  ;;  %v5198_v36 = vmul.f32 %v13019_v61, %v4738_v8 }
 0x2bd   : > { %v5001_v28 = vrot.slane %v4873_v46, 1  ;;  %v5634_v12 = vmax.f32 %v5570_v60, 0.0  ;;  %v4806_v40 = vmul.f32 %v13022_v4, %v4738_v8  ;;  %v4736_v30 = vsel %vm4702_vm4, %v4671_v1, 0.0 }
 0x2be   : > { %v4871_v14 = vmul.f32 %v13016_v37, %v4735_v31  ;;  %v5633_v44 = vmax.f32 %v5569_v20, 0.0  ;;  %v5002_v19 = vrot.slane %v4874_v50, 1  ;;  %v5325_v32 = vrot.slane %v5197_v62, 2 }
 0x2bf   : > { %v5129_v58 = vadd.f32 %v5001_v28, %v4805_v23  ;;  %v4803_v34 = vmul.f32 %v13022_v4, %v4735_v31  ;;  %v4872_v22 = vmul.f32 %v13016_v37, %v4736_v30  ;;  %v5195_v33 = vmul.f32 %v13019_v61, %v4735_v31 }
 0x2c0   : > { %v4999_v49 = vrot.slane %v4871_v14, 1  ;;  %v5196_v9 = vmul.f32 %v13019_v61, %v4736_v30  ;;  %v5130_v60 = vadd.f32 %v5002_v19, %v4806_v40  ;;  %v5326_v56 = vrot.slane %v5198_v36, 2 }
 0x2c1   : > { %v5758_v57 = vcombine.low %v5633_v44, %v5634_v12  ;;  %v5500_v0 = vmul.f32 %v13045_v51, %v13152_v21  ;;  %v13408_v2 = vadd.f32 %v5325_v32, %v5129_v58  ;;  %v4804_v20 = vmul.f32 %v13022_v4, %v4736_v30 }
 0x2c2   : > { %v5000_v46 = vrot.slane %v4872_v22, 1  ;;  %v5127_v62 = vadd.f32 %v4999_v49, %v4803_v34  ;;  %v5323_v8 = vrot.slane %v5195_v33, 2  ;;  %v5501_v23 = vmul.f32 %v13045_v51, %v13166_v52 }
 0x2c3   : > { %10662 = vmatprep.mubr.msk.f32.mxu1 %vm5786_vm5, %v5758_v57  ;;  %v5571_v1 = vadd.f32 %v13055_v42, %v5500_v0  ;;  %v10833_v31 = vadd.f32 %v13150_v18, %v12974_v53  ;;  %v13417_v50 = vadd.f32 %v5326_v56, %v5130_v60  ;;  %v5324_v21 = vrot.slane %v5196_v9, 2 }
 0x2c4   : > { %v10834_v28 = vadd.f32 %v13154_v54, %v12976_v55  ;;  %v5502_v36 = vmul.f32 %v13045_v51, %v13209_v63  ;;  %v5128_v12 = vadd.f32 %v5000_v46, %v4804_v20  ;;  %v5572_v40 = vadd.f32 %v13055_v42, %v5501_v23 }
 0x2c5   : > { %v4496_v30 = vcombine.high %v10833_v31, %v10833_v31  ;;  %v4548_v14 = vrot.slane %v10833_v31, 7  ;;  %v13424_v52 = vadd.f32 %v5323_v8, %v5127_v62  ;;  %v5503_v53 = vmul.f32 %v13045_v51, %v13226_v25 }
 0x2c6   : > { %v4495_v44 = vcombine.high %v10834_v28, %v10834_v28  ;;  %v4546_v19 = vrot.slane %v10834_v28, 7  ;;  %v5635_v18 = vmax.f32 %v5571_v1, 0.0  ;;  %v5636_v58 = vmax.f32 %v5572_v40, 0.0 }
 0x2c7   : > { %v4549_v32 = vrot.slane %v4496_v30, 7  ;;  %v4676_v55 = vsel %vm3286_vm2, 0.0, %v4548_v14  ;;  %v5573_v22 = vadd.f32 %v13055_v42, %v5502_v36  ;;  %v5574_v60 = vadd.f32 %v13055_v42, %v5503_v53 }
 0x2c8   : > { %v4741_v54 = vsel %vm4702_vm4, %v4676_v55, 0.0  ;;  %v4547_v63 = vrot.slane %v4495_v44, 7  ;;  %v4674_v34 = vsel %vm3286_vm2, 0.0, %v4546_v19  ;;  %v5759_v49 = vcombine.low %v5635_v18, %v5636_v58 }
 0x2c9   : > { %v4677_v33 = vsel %vm3286_vm2, 0.0, %v4549_v32  ;;  %v4877_v9 = vmul.f32 %v13016_v37, %v4741_v54  ;;  %v5201_v56 = vmul.f32 %v13019_v61, %v4741_v54  ;;  %v4739_v0 = vsel %vm4702_vm4, %v4674_v34, 0.0 }
 0x2ca   : > { %v4742_v25 = vsel %vm4702_vm4, %v4677_v33, 0.0  ;;  %v4675_v57 = vsel %vm3286_vm2, 0.0, %v4547_v63  ;;  %10663 = vmatmul.mubr.msk.f32.gmra.mrb[36].mxu1 %vm5786_vm5, %v5759_v49  ;;  %v4809_v20 = vmul.f32 %v13022_v4, %v4741_v54  ;;  %v13443_v23 = vadd.f32 %v5324_v21, %v5128_v12 }
 0x2cb   : > { %v4878_v46 = vmul.f32 %v13016_v37, %v4742_v25  ;;  %v5005_v62 = vrot.slane %v4877_v9, 1  ;;  %v5202_v8 = vmul.f32 %v13019_v61, %v4742_v25  ;;  %v4810_v1 = vmul.f32 %v13022_v4, %v4742_v25 }
 0x2cc   : > { %v4740_v31 = vsel %vm4702_vm4, %v4675_v57, 0.0  ;;  %v4875_v28 = vmul.f32 %v13016_v37, %v4739_v0  ;;  %v5329_v30 = vrot.slane %v5201_v56, 2  ;;  %v4807_v14 = vmul.f32 %v13022_v4, %v4739_v0 }
 0x2cd   : > { %v5006_v36 = vrot.slane %v4878_v46, 1  ;;  %v5133_v40 = vadd.f32 %v5005_v62, %v4809_v20  ;;  %v4876_v44 = vmul.f32 %v13016_v37, %v4740_v31  ;;  %v5199_v53 = vmul.f32 %v13019_v61, %v4739_v0  ;;  %v16508_v0 = vld [vmem:[#allocation39_spill] sm:$0xff]  ;;  %v16509_v20 = vld [vmem:[#allocation61_spill] sm:$0xff] }
 0x2ce   : > { %v5003_v19 = vrot.slane %v4875_v28, 1  ;;  %v5200_v18 = vmul.f32 %v13019_v61, %v4740_v31  ;;  %v5330_v12 = vrot.slane %v5202_v8, 2  ;;  %v5637_v58 = vmax.f32 %v5573_v22, 0.0  ;;  %v16507_v22 = vld [vmem:[#allocation59_spill] sm:$0xff] }
 0x2cf   : > { %v5134_v21 = vadd.f32 %v5006_v36, %v4810_v1  ;;  %v5638_v32 = vmax.f32 %v5574_v60, 0.0  ;;  %v13452_v55 = vadd.f32 %v5329_v30, %v5133_v40  ;;  %v4808_v54 = vmul.f32 %v13022_v4, %v4740_v31 }
 0x2d0   : > { %v5004_v63 = vrot.slane %v4876_v44, 1  ;;  %v5131_v34 = vadd.f32 %v5003_v19, %v4807_v14  ;;  %v5327_v49 = vrot.slane %v5199_v53, 2  ;;  %v5504_v9 = vmul.f32 %v13045_v51, %v13198_v10 }
 0x2d1   : > { %v5760_v33 = vcombine.low %v5637_v58, %v5638_v32  ;;  %v5505_v25 = vmul.f32 %v13045_v51, %v13216_v59  ;;  %v13459_v56 = vadd.f32 %v5330_v12, %v5134_v21  ;;  %v5328_v57 = vrot.slane %v5200_v18, 2 }
 0x2d2   : > { %v10835_v60 = vadd.f32 %v16507_v22, %v12978_v45  ;;  %v10836_v46 = vadd.f32 %v16509_v20, %v16508_v0  ;;  %v5575_v62 = vadd.f32 %v13055_v42, %v5504_v9  ;;  %v5506_v10 = vmul.f32 %v13045_v51, %v13249_v26 }
 0x2d3   : > { %10665 = vmatprep.mubr.msk.f32.mxu1 %vm5786_vm5, %v5760_v33  ;;  %v5576_v8 = vadd.f32 %v13055_v42, %v5505_v25  ;;  %v5507_v59 = vmul.f32 %v13045_v51, %v13261_v27  ;;  %v5132_v1 = vadd.f32 %v5004_v63, %v4808_v54  ;;  %v13472_v45 = vadd.f32 %v5327_v49, %v5131_v34 }
 0x2d4   : > { %v4498_v31 = vcombine.high %v10835_v60, %v10835_v60  ;;  %v4552_v28 = vrot.slane %v10835_v60, 7  ;;  %v4497_v36 = vcombine.high %v10836_v46, %v10836_v46  ;;  %v5639_v40 = vmax.f32 %v5575_v62, 0.0 }
 0x2d5   : > { %v5640_v30 = vmax.f32 %v5576_v8, 0.0  ;;  %v4550_v14 = vrot.slane %v10836_v46, 7  ;;  %v5578_v18 = vadd.f32 %v13055_v42, %v5507_v59  ;;  %v13479_v27 = vadd.f32 %v13055_v42, %v5506_v10 }
 0x2d6   : > { %v4553_v44 = vrot.slane %v4498_v31, 7  ;;  %v4680_v19 = vsel %vm3286_vm2, 0.0, %v4552_v28  ;;  %v4551_v53 = vrot.slane %v4497_v36, 7  ;;  %v13481_v12 = vadd.f32 %v5328_v57, %v5132_v1 }
 0x2d7   : > { %v5761_v21 = vcombine.low %v5639_v40, %v5640_v30  ;;  %v4745_v26 = vsel %vm4702_vm4, %v4680_v19, 0.0  ;;  %v4678_v51 = vsel %vm3286_vm2, 0.0, %v4550_v14  ;;  %16510 = vst [vmem:[#allocation80_spill] sm:$0xff] %v13479_v27  ;;  %v5642_v57 = vmax.f32 %v5578_v18, 0.0  ;;  %v13504_v14 = vld [vmem:[%s11474_s17] ss:$0 sm:$0xff] }
 0x2d8   : > { %v4681_v58 = vsel %vm3286_vm2, 0.0, %v4553_v44  ;;  %v4881_v32 = vmul.f32 %v13016_v37, %v4745_v26  ;;  %v5205_v54 = vmul.f32 %v13019_v61, %v4745_v26  ;;  %v4813_v34 = vmul.f32 %v13022_v4, %v4745_v26 }
 0x2d9   : > { %10666 = vmatmul.mubr.msk.f32.gmra.mrb[38].mxu1 %vm5786_vm5, %v5761_v21  ;;  %v4746_v63 = vsel %vm4702_vm4, %v4681_v58, 0.0  ;;  %v4679_v49 = vsel %vm3286_vm2, 0.0, %v4551_v53  ;;  %v4743_v33 = vsel %vm4702_vm4, %v4678_v51, 0.0  ;;  %v16138_v20 = vmax.f32 %v13479_v27, 0.0  ;;  %v13515_v58 = vld [vmem:[%s11479_s21] ss:$0 sm:$0xff] }
 0x2da   : > { %v4882_v42 = vmul.f32 %v13016_v37, %v4746_v63  ;;  %v5009_v9 = vrot.slane %v4881_v32, 1  ;;  %v5206_v25 = vmul.f32 %v13019_v61, %v4746_v63  ;;  %v4814_v22 = vmul.f32 %v13022_v4, %v4746_v63  ;;  %v16513_v63 = vld [vmem:[#allocation67_spill] sm:$0xff] }
 0x2db   : > { %v4744_v60 = vsel %vm4702_vm4, %v4679_v49, 0.0  ;;  %v4879_v0 = vmul.f32 %v13016_v37, %v4743_v33  ;;  %v5333_v8 = vrot.slane %v5205_v54, 2  ;;  %v4811_v10 = vmul.f32 %v13022_v4, %v4743_v33  ;;  %v16512_v54 = vld [vmem:[#allocation44_spill] sm:$0xff] }
 0x2dc   : > { %v5010_v46 = vrot.slane %v4882_v42, 1  ;;  %v5137_v62 = vadd.f32 %v5009_v9, %v4813_v34  ;;  %v4880_v59 = vmul.f32 %v13016_v37, %v4744_v60  ;;  %v5203_v31 = vmul.f32 %v13019_v61, %v4743_v33  ;;  %v16514_v33 = vld [vmem:[#allocation42_spill] sm:$0xff]  ;;  %v16515_v42 = vld [vmem:[#allocation63_spill] sm:$0xff] }
 0x2dd   : > { %v5007_v1 = vrot.slane %v4879_v0, 1  ;;  %v5204_v28 = vmul.f32 %v13019_v61, %v4744_v60  ;;  %v5334_v40 = vrot.slane %v5206_v25, 2  ;;  %v5762_v30 = vcombine.low %v16138_v20, %v5642_v57  ;;  %v14045_v20 = vld [vmem:[%s11499_s8 + $0x18] sm:$0x7] }
 0x2de   : > { %v5138_v36 = vadd.f32 %v5010_v46, %v4814_v22  ;;  %v5508_v44 = vmul.f32 %v13504_v14, %v13237_v5  ;;  %v13508_v19 = vadd.f32 %v5333_v8, %v5137_v62  ;;  %v4812_v53 = vmul.f32 %v13022_v4, %v4744_v60 }
 0x2df   : > { %v5008_v18 = vrot.slane %v4880_v59, 1  ;;  %v5135_v21 = vadd.f32 %v5007_v1, %v4811_v10  ;;  %v5331_v26 = vrot.slane %v5203_v31, 2  ;;  %10668 = vmatprep.mubr.msk.f32.mxu1 %vm5786_vm5, %v5762_v30  ;;  %v5509_v51 = vmul.f32 %v13504_v14, %v13242_v41 }
 0x2e0   : > { %v13518_v32 = vadd.f32 %v13515_v58, %v5508_v44  ;;  %v10837_v5 = vadd.f32 %v16513_v63, %v16512_v54  ;;  %v13522_v34 = vadd.f32 %v5334_v40, %v5138_v36  ;;  %v5332_v49 = vrot.slane %v5204_v28, 2 }
 0x2e1   : > { %v10838_v9 = vadd.f32 %v16515_v42, %v16514_v33  ;;  %v5510_v25 = vmul.f32 %v13504_v14, %v13289_v35  ;;  %v5136_v57 = vadd.f32 %v5008_v18, %v4812_v53  ;;  %v5580_v41 = vadd.f32 %v13515_v58, %v5509_v51 }
 0x2e2   : > { %16511 = vst [vmem:[#allocation76_spill] sm:$0xff] %v13518_v32  ;;  %v4500_v22 = vcombine.high %v10837_v5, %v10837_v5  ;;  %v4556_v60 = vrot.slane %v10837_v5, 7  ;;  %v13529_v0 = vadd.f32 %v5331_v26, %v5135_v21  ;;  %v5511_v8 = vmul.f32 %v13504_v14, %v13294_v24 }
 0x2e3   : > { %v4499_v46 = vcombine.high %v10838_v9, %v10838_v9  ;;  %v4554_v62 = vrot.slane %v10838_v9, 7  ;;  %v16139_v10 = vmax.f32 %v13518_v32, 0.0  ;;  %v5644_v59 = vmax.f32 %v5580_v41, 0.0 }
 0x2e4   : > { %v4557_v1 = vrot.slane %v4500_v22, 7  ;;  %v4684_v31 = vsel %vm3286_vm2, 0.0, %v4556_v60  ;;  %v13538_v40 = vadd.f32 %v13515_v58, %v5510_v25  ;;  %v5582_v53 = vadd.f32 %v13515_v58, %v5511_v8 }
 0x2e5   : > { %v4749_v35 = vsel %vm4702_vm4, %v4684_v31, 0.0  ;;  %v4555_v28 = vrot.slane %v4499_v46, 7  ;;  %v4682_v36 = vsel %vm3286_vm2, 0.0, %v4554_v62  ;;  %v5763_v30 = vcombine.low %v16139_v10, %v5644_v59 }
 0x2e6   : > { %16516 = vst [vmem:[#allocation78_spill] sm:$0xff] %v13538_v40  ;;  %v4685_v44 = vsel %vm3286_vm2, 0.0, %v4557_v1  ;;  %v4885_v24 = vmul.f32 %v13016_v37, %v4749_v35  ;;  %v5209_v21 = vmul.f32 %v13019_v61, %v4749_v35  ;;  %v4747_v51 = vsel %vm4702_vm4, %v4682_v36, 0.0 }
 0x2e7   : > { %v4750_v18 = vsel %vm4702_vm4, %v4685_v44, 0.0  ;;  %v4683_v26 = vsel %vm3286_vm2, 0.0, %v4555_v28  ;;  %10669 = vmatmul.mubr.msk.f32.gmra.mrb[40].mxu1 %vm5786_vm5, %v5763_v30  ;;  %v4817_v54 = vmul.f32 %v13022_v4, %v4749_v35  ;;  %v13553_v42 = vadd.f32 %v5332_v49, %v5136_v57 }
 0x2e8   : > { %v4886_v63 = vmul.f32 %v13016_v37, %v4750_v18  ;;  %v5013_v5 = vrot.slane %v4885_v24, 1  ;;  %v5210_v33 = vmul.f32 %v13019_v61, %v4750_v18  ;;  %v4818_v9 = vmul.f32 %v13022_v4, %v4750_v18 }
 0x2e9   : > { %v4748_v25 = vsel %vm4702_vm4, %v4683_v26, 0.0  ;;  %v4883_v41 = vmul.f32 %v13016_v37, %v4747_v51  ;;  %v5337_v46 = vrot.slane %v5209_v21, 2  ;;  %v4815_v62 = vmul.f32 %v13022_v4, %v4747_v51 }
 0x2ea   : > { %v5014_v22 = vrot.slane %v4886_v63, 1  ;;  %v5141_v60 = vadd.f32 %v5013_v5, %v4817_v54  ;;  %v4884_v8 = vmul.f32 %v13016_v37, %v4748_v25  ;;  %v5207_v1 = vmul.f32 %v13019_v61, %v4747_v51  ;;  %v16518_v5 = vld [vmem:[#allocation69_spill] sm:$0xff] }
 0x2eb   : > { %v5011_v59 = vrot.slane %v4883_v41, 1  ;;  %v5208_v31 = vmul.f32 %v13019_v61, %v4748_v25  ;;  %v5338_v57 = vrot.slane %v5210_v33, 2  ;;  %v16136_v35 = vmax.f32 %v13538_v40, 0.0 }
 0x2ec   : > { %v5142_v49 = vadd.f32 %v5014_v22, %v4818_v9  ;;  %v5646_v28 = vmax.f32 %v5582_v53, 0.0  ;;  %v13563_v36 = vadd.f32 %v5337_v46, %v5141_v60  ;;  %v4816_v30 = vmul.f32 %v13022_v4, %v4748_v25  ;;  %v16517_v53 = vld [vmem:[#allocation43_spill] sm:$0xff]  ;;  %v16519_v9 = vld [vmem:[#allocation49_spill] sm:$0xff]  ;;  %v16520_v25 = vld [vmem:[#allocation64_spill] sm:$0xff] }
 0x2ed   : > { %v5012_v44 = vrot.slane %v4884_v8, 1  ;;  %v5139_v24 = vadd.f32 %v5011_v59, %v4815_v62  ;;  %v5335_v18 = vrot.slane %v5207_v1, 2  ;;  %v5512_v26 = vmul.f32 %v13504_v14, %v13268_v11 }
 0x2ee   : > { %v5764_v21 = vcombine.low %v16136_v35, %v5646_v28  ;;  %v5513_v51 = vmul.f32 %v13504_v14, %v13274_v3  ;;  %v13572_v54 = vadd.f32 %v5338_v57, %v5142_v49  ;;  %v5336_v63 = vrot.slane %v5208_v31, 2 }
 0x2ef   : > { %v10839_v33 = vadd.f32 %v16518_v5, %v16517_v53  ;;  %v10840_v41 = vadd.f32 %v16520_v25, %v16519_v9  ;;  %v13580_v22 = vadd.f32 %v13515_v58, %v5512_v26  ;;  %v5514_v11 = vmul.f32 %v13504_v14, %v13332_v38 }
 0x2f0   : > { %10671 = vmatprep.mubr.msk.f32.mxu1 %vm5786_vm5, %v5764_v21  ;;  %v5584_v60 = vadd.f32 %v13515_v58, %v5513_v51  ;;  %v5515_v3 = vmul.f32 %v13504_v14, %v13334_v43  ;;  %v5140_v46 = vadd.f32 %v5012_v44, %v4816_v30  ;;  %v13587_v1 = vadd.f32 %v5335_v18, %v5139_v24 }
 0x2f1   : > { %16521 = vst [vmem:[#allocation82_spill] sm:$0xff] %v13580_v22  ;;  %v4502_v62 = vcombine.high %v10839_v33, %v10839_v33  ;;  %v4560_v8 = vrot.slane %v10839_v33, 7  ;;  %v4501_v59 = vcombine.high %v10840_v41, %v10840_v41  ;;  %v16137_v31 = vmax.f32 %v13580_v22, 0.0 }
 0x2f2   : > { %v5648_v49 = vmax.f32 %v5584_v60, 0.0  ;;  %v4558_v57 = vrot.slane %v10840_v41, 7  ;;  %v5586_v51 = vadd.f32 %v13515_v58, %v5515_v3  ;;  %v5585_v44 = vadd.f32 %v13515_v58, %v5514_v11 }
 0x2f3   : > { %v4561_v28 = vrot.slane %v4502_v62, 7  ;;  %v4688_v21 = vsel %vm3286_vm2, 0.0, %v4560_v8  ;;  %v4559_v26 = vrot.slane %v4501_v59, 7  ;;  %v13597_v24 = vadd.f32 %v5336_v63, %v5140_v46 }
 0x2f4   : > { %v5765_v38 = vcombine.low %v16137_v31, %v5648_v49  ;;  %v4753_v43 = vsel %vm4702_vm4, %v4688_v21, 0.0  ;;  %v4686_v30 = vsel %vm3286_vm2, 0.0, %v4558_v57  ;;  %v5650_v3 = vmax.f32 %v5586_v51, 0.0 }
 0x2f5   : > { %v4689_v18 = vsel %vm3286_vm2, 0.0, %v4561_v28  ;;  %v4889_v53 = vmul.f32 %v13016_v37, %v4753_v43  ;;  %v5213_v5 = vmul.f32 %v13019_v61, %v4753_v43  ;;  %v4821_v9 = vmul.f32 %v13022_v4, %v4753_v43 }
 0x2f6   : > { %10672 = vmatmul.mubr.msk.f32.gmra.mrb[42].mxu1 %vm5786_vm5, %v5765_v38  ;;  %v4754_v33 = vsel %vm4702_vm4, %v4689_v18, 0.0  ;;  %v4687_v25 = vsel %vm3286_vm2, 0.0, %v4559_v26  ;;  %v4751_v41 = vsel %vm4702_vm4, %v4686_v30, 0.0  ;;  %v5649_v59 = vmax.f32 %v5585_v44, 0.0 }
 0x2f7   : > { %v4890_v60 = vmul.f32 %v13016_v37, %v4754_v33  ;;  %v5017_v63 = vrot.slane %v4889_v53, 1  ;;  %v5214_v11 = vmul.f32 %v13019_v61, %v4754_v33  ;;  %v4822_v46 = vmul.f32 %v13022_v4, %v4754_v33 }
 0x2f8   : > { %v4752_v62 = vsel %vm4702_vm4, %v4687_v25, 0.0  ;;  %v4887_v8 = vmul.f32 %v13016_v37, %v4751_v41  ;;  %v5341_v28 = vrot.slane %v5213_v5, 2  ;;  %v4819_v21 = vmul.f32 %v13022_v4, %v4751_v41 }
 0x2f9   : > { %v5018_v49 = vrot.slane %v4890_v60, 1  ;;  %v5145_v57 = vadd.f32 %v5017_v63, %v4821_v9  ;;  %v4888_v26 = vmul.f32 %v13016_v37, %v4752_v62  ;;  %v5211_v43 = vmul.f32 %v13019_v61, %v4751_v41 }
 0x2fa   : > { %v5015_v38 = vrot.slane %v4887_v8, 1  ;;  %v5212_v30 = vmul.f32 %v13019_v61, %v4752_v62  ;;  %v5342_v18 = vrot.slane %v5214_v11, 2  ;;  %v5766_v53 = vcombine.low %v5649_v59, %v5650_v3  ;;  %v16523_v11 = vld [vmem:[#allocation68_spill] sm:$0xff]  ;;  %v16524_v59 = vld [vmem:[#allocation51_spill] sm:$0xff] }
 0x2fb   : > { %v5146_v51 = vadd.f32 %v5018_v49, %v4822_v46  ;;  %v5516_v33 = vmul.f32 %v13504_v14, %v13314_v7  ;;  %v13618_v25 = vadd.f32 %v5341_v28, %v5145_v57  ;;  %v4820_v44 = vmul.f32 %v13022_v4, %v4752_v62  ;;  %v16522_v46 = vld [vmem:[#allocation45_spill] sm:$0xff] }
 0x2fc   : > { %v5016_v5 = vrot.slane %v4888_v26, 1  ;;  %v5143_v9 = vadd.f32 %v5015_v38, %v4819_v21  ;;  %v5339_v60 = vrot.slane %v5211_v43, 2  ;;  %10674 = vmatprep.mubr.msk.f32.mxu1 %vm5786_vm5, %v5766_v53  ;;  %v5517_v41 = vmul.f32 %v13504_v14, %v13316_v13  ;;  %v16525_v49 = vld [vmem:[#allocation73_spill] sm:$0xff] }
 0x2fd   : > { %v5587_v63 = vadd.f32 %v13515_v58, %v5516_v33  ;;  %v10841_v3 = vadd.f32 %v16523_v11, %v16522_v46  ;;  %v13627_v8 = vadd.f32 %v5342_v18, %v5146_v51  ;;  %v5340_v7 = vrot.slane %v5212_v30, 2 }
 0x2fe   : > { %v10842_v57 = vadd.f32 %v16525_v49, %v16524_v59  ;;  %v5518_v62 = vmul.f32 %v13504_v14, %v13378_v48  ;;  %v5144_v28 = vadd.f32 %v5016_v5, %v4820_v44  ;;  %v5588_v21 = vadd.f32 %v13515_v58, %v5517_v41 }
 0x2ff   : > { %v4504_v26 = vcombine.high %v10841_v3, %v10841_v3  ;;  %v4564_v38 = vrot.slane %v10841_v3, 7  ;;  %v13634_v13 = vadd.f32 %v5339_v60, %v5143_v9  ;;  %v5519_v51 = vmul.f32 %v13504_v14, %v13387_v17 }
 0x300   : > { %v4503_v43 = vcombine.high %v10842_v57, %v10842_v57  ;;  %v4562_v53 = vrot.slane %v10842_v57, 7  ;;  %v5651_v18 = vmax.f32 %v5587_v63, 0.0  ;;  %v5652_v30 = vmax.f32 %v5588_v21, 0.0 }
 0x301   : > { %v4565_v33 = vrot.slane %v4504_v26, 7  ;;  %v4692_v46 = vsel %vm3286_vm2, 0.0, %v4564_v38  ;;  %v5589_v5 = vadd.f32 %v13515_v58, %v5518_v62  ;;  %v5590_v3 = vadd.f32 %v13515_v58, %v5519_v51 }
 0x302   : > { %v4757_v11 = vsel %vm4702_vm4, %v4692_v46, 0.0  ;;  %v4563_v48 = vrot.slane %v4503_v43, 7  ;;  %v4690_v44 = vsel %vm3286_vm2, 0.0, %v4562_v53  ;;  %v5767_v41 = vcombine.low %v5651_v18, %v5652_v30 }
 0x303   : > { %v4693_v9 = vsel %vm3286_vm2, 0.0, %v4565_v33  ;;  %v4893_v60 = vmul.f32 %v13016_v37, %v4757_v11  ;;  %v5217_v63 = vmul.f32 %v13019_v61, %v4757_v11  ;;  %v4755_v49 = vsel %vm4702_vm4, %v4690_v44, 0.0 }
 0x304   : > { %v4758_v17 = vsel %vm4702_vm4, %v4693_v9, 0.0  ;;  %v4691_v59 = vsel %vm3286_vm2, 0.0, %v4563_v48  ;;  %10675 = vmatmul.mubr.msk.f32.gmra.mrb[44].mxu1 %vm5786_vm5, %v5767_v41  ;;  %v4825_v57 = vmul.f32 %v13022_v4, %v4757_v11  ;;  %v13653_v38 = vadd.f32 %v5340_v7, %v5144_v28 }
 0x305   : > { %v4894_v62 = vmul.f32 %v13016_v37, %v4758_v17  ;;  %v5021_v21 = vrot.slane %v4893_v60, 1  ;;  %v5218_v26 = vmul.f32 %v13019_v61, %v4758_v17  ;;  %v4826_v43 = vmul.f32 %v13022_v4, %v4758_v17 }
 0x306   : > { %v4756_v53 = vsel %vm4702_vm4, %v4691_v59, 0.0  ;;  %v4891_v51 = vmul.f32 %v13016_v37, %v4755_v49  ;;  %v5345_v33 = vrot.slane %v5217_v63, 2  ;;  %v4823_v46 = vmul.f32 %v13022_v4, %v4755_v49 }
 0x307   : > { %v5022_v18 = vrot.slane %v4894_v62, 1  ;;  %v5149_v30 = vadd.f32 %v5021_v21, %v4825_v57  ;;  %v4892_v11 = vmul.f32 %v13016_v37, %v4756_v53  ;;  %v5215_v44 = vmul.f32 %v13019_v61, %v4755_v49 }
 0x308   : > { %v5019_v48 = vrot.slane %v4891_v51, 1  ;;  %v5216_v41 = vmul.f32 %v13019_v61, %v4756_v53  ;;  %v5346_v28 = vrot.slane %v5218_v26, 2  ;;  %v5653_v9 = vmax.f32 %v5589_v5, 0.0  ;;  %v16526_v26 = vld [vmem:[#allocation46_spill] sm:$0xff] }
 0x309   : > { %v5150_v7 = vadd.f32 %v5022_v18, %v4826_v43  ;;  %v5654_v60 = vmax.f32 %v5590_v3, 0.0  ;;  %v13662_v17 = vadd.f32 %v5345_v33, %v5149_v30  ;;  %v4824_v59 = vmul.f32 %v13022_v4, %v4756_v53  ;;  %v16527_v5 = vld [vmem:[#allocation70_spill] sm:$0xff]  ;;  %v16529_v30 = vld [vmem:[#allocation72_spill] sm:$0xff] }
 0x30a   : > { %v5020_v62 = vrot.slane %v4892_v11, 1  ;;  %v5147_v57 = vadd.f32 %v5019_v48, %v4823_v46  ;;  %v5343_v63 = vrot.slane %v5215_v44, 2  ;;  %v5520_v35 = vmul.f32 %v13504_v14, %v13358_v47  ;;  %v16528_v18 = vld [vmem:[#allocation50_spill] sm:$0xff] }
 0x30b   : > { %v5768_v21 = vcombine.low %v5653_v9, %v5654_v60  ;;  %v5521_v49 = vmul.f32 %v13504_v14, %v13360_v39  ;;  %v13669_v51 = vadd.f32 %v5346_v28, %v5150_v7  ;;  %v5344_v43 = vrot.slane %v5216_v41, 2 }
 0x30c   : > { %v10843_v3 = vadd.f32 %v16527_v5, %v16526_v26  ;;  %v10844_v33 = vadd.f32 %v16529_v30, %v16528_v18  ;;  %v5591_v53 = vadd.f32 %v13515_v58, %v5520_v35  ;;  %v5522_v47 = vmul.f32 %v13504_v14, %v13424_v52 }
 0x30d   : > { %10677 = vmatprep.mubr.msk.f32.mxu1 %vm5786_vm5, %v5768_v21  ;;  %v5592_v46 = vadd.f32 %v13515_v58, %v5521_v49  ;;  %v5523_v39 = vmul.f32 %v13504_v14, %v13443_v23  ;;  %v5148_v11 = vadd.f32 %v5020_v62, %v4824_v59  ;;  %v13682_v7 = vadd.f32 %v5343_v63, %v5147_v57 }
 0x30e   : > { %v4506_v48 = vcombine.high %v10843_v3, %v10843_v3  ;;  %v4568_v44 = vrot.slane %v10843_v3, 7  ;;  %v4505_v41 = vcombine.high %v10844_v33, %v10844_v33  ;;  %v5655_v28 = vmax.f32 %v5591_v53, 0.0 }
 0x30f   : > { %v5656_v9 = vmax.f32 %v5592_v46, 0.0  ;;  %v4566_v60 = vrot.slane %v10844_v33, 7  ;;  %v5594_v49 = vadd.f32 %v13515_v58, %v5523_v39  ;;  %v13689_v59 = vadd.f32 %v13515_v58, %v5522_v47 }
 0x310   : > { %v4569_v21 = vrot.slane %v4506_v48, 7  ;;  %v4696_v35 = vsel %vm3286_vm2, 0.0, %v4568_v44  ;;  %v4567_v26 = vrot.slane %v4505_v41, 7  ;;  %v13691_v62 = vadd.f32 %v5344_v43, %v5148_v11 }
 0x311   : > { %v5769_v5 = vcombine.low %v5655_v28, %v5656_v9  ;;  %v4761_v52 = vsel %vm4702_vm4, %v4696_v35, 0.0  ;;  %v4694_v23 = vsel %vm3286_vm2, 0.0, %v4566_v60  ;;  %v5658_v39 = vmax.f32 %v5594_v49, 0.0 }
 0x312   : > { %v4697_v57 = vsel %vm3286_vm2, 0.0, %v4569_v21  ;;  %v4897_v63 = vmul.f32 %v13016_v37, %v4761_v52  ;;  %v5221_v3 = vmul.f32 %v13019_v61, %v4761_v52  ;;  %v4829_v30 = vmul.f32 %v13022_v4, %v4761_v52 }
 0x313   : > { %10678 = vmatmul.mubr.msk.f32.gmra.mrb[46].mxu1 %vm5786_vm5, %v5769_v5  ;;  %v4762_v18 = vsel %vm4702_vm4, %v4697_v57, 0.0  ;;  %v4695_v33 = vsel %vm3286_vm2, 0.0, %v4567_v26  ;;  %v4759_v53 = vsel %vm4702_vm4, %v4694_v23, 0.0  ;;  %v5657_v41 = vmax.f32 %v13689_v59, 0.0 }
 0x314   : > { %v4898_v46 = vmul.f32 %v13016_v37, %v4762_v18  ;;  %v5025_v43 = vrot.slane %v4897_v63, 1  ;;  %v5222_v47 = vmul.f32 %v13019_v61, %v4762_v18  ;;  %v4830_v11 = vmul.f32 %v13022_v4, %v4762_v18 }
 0x315   : > { %v4760_v48 = vsel %vm4702_vm4, %v4695_v33, 0.0  ;;  %v4895_v44 = vmul.f32 %v13016_v37, %v4759_v53  ;;  %v5349_v60 = vrot.slane %v5221_v3, 2  ;;  %v4827_v21 = vmul.f32 %v13022_v4, %v4759_v53 }
 0x316   : > { %v5026_v28 = vrot.slane %v4898_v46, 1  ;;  %v5153_v9 = vadd.f32 %v5025_v43, %v4829_v30  ;;  %v4896_v35 = vmul.f32 %v13016_v37, %v4760_v48  ;;  %v5219_v5 = vmul.f32 %v13019_v61, %v4759_v53 }
 0x317   : > { %v5023_v26 = vrot.slane %v4895_v44, 1  ;;  %v5220_v49 = vmul.f32 %v13019_v61, %v4760_v48  ;;  %v5350_v23 = vrot.slane %v5222_v47, 2  ;;  %v5770_v57 = vcombine.low %v5657_v41, %v5658_v39  ;;  %v16530_v47 = vld [vmem:[#allocation54_spill] sm:$0xff]  ;;  %v16531_v39 = vld [vmem:[#allocation71_spill] sm:$0xff] }
 0x318   : > { %v5154_v52 = vadd.f32 %v5026_v28, %v4830_v11  ;;  %v5524_v63 = vmul.f32 %v13504_v14, %v13408_v2  ;;  %v13715_v18 = vadd.f32 %v5349_v60, %v5153_v9  ;;  %v4828_v3 = vmul.f32 %v13022_v4, %v4760_v48  ;;  %v16532_v28 = vld [vmem:[#allocation52_spill] sm:$0xff] }
 0x319   : > { %v5024_v30 = vrot.slane %v4896_v35, 1  ;;  %v5151_v33 = vadd.f32 %v5023_v26, %v4827_v21  ;;  %v5347_v46 = vrot.slane %v5219_v5, 2  ;;  %10680 = vmatprep.mubr.msk.f32.mxu1 %vm5786_vm5, %v5770_v57  ;;  %v5525_v53 = vmul.f32 %v13504_v14, %v13417_v50 }
 0x31a   : > { %v13722_v43 = vadd.f32 %v13515_v58, %v5524_v63  ;;  %v10845_v11 = vadd.f32 %v16531_v39, %v16530_v47  ;;  %v13726_v44 = vadd.f32 %v5350_v23, %v5154_v52  ;;  %v5348_v2 = vrot.slane %v5220_v49, 2 }
 0x31b   : > { %v10846_v48 = vadd.f32 %v13319_v29, %v16532_v28  ;;  %v5526_v9 = vmul.f32 %v13504_v14, %v13472_v45  ;;  %v5152_v60 = vadd.f32 %v5024_v30, %v4828_v3  ;;  %v5596_v21 = vadd.f32 %v13515_v58, %v5525_v53 }
 0x31c   : > { %v4508_v35 = vcombine.high %v10845_v11, %v10845_v11  ;;  %v4572_v50 = vrot.slane %v10845_v11, 7  ;;  %v13733_v26 = vadd.f32 %v5347_v46, %v5151_v33  ;;  %v5527_v52 = vmul.f32 %v13504_v14, %v13481_v12 }
 0x31d   : > { %v4507_v5 = vcombine.high %v10846_v48, %v10846_v48  ;;  %v4570_v57 = vrot.slane %v10846_v48, 7  ;;  %v5659_v49 = vmax.f32 %v13722_v43, 0.0  ;;  %v5660_v23 = vmax.f32 %v5596_v21, 0.0  ;;  %v13907_v43 = vld [vmem:[%s11499_s8 + $0x8] sm:$0xff] }
 0x31e   : > { %v4573_v63 = vrot.slane %v4508_v35, 7  ;;  %v4700_v29 = vsel %vm3286_vm2, 0.0, %v4572_v50  ;;  %v13742_v53 = vadd.f32 %v13515_v58, %v5526_v9  ;;  %v5598_v47 = vadd.f32 %v13515_v58, %v5527_v52 }
 0x31f   : > { %v4765_v45 = vsel %vm4702_vm4, %v4700_v29, 0.0  ;;  %v4571_v3 = vrot.slane %v4507_v5, 7  ;;  %v4698_v30 = vsel %vm3286_vm2, 0.0, %v4570_v57  ;;  %v5771_v33 = vcombine.low %v5659_v49, %v5660_v23 }
 0x320   : > { %v4701_v46 = vsel %vm3286_vm2, 0.0, %v4573_v63  ;;  %v4901_v12 = vmul.f32 %v13016_v37, %v4765_v45  ;;  %v5225_v11 = vmul.f32 %v13019_v61, %v4765_v45  ;;  %v4763_v48 = vsel %vm4702_vm4, %v4698_v30, 0.0 }
 0x321   : > { %v4766_v39 = vsel %vm4702_vm4, %v4701_v46, 0.0  ;;  %v4699_v28 = vsel %vm3286_vm2, 0.0, %v4571_v3  ;;  %10681 = vmatmul.mubr.msk.f32.gmra.mrb[48].mxu1 %vm5786_vm5, %v5771_v33  ;;  %v4833_v9 = vmul.f32 %v13022_v4, %v4765_v45  ;;  %v13759_v5 = vadd.f32 %v5348_v2, %v5152_v60 }
 0x322   : > { %v4902_v21 = vmul.f32 %v13016_v37, %v4766_v39  ;;  %v5029_v35 = vrot.slane %v4901_v12, 1  ;;  %v13757_v50 = vmul.f32 %v13019_v61, %v4766_v39  ;;  %v4834_v57 = vmul.f32 %v13022_v4, %v4766_v39 }
 0x323   : > { %v4764_v52 = vsel %vm4702_vm4, %v4699_v28, 0.0  ;;  %v4899_v23 = vmul.f32 %v13016_v37, %v4763_v48  ;;  %v5353_v3 = vrot.slane %v5225_v11, 2  ;;  %v4831_v30 = vmul.f32 %v13022_v4, %v4763_v48 }
 0x324   : > { %v5030_v63 = vrot.slane %v4902_v21, 1  ;;  %v5157_v29 = vadd.f32 %v5029_v35, %v4833_v9  ;;  %v4900_v45 = vmul.f32 %v13016_v37, %v4764_v52  ;;  %v5223_v46 = vmul.f32 %v13019_v61, %v4763_v48 }
 0x325   : > { %v5027_v33 = vrot.slane %v4899_v23, 1  ;;  %v13768_v12 = vmul.f32 %v13019_v61, %v4764_v52  ;;  %v5354_v2 = vrot.slane %v13757_v50, 2  ;;  %v4832_v60 = vmul.f32 %v13022_v4, %v4764_v52 }
 0x326   : > { %v5661_v39 = vmax.f32 %v13742_v53, 0.0  ;;  %v5662_v28 = vmax.f32 %v5598_v47, 0.0  ;;  %v13773_v21 = vadd.f32 %v5030_v63, %v4834_v57  ;;  %v13775_v11 = vadd.f32 %v5353_v3, %v5157_v29  ;;  %v16540_v53 = vld [vmem:[#allocation53_spill] sm:$0xff] }
 0x327   : > { %v5028_v9 = vrot.slane %v4900_v45, 1  ;;  %v5155_v35 = vadd.f32 %v5027_v33, %v4831_v30  ;;  %v5351_v37 = vrot.slane %v5223_v46, 2  ;;  %v5528_v61 = vmul.f32 %v13504_v14, %v13452_v55 }
 0x328   : > { %v5772_v48 = vcombine.low %v5661_v39, %v5662_v28  ;;  %v5529_v23 = vmul.f32 %v13504_v14, %v13459_v56  ;;  %v5352_v52 = vrot.slane %v13768_v12, 2  ;;  %v5530_v47 = vmul.f32 %v13504_v14, %v13529_v0 }
 0x329   : > { %v5156_v4 = vadd.f32 %v5028_v9, %v4832_v60  ;;  %v5531_v57 = vmul.f32 %v13504_v14, %v13553_v42  ;;  %v13790_v63 = vadd.f32 %v13515_v58, %v5528_v61  ;;  %v5532_v55 = vmul.f32 %v13504_v14, %v13508_v19 }
 0x32a   : > { %10683 = vmatprep.mubr.msk.f32.mxu1 %vm5786_vm5, %v5772_v48  ;;  %v5600_v29 = vadd.f32 %v13515_v58, %v5529_v23  ;;  %v5533_v56 = vmul.f32 %v13504_v14, %v13522_v34  ;;  %v13797_v3 = vadd.f32 %v5351_v37, %v5155_v35  ;;  %v5601_v0 = vadd.f32 %v13515_v58, %v5530_v47 }
 0x32b   : > { %v5602_v30 = vadd.f32 %v13515_v58, %v5531_v57  ;;  %v5534_v42 = vmul.f32 %v13504_v14, %v13587_v1  ;;  %v5663_v45 = vmax.f32 %v13790_v63, 0.0  ;;  %v5603_v46 = vadd.f32 %v13515_v58, %v5532_v55  ;;  %v13919_v63 = vld [vmem:[%s11489_s29] ss:$0 sm:$0xff] }
 0x32c   : > { %v5664_v33 = vmax.f32 %v5600_v29, 0.0  ;;  %v5604_v12 = vadd.f32 %v13515_v58, %v5533_v56  ;;  %v5665_v19 = vmax.f32 %v5601_v0, 0.0  ;;  %v5535_v34 = vmul.f32 %v13504_v14, %v13597_v24 }
 0x32d   : > { %v5666_v60 = vmax.f32 %v5602_v30, 0.0  ;;  %v5605_v28 = vadd.f32 %v13515_v58, %v5534_v42  ;;  %v5667_v35 = vmax.f32 %v5603_v46, 0.0  ;;  %v5536_v1 = vmul.f32 %v13504_v14, %v13563_v36 }
 0x32e   : > { %v5773_v9 = vcombine.low %v5663_v45, %v5664_v33  ;;  %v5668_v37 = vmax.f32 %v5604_v12, 0.0  ;;  %v5606_v61 = vadd.f32 %v13515_v58, %v5535_v34  ;;  %v5537_v47 = vmul.f32 %v13504_v14, %v13572_v54 }
 0x32f   : > { %v5774_v48 = vcombine.low %v5665_v19, %v5666_v60  ;;  %v5669_v23 = vmax.f32 %v5605_v28, 0.0  ;;  %v5607_v57 = vadd.f32 %v13515_v58, %v5536_v1  ;;  %v5538_v29 = vmul.f32 %v13504_v14, %v13634_v13 }
 0x330   : > { %10684 = vmatmul.mubr.msk.f32.gmra.mrb[50].mxu1 %vm5786_vm5, %v5773_v9  ;;  %v5775_v24 = vcombine.low %v5667_v35, %v5668_v37  ;;  %v5539_v55 = vmul.f32 %v13504_v14, %v13653_v38  ;;  %v5670_v36 = vmax.f32 %v5606_v61, 0.0  ;;  %v5608_v56 = vadd.f32 %v13515_v58, %v5537_v47 }
 0x331   : > { %10686 = vmatprep.mubr.msk.f32.mxu1 %vm5786_vm5, %v5774_v48  ;;  %v5540_v0 = vmul.f32 %v13504_v14, %v13618_v25  ;;  %v5541_v54 = vmul.f32 %v13504_v14, %v13627_v8  ;;  %v5671_v30 = vmax.f32 %v5607_v57, 0.0  ;;  %v13829_v42 = vadd.f32 %v13515_v58, %v5538_v29 }
 0x332   : > { %v5610_v13 = vadd.f32 %v13515_v58, %v5539_v55  ;;  %v5542_v38 = vmul.f32 %v13504_v14, %v13682_v7  ;;  %v5776_v33 = vcombine.low %v5669_v23, %v5670_v36  ;;  %v5672_v46 = vmax.f32 %v5608_v56, 0.0 }
 0x333   : > { %v13835_v12 = vadd.f32 %v13515_v58, %v5540_v0  ;;  %v5612_v19 = vadd.f32 %v13515_v58, %v5541_v54  ;;  %v5673_v25 = vmax.f32 %v13829_v42, 0.0  ;;  %v5543_v60 = vmul.f32 %v13504_v14, %v13691_v62 }
 0x334   : > { %10687 = vmatmul.mubr.msk.f32.gmra.mrb[52].mxu1 %vm5786_vm5, %v5775_v24  ;;  %v5674_v8 = vmax.f32 %v5610_v13, 0.0  ;;  %v5613_v34 = vadd.f32 %v13515_v58, %v5542_v38  ;;  %v5480_v28 = vadd.f32 %v5352_v52, %v5156_v4  ;;  %v5777_v7 = vcombine.low %v5671_v30, %v5672_v46 }
 0x335   : > { %10689 = vmatprep.mubr.msk.f32.mxu1 %vm5786_vm5, %v5776_v33  ;;  %v5675_v9 = vmax.f32 %v13835_v12, 0.0  ;;  %v5544_v35 = vmul.f32 %v13504_v14, %v13662_v17  ;;  %v5676_v1 = vmax.f32 %v5612_v19, 0.0  ;;  %v5614_v48 = vadd.f32 %v13515_v58, %v5543_v60 }
 0x336   : > { %v5778_v37 = vcombine.low %v5673_v25, %v5674_v8  ;;  %v5545_v61 = vmul.f32 %v13504_v14, %v13669_v51  ;;  %v5677_v23 = vmax.f32 %v5613_v34, 0.0  ;;  %v5546_v4 = vmul.f32 %v13504_v14, %v13733_v26 }
 0x337   : > { %v5615_v62 = vadd.f32 %v13515_v58, %v5544_v35  ;;  %v5547_v52 = vmul.f32 %v13504_v14, %v13759_v5  ;;  %v5678_v47 = vmax.f32 %v5614_v48, 0.0  ;;  %v5548_v24 = vmul.f32 %v13504_v14, %v13715_v18 }
 0x338   : > { %10690 = vmatmul.mubr.msk.f32.gmra.mrb[54].mxu1 %vm5786_vm5, %v5777_v7  ;;  %v5616_v17 = vadd.f32 %v13515_v58, %v5545_v61  ;;  %v5549_v51 = vmul.f32 %v13504_v14, %v13726_v44  ;;  %v5482_v57 = vadd.f32 %v5354_v2, %v13773_v21  ;;  %v5617_v26 = vadd.f32 %v13515_v58, %v5546_v4  ;;  %v13933_v4 = vld [vmem:[%s11494_s3] ss:$0 sm:$0xff] }
 0x339   : > { %10692 = vmatprep.mubr.msk.f32.mxu1 %vm5786_vm5, %v5778_v37  ;;  %v5618_v5 = vadd.f32 %v13515_v58, %v5547_v52  ;;  %v5550_v29 = vmul.f32 %v13504_v14, %v13797_v3  ;;  %v5779_v55 = vcombine.low %v5675_v9, %v5676_v1  ;;  %v5780_v36 = vcombine.low %v5677_v23, %v5678_v47  ;;  %v16546_v52 = vld [vmem:[#allocation58_spill] sm:$0xff] }
 0x33a   : > { %v5680_v56 = vmax.f32 %v5616_v17, 0.0  ;;  %v5620_v18 = vadd.f32 %v13515_v58, %v5549_v51  ;;  %v5681_v0 = vmax.f32 %v5617_v26, 0.0  ;;  %v5551_v54 = vmul.f32 %v13504_v14, %v5480_v28 }
 0x33b   : > { %v5682_v44 = vmax.f32 %v5618_v5, 0.0  ;;  %v5621_v50 = vadd.f32 %v13515_v58, %v5550_v29  ;;  %v5679_v2 = vmax.f32 %v5615_v62, 0.0  ;;  %v5619_v21 = vadd.f32 %v13515_v58, %v5548_v24  ;;  %v13904_v62 = vld [vmem:[%s11499_s8] sm:$0xff]  ;;  %v13939_v24 = vld [vmem:[%s11499_s8 + $0x10] sm:$0xff] }
 0x33c   : > { %10693 = vmatmul.mubr.msk.f32.gmra.mrb[56].mxu1 %vm5786_vm5, %v5779_v55  ;;  %v5552_v30 = vmul.f32 %v13504_v14, %v13775_v11  ;;  %v5622_v42 = vadd.f32 %v13515_v58, %v5551_v54  ;;  %v5553_v13 = vmul.f32 %v13504_v14, %v5482_v57  ;;  %v5684_v33 = vmax.f32 %v5620_v18, 0.0 }
 0x33d   : > { %10695 = vmatprep.mubr.msk.f32.mxu1 %vm5786_vm5, %v5780_v36  ;;  %v5782_v3 = vcombine.low %v5681_v0, %v5682_v44  ;;  %v5781_v38 = vcombine.low %v5679_v2, %v5680_v56  ;;  %v5685_v46 = vmax.f32 %v5621_v50, 0.0  ;;  %v5683_v8 = vmax.f32 %v5619_v21, 0.0 }
 0x33e   : > { %v5686_v12 = vmax.f32 %v5622_v42, 0.0  ;;  %v5624_v19 = vadd.f32 %v13515_v58, %v5553_v13  ;;  %v5623_v60 = vadd.f32 %v13515_v58, %v5552_v30  ;;  %v13890_v58 = vcombine.low %v5657_v41, %v5659_v49  ;;  %v16538_v41 = vld [vmem:[#allocation55_spill] sm:$0xff] }
 0x33f   : > { %v5783_v34 = vcombine.low %v5683_v8, %v5684_v33  ;;  %v13896_v35 = vcombine.low %v5661_v39, %v5663_v45  ;;  %v13898_v37 = vcombine.low %v5673_v25, %v5675_v9  ;;  %v13900_v1 = vcombine.low %v5677_v23, %v5679_v2  ;;  %v16544_v9 = vld [vmem:[#allocation60_spill] sm:$0xff] }
 0x340   : > { %10696 = vmatmul.mubr.msk.f32.gmra.mrb[58].mxu1 %vm5786_vm5, %v5781_v38  ;;  %v5784_v11 = vcombine.low %v5685_v46, %v5686_v12  ;;  %v5688_v28 = vmax.f32 %v5624_v19, 0.0  ;;  %v5687_v14 = vmax.f32 %v5623_v60, 0.0  ;;  %16533 = vst [vmem:[#allocation81_spill] sm:$0xff] %v13890_v58  ;;  %v16537_v48 = vmov 0.0  }
 0x341   : > { %10698 = vmatprep.mubr.msk.f32.mxu1 %vm5786_vm5, %v5782_v3  ;;  %16534 = vst [vmem:[#allocation84_spill] sm:$0xff] %v13896_v35  ;;  %16535 = vst [vmem:[#allocation83_spill] sm:$0xff] %v13898_v37  ;;  %v6250_v61 = vrot.slane %v16537_v48, 7  ;;  %v13912_v49 = vrot.slane %v13904_v62, %v16538_v41  ;;  %v13916_v39 = vrot.slane %v13904_v62, %v16540_v53  ;;  %v13936_v47 = vsub.s32 3, %v16546_v52 }
 0x342   : > { %v5785_v7 = vcombine.low %v5687_v14, %v5688_v28  ;;  %16536 = vst [vmem:[#allocation88_spill] sm:$0xff] %v13900_v1  ;;  %v13926_v25 = vrot.slane %v13907_v43, %v16540_v53  ;;  %v13930_v23 = vrot.slane %v13907_v43, %v16544_v9  ;;  %v13942_v51 = vsub.s32 4, %v16546_v52 }
 0x343   : > { %v6380_v59 = vsel %vm3286_vm2, 0.0, %v6250_v61  ;;  %16539 = vst [vmem:[#allocation87_spill] sm:$0xff] %v13912_v49  ;;  %16541 = vst [vmem:[#allocation91_spill] sm:$0xff] %v13916_v39  ;;  %v13945_v57 = vsub.s32 5, %v16546_v52  ;;  %v13948_v26 = vsub.s32 6, %v16546_v52  ;;  %v13951_v5 = vsub.s32 7, %v16546_v52 }
 0x344   : > { %10699 = vmatmul.mubr.msk.f32.gmra.mrb[60].mxu1 %vm5786_vm5, %v5783_v34  ;;  %v13922_v45 = vsel %vm4702_vm4, %v6380_v59, 0.0  ;;  %16543 = vst [vmem:[#allocation22_spill] sm:$0xff] %v13926_v25  ;;  %16545 = vst [vmem:[#allocation23_spill] sm:$0xff] %v13930_v23  ;;  %v13962_v18 = vrot.slane %v13904_v62, %v16544_v9  ;;  %v13973_v50 = vrot.slane %v13907_v43, %v13936_v47 }
 0x345   : > { %10701 = vmatprep.mubr.msk.f32.mxu1 %vm5786_vm5, %v5784_v11  ;;  %16542 = vst [vmem:[#allocation94_spill] sm:$0xff] %v13922_v45  ;;  %16547 = vst [vmem:[#allocation24_spill] sm:$0xff] %v13936_v47  ;;  %v13956_v36 = vmul.f32 %v13912_v49, %v13922_v45  ;;  %v6542_v56 = vmul.f32 %v13916_v39, %v13922_v45  ;;  %v13967_v44 = vmul.f32 %v13926_v25, %v13922_v45 }
 0x346   : > { %16548 = vst [vmem:[#allocation25_spill] sm:$0xff] %v13942_v51  ;;  %16549 = vst [vmem:[#allocation26_spill] sm:$0xff] %v13945_v57  ;;  %v6836_v54 = vmul.f32 %v13930_v23, %v13922_v45  ;;  %v13978_v21 = vrot.slane %v13904_v62, %v13942_v51  ;;  %v13982_v30 = vrot.slane %v13939_v24, %v16544_v9 }
 0x347   : > { %16550 = vst [vmem:[#allocation27_spill] sm:$0xff] %v13948_v26  ;;  %16551 = vst [vmem:[#allocation28_spill] sm:$0xff] %v13951_v5  ;;  %v13986_v3 = vrot.slane %v13939_v24, %v13936_v47  ;;  %v13990_v42 = vrot.slane %v13904_v62, %v13945_v57  ;;  %v13994_v13 = vrot.slane %v13907_v43, %v13945_v57 }
 0x348   : > { %10702 = vmatmul.mubr.msk.f32.gmra.mrb[62].mxu1 %vm5786_vm5, %v5785_v7  ;;  %16552 = vst [vmem:[#allocation29_spill] sm:$0xff] %v13956_v36  ;;  %16553 = vst [vmem:[#allocation30_spill] sm:$0xff] %v13962_v18  ;;  %v13999_v33 = vrot.slane %v13904_v62, %v13936_v47  ;;  %v6555_v12 = vadd.f32 %v6542_v56, %v13956_v36  ;;  %v6572_v19 = vmul.f32 %v13962_v18, %v13922_v45 }
 0x349   : > { %16554 = vst [vmem:[#allocation31_spill] sm:$0xff] %v13967_v44  ;;  %16555 = vst [vmem:[#allocation32_spill] sm:$0xff] %v13973_v50  ;;  %v14006_v8 = vrot.slane %v13907_v43, %v13942_v51  ;;  %v6849_v11 = vadd.f32 %v6836_v54, %v13967_v44  ;;  %v6866_v34 = vmul.f32 %v13973_v50, %v13922_v45 }
 0x34a   : > { %16556 = vst [vmem:[#allocation33_spill] sm:$0xff] %v13978_v21  ;;  %16557 = vst [vmem:[#allocation34_spill] sm:$0xff] %v13982_v30  ;;  %v14013_v28 = vrot.slane %v13939_v24, %v13942_v51  ;;  %v14017_v61 = vmul.f32 %v13982_v30, %v13922_v45  ;;  %v7130_v59 = vmul.f32 %v13986_v3, %v13922_v45 }
 0x34b   : > { %16558 = vst [vmem:[#allocation35_spill] sm:$0xff] %v13990_v42  ;;  %16559 = vst [vmem:[#allocation36_spill] sm:$0xff] %v13994_v13  ;;  %v14023_v52 = vrot.slane %v13907_v43, %v13948_v26  ;;  %v14034_v54 = vadd.f32 %v6572_v19, %v6555_v12  ;;  %v14049_v10 = vmul.f32 %v14006_v8, %v13922_v45 }
 0x34c   : > { %16560 = vst [vmem:[#allocation37_spill] sm:$0xff] %v13999_v33  ;;  %16561 = vst [vmem:[#allocation38_spill] sm:$0xff] %v14006_v8  ;;  %v14052_v12 = vadd.f32 %v6866_v34, %v6849_v11  ;;  %v7143_v19 = vadd.f32 %v7130_v59, %v14017_v61 }
 0x34d   : > { %16562 = vst [vmem:[#allocation40_spill] sm:$0xff] %v14013_v28  ;;  %16563 = vst [vmem:[#allocation41_spill] sm:$0xff] %v14017_v61 }
 0x34e   : > { %16564 = vst [vmem:[#allocation47_spill] sm:$0xff] %v14023_v52  ;;  %16569 = vst [vmem:[#allocation66_spill] sm:$0xff] %v14049_v10  ;;  %v6909_v47 = vadd.f32 %v14049_v10, %v14052_v12 }
 0x380   : > { %v10658_v17 = vpop.f32.mrb[32].mxu1 }
 0x381   : > { %v6084_v29 = vmul.f32 %v10658_v17, %v13919_v63  ;;  %v5917_v55 = vpop.f32.mrb[33].mxu1  ;;  %v14027_v17 = vrot.slane %v13939_v24, %v13948_v26 }
 0x382   : > { %v6083_v0 = vmul.f32 %v13919_v63, %v5917_v55  ;;  %v14031_v55 = vmul.f32 %v13999_v33, %v13922_v45 }
 0x383   : > { %v6123_v2 = vadd.f32 %v13933_v4, %v6084_v29  ;;  %16565 = vst [vmem:[#allocation48_spill] sm:$0xff] %v14027_v17 }
 0x384   : > { %v6122_v38 = vadd.f32 %v13933_v4, %v6083_v0  ;;  %16566 = vst [vmem:[#allocation56_spill] sm:$0xff] %v14031_v55  ;;  %v6615_v34 = vadd.f32 %v14031_v55, %v14034_v54 }
 0x385   : > { %v6155_v46 = vmax.f32 %v6123_v2, 0.0  ;;  %v14038_v2 = vrot.slane %v13939_v24, %v13945_v57  ;;  %v14065_v57 = vrot.slane %v13907_v43, %v13951_v5 }
 0x386   : > { %v6154_v60 = vmax.f32 %v6122_v38, 0.0  ;;  %v14042_v38 = vrot.slane %v13939_v24, %v13951_v5 }
 0x387   : > { %v6219_v14 = vcombine.high %v6155_v46, %v6155_v46  ;;  %v6253_v7 = vrot.slane %v6155_v46, 7  ;;  %16567 = vst [vmem:[#allocation57_spill] sm:$0xff] %v14038_v2  ;;  %16571 = vst [vmem:[#allocation79_spill] sm:$0xff] %v14065_v57  ;;  %v14072_v59 = vmul.f32 %v14038_v2, %v13922_v45 }
 0x388   : > { %v6218_v29 = vcombine.high %v6154_v60, %v6154_v60  ;;  %16568 = vst [vmem:[#allocation65_spill] sm:$0xff] %v14042_v38  ;;  %v6251_v46 = vrot.slane %v6154_v60, 7 }
 0x389   : > { %v6254_v56 = vrot.slane %v6219_v14, 7  ;;  %v6383_v0 = vsel %vm3286_vm2, 0.0, %v6253_v7  ;;  %v7160_v7 = vmul.f32 %v14013_v28, %v13922_v45  ;;  %16572 = vst [vmem:[#allocation85_spill] sm:$0xff] %v14072_v59 }
 0x38a   : > { %v6252_v31 = vrot.slane %v6218_v29, 7  ;;  %v6448_v16 = vsel %vm4702_vm4, %v6383_v0, 0.0  ;;  %v14061_v29 = vrot.slane %v13904_v62, %v13948_v26  ;;  %v6381_v0 = vsel %vm3286_vm2, 0.0, %v6251_v46 }
 0x38b   : > { %v6384_v14 = vsel %vm3286_vm2, 0.0, %v6254_v56  ;;  %v14085_v1 = vadd.f32 %v7160_v7, %v7143_v19  ;;  %v6930_v58 = vmul.f32 %v13994_v13, %v6448_v16  ;;  %v6446_v27 = vsel %vm4702_vm4, %v6381_v0, 0.0 }
 0x38c   : > { %v6382_v60 = vsel %vm3286_vm2, 0.0, %v6252_v31  ;;  %16570 = vst [vmem:[#allocation75_spill] sm:$0xff] %v14061_v29  ;;  %v14076_v31 = vrot.slane %v14045_v20, %v16538_v41  ;;  %v6449_v56 = vsel %vm4702_vm4, %v6384_v14, 0.0  ;;  %v7224_v14 = vmul.f32 %v14027_v17, %v6448_v16 }
 0x38d   : > { %v6447_v11 = vsel %vm4702_vm4, %v6382_v60, 0.0  ;;  %v6636_v60 = vmul.f32 %v13978_v21, %v6448_v16  ;;  %v6672_v15 = vmul.f32 %v13990_v42, %v6449_v56  ;;  %v6966_v7 = vmul.f32 %v14023_v52, %v6449_v56 }
 0x38e   : > { %16573 = vst [vmem:[#allocation86_spill] sm:$0xff] %v14076_v31  ;;  %v6603_v26 = vmul.f32 %v13999_v33, %v6447_v11  ;;  %v6897_v51 = vmul.f32 %v14006_v8, %v6447_v11  ;;  %v7191_v37 = vmul.f32 %v14038_v2, %v6447_v11  ;;  %v7260_v16 = vmul.f32 %v14042_v38, %v6449_v56 }
 0x38f   : > { %v10661_v35 = vpop.f32.mrb[34].mxu1  ;;  %v6635_v0 = vmul.f32 %v13978_v21, %v6446_v27  ;;  %v14124_v30 = vmul.f32 %v14042_v38, %v6447_v11 }
 0x390   : > { %v6616_v46 = vadd.f32 %v6603_v26, %v14034_v54  ;;  %v6910_v40 = vadd.f32 %v6897_v51, %v14052_v12  ;;  %v5927_v22 = vpop.f32.mrb[35].mxu1  ;;  %v7204_v32 = vadd.f32 %v7191_v37, %v14085_v1  ;;  %v6086_v19 = vmul.f32 %v10661_v35, %v13919_v63 }
 0x391   : > { %v6085_v28 = vmul.f32 %v13919_v63, %v5927_v22  ;;  %v14101_v51 = vadd.f32 %v14072_v59, %v14085_v1  ;;  %v6929_v22 = vmul.f32 %v13994_v13, %v6446_v27  ;;  %v6651_v59 = vadd.f32 %v6635_v0, %v6615_v34 }
 0x392   : > { %v6652_v6 = vadd.f32 %v6636_v60, %v6616_v46  ;;  %v6946_v48 = vadd.f32 %v6930_v58, %v6910_v40  ;;  %v7240_v26 = vadd.f32 %v7224_v14, %v7204_v32  ;;  %v6125_v61 = vadd.f32 %v13933_v4, %v6086_v19 }
 0x393   : > { %v6124_v60 = vadd.f32 %v13933_v4, %v6085_v28  ;;  %v14111_v40 = vmul.f32 %v13990_v42, %v6447_v11  ;;  %v14117_v32 = vmul.f32 %v14023_v52, %v6447_v11  ;;  %v6604_v19 = vmul.f32 %v13999_v33, %v6449_v56 }
 0x394   : > { %v14105_v37 = vadd.f32 %v6672_v15, %v6652_v6  ;;  %v14107_v35 = vadd.f32 %v6966_v7, %v6946_v48  ;;  %v14114_v58 = vadd.f32 %v7260_v16, %v7240_v26  ;;  %v6157_v46 = vmax.f32 %v6125_v61, 0.0 }
 0x395   : > { %v6156_v14 = vmax.f32 %v6124_v60, 0.0  ;;  %v6898_v6 = vmul.f32 %v14006_v8, %v6449_v56  ;;  %v7223_v15 = vmul.f32 %v14027_v17, %v6446_v27  ;;  %v7192_v7 = vmul.f32 %v14038_v2, %v6449_v56 }
 0x396   : > { %v6221_v48 = vcombine.high %v6157_v46, %v6157_v46  ;;  %v6257_v28 = vrot.slane %v6157_v46, 7  ;;  %v6945_v26 = vadd.f32 %v6929_v22, %v6909_v47  ;;  %v6617_v44 = vadd.f32 %v6604_v19, %v14034_v54 }
 0x397   : > { %v6220_v16 = vcombine.high %v6156_v14, %v6156_v14  ;;  %v6255_v61 = vrot.slane %v6156_v14, 7  ;;  %v6911_v46 = vadd.f32 %v6898_v6, %v14052_v12  ;;  %v7205_v47 = vadd.f32 %v7192_v7, %v14085_v1 }
 0x398   : > { %v6258_v10 = vrot.slane %v6221_v48, 7  ;;  %v6387_v60 = vsel %vm3286_vm2, 0.0, %v6257_v28 }
 0x399   : > { %v6452_v25 = vsel %vm4702_vm4, %v6387_v60, 0.0  ;;  %v6256_v55 = vrot.slane %v6220_v16, 7  ;;  %v6385_v27 = vsel %vm3286_vm2, 0.0, %v6255_v61 }
 0x39a   : > { %v6388_v34 = vsel %vm3286_vm2, 0.0, %v6258_v10  ;;  %v6638_v11 = vmul.f32 %v13978_v21, %v6452_v25  ;;  %v6932_v56 = vmul.f32 %v13994_v13, %v6452_v25  ;;  %v7226_v22 = vmul.f32 %v14027_v17, %v6452_v25 }
 0x39b   : > { %v6453_v0 = vsel %vm4702_vm4, %v6388_v34, 0.0  ;;  %v6386_v14 = vsel %vm3286_vm2, 0.0, %v6256_v55  ;;  %v6450_v19 = vsel %vm4702_vm4, %v6385_v27, 0.0 }
 0x39c   : > { %v6674_v48 = vmul.f32 %v13990_v42, %v6453_v0  ;;  %v6968_v6 = vmul.f32 %v14023_v52, %v6453_v0  ;;  %v7262_v10 = vmul.f32 %v14042_v38, %v6453_v0  ;;  %v6451_v28 = vsel %vm4702_vm4, %v6386_v14, 0.0 }
 0x39d   : > { %v6605_v16 = vmul.f32 %v13999_v33, %v6451_v28  ;;  %v6637_v7 = vmul.f32 %v13978_v21, %v6450_v19  ;;  %v6673_v61 = vmul.f32 %v13990_v42, %v6451_v28  ;;  %v6899_v25 = vmul.f32 %v14006_v8, %v6451_v28  ;;  %v10664_v60 = vpop.f32.mrb[36].mxu1 }
 0x39e   : > { %v6931_v55 = vmul.f32 %v13994_v13, %v6450_v19  ;;  %v6967_v27 = vmul.f32 %v14023_v52, %v6451_v28  ;;  %v7193_v34 = vmul.f32 %v14038_v2, %v6451_v28  ;;  %v7225_v50 = vmul.f32 %v14027_v17, %v6450_v19  ;;  %v5937_v0 = vpop.f32.mrb[37].mxu1 }
 0x39f   : > { %v6618_v14 = vadd.f32 %v6605_v16, %v14034_v54  ;;  %v6653_v18 = vadd.f32 %v6637_v7, %v6617_v44  ;;  %v6912_v33 = vadd.f32 %v6899_v25, %v14052_v12  ;;  %v7261_v21 = vmul.f32 %v14042_v38, %v6451_v28 }
 0x3a0   : > { %v6947_v42 = vadd.f32 %v6931_v55, %v6911_v46  ;;  %v7206_v8 = vadd.f32 %v7193_v34, %v14085_v1  ;;  %v7241_v36 = vadd.f32 %v7225_v50, %v7205_v47  ;;  %v6088_v13 = vmul.f32 %v10664_v60, %v13919_v63 }
 0x3a1   : > { %v6654_v49 = vadd.f32 %v6638_v11, %v6618_v14  ;;  %v14156_v52 = vadd.f32 %v6673_v61, %v6653_v18  ;;  %v6948_v2 = vadd.f32 %v6932_v56, %v6912_v33  ;;  %v6087_v19 = vmul.f32 %v13919_v63, %v5937_v0 }
 0x3a2   : > { %v14159_v17 = vadd.f32 %v6967_v27, %v6947_v42  ;;  %v7242_v54 = vadd.f32 %v7226_v22, %v7206_v8  ;;  %v14161_v44 = vadd.f32 %v7261_v21, %v7241_v36  ;;  %v6127_v12 = vadd.f32 %v13933_v4, %v6088_v13 }
 0x3a3   : > { %v7239_v46 = vadd.f32 %v7223_v15, %v14101_v51  ;;  %v14165_v28 = vadd.f32 %v6674_v48, %v6654_v49  ;;  %v14167_v1 = vadd.f32 %v6968_v6, %v6948_v2  ;;  %v6126_v50 = vadd.f32 %v13933_v4, %v6087_v19 }
 0x3a4   : > { %v14170_v18 = vadd.f32 %v7262_v10, %v7242_v54  ;;  %v6159_v33 = vmax.f32 %v6127_v12, 0.0  ;;  %v14174_v42 = vmul.f32 %v14061_v29, %v13922_v45  ;;  %v14178_v36 = vrot.slane %v13904_v62, %v13951_v5 }
 0x3a5   : > { %v14182_v21 = vmul.f32 %v14065_v57, %v13922_v45  ;;  %v6158_v49 = vmax.f32 %v6126_v50, 0.0  ;;  %v6687_v13 = vadd.f32 %v14111_v40, %v6651_v59  ;;  %v14187_v8 = vmul.f32 %v14076_v31, %v13922_v45 }
 0x3a6   : > { %16574 = vst [vmem:[#allocation89_spill] sm:$0xff] %v14174_v42  ;;  %16575 = vst [vmem:[#allocation90_spill] sm:$0xff] %v14178_v36  ;;  %v6223_v2 = vcombine.high %v6159_v33, %v6159_v33  ;;  %v6261_v51 = vrot.slane %v6159_v33, 7  ;;  %v6981_v15 = vadd.f32 %v14117_v32, %v6945_v26  ;;  %v7275_v11 = vadd.f32 %v14124_v30, %v7239_v46 }
 0x3a7   : > { %16576 = vst [vmem:[#allocation92_spill] sm:$0xff] %v14182_v21  ;;  %16577 = vst [vmem:[#allocation93_spill] sm:$0xff] %v14187_v8  ;;  %v6222_v56 = vcombine.high %v6158_v49, %v6158_v49  ;;  %v6259_v62 = vrot.slane %v6158_v49, 7  ;;  %v14193_v47 = vrot.slane %v14045_v20, %v16540_v53  ;;  %v14198_v59 = vrot.slane %v13939_v24, %v16538_v41 }
 0x3a8   : > { %v6262_v22 = vrot.slane %v6223_v2, 7  ;;  %v6391_v48 = vsel %vm3286_vm2, 0.0, %v6261_v51  ;;  %v14206_v30 = vrot.slane %v13907_v43, %v16538_v41  ;;  %v14210_v26 = vrot.slane %v14045_v20, %v16544_v9 }
 0x3a9   : > { %16578 = vst [vmem:[#allocation95_spill] sm:$0xff] %v14193_v47  ;;  %16579 = vst [vmem:[#allocation96_spill] sm:$0xff] %v14198_v59  ;;  %v14201_v40 = vsel %vm4702_vm4, %v6391_v48, 0.0  ;;  %v6260_v6 = vrot.slane %v6222_v56, 7  ;;  %v6389_v32 = vsel %vm3286_vm2, 0.0, %v6259_v62  ;;  %v14215_v16 = vrot.slane %v13939_v24, %v16540_v53 }
 0x3aa   : > { %16580 = vst [vmem:[#allocation97_spill] sm:$0xff] %v14206_v30  ;;  %16581 = vst [vmem:[#allocation98_spill] sm:$0xff] %v14210_v26  ;;  %v6392_v10 = vsel %vm3286_vm2, 0.0, %v6262_v22  ;;  %v6720_v7 = vadd.f32 %v14174_v42, %v6687_v13  ;;  %v7014_v61 = vadd.f32 %v14182_v21, %v6981_v15  ;;  %v7308_v25 = vadd.f32 %v14187_v8, %v7275_v11 }
 0x3ab   : > { %16582 = vst [vmem:[#allocation59_spill] sm:$0xff] %v14215_v16  ;;  %v14221_v60 = vsel %vm4702_vm4, %v6392_v10, 0.0  ;;  %v6741_v20 = vmul.f32 %v14178_v36, %v14201_v40  ;;  %v7035_v55 = vmul.f32 %v14198_v59, %v14201_v40  ;;  %v6390_v27 = vsel %vm3286_vm2, 0.0, %v6260_v6 }
 0x3ac   : > { %v10667_v43 = vpop.f32.mrb[38].mxu1  ;;  %v14229_v24 = vsel %vm4702_vm4, %v6389_v32, 0.0  ;;  %v7329_v0 = vmul.f32 %v14193_v47, %v14201_v40  ;;  %v14234_v14 = vsel %vm4702_vm4, %v6390_v27, 0.0  ;;  %v6777_v54 = vmul.f32 %v14206_v30, %v14221_v60 }
 0x3ad   : > { %v5947_v34 = vpop.f32.mrb[39].mxu1  ;;  %v6740_v19 = vmul.f32 %v14178_v36, %v14229_v24  ;;  %v6708_v12 = vmul.f32 %v14061_v29, %v14234_v14  ;;  %v6776_v46 = vmul.f32 %v14206_v30, %v14234_v14  ;;  %v7002_v50 = vmul.f32 %v14065_v57, %v14234_v14 }
 0x3ae   : > { %v7034_v33 = vmul.f32 %v14198_v59, %v14229_v24  ;;  %v7070_v13 = vmul.f32 %v14215_v16, %v14234_v14  ;;  %v7071_v2 = vmul.f32 %v14215_v16, %v14221_v60  ;;  %v7296_v51 = vmul.f32 %v14076_v31, %v14234_v14 }
 0x3af   : > { %v6756_v49 = vadd.f32 %v6740_v19, %v6720_v7  ;;  %v6721_v15 = vadd.f32 %v6708_v12, %v14105_v37  ;;  %v7015_v11 = vadd.f32 %v7002_v50, %v14107_v35  ;;  %v7328_v62 = vmul.f32 %v14193_v47, %v14229_v24 }
 0x3b0   : > { %v7050_v56 = vadd.f32 %v7034_v33, %v7014_v61  ;;  %v7309_v48 = vadd.f32 %v7296_v51, %v14114_v58  ;;  %v7364_v6 = vmul.f32 %v14210_v26, %v14234_v14  ;;  %v7365_v32 = vmul.f32 %v14210_v26, %v14221_v60 }
 0x3b1   : > { %v6792_v22 = vadd.f32 %v6776_v46, %v6756_v49  ;;  %v6757_v10 = vadd.f32 %v6741_v20, %v6721_v15  ;;  %v7051_v7 = vadd.f32 %v7035_v55, %v7015_v11  ;;  %v7344_v19 = vadd.f32 %v7328_v62, %v7308_v25 }
 0x3b2   : > { %v7086_v27 = vadd.f32 %v7070_v13, %v7050_v56  ;;  %v7345_v37 = vadd.f32 %v7329_v0, %v7309_v48  ;;  %v6090_v35 = vmul.f32 %v10667_v43, %v13919_v63  ;;  %v6089_v61 = vmul.f32 %v13919_v63, %v5947_v34 }
 0x3b3   : > { %v6709_v12 = vmul.f32 %v14061_v29, %v14221_v60  ;;  %v6793_v46 = vadd.f32 %v6777_v54, %v6757_v10  ;;  %v7087_v58 = vadd.f32 %v7071_v2, %v7051_v7  ;;  %v7380_v50 = vadd.f32 %v7364_v6, %v7344_v19 }
 0x3b4   : > { %v7412_v33 = vrot.slane %v7086_v27, 1  ;;  %v7381_v49 = vadd.f32 %v7365_v32, %v7345_v37  ;;  %v6129_v51 = vadd.f32 %v13933_v4, %v6090_v35  ;;  %v6128_v20 = vadd.f32 %v13933_v4, %v6089_v61 }
 0x3b5   : > { %v6722_v55 = vadd.f32 %v6709_v12, %v14156_v52  ;;  %v7413_v25 = vrot.slane %v7087_v58, 1  ;;  %v7476_v13 = vrot.slane %v7380_v50, 2  ;;  %v7003_v43 = vmul.f32 %v14065_v57, %v14221_v60 }
 0x3b6   : > { %v7444_v0 = vadd.f32 %v7412_v33, %v6792_v22  ;;  %v6161_v34 = vmax.f32 %v6129_v51, 0.0  ;;  %v6160_v15 = vmax.f32 %v6128_v20, 0.0  ;;  %v7297_v54 = vmul.f32 %v14076_v31, %v14221_v60 }
 0x3b7   : > { %v7445_v2 = vadd.f32 %v7413_v25, %v6793_v46  ;;  %v7477_v11 = vrot.slane %v7381_v49, 2  ;;  %v7016_v62 = vadd.f32 %v7003_v43, %v14159_v17  ;;  %v6543_v61 = vmul.f32 %v13916_v39, %v14229_v24  ;;  %v16585_v25 = vld [vmem:[#allocation87_spill] sm:$0xff] }
 0x3b8   : > { %v14274_v56 = vadd.f32 %v7476_v13, %v7444_v0  ;;  %v6225_v48 = vcombine.high %v6161_v34, %v6161_v34  ;;  %v6265_v6 = vrot.slane %v6161_v34, 7  ;;  %v6224_v52 = vcombine.high %v6160_v15, %v6160_v15  ;;  %v16586_v13 = vld [vmem:[#allocation29_spill] sm:$0xff] }
 0x3b9   : > { %v6263_v32 = vrot.slane %v6160_v15, 7  ;;  %v14277_v22 = vadd.f32 %v7477_v11, %v7445_v2  ;;  %v7310_v10 = vadd.f32 %v7297_v54, %v14161_v44  ;;  %v6544_v50 = vmul.f32 %v13916_v39, %v14201_v40 }
 0x3ba   : > { %16583 = vst [vmem:[#allocation39_spill] sm:$0xff] %v14274_v56  ;;  %v10670_v7 = vpop.f32.mrb[40].mxu1  ;;  %v6266_v27 = vrot.slane %v6225_v48, 7  ;;  %v6395_v19 = vsel %vm3286_vm2, 0.0, %v6265_v6  ;;  %v6264_v46 = vrot.slane %v6224_v52, 7  ;;  %v14298_v33 = vmul.f32 %v13930_v23, %v14201_v40 }
 0x3bb   : > { %16584 = vst [vmem:[#allocation61_spill] sm:$0xff] %v14277_v22  ;;  %v6393_v37 = vsel %vm3286_vm2, 0.0, %v6263_v32  ;;  %v5957_v35 = vpop.f32.mrb[41].mxu1  ;;  %v14286_v12 = vsel %vm4702_vm4, %v6395_v19, 0.0  ;;  %v14302_v49 = vmul.f32 %v13986_v3, %v14201_v40  ;;  %v6519_v0 = vmul.f32 %v16585_v25, %v14234_v14 }
 0x3bc   : > { %v6396_v17 = vsel %vm3286_vm2, 0.0, %v6266_v27  ;;  %v14292_v44 = vsel %vm4702_vm4, %v6393_v37, 0.0  ;;  %v6743_v51 = vmul.f32 %v14178_v36, %v14286_v12  ;;  %v7037_v20 = vmul.f32 %v14198_v59, %v14286_v12 }
 0x3bd   : > { %v14289_v58 = vsel %vm4702_vm4, %v6396_v17, 0.0  ;;  %v6556_v43 = vadd.f32 %v6543_v61, %v16586_v13  ;;  %v6394_v40 = vsel %vm3286_vm2, 0.0, %v6264_v46  ;;  %v6742_v54 = vmul.f32 %v14178_v36, %v14292_v44  ;;  %v16605_v36 = vld [vmem:[#allocation57_spill] sm:$0xff] }
 0x3be   : > { %v6779_v34 = vmul.f32 %v14206_v30, %v14289_v58  ;;  %v7073_v15 = vmul.f32 %v14215_v16, %v14289_v58  ;;  %v7331_v2 = vmul.f32 %v14193_v47, %v14286_v12  ;;  %v7367_v11 = vmul.f32 %v14210_v26, %v14289_v58 }
 0x3bf   : > { %v14323_v48 = vsel %vm4702_vm4, %v6394_v40, 0.0  ;;  %v7036_v6 = vmul.f32 %v14198_v59, %v14292_v44  ;;  %v6758_v32 = vadd.f32 %v6742_v54, %v6722_v55  ;;  %v7330_v46 = vmul.f32 %v14193_v47, %v14292_v44 }
 0x3c0   : > { %v6710_v52 = vmul.f32 %v14061_v29, %v14323_v48  ;;  %v6778_v27 = vmul.f32 %v14206_v30, %v14323_v48  ;;  %v7004_v19 = vmul.f32 %v14065_v57, %v14323_v48  ;;  %v7072_v61 = vmul.f32 %v14215_v16, %v14323_v48  ;;  %v16601_v30 = vld [vmem:[#allocation47_spill] sm:$0xff] }
 0x3c1   : > { %v7052_v37 = vadd.f32 %v7036_v6, %v7016_v62  ;;  %v7298_v17 = vmul.f32 %v14076_v31, %v14323_v48  ;;  %v7366_v54 = vmul.f32 %v14210_v26, %v14323_v48  ;;  %v7346_v6 = vadd.f32 %v7330_v46, %v7310_v10 }
 0x3c2   : > { %v6723_v40 = vadd.f32 %v6710_v52, %v14165_v28  ;;  %v6794_v5 = vadd.f32 %v6778_v27, %v6758_v32  ;;  %v7017_v55 = vadd.f32 %v7004_v19, %v14167_v1  ;;  %v6092_v45 = vmul.f32 %v10670_v7, %v13919_v63 }
 0x3c3   : > { %v7088_v9 = vadd.f32 %v7072_v61, %v7052_v37  ;;  %v7311_v62 = vadd.f32 %v7298_v17, %v14170_v18  ;;  %v6091_v22 = vmul.f32 %v13919_v63, %v5957_v35  ;;  %v6557_v56 = vadd.f32 %v6544_v50, %v6519_v0  ;;  %v16587_v18 = vld [vmem:[#allocation30_spill] sm:$0xff] }
 0x3c4   : > { %v6759_v53 = vadd.f32 %v6743_v51, %v6723_v40  ;;  %v7053_v41 = vadd.f32 %v7037_v20, %v7017_v55  ;;  %v7382_v31 = vadd.f32 %v7366_v54, %v7346_v6  ;;  %v6131_v52 = vadd.f32 %v13933_v4, %v6092_v45 }
 0x3c5   : > { %v7347_v13 = vadd.f32 %v7331_v2, %v7311_v62  ;;  %v7414_v28 = vrot.slane %v7088_v9, 1  ;;  %v6130_v19 = vadd.f32 %v13933_v4, %v6091_v22  ;;  %v6573_v10 = vmul.f32 %v16587_v18, %v14234_v14 }
 0x3c6   : > { %v6795_v32 = vadd.f32 %v6779_v34, %v6759_v53  ;;  %v7089_v27 = vadd.f32 %v7073_v15, %v7053_v41  ;;  %v7478_v35 = vrot.slane %v7382_v31, 2  ;;  %v6163_v50 = vmax.f32 %v6131_v52, 0.0 }
 0x3c7   : > { %v7383_v51 = vadd.f32 %v7367_v11, %v7347_v13  ;;  %v7446_v20 = vadd.f32 %v7414_v28, %v6794_v5  ;;  %v6837_v9 = vmul.f32 %v13930_v23, %v14229_v24  ;;  %v6162_v45 = vmax.f32 %v6130_v19, 0.0  ;;  %v16590_v28 = vld [vmem:[#allocation32_spill] sm:$0xff] }
 0x3c8   : > { %v7415_v0 = vrot.slane %v7089_v27, 1  ;;  %v6574_v53 = vmul.f32 %v16587_v18, %v14221_v60  ;;  %v6227_v22 = vcombine.high %v6163_v50, %v6163_v50  ;;  %v6269_v15 = vrot.slane %v6163_v50, 7 }
 0x3c9   : > { %v14347_v1 = vpop.f32.mrb[42].mxu1  ;;  %v7479_v41 = vrot.slane %v7383_v51, 2  ;;  %v14358_v34 = vadd.f32 %v7478_v35, %v7446_v20  ;;  %v6226_v37 = vcombine.high %v6162_v45, %v6162_v45  ;;  %v6267_v61 = vrot.slane %v6162_v45, 7  ;;  %v16592_v20 = vld [vmem:[#allocation56_spill] sm:$0xff] }
 0x3ca   : > { %v14352_v7 = vpop.f32.mrb[43].mxu1  ;;  %v7447_v2 = vadd.f32 %v7415_v0, %v6795_v32  ;;  %v6587_v13 = vadd.f32 %v6574_v53, %v6557_v56  ;;  %v7131_v5 = vmul.f32 %v13986_v3, %v14229_v24  ;;  %v6270_v31 = vrot.slane %v6227_v22, 7  ;;  %v16593_v53 = vld [vmem:[#allocation22_spill] sm:$0xff]  ;;  %v16594_v22 = vld [vmem:[#allocation37_spill] sm:$0xff] }
 0x3cb   : > { %16588 = vst [vmem:[#allocation44_spill] sm:$0xff] %v14358_v34  ;;  %v6399_v11 = vsel %vm3286_vm2, 0.0, %v6269_v15  ;;  %v6586_v17 = vadd.f32 %v6573_v10, %v6556_v43  ;;  %v6268_v55 = vrot.slane %v6226_v37, 7  ;;  %v6397_v54 = vsel %vm3286_vm2, 0.0, %v6267_v61  ;;  %v16596_v61 = vld [vmem:[#allocation31_spill] sm:$0xff] }
 0x3cc   : > { %v14363_v46 = vadd.f32 %v7479_v41, %v7447_v2  ;;  %v6464_v40 = vsel %vm4702_vm4, %v6399_v11, 0.0  ;;  %v14369_v62 = vmul.f32 %v13916_v39, %v14286_v12  ;;  %v14373_v56 = vmul.f32 %v13930_v23, %v14286_v12  ;;  %v16595_v2 = vld [vmem:[#allocation35_spill] sm:$0xff] }
 0x3cd   : > { %v14377_v24 = vmul.f32 %v13986_v3, %v14286_v12  ;;  %v6400_v43 = vsel %vm3286_vm2, 0.0, %v6270_v31  ;;  %v14382_v6 = vmul.f32 %v16587_v18, %v14289_v58  ;;  %v14386_v52 = vmul.f32 %v16590_v28, %v14289_v58  ;;  %v16591_v12 = vld [vmem:[#allocation33_spill] sm:$0xff] }
 0x3ce   : > { %16589 = vst [vmem:[#allocation67_spill] sm:$0xff] %v14363_v46  ;;  %v6545_v32 = vmul.f32 %v13916_v39, %v14292_v44  ;;  %v6398_v27 = vsel %vm3286_vm2, 0.0, %v6268_v55  ;;  %v14393_v19 = vmul.f32 %v13930_v23, %v14292_v44  ;;  %v6640_v10 = vmul.f32 %v16591_v12, %v6464_v40 }
 0x3cf   : > { %v6462_v51 = vsel %vm4702_vm4, %v6397_v54, 0.0  ;;  %v6619_v35 = vadd.f32 %v16592_v20, %v6586_v17  ;;  %v14399_v50 = vsel %vm4702_vm4, %v6400_v43, 0.0  ;;  %v6463_v0 = vsel %vm4702_vm4, %v6398_v27, 0.0  ;;  %v16597_v17 = vld [vmem:[#allocation36_spill] sm:$0xff]  ;;  %v16598_v20 = vld [vmem:[#allocation38_spill] sm:$0xff] }
 0x3d0   : > { %v6639_v45 = vmul.f32 %v16591_v12, %v6462_v51  ;;  %v6813_v41 = vmul.f32 %v16593_v53, %v14234_v14  ;;  %v6606_v15 = vmul.f32 %v16594_v22, %v6463_v0  ;;  %v6675_v37 = vmul.f32 %v16595_v2, %v6463_v0 }
 0x3d1   : > { %v6850_v31 = vadd.f32 %v6837_v9, %v16596_v61  ;;  %v6867_v11 = vmul.f32 %v16590_v28, %v14234_v14  ;;  %v6934_v55 = vmul.f32 %v16597_v17, %v6464_v40  ;;  %v6868_v27 = vmul.f32 %v16590_v28, %v14221_v60  ;;  %v16599_v61 = vld [vmem:[#allocation48_spill] sm:$0xff] }
 0x3d2   : > { %v6655_v54 = vadd.f32 %v6639_v45, %v6619_v35  ;;  %v6851_v43 = vadd.f32 %v14298_v33, %v6813_v41  ;;  %v6620_v46 = vadd.f32 %v6606_v15, %v6587_v13  ;;  %v6900_v23 = vmul.f32 %v16598_v20, %v6463_v0  ;;  %v16600_v45 = vld [vmem:[#allocation66_spill] sm:$0xff] }
 0x3d3   : > { %v6880_v34 = vadd.f32 %v6867_v11, %v6850_v31  ;;  %v6933_v39 = vmul.f32 %v16597_v17, %v6462_v51  ;;  %v6676_v9 = vmul.f32 %v16595_v2, %v14399_v50  ;;  %v7228_v26 = vmul.f32 %v16599_v61, %v6464_v40  ;;  %v16602_v15 = vld [vmem:[#allocation34_spill] sm:$0xff]  ;;  %v16603_v40 = vld [vmem:[#allocation41_spill] sm:$0xff] }
 0x3d4   : > { %v14419_v16 = vadd.f32 %v6675_v37, %v6655_v54  ;;  %v6881_v57 = vadd.f32 %v6868_v27, %v6851_v43  ;;  %v6656_v33 = vadd.f32 %v6640_v10, %v6620_v46  ;;  %v6969_v13 = vmul.f32 %v16601_v30, %v6463_v0  ;;  %v16604_v54 = vld [vmem:[#allocation40_spill] sm:$0xff] }
 0x3d5   : > { %v6913_v41 = vadd.f32 %v16600_v45, %v6880_v34  ;;  %v7107_v31 = vmul.f32 %v16602_v15, %v14234_v14  ;;  %v6970_v29 = vmul.f32 %v16601_v30, %v14399_v50  ;;  %v7144_v37 = vadd.f32 %v7131_v5, %v16603_v40 }
 0x3d6   : > { %v6914_v47 = vadd.f32 %v6900_v23, %v6881_v57  ;;  %v7161_v43 = vmul.f32 %v16604_v54, %v14234_v14  ;;  %v14434_v27 = vadd.f32 %v6676_v9, %v6656_v33  ;;  %v7162_v10 = vmul.f32 %v16604_v54, %v14221_v60 }
 0x3d7   : > { %v14421_v35 = vpop.f32.mrb[44].mxu1  ;;  %v6949_v46 = vadd.f32 %v6933_v39, %v6913_v41  ;;  %v7145_v34 = vadd.f32 %v14302_v49, %v7107_v31  ;;  %v7194_v8 = vmul.f32 %v16605_v36, %v6463_v0  ;;  %v7227_v21 = vmul.f32 %v16599_v61, %v6462_v51  ;;  %v16606_v49 = vld [vmem:[#allocation85_spill] sm:$0xff] }
 0x3d8   : > { %v14427_v11 = vpop.f32.mrb[45].mxu1  ;;  %v6950_v45 = vadd.f32 %v6934_v55, %v6914_v47  ;;  %v7174_v59 = vadd.f32 %v7161_v43, %v7144_v37  ;;  %v7263_v5 = vmul.f32 %v14042_v38, %v6463_v0  ;;  %v6094_v14 = vmul.f32 %v14347_v1, %v13919_v63 }
 0x3d9   : > { %v14441_v23 = vadd.f32 %v6969_v13, %v6949_v46  ;;  %v7175_v57 = vadd.f32 %v7162_v10, %v7145_v34  ;;  %v6093_v47 = vmul.f32 %v13919_v63, %v14352_v7  ;;  %v6520_v55 = vmul.f32 %v16585_v25, %v14221_v60 }
 0x3da   : > { %v14446_v39 = vadd.f32 %v6970_v29, %v6950_v45  ;;  %v7207_v9 = vadd.f32 %v16606_v49, %v7174_v59  ;;  %v7264_v51 = vmul.f32 %v14042_v38, %v14399_v50  ;;  %v6133_v41 = vadd.f32 %v13933_v4, %v6094_v14 }
 0x3db   : > { %v7208_v33 = vadd.f32 %v7194_v8, %v7175_v57  ;;  %v6521_v0 = vmul.f32 %v16585_v25, %v14323_v48  ;;  %v6132_v29 = vadd.f32 %v13933_v4, %v6093_v47  ;;  %v6558_v45 = vadd.f32 %v6545_v32, %v6520_v55 }
 0x3dc   : > { %v7243_v1 = vadd.f32 %v7227_v21, %v7207_v9  ;;  %v6575_v59 = vmul.f32 %v16587_v18, %v14323_v48  ;;  %v6165_v13 = vmax.f32 %v6133_v41, 0.0  ;;  %v6607_v37 = vmul.f32 %v16594_v22, %v14399_v50 }
 0x3dd   : > { %v7244_v7 = vadd.f32 %v7228_v26, %v7208_v33  ;;  %v6559_v31 = vadd.f32 %v14369_v62, %v6521_v0  ;;  %v6164_v43 = vmax.f32 %v6132_v29, 0.0  ;;  %v6814_v21 = vmul.f32 %v16593_v53, %v14221_v60 }
 0x3de   : > { %v14464_v8 = vadd.f32 %v7263_v5, %v7243_v1  ;;  %v6588_v46 = vadd.f32 %v6575_v59, %v6558_v45  ;;  %v6229_v32 = vcombine.high %v6165_v13, %v6165_v13  ;;  %v6273_v10 = vrot.slane %v6165_v13, 7 }
 0x3df   : > { %v14468_v34 = vadd.f32 %v7264_v51, %v7244_v7  ;;  %v6589_v57 = vadd.f32 %v14382_v6, %v6559_v31  ;;  %v7164_v26 = vmul.f32 %v16604_v54, %v14289_v58  ;;  %v6228_v62 = vcombine.high %v6164_v43, %v6164_v43 }
 0x3e0   : > { %v6271_v14 = vrot.slane %v6164_v43, 7  ;;  %v6621_v9 = vadd.f32 %v6607_v37, %v6588_v46  ;;  %v6274_v47 = vrot.slane %v6229_v32, 7  ;;  %v6403_v5 = vsel %vm3286_vm2, 0.0, %v6273_v10 }
 0x3e1   : > { %v6815_v55 = vmul.f32 %v16593_v53, %v14323_v48  ;;  %v6852_v33 = vadd.f32 %v14393_v19, %v6814_v21  ;;  %v6468_v51 = vsel %vm4702_vm4, %v6403_v5, 0.0  ;;  %v6272_v41 = vrot.slane %v6228_v62, 7 }
 0x3e2   : > { %v6401_v0 = vsel %vm3286_vm2, 0.0, %v6271_v14  ;;  %v6869_v6 = vmul.f32 %v16590_v28, %v14323_v48  ;;  %v7133_v1 = vmul.f32 %v13986_v3, %v14292_v44  ;;  %v6404_v29 = vsel %vm3286_vm2, 0.0, %v6274_v47 }
 0x3e3   : > { %v6642_v45 = vmul.f32 %v16591_v12, %v6468_v51  ;;  %v6936_v59 = vmul.f32 %v16597_v17, %v6468_v51  ;;  %v6469_v19 = vsel %vm4702_vm4, %v6404_v29, 0.0  ;;  %v6402_v13 = vsel %vm3286_vm2, 0.0, %v6272_v41 }
 0x3e4   : > { %v6466_v31 = vsel %vm4702_vm4, %v6401_v0, 0.0  ;;  %v6853_v37 = vadd.f32 %v14373_v56, %v6815_v55  ;;  %v6678_v43 = vmul.f32 %v16595_v2, %v6469_v19  ;;  %v6972_v46 = vmul.f32 %v16601_v30, %v6469_v19 }
 0x3e5   : > { %v7230_v44 = vmul.f32 %v16599_v61, %v6468_v51  ;;  %v6467_v21 = vsel %vm4702_vm4, %v6402_v13, 0.0  ;;  %v6641_v10 = vmul.f32 %v16591_v12, %v6466_v31  ;;  %v6882_v14 = vadd.f32 %v6869_v6, %v6852_v33 }
 0x3e6   : > { %v10679_v58 = vpop.f32.mrb[46].mxu1  ;;  %v6608_v32 = vmul.f32 %v16594_v22, %v6467_v21  ;;  %v6677_v62 = vmul.f32 %v16595_v2, %v6467_v21  ;;  %v6883_v47 = vadd.f32 %v14386_v52, %v6853_v37  ;;  %v6901_v56 = vmul.f32 %v16598_v20, %v14399_v50 }
 0x3e7   : > { %v5987_v7 = vpop.f32.mrb[47].mxu1  ;;  %v6902_v5 = vmul.f32 %v16598_v20, %v6467_v21  ;;  %v6935_v55 = vmul.f32 %v16597_v17, %v6466_v31  ;;  %v6657_v51 = vadd.f32 %v6641_v10, %v6621_v9  ;;  %v6971_v0 = vmul.f32 %v16601_v30, %v6467_v21 }
 0x3e8   : > { %v6622_v41 = vadd.f32 %v6608_v32, %v6589_v57  ;;  %v7108_v29 = vmul.f32 %v16602_v15, %v14221_v60  ;;  %v6915_v13 = vadd.f32 %v6901_v56, %v6882_v14  ;;  %v7109_v52 = vmul.f32 %v16602_v15, %v14323_v48 }
 0x3e9   : > { %v6916_v49 = vadd.f32 %v6902_v5, %v6883_v47  ;;  %v7163_v33 = vmul.f32 %v16604_v54, %v14323_v48  ;;  %v14509_v37 = vadd.f32 %v6677_v62, %v6657_v51  ;;  %v7195_v9 = vmul.f32 %v16605_v36, %v14399_v50  ;;  %v7627_v62 = vld [vmem:[%s11514_s24 + $0x8] sm:$0xff] }
 0x3ea   : > { %v6658_v6 = vadd.f32 %v6642_v45, %v6622_v41  ;;  %v7146_v57 = vadd.f32 %v7133_v1, %v7108_v29  ;;  %v6951_v32 = vadd.f32 %v6935_v55, %v6915_v13  ;;  %v7147_v60 = vadd.f32 %v14377_v24, %v7109_v52  ;;  %v7626_v45 = vld [vmem:[%s11514_s24] sm:$0xff] }
 0x3eb   : > { %v6952_v10 = vadd.f32 %v6936_v59, %v6916_v49  ;;  %v7196_v14 = vmul.f32 %v16605_v36, %v6467_v21  ;;  %v7229_v5 = vmul.f32 %v16599_v61, %v6466_v31  ;;  %v7265_v48 = vmul.f32 %v14042_v38, %v6467_v21 }
 0x3ec   : > { %v14515_v47 = vadd.f32 %v6678_v43, %v6658_v6  ;;  %v7176_v56 = vadd.f32 %v7163_v33, %v7146_v57  ;;  %v14521_v41 = vadd.f32 %v6971_v0, %v6951_v32  ;;  %v7177_v50 = vadd.f32 %v7164_v26, %v7147_v60 }
 0x3ed   : > { %v14523_v1 = vadd.f32 %v6972_v46, %v6952_v10  ;;  %v6096_v49 = vmul.f32 %v14421_v35, %v13919_v63  ;;  %v6095_v59 = vmul.f32 %v13919_v63, %v14427_v11  ;;  %v6098_v43 = vmul.f32 %v10679_v58, %v13919_v63 }
 0x3ee   : > { %v7209_v24 = vadd.f32 %v7195_v9, %v7176_v56  ;;  %v6097_v31 = vmul.f32 %v13919_v63, %v5987_v7  ;;  %v7210_v55 = vadd.f32 %v7196_v14, %v7177_v50  ;;  %v10793_v51 = vpack.c.bf16 %v7627_v62, %v7626_v45  ;;  %v16608_v62 = vld [vmem:[#allocation92_spill] sm:$0xff] }
 0x3ef   : > { %v6135_v21 = vadd.f32 %v13933_v4, %v6096_v49  ;;  %v6134_v46 = vadd.f32 %v13933_v4, %v6095_v59  ;;  %v6137_v26 = vadd.f32 %v13933_v4, %v6098_v43  ;;  %v16227_v35 = vmov 0.0|0.0  }
 0x3f0   : > { %v7245_v0 = vadd.f32 %v7229_v5, %v7209_v24  ;;  %v6136_v29 = vadd.f32 %v13933_v4, %v6097_v31  ;;  %10792 = vmatprep.subr.bf16.mxu1 %v16227_v35  ;;  %v7266_v11 = vmul.f32 %v14042_v38, %v6469_v19  ;;  %v7246_v13 = vadd.f32 %v7230_v44, %v7210_v55  ;;  %v16609_v24 = vld [vmem:[#allocation93_spill] sm:$0xff]  ;;  %v16618_v38 = vld [vmem:[#allocation98_spill] sm:$0xff] }
 0x3f1   : > { %v6167_v58 = vmax.f32 %v6135_v21, 0.0  ;;  %10794 = vmatpush3.bf16.msra.mxu1 %v10793_v51  ;;  %v6166_v7 = vmax.f32 %v6134_v46, 0.0  ;;  %v16607_v6 = vmov 0.0   ;;  %v6169_v60 = vmax.f32 %v6137_v26, 0.0  ;;  %v16610_v51 = vld [vmem:[#allocation90_spill] sm:$0xff]  ;;  %v16611_v46 = vld [vmem:[#allocation96_spill] sm:$0xff] }
 0x3f2   : > { %v14539_v63 = vadd.f32 %v7265_v48, %v7245_v0  ;;  %10711 = vmatprep.subr.mxu1 %v16607_v6  ;;  %v14544_v57 = vadd.f32 %v7266_v11, %v7246_v13  ;;  %v14546_v19 = vmax.f32 %v6136_v29, 0.0  ;;  %v6724_v45 = vadd.f32 %v14174_v42, %v14419_v16 }
 0x3f3   : > { %v6231_v4 = vcombine.high %v6167_v58, %v6167_v58  ;;  %v6277_v9 = vrot.slane %v6167_v58, 7  ;;  %v6230_v32 = vcombine.high %v6166_v7, %v6166_v7  ;;  %v6275_v10 = vrot.slane %v6166_v7, 7  ;;  %v16613_v58 = vld [vmem:[#allocation75_spill] sm:$0xff] }
 0x3f4   : > { %v14537_v52 = vpop.f32.mrb[48].mxu1  ;;  %v7018_v50 = vadd.f32 %v16608_v62, %v14441_v23  ;;  %v7312_v59 = vadd.f32 %v16609_v24, %v14464_v8  ;;  %v6233_v43 = vcombine.high %v6169_v60, %v6169_v60  ;;  %v6281_v31 = vrot.slane %v6169_v60, 7  ;;  %v16612_v8 = vld [vmem:[#allocation95_spill] sm:$0xff] }
 0x3f5   : > { %v14541_v33 = vpop.f32.mrb[49].mxu1  ;;  %v6278_v44 = vrot.slane %v6231_v4, 7  ;;  %v6407_v14 = vsel %vm3286_vm2, 0.0, %v6277_v9  ;;  %v6276_v5 = vrot.slane %v6230_v32, 7  ;;  %v6405_v48 = vsel %vm3286_vm2, 0.0, %v6275_v10  ;;  %v16614_v4 = vld [vmem:[#allocation97_spill] sm:$0xff] }
 0x3f6   : > { %v14550_v56 = vsel %vm4702_vm4, %v6407_v14, 0.0  ;;  %v6232_v55 = vcombine.high %v14546_v19, %v14546_v19  ;;  %v14569_v23 = vsel %vm4702_vm4, %v6405_v48, 0.0  ;;  %v16615_v32 = vld [vmem:[#allocation79_spill] sm:$0xff] }
 0x3f7   : > { %v6408_v49 = vsel %vm3286_vm2, 0.0, %v6278_v44  ;;  %v6745_v0 = vmul.f32 %v16610_v51, %v14550_v56  ;;  %v6406_v16 = vsel %vm3286_vm2, 0.0, %v6276_v5  ;;  %v7039_v26 = vmul.f32 %v16611_v46, %v14550_v56  ;;  %v16616_v5 = vld [vmem:[#allocation59_spill] sm:$0xff] }
 0x3f8   : > { %v14563_v21 = vsel %vm4702_vm4, %v6408_v49, 0.0  ;;  %v7333_v29 = vmul.f32 %v16612_v8, %v14550_v56  ;;  %v14576_v11 = vsel %vm4702_vm4, %v6406_v16, 0.0  ;;  %v6744_v13 = vmul.f32 %v16610_v51, %v14569_v23  ;;  %v16617_v49 = vld [vmem:[#allocation86_spill] sm:$0xff] }
 0x3f9   : > { %v6711_v7 = vmul.f32 %v16613_v58, %v14576_v11  ;;  %v6780_v9 = vmul.f32 %v16614_v4, %v14576_v11  ;;  %v7005_v10 = vmul.f32 %v16615_v32, %v14576_v11  ;;  %v7038_v60 = vmul.f32 %v16611_v46, %v14569_v23 }
 0x3fa   : > { %v6760_v44 = vadd.f32 %v6744_v13, %v6724_v45  ;;  %v6781_v14 = vmul.f32 %v16614_v4, %v14563_v21  ;;  %v7074_v48 = vmul.f32 %v16616_v5, %v14576_v11  ;;  %v7299_v16 = vmul.f32 %v16617_v49, %v14576_v11 }
 0x3fb   : > { %v6725_v35 = vadd.f32 %v6711_v7, %v14434_v27  ;;  %v7019_v6 = vadd.f32 %v7005_v10, %v14446_v39  ;;  %v7054_v24 = vadd.f32 %v7038_v60, %v7018_v50  ;;  %v7332_v62 = vmul.f32 %v16612_v8, %v14569_v23 }
 0x3fc   : > { %v6796_v42 = vadd.f32 %v6780_v9, %v6760_v44  ;;  %v7075_v45 = vmul.f32 %v16616_v5, %v14563_v21  ;;  %v7313_v13 = vadd.f32 %v7299_v16, %v14468_v34  ;;  %v7368_v36 = vmul.f32 %v16618_v38, %v14576_v11 }
 0x3fd   : > { %v6761_v54 = vadd.f32 %v6745_v0, %v6725_v35  ;;  %v7055_v40 = vadd.f32 %v7039_v26, %v7019_v6  ;;  %v7090_v15 = vadd.f32 %v7074_v48, %v7054_v24  ;;  %v7348_v30 = vadd.f32 %v7332_v62, %v7312_v59 }
 0x3fe   : > { %v7349_v39 = vadd.f32 %v7333_v29, %v7313_v13  ;;  %v7369_v50 = vmul.f32 %v16618_v38, %v14563_v21  ;;  %v6282_v7 = vrot.slane %v6233_v43, 7  ;;  %v6279_v9 = vrot.slane %v14546_v19, 7 }
 0x3ff   : > { %v6797_v60 = vadd.f32 %v6781_v14, %v6761_v54  ;;  %v7091_v34 = vadd.f32 %v7075_v45, %v7055_v40  ;;  %v7384_v44 = vadd.f32 %v7368_v36, %v7348_v30  ;;  %v7416_v16 = vrot.slane %v7090_v15, 1  ;;  %v14620_v30 = vld [vmem:[%s11489_s29] ss:$0 sm:$0xff]  ;;  %v16621_v15 = vld [vmem:[#allocation91_spill] sm:$0xff] }
 0x400   : > { %v7385_v35 = vadd.f32 %v7369_v50, %v7349_v39  ;;  %v6411_v0 = vsel %vm3286_vm2, 0.0, %v6281_v31  ;;  %v6412_v26 = vsel %vm3286_vm2, 0.0, %v6282_v7  ;;  %v6280_v43 = vrot.slane %v6232_v55, 7  ;;  %16620 = vst [vmem:[#allocation63_spill] sm:$0xff] %v14620_v30 }
 0x401   : > { %v7417_v6 = vrot.slane %v7091_v34, 1  ;;  %v7448_v24 = vadd.f32 %v7416_v16, %v6796_v42  ;;  %v7480_v62 = vrot.slane %v7384_v44, 2  ;;  %v6409_v36 = vsel %vm3286_vm2, 0.0, %v6279_v9  ;;  %v16624_v9 = vld [vmem:[#allocation23_spill] sm:$0xff] }
 0x402   : > { %v7481_v48 = vrot.slane %v7385_v35, 2  ;;  %v6100_v42 = vmul.f32 %v14620_v30, %v14537_v52  ;;  %v14626_v40 = vmul.f32 %v16621_v15, %v14550_v56  ;;  %v14631_v55 = vsel %vm4702_vm4, %v6411_v0, 0.0 }
 0x403   : > { %v14603_v27 = vpop.f32.mrb[50].mxu1  ;;  %v7449_v19 = vadd.f32 %v7417_v6, %v6797_v60  ;;  %v14616_v54 = vadd.f32 %v7480_v62, %v7448_v24  ;;  %v14634_v14 = vsel %vm4702_vm4, %v6412_v26, 0.0  ;;  %v6410_v13 = vsel %vm3286_vm2, 0.0, %v6280_v43 }
 0x404   : > { %v14608_v10 = vpop.f32.mrb[51].mxu1  ;;  %v14640_v39 = vsel %vm4702_vm4, %v6409_v36, 0.0  ;;  %v6712_v52 = vmul.f32 %v16613_v58, %v14563_v21  ;;  %v7006_v50 = vmul.f32 %v16615_v32, %v14563_v21  ;;  %v14650_v60 = vmul.f32 %v16624_v9, %v14550_v56 }
 0x405   : > { %16619 = vst [vmem:[#allocation42_spill] sm:$0xff] %v14616_v54  ;;  %v14628_v31 = vadd.f32 %v7481_v48, %v7449_v19  ;;  %v14654_v34 = vmul.f32 %v13986_v3, %v14550_v56  ;;  %v6547_v44 = vmul.f32 %v16621_v15, %v14569_v23  ;;  %v14659_v16 = vsel %vm4702_vm4, %v6410_v13, 0.0 }
 0x406   : > { %v6713_v35 = vmul.f32 %v16613_v58, %v14659_v16  ;;  %v6726_v6 = vadd.f32 %v6712_v52, %v14509_v37  ;;  %v6746_v24 = vmul.f32 %v16610_v51, %v14640_v39  ;;  %v6782_v62 = vmul.f32 %v16614_v4, %v14659_v16 }
 0x407   : > { %v14610_v59 = vpop.f32.mrb[52].mxu1  ;;  %16622 = vst [vmem:[#allocation43_spill] sm:$0xff] %v14628_v31  ;;  %v6747_v56 = vmul.f32 %v16610_v51, %v14631_v55  ;;  %v6783_v0 = vmul.f32 %v16614_v4, %v14634_v14  ;;  %v7007_v26 = vmul.f32 %v16615_v32, %v14659_v16  ;;  %v7020_v43 = vadd.f32 %v7006_v50, %v14521_v41  ;;  %v16640_v51 = vld [vmem:[#allocation41_spill] sm:$0xff] }
 0x408   : > { %v14614_v29 = vpop.f32.mrb[53].mxu1  ;;  %v6727_v37 = vadd.f32 %v6713_v35, %v14515_v47  ;;  %v6762_v48 = vadd.f32 %v6746_v24, %v6726_v6  ;;  %v7040_v36 = vmul.f32 %v16611_v46, %v14640_v39  ;;  %v7076_v13 = vmul.f32 %v16616_v5, %v14659_v16 }
 0x409   : > { %v7041_v31 = vmul.f32 %v16611_v46, %v14631_v55  ;;  %v7077_v54 = vmul.f32 %v16616_v5, %v14634_v14  ;;  %v7021_v41 = vadd.f32 %v7007_v26, %v14523_v1  ;;  %v7300_v47 = vmul.f32 %v16617_v49, %v14563_v21 }
 0x40a   : > { %v6763_v50 = vadd.f32 %v6747_v56, %v6727_v37  ;;  %v6798_v35 = vadd.f32 %v6782_v62, %v6762_v48  ;;  %v7056_v6 = vadd.f32 %v7040_v36, %v7020_v43  ;;  %v7301_v24 = vmul.f32 %v16617_v49, %v14659_v16 }
 0x40b   : > { %v14636_v45 = vpop.f32.mrb[54].mxu1  ;;  %v7335_v32 = vmul.f32 %v16612_v8, %v14631_v55  ;;  %v7057_v4 = vadd.f32 %v7041_v31, %v7021_v41  ;;  %v7314_v58 = vadd.f32 %v7300_v47, %v14539_v63  ;;  %v7334_v5 = vmul.f32 %v16612_v8, %v14640_v39  ;;  %v14708_v63 = vld [vmem:[%s11494_s3] ss:$0 sm:$0xff] }
 0x40c   : > { %v14646_v7 = vpop.f32.mrb[55].mxu1  ;;  %v7371_v56 = vmul.f32 %v16618_v38, %v14634_v14  ;;  %v6799_v62 = vadd.f32 %v6783_v0, %v6763_v50  ;;  %v7092_v26 = vadd.f32 %v7076_v13, %v7056_v6  ;;  %v7315_v43 = vadd.f32 %v7301_v24, %v14544_v57  ;;  %v16639_v8 = vld [vmem:[#allocation34_spill] sm:$0xff] }
 0x40d   : > { %16623 = vst [vmem:[#allocation69_spill] sm:$0xff] %v14646_v7  ;;  %v7093_v48 = vadd.f32 %v7077_v54, %v7057_v4  ;;  %v7350_v36 = vadd.f32 %v7334_v5, %v7314_v58  ;;  %v7370_v31 = vmul.f32 %v16618_v38, %v14659_v16  ;;  %v6139_v41 = vadd.f32 %v14708_v63, %v6100_v42 }
 0x40e   : > { %v7351_v47 = vadd.f32 %v7335_v32, %v7315_v43  ;;  %v6099_v49 = vmul.f32 %v14620_v30, %v14541_v33  ;;  %v6522_v0 = vmul.f32 %v16585_v25, %v14576_v11  ;;  %v6841_v57 = vmul.f32 %v16624_v9, %v14569_v23 }
 0x40f   : > { %v14675_v19 = vpop.f32.mrb[56].mxu1  ;;  %v7386_v4 = vadd.f32 %v7370_v31, %v7350_v36  ;;  %v7419_v58 = vrot.slane %v7093_v48, 1  ;;  %v6171_v5 = vmax.f32 %v6139_v41, 0.0  ;;  %v16631_v31 = vld [vmem:[#allocation29_spill] sm:$0xff]  ;;  %v7110_v46 = vmul.f32 %v16639_v8, %v14576_v11 }
 0x410   : > { %16625 = vst [vmem:[#allocation49_spill] sm:$0xff] %v14675_v19  ;;  %v14682_v52 = vpop.f32.mrb[57].mxu1  ;;  %v7387_v13 = vadd.f32 %v7371_v56, %v7351_v47  ;;  %v6138_v42 = vadd.f32 %v14708_v63, %v6099_v49  ;;  %v6561_v32 = vadd.f32 %v14626_v40, %v6522_v0  ;;  %v6560_v41 = vadd.f32 %v6547_v44, %v16631_v31  ;;  %v16641_v19 = vld [vmem:[#allocation66_spill] sm:$0xff] }
 0x411   : > { %16626 = vst [vmem:[#allocation64_spill] sm:$0xff] %v14682_v52  ;;  %v7451_v33 = vadd.f32 %v7419_v58, %v6799_v62  ;;  %v7482_v24 = vrot.slane %v7386_v4, 2  ;;  %v6285_v43 = vrot.slane %v6171_v5, 7  ;;  %v6577_v40 = vmul.f32 %v16587_v18, %v14576_v11 }
 0x412   : > { %v7483_v36 = vrot.slane %v7387_v13, 2  ;;  %v6170_v48 = vmax.f32 %v6138_v42, 0.0  ;;  %v14740_v44 = vmul.f32 %v16621_v15, %v14631_v55  ;;  %v14744_v4 = vmul.f32 %v16587_v18, %v14634_v14 }
 0x413   : > { %v14698_v1 = vpop.f32.mrb[58].mxu1  ;;  %v6415_v49 = vsel %vm3286_vm2, 0.0, %v6285_v43  ;;  %v14748_v58 = vmul.f32 %v16624_v9, %v14631_v55  ;;  %v14753_v13 = vmul.f32 %v16590_v28, %v14634_v14  ;;  %v6549_v42 = vmul.f32 %v16621_v15, %v14640_v39  ;;  %v16637_v15 = vld [vmem:[#allocation56_spill] sm:$0xff] }
 0x414   : > { %16627 = vst [vmem:[#allocation45_spill] sm:$0xff] %v14698_v1  ;;  %v14703_v37 = vpop.f32.mrb[59].mxu1  ;;  %v7418_v1 = vrot.slane %v7092_v26, 1  ;;  %v6235_v26 = vcombine.high %v6171_v5, %v6171_v5  ;;  %v14733_v56 = vadd.f32 %v7483_v36, %v7451_v33  ;;  %v6480_v62 = vsel %vm4702_vm4, %v6415_v49, 0.0 }
 0x415   : > { %16628 = vst [vmem:[#allocation68_spill] sm:$0xff] %v14703_v37  ;;  %v7135_v37 = vmul.f32 %v13986_v3, %v14569_v23  ;;  %v6234_v47 = vcombine.high %v6170_v48, %v6170_v48  ;;  %v6283_v23 = vrot.slane %v6170_v48, 7  ;;  %v6578_v43 = vmul.f32 %v16587_v18, %v14563_v21 }
 0x416   : > { %v7450_v50 = vadd.f32 %v7418_v1, %v6798_v35  ;;  %v6286_v35 = vrot.slane %v6235_v26, 7  ;;  %16634 = vst [vmem:[#allocation50_spill] sm:$0xff] %v14733_v56  ;;  %v6938_v26 = vmul.f32 %v16597_v17, %v6480_v62  ;;  %v6816_v36 = vmul.f32 %v16593_v53, %v14576_v11 }
 0x417   : > { %v14717_v54 = vpop.f32.mrb[60].mxu1  ;;  %v6284_v33 = vrot.slane %v6234_v47, 7  ;;  %v6590_v49 = vadd.f32 %v6577_v40, %v6560_v41  ;;  %v6591_v56 = vadd.f32 %v6578_v43, %v6561_v32  ;;  %v6871_v41 = vmul.f32 %v16590_v28, %v14576_v11 }
 0x418   : > { %16629 = vst [vmem:[#allocation51_spill] sm:$0xff] %v14717_v54  ;;  %v14721_v6 = vpop.f32.mrb[61].mxu1  ;;  %v14726_v54 = vadd.f32 %v7482_v24, %v7450_v50  ;;  %v6416_v5 = vsel %vm3286_vm2, 0.0, %v6286_v35  ;;  %v14757_v50 = vmul.f32 %v13986_v3, %v14631_v55  ;;  %v6644_v24 = vmul.f32 %v16591_v12, %v6480_v62 }
 0x419   : > { %16630 = vst [vmem:[#allocation73_spill] sm:$0xff] %v14721_v6  ;;  %v14768_v48 = vsel %vm4702_vm4, %v6416_v5, 0.0  ;;  %v6413_v55 = vsel %vm3286_vm2, 0.0, %v6283_v23  ;;  %v6414_v35 = vsel %vm3286_vm2, 0.0, %v6284_v33  ;;  %v7232_v6 = vmul.f32 %v16599_v61, %v6480_v62 }
 0x41a   : > { %16632 = vst [vmem:[#allocation46_spill] sm:$0xff] %v14726_v54  ;;  %v6478_v47 = vsel %vm4702_vm4, %v6413_v55, 0.0  ;;  %v16636_v54 = vld [vmem:[#allocation31_spill] sm:$0xff]  ;;  %v6623_v38 = vadd.f32 %v16637_v15, %v6590_v49  ;;  %v6855_v33 = vadd.f32 %v14650_v60, %v6816_v36  ;;  %v6872_v32 = vmul.f32 %v16590_v28, %v14563_v21 }
 0x41b   : > { %v14731_v1 = vpop.f32.mrb[62].mxu1  ;;  %v6643_v5 = vmul.f32 %v16591_v12, %v6478_v47  ;;  %v16638_v55 = vld [vmem:[#allocation47_spill] sm:$0xff]  ;;  %v6937_v60 = vmul.f32 %v16597_v17, %v6478_v47  ;;  %v7148_v52 = vadd.f32 %v7135_v37, %v16640_v51 }
 0x41c   : > { %16633 = vst [vmem:[#allocation70_spill] sm:$0xff] %v14731_v1  ;;  %v14736_v0 = vpop.f32.mrb[63].mxu1  ;;  %v6854_v1 = vadd.f32 %v6841_v57, %v16636_v54  ;;  %v6680_v57 = vmul.f32 %v16595_v2, %v14768_v48  ;;  %v6885_v54 = vadd.f32 %v6872_v32, %v6855_v33  ;;  %v7149_v33 = vadd.f32 %v14654_v34, %v7110_v46 }
 0x41d   : > { %16635 = vst [vmem:[#allocation72_spill] sm:$0xff] %v14736_v0  ;;  %v6479_v0 = vsel %vm4702_vm4, %v6414_v35, 0.0  ;;  %v6659_v62 = vadd.f32 %v6643_v5, %v6623_v38  ;;  %v6974_v35 = vmul.f32 %v16638_v55, %v14768_v48  ;;  %v16642_v5 = vld [vmem:[#allocation40_spill] sm:$0xff] }
 0x41e   : > { %v6609_v31 = vmul.f32 %v16594_v22, %v6479_v0  ;;  %v6679_v23 = vmul.f32 %v16595_v2, %v6479_v0  ;;  %v6903_v43 = vmul.f32 %v16598_v20, %v6479_v0  ;;  %v6884_v49 = vadd.f32 %v6871_v41, %v6854_v1 }
 0x41f   : > { %v7165_v7 = vmul.f32 %v16642_v5, %v14576_v11  ;;  %v6102_v11 = vmul.f32 %v14620_v30, %v14603_v27  ;;  %v6524_v27 = vmul.f32 %v16585_v25, %v14659_v16 }
 0x420   : > { %v6624_v40 = vadd.f32 %v6609_v31, %v6591_v56  ;;  %v14791_v15 = vadd.f32 %v6679_v23, %v6659_v62  ;;  %v6917_v31 = vadd.f32 %v16641_v19, %v6884_v49  ;;  %v6918_v38 = vadd.f32 %v6903_v43, %v6885_v54  ;;  %v16643_v23 = vld [vmem:[#allocation57_spill] sm:$0xff] }
 0x421   : > { %v6973_v56 = vmul.f32 %v16638_v55, %v6479_v0  ;;  %v7197_v41 = vmul.f32 %v16643_v23, %v6479_v0  ;;  %v7178_v37 = vadd.f32 %v7165_v7, %v7148_v52  ;;  %v7231_v62 = vmul.f32 %v16599_v61, %v6478_v47  ;;  %v16644_v43 = vld [vmem:[#allocation65_spill] sm:$0xff] }
 0x422   : > { %v6660_v36 = vadd.f32 %v6644_v24, %v6624_v40  ;;  %v7166_v24 = vmul.f32 %v16642_v5, %v14563_v21  ;;  %v6953_v32 = vadd.f32 %v6937_v60, %v6917_v31  ;;  %v6954_v40 = vadd.f32 %v6938_v26, %v6918_v38 }
 0x423   : > { %v7267_v49 = vmul.f32 %v16644_v43, %v6479_v0  ;;  %v6523_v7 = vmul.f32 %v16585_v25, %v14563_v21  ;;  %v6141_v26 = vadd.f32 %v14708_v63, %v6102_v11 }
 0x424   : > { %v14800_v1 = vadd.f32 %v6680_v57, %v6660_v36  ;;  %v7179_v54 = vadd.f32 %v7166_v24, %v7149_v33  ;;  %v6101_v57 = vmul.f32 %v14620_v30, %v14608_v10  ;;  %v14812_v46 = vadd.f32 %v6973_v56, %v6953_v32  ;;  %v16645_v36 = vld [vmem:[#allocation85_spill] sm:$0xff] }
 0x425   : > { %v14814_v34 = vadd.f32 %v6974_v35, %v6954_v40  ;;  %v7211_v19 = vadd.f32 %v16645_v36, %v7178_v37  ;;  %v7268_v10 = vmul.f32 %v16644_v43, %v14768_v48  ;;  %v6562_v60 = vadd.f32 %v6549_v42, %v6523_v7 }
 0x426   : > { %v7212_v52 = vadd.f32 %v7197_v41, %v7179_v54  ;;  %v6140_v0 = vadd.f32 %v14708_v63, %v6101_v57  ;;  %v6579_v35 = vmul.f32 %v16587_v18, %v14659_v16  ;;  %v6173_v38 = vmax.f32 %v6141_v26, 0.0 }
 0x427   : > { %v7247_v47 = vadd.f32 %v7231_v62, %v7211_v19  ;;  %v6563_v33 = vadd.f32 %v14740_v44, %v6524_v27  ;;  %v6843_v24 = vmul.f32 %v16624_v9, %v14640_v39  ;;  %v6610_v40 = vmul.f32 %v16594_v22, %v14768_v48 }
 0x428   : > { %v7248_v31 = vadd.f32 %v7232_v6, %v7212_v52  ;;  %v6172_v56 = vmax.f32 %v6140_v0, 0.0  ;;  %v6592_v32 = vadd.f32 %v6579_v35, %v6562_v60  ;;  %v6237_v19 = vcombine.high %v6173_v38, %v6173_v38 }
 0x429   : > { %v14830_v41 = vadd.f32 %v7267_v49, %v7247_v47  ;;  %v6289_v42 = vrot.slane %v6173_v38, 7  ;;  %v6593_v6 = vadd.f32 %v14744_v4, %v6563_v33  ;;  %v6817_v44 = vmul.f32 %v16593_v53, %v14563_v21 }
 0x42a   : > { %v14834_v37 = vadd.f32 %v7268_v10, %v7248_v31  ;;  %v6236_v62 = vcombine.high %v6172_v56, %v6172_v56  ;;  %v6287_v54 = vrot.slane %v6172_v56, 7  ;;  %v6625_v11 = vadd.f32 %v6610_v40, %v6592_v32 }
 0x42b   : > { %v6290_v57 = vrot.slane %v6237_v19, 7  ;;  %v6419_v49 = vsel %vm3286_vm2, 0.0, %v6289_v42  ;;  %v6818_v52 = vmul.f32 %v16593_v53, %v14659_v16  ;;  %v6856_v27 = vadd.f32 %v6843_v24, %v6817_v44 }
 0x42c   : > { %v6288_v7 = vrot.slane %v6236_v62, 7  ;;  %v6484_v26 = vsel %vm4702_vm4, %v6419_v49, 0.0  ;;  %v6417_v0 = vsel %vm3286_vm2, 0.0, %v6287_v54  ;;  %v6873_v10 = vmul.f32 %v16590_v28, %v14659_v16 }
 0x42d   : > { %v7168_v4 = vmul.f32 %v16642_v5, %v14634_v14  ;;  %v7137_v47 = vmul.f32 %v13986_v3, %v14640_v39  ;;  %v6420_v60 = vsel %vm3286_vm2, 0.0, %v6290_v57  ;;  %v6646_v35 = vmul.f32 %v16591_v12, %v6484_v26 }
 0x42e   : > { %v6485_v31 = vsel %vm4702_vm4, %v6420_v60, 0.0  ;;  %v6418_v38 = vsel %vm3286_vm2, 0.0, %v6288_v7  ;;  %v6482_v56 = vsel %vm4702_vm4, %v6417_v0, 0.0  ;;  %v6857_v33 = vadd.f32 %v14748_v58, %v6818_v52 }
 0x42f   : > { %v6682_v24 = vmul.f32 %v16595_v2, %v6485_v31  ;;  %v6940_v32 = vmul.f32 %v16597_v17, %v6484_v26  ;;  %v6976_v14 = vmul.f32 %v16638_v55, %v6485_v31  ;;  %v6483_v39 = vsel %vm4702_vm4, %v6418_v38, 0.0 }
 0x430   : > { %v6611_v40 = vmul.f32 %v16594_v22, %v6483_v39  ;;  %v6645_v19 = vmul.f32 %v16591_v12, %v6482_v56  ;;  %v6681_v42 = vmul.f32 %v16595_v2, %v6483_v39  ;;  %v6886_v62 = vadd.f32 %v6873_v10, %v6856_v27 }
 0x431   : > { %v6887_v54 = vadd.f32 %v14753_v13, %v6857_v33  ;;  %v6904_v58 = vmul.f32 %v16598_v20, %v14768_v48  ;;  %v6905_v44 = vmul.f32 %v16598_v20, %v6483_v39  ;;  %v6939_v57 = vmul.f32 %v16597_v17, %v6482_v56 }
 0x432   : > { %v6626_v49 = vadd.f32 %v6611_v40, %v6593_v6  ;;  %v6661_v7 = vadd.f32 %v6645_v19, %v6625_v11  ;;  %v6975_v52 = vmul.f32 %v16638_v55, %v6483_v39  ;;  %v7111_v0 = vmul.f32 %v16639_v8, %v14563_v21  ;;  %v16666_v55 = vld [vmem:[#allocation98_spill] sm:$0xff] }
 0x433   : > { %v6919_v60 = vadd.f32 %v6904_v58, %v6886_v62  ;;  %v6920_v38 = vadd.f32 %v6905_v44, %v6887_v54  ;;  %v7112_v27 = vmul.f32 %v16639_v8, %v14659_v16  ;;  %v7167_v13 = vmul.f32 %v16642_v5, %v14659_v16  ;;  %v14898_v44 = vld [vmem:[%s11504_s14] ss:$0 sm:$0xff] }
 0x434   : > { %v6662_v10 = vadd.f32 %v6646_v35, %v6626_v49  ;;  %v14875_v33 = vadd.f32 %v6681_v42, %v6661_v7  ;;  %v7150_v36 = vadd.f32 %v7137_v47, %v7111_v0  ;;  %v7198_v6 = vmul.f32 %v16643_v23, %v14768_v48  ;;  %16647 = vst [vmem:[#allocation54_spill] sm:$0xff] %v14898_v44  ;;  %v16648_v0 = vld [vmem:[#allocation39_spill] sm:$0xff] }
 0x435   : > { %v6955_v11 = vadd.f32 %v6939_v57, %v6919_v60  ;;  %v6956_v40 = vadd.f32 %v6940_v32, %v6920_v38  ;;  %v7151_v21 = vadd.f32 %v14757_v50, %v7112_v27  ;;  %v7199_v19 = vmul.f32 %v16643_v23, %v6483_v39  ;;  %v16649_v27 = vld [vmem:[#allocation61_spill] sm:$0xff] }
 0x436   : > { %v14881_v62 = vadd.f32 %v6682_v24, %v6662_v10  ;;  %v7180_v54 = vadd.f32 %v7167_v13, %v7150_v36  ;;  %v7233_v58 = vmul.f32 %v16599_v61, %v6482_v56  ;;  %v7269_v16 = vmul.f32 %v16644_v43, %v6483_v39  ;;  %v16646_v36 = vld [vmem:[#allocation69_spill] sm:$0xff] }
 0x437   : > { %v14885_v35 = vadd.f32 %v6975_v52, %v6955_v11  ;;  %v14887_v47 = vadd.f32 %v6976_v14, %v6956_v40  ;;  %v7181_v42 = vadd.f32 %v7168_v4, %v7151_v21  ;;  %v6104_v48 = vmul.f32 %v14620_v30, %v14610_v59 }
 0x438   : > { %v7213_v32 = vadd.f32 %v7198_v6, %v7180_v54  ;;  %v6103_v50 = vmul.f32 %v14620_v30, %v14614_v29  ;;  %v6106_v24 = vmul.f32 %v14620_v30, %v14636_v45  ;;  %v6105_v56 = vmul.f32 %v14620_v30, %v16646_v36  ;;  %v16651_v54 = vld [vmem:[#allocation44_spill] sm:$0xff] }
 0x439   : > { %v7234_v39 = vmul.f32 %v16599_v61, %v6484_v26  ;;  %v7214_v14 = vadd.f32 %v7199_v19, %v7181_v42  ;;  %v6143_v4 = vadd.f32 %v14708_v63, %v6104_v48  ;;  %v7270_v7 = vmul.f32 %v16644_v43, %v6485_v31  ;;  %v14989_v61 = vld [vmem:[%s11509_s19] ss:$0 sm:$0xff] }
 0x43a   : > { %v7249_v57 = vadd.f32 %v7233_v58, %v7213_v32  ;;  %v6142_v59 = vadd.f32 %v14708_v63, %v6103_v50  ;;  %v6145_v49 = vadd.f32 %v14708_v63, %v6106_v24  ;;  %v6144_v29 = vadd.f32 %v14708_v63, %v6105_v56  ;;  %v16653_v50 = vld [vmem:[#allocation89_spill] sm:$0xff] }
 0x43b   : > { %v7250_v45 = vadd.f32 %v7234_v39, %v7214_v14  ;;  %v6175_v52 = vmax.f32 %v6143_v4, 0.0  ;;  %v14908_v60 = vmul.f32 %v14898_v44, %v16648_v0  ;;  %v14914_v13 = vmul.f32 %v14898_v44, %v16649_v27  ;;  %v16654_v14 = vld [vmem:[#allocation92_spill] sm:$0xff] }
 0x43c   : > { %v14910_v38 = vadd.f32 %v7269_v16, %v7249_v57  ;;  %v6174_v26 = vmax.f32 %v6142_v59, 0.0  ;;  %v14918_v31 = vmax.f32 %v6145_v49, 0.0  ;;  %v14920_v19 = vmax.f32 %v6144_v29, 0.0  ;;  %v16652_v16 = vld [vmem:[#allocation67_spill] sm:$0xff]  ;;  %v16655_v57 = vld [vmem:[#allocation93_spill] sm:$0xff]  ;;  %v16657_v0 = vld [vmem:[#allocation64_spill] sm:$0xff] }
 0x43d   : > { %16650 = vst [vmem:[#allocation71_spill] sm:$0xff] %v14914_v13  ;;  %v14916_v10 = vadd.f32 %v7270_v7, %v7250_v45  ;;  %v6239_v6 = vcombine.high %v6175_v52, %v6175_v52  ;;  %v6293_v11 = vrot.slane %v6175_v52, 7  ;;  %v7533_v58 = vmul.f32 %v14898_v44, %v16651_v54  ;;  %v16656_v29 = vld [vmem:[#allocation49_spill] sm:$0xff]  ;;  %v16665_v13 = vld [vmem:[#allocation86_spill] sm:$0xff] }
 0x43e   : > { %v6238_v40 = vcombine.high %v6174_v26, %v6174_v26  ;;  %v6291_v21 = vrot.slane %v6174_v26, 7  ;;  %v7534_v42 = vmul.f32 %v14898_v44, %v16652_v16  ;;  %v6728_v24 = vadd.f32 %v16653_v50, %v14791_v15  ;;  %v16664_v50 = vld [vmem:[#allocation59_spill] sm:$0xff] }
 0x43f   : > { %v6294_v48 = vrot.slane %v6239_v6, 7  ;;  %v6423_v32 = vsel %vm3286_vm2, 0.0, %v6293_v11  ;;  %v7022_v4 = vadd.f32 %v16654_v14, %v14812_v46  ;;  %v7316_v59 = vadd.f32 %v16655_v57, %v14830_v41  ;;  %v16658_v41 = vld [vmem:[#allocation90_spill] sm:$0xff] }
 0x440   : > { %v14930_v36 = vsel %vm4702_vm4, %v6423_v32, 0.0  ;;  %v6292_v56 = vrot.slane %v6238_v40, 7  ;;  %v6421_v39 = vsel %vm3286_vm2, 0.0, %v6291_v21  ;;  %v6108_v7 = vmul.f32 %v14620_v30, %v16656_v29  ;;  %v16659_v40 = vld [vmem:[#allocation96_spill] sm:$0xff]  ;;  %v16661_v32 = vld [vmem:[#allocation75_spill] sm:$0xff] }
 0x441   : > { %v6424_v49 = vsel %vm3286_vm2, 0.0, %v6294_v48  ;;  %v6241_v15 = vcombine.high %v14918_v31, %v14918_v31  ;;  %v6297_v45 = vrot.slane %v14918_v31, 7  ;;  %v6240_v52 = vcombine.high %v14920_v19, %v14920_v19  ;;  %v16660_v31 = vld [vmem:[#allocation95_spill] sm:$0xff] }
 0x442   : > { %v6107_v26 = vmul.f32 %v14620_v30, %v16657_v0  ;;  %v14948_v46 = vsel %vm4702_vm4, %v6424_v49, 0.0  ;;  %v6749_v27 = vmul.f32 %v16658_v41, %v14930_v36  ;;  %v6422_v6 = vsel %vm3286_vm2, 0.0, %v6292_v56  ;;  %v16662_v56 = vld [vmem:[#allocation97_spill] sm:$0xff]  ;;  %v16663_v29 = vld [vmem:[#allocation79_spill] sm:$0xff] }
 0x443   : > { %v14954_v11 = vsel %vm4702_vm4, %v6421_v39, 0.0  ;;  %v7043_v21 = vmul.f32 %v16659_v40, %v14930_v36  ;;  %v7337_v54 = vmul.f32 %v16660_v31, %v14930_v36  ;;  %v14961_v16 = vsel %vm4702_vm4, %v6422_v6, 0.0 }
 0x444   : > { %v6748_v48 = vmul.f32 %v16658_v41, %v14954_v11  ;;  %v6714_v49 = vmul.f32 %v16661_v32, %v14961_v16  ;;  %v6784_v39 = vmul.f32 %v16662_v56, %v14961_v16  ;;  %v7008_v0 = vmul.f32 %v16663_v29, %v14961_v16 }
 0x445   : > { %v7042_v57 = vmul.f32 %v16659_v40, %v14954_v11  ;;  %v6785_v6 = vmul.f32 %v16662_v56, %v14948_v46  ;;  %v7078_v44 = vmul.f32 %v16664_v50, %v14961_v16  ;;  %v7302_v30 = vmul.f32 %v16665_v13, %v14961_v16 }
 0x446   : > { %v6764_v14 = vadd.f32 %v6748_v48, %v6728_v24  ;;  %v6729_v43 = vadd.f32 %v6714_v49, %v14800_v1  ;;  %v7023_v23 = vadd.f32 %v7008_v0, %v14814_v34  ;;  %v7336_v51 = vmul.f32 %v16660_v31, %v14954_v11 }
 0x447   : > { %v7058_v5 = vadd.f32 %v7042_v57, %v7022_v4  ;;  %v7079_v24 = vmul.f32 %v16664_v50, %v14948_v46  ;;  %v7317_v48 = vadd.f32 %v7302_v30, %v14834_v37  ;;  %v7372_v20 = vmul.f32 %v16666_v55, %v14961_v16 }
 0x448   : > { %v6800_v8 = vadd.f32 %v6784_v39, %v6764_v14  ;;  %v6765_v2 = vadd.f32 %v6749_v27, %v6729_v43  ;;  %v7059_v22 = vadd.f32 %v7043_v21, %v7023_v23  ;;  %v7352_v49 = vadd.f32 %v7336_v51, %v7316_v59 }
 0x449   : > { %v7094_v1 = vadd.f32 %v7078_v44, %v7058_v5  ;;  %v7353_v34 = vadd.f32 %v7337_v54, %v7317_v48  ;;  %v7373_v4 = vmul.f32 %v16666_v55, %v14948_v46  ;;  %v6298_v57 = vrot.slane %v6241_v15, 7 }
 0x44a   : > { %v6295_v14 = vrot.slane %v14920_v19, 7  ;;  %v6801_v39 = vadd.f32 %v6785_v6, %v6765_v2  ;;  %v7095_v0 = vadd.f32 %v7079_v24, %v7059_v22  ;;  %v7388_v17 = vadd.f32 %v7372_v20, %v7352_v49 }
 0x44b   : > { %v7420_v30 = vrot.slane %v7094_v1, 1  ;;  %v14996_v37 = vadd.f32 %v14989_v61, %v14908_v60  ;;  %v14999_v43 = vadd.f32 %v14989_v61, %v7533_v58  ;;  %v7389_v5 = vadd.f32 %v7373_v4, %v7353_v34 }
 0x44c   : > { %v6147_v51 = vadd.f32 %v14708_v63, %v6108_v7  ;;  %v7421_v23 = vrot.slane %v7095_v0, 1  ;;  %v7484_v59 = vrot.slane %v7388_v17, 2  ;;  %v6427_v15 = vsel %vm3286_vm2, 0.0, %v6297_v45  ;;  %v16669_v7 = vld [vmem:[#allocation91_spill] sm:$0xff] }
 0x44d   : > { %16667 = vst [vmem:[#allocation52_spill] sm:$0xff] %v14996_v37  ;;  %v7452_v44 = vadd.f32 %v7420_v30, %v6800_v8  ;;  %v15004_v2 = vadd.f32 %v14989_v61, %v7534_v42  ;;  %v6428_v20 = vsel %vm3286_vm2, 0.0, %v6298_v57  ;;  %v6296_v22 = vrot.slane %v6240_v52, 7 }
 0x44e   : > { %v6146_v60 = vadd.f32 %v14708_v63, %v6107_v26  ;;  %v7453_v19 = vadd.f32 %v7421_v23, %v6801_v39  ;;  %v7485_v27 = vrot.slane %v7389_v5, 2  ;;  %v6425_v21 = vsel %vm3286_vm2, 0.0, %v6295_v14 }
 0x44f   : > { %v15008_v58 = vadd.f32 %v7484_v59, %v7452_v44  ;;  %v15013_v8 = vmul.f32 %v16669_v7, %v14930_v36  ;;  %v15017_v17 = vmul.f32 %v16624_v9, %v14930_v36  ;;  %v15020_v42 = vsel %vm4702_vm4, %v6427_v15, 0.0 }
 0x450   : > { %v6179_v45 = vmax.f32 %v6147_v51, 0.0  ;;  %v15024_v52 = vmul.f32 %v13986_v3, %v14930_v36  ;;  %v15028_v26 = vmul.f32 %v16669_v7, %v14954_v11  ;;  %v15030_v54 = vadd.f32 %v7485_v27, %v7453_v19 }
 0x451   : > { %16668 = vst [vmem:[#allocation58_spill] sm:$0xff] %v15008_v58  ;;  %v15033_v6 = vsel %vm4702_vm4, %v6428_v20, 0.0  ;;  %v6426_v24 = vsel %vm3286_vm2, 0.0, %v6296_v22  ;;  %v15037_v48 = vsel %vm4702_vm4, %v6425_v21, 0.0  ;;  %v6715_v1 = vmul.f32 %v16661_v32, %v14948_v46 }
 0x452   : > { %16670 = vst [vmem:[#allocation87_spill] sm:$0xff] %v15030_v54  ;;  %v7009_v36 = vmul.f32 %v16663_v29, %v14948_v46  ;;  %v15045_v49 = vmul.f32 %v16624_v9, %v14954_v11  ;;  %v15049_v34 = vmul.f32 %v13986_v3, %v14954_v11  ;;  %v6751_v4 = vmul.f32 %v16658_v41, %v15020_v42 }
 0x453   : > { %v15054_v57 = vsel %vm4702_vm4, %v6426_v24, 0.0  ;;  %v6730_v39 = vadd.f32 %v6715_v1, %v14875_v33  ;;  %v6750_v0 = vmul.f32 %v16658_v41, %v15037_v48  ;;  %v6787_v11 = vmul.f32 %v16662_v56, %v15033_v6 }
 0x454   : > { %v6716_v14 = vmul.f32 %v16661_v32, %v15054_v57  ;;  %v6786_v30 = vmul.f32 %v16662_v56, %v15054_v57  ;;  %v7045_v5 = vmul.f32 %v16659_v40, %v15020_v42  ;;  %v7010_v51 = vmul.f32 %v16663_v29, %v15054_v57  ;;  %v16690_v32 = vld [vmem:[#allocation68_spill] sm:$0xff] }
 0x455   : > { %v7024_v23 = vadd.f32 %v7009_v36, %v14885_v35  ;;  %v6766_v33 = vadd.f32 %v6750_v0, %v6730_v39  ;;  %v7044_v59 = vmul.f32 %v16659_v40, %v15037_v48  ;;  %v7080_v15 = vmul.f32 %v16664_v50, %v15054_v57 }
 0x456   : > { %v6731_v44 = vadd.f32 %v6716_v14, %v14881_v62  ;;  %v7081_v20 = vmul.f32 %v16664_v50, %v15033_v6  ;;  %v7339_v22 = vmul.f32 %v16660_v31, %v15020_v42  ;;  %v7025_v19 = vadd.f32 %v7010_v51, %v14887_v47 }
 0x457   : > { %v7303_v35 = vmul.f32 %v16665_v13, %v14948_v46  ;;  %v6802_v62 = vadd.f32 %v6786_v30, %v6766_v33  ;;  %v7060_v21 = vadd.f32 %v7044_v59, %v7024_v23  ;;  %v7304_v24 = vmul.f32 %v16665_v13, %v15054_v57  ;;  %v16683_v13 = vld [vmem:[#allocation41_spill] sm:$0xff] }
 0x458   : > { %v6767_v27 = vadd.f32 %v6751_v4, %v6731_v44  ;;  %v7061_v1 = vadd.f32 %v7045_v5, %v7025_v19  ;;  %v7338_v14 = vmul.f32 %v16660_v31, %v15037_v48  ;;  %v7374_v39 = vmul.f32 %v16666_v55, %v15054_v57 }
 0x459   : > { %v7318_v36 = vadd.f32 %v7303_v35, %v14910_v38  ;;  %v7096_v47 = vadd.f32 %v7080_v15, %v7060_v21  ;;  %v7319_v51 = vadd.f32 %v7304_v24, %v14916_v10  ;;  %v6243_v37 = vcombine.high %v6179_v45, %v6179_v45 }
 0x45a   : > { %v6803_v0 = vadd.f32 %v6787_v11, %v6767_v27  ;;  %v7097_v4 = vadd.f32 %v7081_v20, %v7061_v1  ;;  %v6301_v23 = vrot.slane %v6179_v45, 7  ;;  %v6178_v44 = vmax.f32 %v6146_v60, 0.0 }
 0x45b   : > { %v7354_v30 = vadd.f32 %v7338_v14, %v7318_v36  ;;  %v15092_v5 = vmul.f32 %v16669_v7, %v15020_v42  ;;  %v7375_v38 = vmul.f32 %v16666_v55, %v15033_v6  ;;  %v7355_v33 = vadd.f32 %v7339_v22, %v7319_v51 }
 0x45c   : > { %v7422_v59 = vrot.slane %v7096_v47, 1  ;;  %v7423_v35 = vrot.slane %v7097_v4, 1  ;;  %v6302_v11 = vrot.slane %v6243_v37, 7  ;;  %v6525_v10 = vmul.f32 %v16585_v25, %v14961_v16 }
 0x45d   : > { %v7390_v19 = vadd.f32 %v7374_v39, %v7354_v30  ;;  %v7391_v15 = vadd.f32 %v7375_v38, %v7355_v33  ;;  %v6431_v45 = vsel %vm3286_vm2, 0.0, %v6301_v23  ;;  %v6242_v60 = vcombine.high %v6178_v44, %v6178_v44  ;;  %v16673_v30 = vld [vmem:[#allocation29_spill] sm:$0xff] }
 0x45e   : > { %v7454_v20 = vadd.f32 %v7422_v59, %v6802_v62  ;;  %v15101_v27 = vmul.f32 %v16587_v18, %v15033_v6  ;;  %v15105_v21 = vmul.f32 %v16624_v9, %v15020_v42  ;;  %v7455_v22 = vadd.f32 %v7423_v35, %v6803_v0 }
 0x45f   : > { %v7486_v24 = vrot.slane %v7390_v19, 2  ;;  %v15109_v37 = vmul.f32 %v16590_v28, %v15033_v6  ;;  %v15113_v62 = vmul.f32 %v13986_v3, %v15020_v42  ;;  %v15117_v1 = vmul.f32 %v16669_v7, %v15037_v48 }
 0x460   : > { %v7487_v36 = vrot.slane %v7391_v15, 2  ;;  %v6432_v39 = vsel %vm3286_vm2, 0.0, %v6302_v11  ;;  %v6496_v0 = vsel %vm4702_vm4, %v6431_v45, 0.0  ;;  %v6299_v47 = vrot.slane %v6178_v44, 7  ;;  %v16674_v15 = vld [vmem:[#allocation36_spill] sm:$0xff]  ;;  %v16675_v45 = vld [vmem:[#allocation37_spill] sm:$0xff] }
 0x461   : > { %v15119_v14 = vadd.f32 %v7486_v24, %v7454_v20  ;;  %v6300_v4 = vrot.slane %v6242_v60, 7  ;;  %v6564_v23 = vadd.f32 %v15028_v26, %v16673_v30  ;;  %v6565_v42 = vadd.f32 %v15013_v8, %v6525_v10  ;;  %v16676_v24 = vld [vmem:[#allocation35_spill] sm:$0xff] }
 0x462   : > { %v15123_v51 = vadd.f32 %v7487_v36, %v7455_v22  ;;  %v15130_v7 = vmul.f32 %v16624_v9, %v15037_v48  ;;  %v6429_v38 = vsel %vm3286_vm2, 0.0, %v6299_v47  ;;  %v6581_v33 = vmul.f32 %v16587_v18, %v14961_v16 }
 0x463   : > { %16671 = vst [vmem:[#allocation30_spill] sm:$0xff] %v15119_v14  ;;  %v6582_v44 = vmul.f32 %v16587_v18, %v14948_v46  ;;  %v15138_v59 = vsel %vm4702_vm4, %v6432_v39, 0.0  ;;  %v6430_v19 = vsel %vm3286_vm2, 0.0, %v6300_v4  ;;  %v6494_v26 = vsel %vm4702_vm4, %v6429_v38, 0.0  ;;  %v16677_v39 = vld [vmem:[#allocation56_spill] sm:$0xff]  ;;  %v16678_v4 = vld [vmem:[#allocation31_spill] sm:$0xff] }
 0x464   : > { %16672 = vst [vmem:[#allocation32_spill] sm:$0xff] %v15123_v51  ;;  %v6819_v8 = vmul.f32 %v16593_v53, %v14961_v16  ;;  %v6648_v9 = vmul.f32 %v16591_v12, %v6496_v0  ;;  %v6495_v35 = vsel %vm4702_vm4, %v6430_v19, 0.0  ;;  %v6594_v11 = vadd.f32 %v6581_v33, %v6564_v23  ;;  %v16679_v23 = vld [vmem:[#allocation48_spill] sm:$0xff]  ;;  %v16680_v51 = vld [vmem:[#allocation38_spill] sm:$0xff] }
 0x465   : > { %v6595_v10 = vadd.f32 %v6582_v44, %v6565_v42  ;;  %v6942_v20 = vmul.f32 %v16674_v15, %v6496_v0  ;;  %v6612_v60 = vmul.f32 %v16675_v45, %v6495_v35  ;;  %v6647_v22 = vmul.f32 %v16591_v12, %v6494_v26 }
 0x466   : > { %v6683_v36 = vmul.f32 %v16676_v24, %v6495_v35  ;;  %v6627_v47 = vadd.f32 %v16677_v39, %v6594_v11  ;;  %v6858_v30 = vadd.f32 %v15045_v49, %v16678_v4  ;;  %v6859_v38 = vadd.f32 %v15017_v17, %v6819_v8  ;;  %v16681_v39 = vld [vmem:[#allocation47_spill] sm:$0xff]  ;;  %v16682_v8 = vld [vmem:[#allocation34_spill] sm:$0xff] }
 0x467   : > { %v6875_v19 = vmul.f32 %v16590_v28, %v14961_v16  ;;  %v7236_v42 = vmul.f32 %v16679_v23, %v6496_v0  ;;  %v6628_v33 = vadd.f32 %v6612_v60, %v6595_v10  ;;  %v6876_v44 = vmul.f32 %v16590_v28, %v14948_v46  ;;  %v16684_v60 = vld [vmem:[#allocation66_spill] sm:$0xff] }
 0x468   : > { %v6906_v14 = vmul.f32 %v16680_v51, %v6495_v35  ;;  %v6663_v54 = vadd.f32 %v6647_v22, %v6627_v47  ;;  %v6941_v11 = vmul.f32 %v16674_v15, %v6494_v26  ;;  %v6977_v55 = vmul.f32 %v16681_v39, %v6495_v35  ;;  %v16685_v22 = vld [vmem:[#allocation40_spill] sm:$0xff] }
 0x469   : > { %v6888_v58 = vadd.f32 %v6875_v19, %v6858_v30  ;;  %v15162_v49 = vadd.f32 %v6648_v9, %v6628_v33  ;;  %v6889_v17 = vadd.f32 %v6876_v44, %v6859_v38  ;;  %v7113_v4 = vmul.f32 %v16682_v8, %v14961_v16  ;;  %v16686_v38 = vld [vmem:[#allocation57_spill] sm:$0xff] }
 0x46a   : > { %v7152_v0 = vadd.f32 %v15049_v34, %v16683_v13  ;;  %v15168_v10 = vadd.f32 %v6683_v36, %v6663_v54  ;;  %v7169_v47 = vmul.f32 %v16685_v22, %v14961_v16  ;;  %v7170_v30 = vmul.f32 %v16685_v22, %v14948_v46  ;;  %v16687_v13 = vld [vmem:[#allocation65_spill] sm:$0xff]  ;;  %v16689_v36 = vld [vmem:[#allocation63_spill] sm:$0xff] }
 0x46b   : > { %v6921_v50 = vadd.f32 %v16684_v60, %v6888_v58  ;;  %v6922_v19 = vadd.f32 %v6906_v14, %v6889_v17  ;;  %v7153_v9 = vadd.f32 %v15024_v52, %v7113_v4  ;;  %v7200_v33 = vmul.f32 %v16686_v38, %v6495_v35  ;;  %v16688_v34 = vld [vmem:[#allocation45_spill] sm:$0xff] }
 0x46c   : > { %v7235_v44 = vmul.f32 %v16679_v23, %v6494_v26  ;;  %v7182_v56 = vadd.f32 %v7169_v47, %v7152_v0  ;;  %v7271_v54 = vmul.f32 %v16687_v13, %v6495_v35  ;;  %v6110_v58 = vmul.f32 %v16689_v36, %v16688_v34  ;;  %v16691_v17 = vld [vmem:[#allocation85_spill] sm:$0xff] }
 0x46d   : > { %v6957_v29 = vadd.f32 %v6941_v11, %v6921_v50  ;;  %v15181_v60 = vadd.f32 %v6942_v20, %v6922_v19  ;;  %v7183_v16 = vadd.f32 %v7170_v30, %v7153_v9  ;;  %v6109_v31 = vmul.f32 %v16689_v36, %v16690_v32 }
 0x46e   : > { %v6526_v52 = vmul.f32 %v16585_v25, %v14948_v46  ;;  %v7215_v26 = vadd.f32 %v16691_v17, %v7182_v56  ;;  %v6149_v50 = vadd.f32 %v14708_v63, %v6110_v58  ;;  %v6527_v35 = vmul.f32 %v16585_v25, %v15054_v57 }
 0x46f   : > { %v15187_v14 = vadd.f32 %v6977_v55, %v6957_v29  ;;  %v7216_v11 = vadd.f32 %v7200_v33, %v7183_v16  ;;  %v6148_v20 = vadd.f32 %v14708_v63, %v6109_v31  ;;  %v6583_v32 = vmul.f32 %v16587_v18, %v15054_v57 }
 0x470   : > { %v6566_v4 = vadd.f32 %v15117_v1, %v6526_v52  ;;  %v7251_v0 = vadd.f32 %v7235_v44, %v7215_v26  ;;  %v6181_v47 = vmax.f32 %v6149_v50, 0.0  ;;  %v6567_v55 = vadd.f32 %v15092_v5, %v6527_v35 }
 0x471   : > { %v6613_v56 = vmul.f32 %v16675_v45, %v15138_v59  ;;  %v15200_v29 = vadd.f32 %v7236_v42, %v7216_v11  ;;  %v6180_v30 = vmax.f32 %v6148_v20, 0.0  ;;  %v6820_v25 = vmul.f32 %v16593_v53, %v14948_v46 }
 0x472   : > { %v6596_v19 = vadd.f32 %v6583_v32, %v6566_v4  ;;  %v15204_v31 = vadd.f32 %v7271_v54, %v7251_v0  ;;  %v6245_v1 = vcombine.high %v6181_v47, %v6181_v47  ;;  %v6305_v9 = vrot.slane %v6181_v47, 7 }
 0x473   : > { %v6597_v18 = vadd.f32 %v15101_v27, %v6567_v55  ;;  %v6244_v33 = vcombine.high %v6180_v30, %v6180_v30  ;;  %v6303_v44 = vrot.slane %v6180_v30, 7  ;;  %v6821_v5 = vmul.f32 %v16593_v53, %v15054_v57 }
 0x474   : > { %v6629_v34 = vadd.f32 %v6613_v56, %v6596_v19  ;;  %v6306_v58 = vrot.slane %v6245_v1, 7  ;;  %v6435_v42 = vsel %vm3286_vm2, 0.0, %v6305_v9  ;;  %v6860_v16 = vadd.f32 %v15130_v7, %v6820_v25 }
 0x475   : > { %v6877_v52 = vmul.f32 %v16590_v28, %v15054_v57  ;;  %v6500_v54 = vsel %vm4702_vm4, %v6435_v42, 0.0  ;;  %v6304_v17 = vrot.slane %v6244_v33, 7  ;;  %v6433_v26 = vsel %vm3286_vm2, 0.0, %v6303_v44 }
 0x476   : > { %v6861_v27 = vadd.f32 %v15105_v21, %v6821_v5  ;;  %v7172_v50 = vmul.f32 %v16685_v22, %v15033_v6  ;;  %v7141_v53 = vmul.f32 %v13986_v3, %v15037_v48  ;;  %v6684_v35 = vmul.f32 %v16676_v24, %v15138_v59 }
 0x477   : > { %v6978_v7 = vmul.f32 %v16681_v39, %v15138_v59  ;;  %v7272_v28 = vmul.f32 %v16687_v13, %v15138_v59  ;;  %v6434_v11 = vsel %vm3286_vm2, 0.0, %v6304_v17  ;;  %v6498_v20 = vsel %vm4702_vm4, %v6433_v26, 0.0 }
 0x478   : > { %v6890_v21 = vadd.f32 %v6877_v52, %v6860_v16  ;;  %v6436_v4 = vsel %vm3286_vm2, 0.0, %v6306_v58  ;;  %v6650_v6 = vmul.f32 %v16591_v12, %v6500_v54  ;;  %v6944_v3 = vmul.f32 %v16674_v15, %v6500_v54 }
 0x479   : > { %v6499_v48 = vsel %vm4702_vm4, %v6434_v11, 0.0  ;;  %v6649_v0 = vmul.f32 %v16591_v12, %v6498_v20  ;;  %v6891_v55 = vadd.f32 %v15109_v37, %v6861_v27  ;;  %v6907_v56 = vmul.f32 %v16680_v51, %v15138_v59  ;;  %v15263_v27 = vld [vmem:[%s11489_s29] ss:$0 sm:$0xff] }
 0x47a   : > { %v6614_v32 = vmul.f32 %v16675_v45, %v6499_v48  ;;  %v6685_v47 = vmul.f32 %v16676_v24, %v6499_v48  ;;  %v6908_v30 = vmul.f32 %v16680_v51, %v6499_v48  ;;  %v6943_v19 = vmul.f32 %v16674_v15, %v6498_v20 }
 0x47b   : > { %v6979_v25 = vmul.f32 %v16681_v39, %v6499_v48  ;;  %v6665_v9 = vadd.f32 %v6649_v0, %v6629_v34  ;;  %v7114_v45 = vmul.f32 %v16682_v8, %v14948_v46  ;;  %v7115_v12 = vmul.f32 %v16682_v8, %v15054_v57  ;;  %v16695_v0 = vld [vmem:[#allocation42_spill] sm:$0xff] }
 0x47c   : > { %v6630_v1 = vadd.f32 %v6614_v32, %v6597_v18  ;;  %v6923_v33 = vadd.f32 %v6907_v56, %v6890_v21  ;;  %v6924_v44 = vadd.f32 %v6908_v30, %v6891_v55  ;;  %v7171_v37 = vmul.f32 %v16685_v22, %v15054_v57  ;;  %v16692_v22 = vld [vmem:[#allocation51_spill] sm:$0xff] }
 0x47d   : > { %v7201_v51 = vmul.f32 %v16686_v38, %v15138_v59  ;;  %v15249_v5 = vadd.f32 %v6685_v47, %v6665_v9  ;;  %v7154_v18 = vadd.f32 %v7141_v53, %v7114_v45  ;;  %v7155_v34 = vadd.f32 %v15113_v62, %v7115_v12  ;;  %v16693_v62 = vld [vmem:[#allocation73_spill] sm:$0xff]  ;;  %v16697_v47 = vld [vmem:[#allocation43_spill] sm:$0xff] }
 0x47e   : > { %v6666_v15 = vadd.f32 %v6650_v6, %v6630_v1  ;;  %v7238_v46 = vmul.f32 %v16679_v23, %v6500_v54  ;;  %v6959_v58 = vadd.f32 %v6943_v19, %v6923_v33  ;;  %v15253_v42 = vadd.f32 %v6944_v3, %v6924_v44  ;;  %v16699_v1 = vld [vmem:[#allocation46_spill] sm:$0xff] }
 0x47f   : > { %v7202_v8 = vmul.f32 %v16686_v38, %v6499_v48  ;;  %v7184_v16 = vadd.f32 %v7171_v37, %v7154_v18  ;;  %v7185_v52 = vadd.f32 %v7172_v50, %v7155_v34  ;;  %v7237_v57 = vmul.f32 %v16679_v23, %v6498_v20  ;;  %v16694_v20 = vld [vmem:[#allocation71_spill] sm:$0xff]  ;;  %v16700_v44 = vld [vmem:[#allocation50_spill] sm:$0xff] }
 0x480   : > { %v6112_v59 = vmul.f32 %v16689_v36, %v16692_v22  ;;  %v15259_v17 = vadd.f32 %v6979_v25, %v6959_v58  ;;  %v7273_v26 = vmul.f32 %v16687_v13, %v6499_v48  ;;  %v6111_v54 = vmul.f32 %v15263_v27, %v16693_v62 }
 0x481   : > { %v6700_v53 = vadd.f32 %v6684_v35, %v15162_v49  ;;  %v7217_v11 = vadd.f32 %v7201_v51, %v7184_v16  ;;  %v7218_v38 = vadd.f32 %v7202_v8, %v7185_v52  ;;  %v6994_v23 = vadd.f32 %v6978_v7, %v15181_v60  ;;  %v16696_v60 = vld [vmem:[#allocation54_spill] sm:$0xff]  ;;  %v16702_v52 = vld [vmem:[#allocation89_spill] sm:$0xff] }
 0x482   : > { %v6151_v50 = vadd.f32 %v14708_v63, %v6112_v59  ;;  %v15272_v36 = vadd.f32 %v14989_v61, %v16694_v20  ;;  %v15275_v21 = vsel %vm4702_vm4, %v6436_v4, 0.0  ;;  %v6150_v6 = vadd.f32 %v14708_v63, %v6111_v54  ;;  %v16698_v4 = vld [vmem:[#allocation70_spill] sm:$0xff]  ;;  %v16704_v59 = vld [vmem:[#allocation93_spill] sm:$0xff] }
 0x483   : > { %v7288_v3 = vadd.f32 %v7272_v28, %v15200_v29  ;;  %v7253_v35 = vadd.f32 %v7237_v57, %v7217_v11  ;;  %v15281_v48 = vadd.f32 %v7238_v46, %v7218_v38  ;;  %v7535_v7 = vmul.f32 %v16696_v60, %v16695_v0  ;;  %v16703_v57 = vld [vmem:[#allocation92_spill] sm:$0xff] }
 0x484   : > { %v6183_v32 = vmax.f32 %v6151_v50, 0.0  ;;  %v7536_v55 = vmul.f32 %v16696_v60, %v16697_v47  ;;  %v6182_v56 = vmax.f32 %v6150_v6, 0.0  ;;  %v6114_v30 = vmul.f32 %v15263_v27, %v16698_v4  ;;  %v16705_v50 = vld [vmem:[#allocation95_spill] sm:$0xff] }
 0x485   : > { %v6686_v29 = vmul.f32 %v16676_v24, %v15275_v21  ;;  %v15291_v28 = vadd.f32 %v7273_v26, %v7253_v35  ;;  %v7537_v9 = vmul.f32 %v16696_v60, %v16699_v1  ;;  %v7538_v37 = vmul.f32 %v16696_v60, %v16700_v44  ;;  %v16706_v6 = vld [vmem:[#allocation75_spill] sm:$0xff]  ;;  %v16711_v44 = vld [vmem:[#allocation98_spill] sm:$0xff] }
 0x486   : > { %v6247_v19 = vcombine.high %v6183_v32, %v6183_v32  ;;  %v6309_v25 = vrot.slane %v6183_v32, 7  ;;  %v6246_v45 = vcombine.high %v6182_v56, %v6182_v56  ;;  %v6307_v12 = vrot.slane %v6182_v56, 7  ;;  %v16707_v32 = vld [vmem:[#allocation97_spill] sm:$0xff]  ;;  %v16708_v47 = vld [vmem:[#allocation79_spill] sm:$0xff] }
 0x487   : > { %v6153_v33 = vadd.f32 %v14708_v63, %v6114_v30  ;;  %v15299_v34 = vadd.f32 %v6686_v29, %v6666_v15  ;;  %v6732_v63 = vadd.f32 %v16702_v52, %v15168_v10  ;;  %v7026_v22 = vadd.f32 %v16703_v57, %v15187_v14  ;;  %v16709_v30 = vld [vmem:[#allocation59_spill] sm:$0xff] }
 0x488   : > { %v6310_v51 = vrot.slane %v6247_v19, 7  ;;  %v6439_v18 = vsel %vm3286_vm2, 0.0, %v6309_v25  ;;  %v6308_v46 = vrot.slane %v6246_v45, 7  ;;  %v6437_v58 = vsel %vm3286_vm2, 0.0, %v6307_v12  ;;  %v16710_v19 = vld [vmem:[#allocation86_spill] sm:$0xff] }
 0x489   : > { %16701 = vst [vmem:[#allocation33_spill] sm:$0xff] %v15299_v34  ;;  %v6504_v24 = vsel %vm4702_vm4, %v6439_v18, 0.0  ;;  %v15303_v8 = vmax.f32 %v6153_v33, 0.0  ;;  %v7320_v26 = vadd.f32 %v16704_v59, %v15204_v31  ;;  %v6502_v11 = vsel %vm4702_vm4, %v6437_v58, 0.0 }
 0x48a   : > { %v6440_v16 = vsel %vm3286_vm2, 0.0, %v6310_v51  ;;  %v6753_v15 = vmul.f32 %v16658_v41, %v6504_v24  ;;  %v7047_v62 = vmul.f32 %v16659_v40, %v6504_v24  ;;  %v6438_v54 = vsel %vm3286_vm2, 0.0, %v6308_v46 }
 0x48b   : > { %v6505_v38 = vsel %vm4702_vm4, %v6440_v16, 0.0  ;;  %v7341_v20 = vmul.f32 %v16705_v50, %v6504_v24  ;;  %v6503_v10 = vsel %vm4702_vm4, %v6438_v54, 0.0  ;;  %v6249_v14 = vcombine.high %v15303_v8, %v15303_v8 }
 0x48c   : > { %v6717_v35 = vmul.f32 %v16706_v6, %v6503_v10  ;;  %v6752_v31 = vmul.f32 %v16658_v41, %v6502_v11  ;;  %v6788_v0 = vmul.f32 %v16707_v32, %v6503_v10  ;;  %v7011_v56 = vmul.f32 %v16708_v47, %v6503_v10 }
 0x48d   : > { %v7046_v4 = vmul.f32 %v16659_v40, %v6502_v11  ;;  %v7082_v29 = vmul.f32 %v16709_v30, %v6503_v10  ;;  %v7305_v25 = vmul.f32 %v16710_v19, %v6503_v10  ;;  %v7340_v1 = vmul.f32 %v16705_v50, %v6502_v11 }
 0x48e   : > { %v6733_v45 = vadd.f32 %v6717_v35, %v6700_v53  ;;  %v6768_v12 = vadd.f32 %v6752_v31, %v6732_v63  ;;  %v7027_v33 = vadd.f32 %v7011_v56, %v6994_v23  ;;  %v7376_v51 = vmul.f32 %v16711_v44, %v6503_v10  ;;  %v16712_v10 = vld [vmem:[#allocation72_spill] sm:$0xff] }
 0x48f   : > { %v6789_v18 = vmul.f32 %v16707_v32, %v6505_v38  ;;  %v7062_v24 = vadd.f32 %v7046_v4, %v7026_v22  ;;  %v7321_v46 = vadd.f32 %v7305_v25, %v7288_v3  ;;  %v7356_v58 = vadd.f32 %v7340_v1, %v7320_v26 }
 0x490   : > { %v7083_v16 = vmul.f32 %v16709_v30, %v6505_v38  ;;  %v6769_v52 = vadd.f32 %v6753_v15, %v6733_v45  ;;  %v6804_v57 = vadd.f32 %v6788_v0, %v6768_v12  ;;  %v7063_v59 = vadd.f32 %v7047_v62, %v7027_v33  ;;  %v16714_v33 = vld [vmem:[#allocation87_spill] sm:$0xff] }
 0x491   : > { %v7377_v54 = vmul.f32 %v16711_v44, %v6505_v38  ;;  %v7098_v49 = vadd.f32 %v7082_v29, %v7062_v24  ;;  %v7357_v34 = vadd.f32 %v7341_v20, %v7321_v46  ;;  %v7392_v11 = vadd.f32 %v7376_v51, %v7356_v58  ;;  %v11402_v29 = vld [vmem:[%s11494_s3] ss:$0 sm:$0xff] }
 0x492   : > { %v15334_v53 = vadd.f32 %v14989_v61, %v7535_v7  ;;  %v6805_v23 = vadd.f32 %v6789_v18, %v6769_v52  ;;  %v7099_v63 = vadd.f32 %v7083_v16, %v7063_v59  ;;  %v6113_v3 = vmul.f32 %v15263_v27, %v16712_v10 }
 0x493   : > { %v15339_v22 = vadd.f32 %v14989_v61, %v7536_v55  ;;  %v15342_v26 = vadd.f32 %v14989_v61, %v7537_v9  ;;  %v7393_v15 = vadd.f32 %v7377_v54, %v7357_v34  ;;  %v7424_v62 = vrot.slane %v7098_v49, 1 }
 0x494   : > { %v15345_v20 = vadd.f32 %v14989_v61, %v7538_v37  ;;  %v6980_v7 = vmul.f32 %v16681_v39, %v15275_v21  ;;  %v7274_v35 = vmul.f32 %v16687_v13, %v15275_v21  ;;  %v7425_v31 = vrot.slane %v7099_v63, 1 }
 0x495   : > { %v7456_v0 = vadd.f32 %v7424_v62, %v6804_v57  ;;  %v7488_v27 = vrot.slane %v7392_v11, 2  ;;  %v6313_v55 = vrot.slane %v15303_v8, 7  ;;  %v6314_v56 = vrot.slane %v6249_v14, 7  ;;  %v16713_v14 = vld [vmem:[#allocation58_spill] sm:$0xff] }
 0x496   : > { %v7457_v4 = vadd.f32 %v7425_v31, %v6805_v23  ;;  %v7489_v9 = vrot.slane %v7393_v15, 2  ;;  %v6152_v34 = vadd.f32 %v11402_v29, %v6113_v3  ;;  %v6718_v49 = vmul.f32 %v16706_v6, %v6505_v38 }
 0x497   : > { %v15354_v37 = vadd.f32 %v7488_v27, %v7456_v0  ;;  %v6996_v25 = vadd.f32 %v6980_v7, %v15253_v42  ;;  %v7012_v39 = vmul.f32 %v16708_v47, %v6505_v38  ;;  %v7290_v13 = vadd.f32 %v7274_v35, %v15281_v48  ;;  %v16718_v35 = vld [vmem:[#allocation30_spill] sm:$0xff]  ;;  %v16719_v0 = vld [vmem:[#allocation32_spill] sm:$0xff] }
 0x498   : > { %v7521_v21 = vadd.f32 %v7489_v9, %v7457_v4  ;;  %v6184_v1 = vmax.f32 %v6152_v34, 0.0  ;;  %v6734_v45 = vadd.f32 %v6718_v49, %v15249_v5  ;;  %v7306_v8 = vmul.f32 %v16710_v19, %v6505_v38  ;;  %v16716_v5 = vld [vmem:[#allocation52_spill] sm:$0xff] }
 0x499   : > { %v7539_v12 = vmul.f32 %v16696_v60, %v16713_v14  ;;  %v7540_v51 = vmul.f32 %v16696_v60, %v16714_v33  ;;  %v7028_v18 = vadd.f32 %v7012_v39, %v15259_v17  ;;  %v6443_v42 = vsel %vm3286_vm2, 0.0, %v6313_v55  ;;  %v16720_v14 = vld [vmem:[#allocation33_spill] sm:$0xff] }
 0x49a   : > { %v6248_v24 = vcombine.high %v6184_v1, %v6184_v1  ;;  %v6311_v46 = vrot.slane %v6184_v1, 7  ;;  %v7322_v48 = vadd.f32 %v7306_v8, %v15291_v28  ;;  %v16715_v58 = vmov 0.0  }
 0x49b   : > { %10708 = vmatprep.mubr.msk.f32.mxu1 %vm11450_vm7, %v16715_v58  ;;  %v7586_v38 = vcombine.low %v16716_v5, %v15272_v36  ;;  %v16717_v16 = vcombine.low %v14999_v43, %v15004_v2  ;;  %v6444_v17 = vsel %vm3286_vm2, 0.0, %v6314_v56  ;;  %v7588_v57 = vcombine.low %v15334_v53, %v15339_v22 }
 0x49c   : > { %v7589_v28 = vcombine.low %v15342_v26, %v15345_v20  ;;  %v6312_v59 = vrot.slane %v6248_v24, 7  ;;  %v6441_v54 = vsel %vm3286_vm2, 0.0, %v6311_v46  ;;  %v15383_v11 = vadd.f32 %v14989_v61, %v7539_v12 }
 0x49d   : > { %v7604_v52 = vsel %vm7602_vm6, %v16717_v16, 0.0  ;;  %v15386_v23 = vadd.f32 %v14989_v61, %v7540_v51  ;;  %v6508_v63 = vsel %vm4702_vm4, %v6443_v42, 0.0  ;;  %v6506_v10 = vsel %vm4702_vm4, %v6441_v54, 0.0 }
 0x49e   : > { %v6509_v3 = vsel %vm4702_vm4, %v6444_v17, 0.0  ;;  %v6442_v15 = vsel %vm3286_vm2, 0.0, %v6312_v59  ;;  %v6754_v62 = vmul.f32 %v16658_v41, %v6506_v10  ;;  %v7048_v7 = vmul.f32 %v16659_v40, %v6506_v10 }
 0x49f   : > { %v7541_v31 = vmul.f32 %v16696_v60, %v16718_v35  ;;  %v7542_v27 = vmul.f32 %v16696_v60, %v16719_v0  ;;  %v6507_v55 = vsel %vm4702_vm4, %v6442_v15, 0.0  ;;  %v7342_v56 = vmul.f32 %v16705_v50, %v6506_v10 }
 0x4a0   : > { %v6755_v4 = vmul.f32 %v16658_v41, %v6508_v63  ;;  %v6719_v9 = vmul.f32 %v16706_v6, %v6507_v55  ;;  %v6770_v29 = vadd.f32 %v6754_v62, %v6734_v45  ;;  %v6790_v34 = vmul.f32 %v16707_v32, %v6507_v55 }
 0x4a1   : > { %v6791_v49 = vmul.f32 %v16707_v32, %v6509_v3  ;;  %v7013_v39 = vmul.f32 %v16708_v47, %v6507_v55  ;;  %v7064_v1 = vadd.f32 %v7048_v7, %v7028_v18  ;;  %v7084_v8 = vmul.f32 %v16709_v30, %v6507_v55 }
 0x4a2   : > { %v6735_v12 = vadd.f32 %v6719_v9, %v16720_v14  ;;  %v6806_v33 = vadd.f32 %v6790_v34, %v6770_v29  ;;  %v7307_v51 = vmul.f32 %v16710_v19, %v6507_v55  ;;  %v7358_v42 = vadd.f32 %v7342_v56, %v7322_v48 }
 0x4a3   : > { %v7049_v41 = vmul.f32 %v16659_v40, %v6508_v63  ;;  %v7029_v24 = vadd.f32 %v7013_v39, %v6996_v25  ;;  %v7100_v6 = vadd.f32 %v7084_v8, %v7064_v1  ;;  %v7378_v45 = vmul.f32 %v16711_v44, %v6507_v55 }
 0x4a4   : > { %v7085_v46 = vmul.f32 %v16709_v30, %v6509_v3  ;;  %v7343_v32 = vmul.f32 %v16705_v50, %v6508_v63  ;;  %v6771_v47 = vadd.f32 %v6755_v4, %v6735_v12  ;;  %v7323_v18 = vadd.f32 %v7307_v51, %v7290_v13 }
 0x4a5   : > { %v7544_v16 = vmul.f32 %v16696_v60, %v7521_v21  ;;  %v7065_v17 = vadd.f32 %v7049_v41, %v7029_v24  ;;  %v7394_v59 = vadd.f32 %v7378_v45, %v7358_v42  ;;  %v7426_v54 = vrot.slane %v7100_v6, 1 }
 0x4a6   : > { %v15414_v19 = vadd.f32 %v14989_v61, %v7542_v27  ;;  %v7379_v40 = vmul.f32 %v16711_v44, %v6509_v3  ;;  %v6807_v25 = vadd.f32 %v6791_v49, %v6771_v47  ;;  %v7359_v48 = vadd.f32 %v7343_v32, %v7323_v18  ;;  %v7628_v47 = vld [vmem:[%s11519_s30] sm:$0x1] }
 0x4a7   : > { %v7543_v10 = vmul.f32 %v16696_v60, %v15354_v37  ;;  %v7101_v30 = vadd.f32 %v7085_v46, %v7065_v17  ;;  %v7458_v15 = vadd.f32 %v7426_v54, %v6806_v33  ;;  %v7490_v50 = vrot.slane %v7394_v59, 2  ;;  %v7924_v54 = vld [vmem:[%s16721_s15] sm:$0xff] }
 0x4a8   : > { %v7603_v13 = vsel %vm7602_vm6, %v7586_v38, 0.0  ;;  %v7606_v21 = vsel %vm7602_vm6, %v7588_v57, 0.0  ;;  %v7590_v63 = vcombine.low %v15383_v11, %v15386_v23  ;;  %v7395_v62 = vadd.f32 %v7379_v40, %v7359_v48  ;;  %v7925_v40 = vld [vmem:[%s16721_s15 + $0x8] sm:$0xff]  ;;  %v15459_v48 = vld [vmem:[%s16722_s16] sm:$0xff]  ;;  %s16763_s16 = sld [smem:[#allocation11_spill]] }
 0x4a9   : > { %v15424_v7 = vadd.f32 %v14989_v61, %v7541_v31  ;;  %v15427_v44 = vadd.f32 %v14989_v61, %v7544_v16  ;;  %v7427_v3 = vrot.slane %v7101_v30, 1  ;;  %v7522_v35 = vadd.f32 %v7490_v50, %v7458_v15 }
 0x4aa   : > { %v7605_v37 = vadd.f32 %v7604_v52, %v7603_v13  ;;  %v7608_v0 = vsel %vm7602_vm6, %v7589_v28, 0.0  ;;  %v15433_v57 = vadd.f32 %v14989_v61, %v7543_v10  ;;  %v7491_v55 = vrot.slane %v7395_v62, 2  ;;  %v7704_v10 = vld [vmem:[%s16723_s18] sm:$0x1]  ;;  %s16802_s18 = sld [smem:[#allocation13_spill]] }
 0x4ab   : > { %v7591_v38 = vcombine.low %v15424_v7, %v15414_v19  ;;  %v7459_v27 = vadd.f32 %v7427_v3, %v6807_v25  ;;  %v7610_v4 = vsel %vm7602_vm6, %v7590_v63, 0.0  ;;  %v7545_v29 = vmul.f32 %v16696_v60, %v7522_v35  ;;  %v16724_v3 = vld [vmem:[#allocation55_spill] sm:$0xff] }
 0x4ac   : > { %v7607_v56 = vadd.f32 %v7606_v21, %v7605_v37  ;;  %v7592_v31 = vcombine.low %v15433_v57, %v15427_v44  ;;  %v10795_v25 = vpack.c.bf16 %v7925_v40, %v7924_v54 }
 0x4ad   : > { %v7523_v9 = vadd.f32 %v7491_v55, %v7459_v27  ;;  %v7612_v28 = vsel %vm7602_vm6, %v7591_v38, 0.0  ;;  %v15443_v1 = vadd.f32 %v14989_v61, %v7545_v29 }
 0x4ae   : > { %v7609_v52 = vadd.f32 %v7608_v0, %v7607_v56  ;;  %v7614_v39 = vsel %vm7602_vm6, %v7592_v31, 0.0 }
 0x4af   : > { %v7546_v34 = vmul.f32 %v16696_v60, %v7523_v9 }
 0x4b0   : > { %v7611_v49 = vadd.f32 %v7610_v4, %v7609_v52 }
 0x4b1   : > { %v15446_v8 = vadd.f32 %v14989_v61, %v7546_v34  ;;  %v7703_v61 = vld [vmem:[%s11524_s6] sm:$0xf] }
 0x4b2   : > { %v7613_v14 = vadd.f32 %v7612_v28, %v7611_v49 }
 0x4b3   : > { %v7593_v12 = vcombine.low %v15443_v1, %v15446_v8 }
 0x4b4   : > { %v7615_v33 = vadd.f32 %v7614_v39, %v7613_v14 }
 0x4b5   : > { %v7616_v51 = vsel %vm7602_vm6, %v7593_v12, 0.0 }
 0x4b6   : > { %v7617_v42 = vadd.f32 %v7616_v51, %v7615_v33 }
 0x4b8   : > { %v7618_v60 = vrot.slane %v7617_v42, 4 }
 0x4ba   : > { %v7619_v41 = vadd.f32 %v7618_v60, %v7617_v42 }
 0x4bc   : > { %v7620_v24 = vrot.slane %v7619_v41, 2 }
 0x4be   : > { %v7621_v6 = vadd.f32 %v7620_v24, %v7619_v41 }
 0x4c0   : > { %v7622_v45 = vrot.slane %v7621_v6, 1 }
 0x4c2   : > { %v7623_v46 = vadd.f32 %v7622_v45, %v7621_v6 }
 0x4c4   : > { %v7625_v32 = vmul.f32 0.015625, %v7623_v46 }
 0x4c6   : > { %10709 = vmatmul.mubr.msk.f32.vlgmr.msra.gmra.mrb[64].mxu1 %vm7602_vm6, %v7625_v32 }
 0x4c7   : > { %10713 = vmatprep.mubr.msk.f32.mxu1 %vm11450_vm7, %v16715_v58  ;;  %10712 = vmatpush3.msk.msra.mxu1 %vm7709_vm8, %v7703_v61 }
 0x4c8   : > { %10796 = vmatprep.subr.bf16.mxu1 %v10795_v25 }
 0x599   : > { %v7698_v18 = vpop.f32.mrb[64].mxu1 }
 0x59a   : > { %v7699_v16 = vadd.f32 %v7698_v18, %v7628_v47  ;;  %v10710_v17 = vpop.f32.mrb[65].mxu1 }
 0x59c   : > { %v7702_v59 = vmax.f32 %v7699_v16, 0.0 }
 0x59e   : > { %10714 = vmatmul.mubr.msk.f32.vlgmr.msra.gmra.mrb[66].mxu1 %vm7705_vm9, %v7702_v59 }
 0x59f   : > { %10798 = vmatpush3.bf16.msra.mxu1 %v10795_v25 }
 0x5a0   : > { %10732 = vmatprep.subr.mxu1 %v15459_v48 }
 0x671   : > { %v7779_v30 = vpop.f32.mrb[66].mxu1 }
 0x672   : > { %v7780_v15 = vadd.f32 %v7779_v30, %v7704_v10  ;;  %v10715_v50 = vpop.f32.mrb[67].mxu1 }
 0x674   : > { %v9757_v13 = vmul.f32 -1.442695, %v7780_v15 }
 0x676   : > { %11295 = vpow2.f32 %v9757_v13 }
 0x680   : > { %v11296_v21 = vpop.eup %11295 }
 0x681   : > { %v7786_v63 = vadd.f32 1.0, %v11296_v21 }
 0x683   : > { %11297 = vrcp.f32 %v7786_v63 }
 0x68d   : > { %v11298_v62 = vpop.eup %11297 }
 0x68e   : > { %v15464_v35 = vrot.slane %v11298_v62, %v16724_v3 }
 0x690   : > { %v15468_v37 = vcombine.high %v15464_v35, %v15464_v35  ;;  %v15472_v0 = vmul.f32 %v15464_v35, %v16716_v5  ;;  %v15476_v38 = vmul.f32 %v15464_v35, %v14999_v43  ;;  %v15480_v27 = vmul.f32 %v15464_v35, %v15334_v53 }
 0x691   : > { %v15484_v55 = vmul.f32 %v15464_v35, %v15342_v26  ;;  %v15541_v40 = vmul.f32 %v15464_v35, %v15443_v1 }
 0x692   : > { %v15488_v56 = vmul.f32 %v15468_v37, %v15272_v36  ;;  %v9758_v31 = vmul.f32 -1.442695, %v15472_v0  ;;  %v15493_v5 = vmul.f32 %v15468_v37, %v15004_v2  ;;  %v9760_v43 = vmul.f32 -1.442695, %v15476_v38 }
 0x693   : > { %v15498_v53 = vmul.f32 %v15468_v37, %v15339_v22  ;;  %v15502_v26 = vmul.f32 %v15468_v37, %v15345_v20  ;;  %v15506_v36 = vmul.f32 %v15464_v35, %v15383_v11  ;;  %v9762_v9 = vmul.f32 -1.442695, %v15480_v27 }
 0x694   : > { %11299 = vpow2.f32 %v9758_v31  ;;  %v9759_v4 = vmul.f32 -1.442695, %v15488_v56  ;;  %v9761_v2 = vmul.f32 -1.442695, %v15493_v5  ;;  %v15514_v22 = vmul.f32 %v15468_v37, %v15386_v23 }
 0x695   : > { %11301 = vpow2.f32 %v9760_v43  ;;  %v9763_v29 = vmul.f32 -1.442695, %v15498_v53  ;;  %v9764_v20 = vmul.f32 -1.442695, %v15484_v55  ;;  %v15519_v11 = vmul.f32 %v15464_v35, %v15424_v7 }
 0x696   : > { %11303 = vpow2.f32 %v9759_v4  ;;  %v9765_v52 = vmul.f32 -1.442695, %v15502_v26  ;;  %v15524_v28 = vmul.f32 %v15468_v37, %v15414_v19  ;;  %v9766_v34 = vmul.f32 -1.442695, %v15506_v36 }
 0x697   : > { %11305 = vpow2.f32 %v9761_v2  ;;  %v15529_v23 = vmul.f32 %v15464_v35, %v15433_v57  ;;  %v9767_v49 = vmul.f32 -1.442695, %v15514_v22  ;;  %v9768_v7 = vmul.f32 -1.442695, %v15519_v11 }
 0x698   : > { %11307 = vpow2.f32 %v9762_v9  ;;  %v9769_v39 = vmul.f32 -1.442695, %v15524_v28  ;;  %v15537_v18 = vmul.f32 %v15468_v37, %v15427_v44  ;;  %v15545_v30 = vmul.f32 %v15468_v37, %v15446_v8 }
 0x699   : > { %11309 = vpow2.f32 %v9763_v29  ;;  %v9770_v19 = vmul.f32 -1.442695, %v15529_v23  ;;  %v9772_v1 = vmul.f32 -1.442695, %v15541_v40 }
 0x69a   : > { %11311 = vpow2.f32 %v9764_v20  ;;  %v9771_v50 = vmul.f32 -1.442695, %v15537_v18  ;;  %v9773_v35 = vmul.f32 -1.442695, %v15545_v30 }
 0x69b   : > { %11313 = vpow2.f32 %v9765_v52 }
 0x69c   : > { %11315 = vpow2.f32 %v9766_v34 }
 0x69d   : > { %11317 = vpow2.f32 %v9767_v49 }
 0x69e   : > { %v11300_v14 = vpop.eup %11299  ;;  %11319 = vpow2.f32 %v9768_v7 }
 0x69f   : > { %v11302_v12 = vpop.eup %11301  ;;  %v7860_v33 = vadd.f32 1.0, %v11300_v14  ;;  %11321 = vpow2.f32 %v9769_v39 }
 0x6a0   : > { %v11304_v57 = vpop.eup %11303  ;;  %v7862_v51 = vadd.f32 1.0, %v11302_v12  ;;  %11323 = vpow2.f32 %v9770_v19 }
 0x6a1   : > { %v11306_v42 = vpop.eup %11305  ;;  %v7861_v60 = vadd.f32 1.0, %v11304_v57  ;;  %11325 = vrcp.f32 %v7860_v33 }
 0x6a2   : > { %v11308_v41 = vpop.eup %11307  ;;  %v7863_v24 = vadd.f32 1.0, %v11306_v42  ;;  %11327 = vrcp.f32 %v7862_v51 }
 0x6a3   : > { %v11310_v6 = vpop.eup %11309  ;;  %11329 = vrcp.f32 %v7861_v60  ;;  %v7864_v45 = vadd.f32 1.0, %v11308_v41 }
 0x6a4   : > { %v11312_v46 = vpop.eup %11311  ;;  %11331 = vrcp.f32 %v7863_v24  ;;  %v7865_v32 = vadd.f32 1.0, %v11310_v6 }
 0x6a5   : > { %v11314_v61 = vpop.eup %11313  ;;  %11333 = vrcp.f32 %v7864_v45  ;;  %v7866_v47 = vadd.f32 1.0, %v11312_v46 }
 0x6a6   : > { %v11316_v16 = vpop.eup %11315  ;;  %11335 = vrcp.f32 %v7865_v32  ;;  %v7867_v17 = vadd.f32 1.0, %v11314_v61 }
 0x6a7   : > { %v11318_v59 = vpop.eup %11317  ;;  %11337 = vrcp.f32 %v7866_v47  ;;  %v7868_v54 = vadd.f32 1.0, %v11316_v16 }
 0x6a8   : > { %v11320_v25 = vpop.eup %11319  ;;  %11339 = vrcp.f32 %v7867_v17  ;;  %v7869_v10 = vadd.f32 1.0, %v11318_v59  ;;  %v16726_v59 = vld [vmem:[#allocation62_spill] sm:$0xff] }
 0x6a9   : > { %v11322_v15 = vpop.eup %11321  ;;  %11341 = vrcp.f32 %v7868_v54  ;;  %v7870_v44 = vadd.f32 1.0, %v11320_v25  ;;  %v16727_v54 = vmax.f32 %v16726_v59, 0.0  ;;  %v16728_v25 = vld [vmem:[#allocation77_spill] sm:$0xff] }
 0x6aa   : > { %v11324_v13 = vpop.eup %11323  ;;  %11343 = vrcp.f32 %v7869_v10  ;;  %v7871_v21 = vadd.f32 1.0, %v11322_v15  ;;  %v16729_v10 = vmax.f32 %v16728_v25, 0.0 }
 0x6ab   : > { %v11326_v63 = vpop.eup %11325  ;;  %11345 = vrcp.f32 %v7870_v44  ;;  %v7872_v14 = vadd.f32 1.0, %v11324_v13  ;;  %v16732_v44 = vld [vmem:[#allocation80_spill] sm:$0xff]  ;;  %v16734_v13 = vld [vmem:[#allocation74_spill] sm:$0xff] }
 0x6ac   : > { %v11328_v62 = vpop.eup %11327  ;;  %11347 = vrcp.f32 %v7871_v21  ;;  %v7908_v37 = vmul.f32 %v11326_v63, %v15472_v0  ;;  %v8102_v15 = vcombine.low %v16729_v10, %v16727_v54  ;;  %v16737_v63 = vld [vmem:[#allocation78_spill] sm:$0xff] }
 0x6ad   : > { %v11330_v31 = vpop.eup %11329  ;;  %11349 = vpow2.f32 %v9771_v50  ;;  %v7910_v2 = vmul.f32 %v11328_v62, %v15476_v38  ;;  %v16733_v50 = vmax.f32 %v16732_v44, 0.0 }
 0x6ae   : > { %v11332_v8 = vpop.eup %11331  ;;  %v7909_v43 = vmul.f32 %v11330_v31, %v15488_v56  ;;  %11351 = vpow2.f32 %v9772_v1  ;;  %v16738_v1 = vmax.f32 %v16737_v63, 0.0  ;;  %v16741_v31 = vld [vmem:[#allocation84_spill] sm:$0xff] }
 0x6af   : > { %v11334_v4 = vpop.eup %11333  ;;  %v7911_v9 = vmul.f32 %v11332_v8, %v15493_v5  ;;  %11353 = vpow2.f32 %v9773_v35  ;;  %v16740_v35 = vld [vmem:[#allocation81_spill] sm:$0xff]  ;;  %v16742_v8 = vld [vmem:[#allocation83_spill] sm:$0xff] }
 0x6b0   : > { %v11336_v29 = vpop.eup %11335  ;;  %v7942_v20 = vcombine.low %v7908_v37, %v7909_v43  ;;  %v7912_v49 = vmul.f32 %v11334_v4, %v15480_v27  ;;  %11355 = vrcp.f32 %v7872_v14  ;;  %v16744_v37 = vld [vmem:[#allocation88_spill] sm:$0xff]  ;;  %v8277_v43 = vld [vmem:[%s16725_s22] sm:$0xff]  ;;  %v16746_v4 = vmov 0.0|0.0   ;;  %s16804_s22 = sld [smem:[#allocation14_spill]] }
 0x6b1   : > { %v11338_v52 = vpop.eup %11337  ;;  %v7943_v34 = vcombine.low %v7910_v2, %v7911_v9  ;;  %v7913_v7 = vmul.f32 %v11336_v29, %v15498_v53  ;;  %v9793_v14 = vld [vmem:[%s16747_s1] ss:$0 sm:$0xff]  ;;  %s16809_s1 = sld [smem:[#allocation18_spill]] }
 0x6b2   : > { %v11340_v39 = vpop.eup %11339  ;;  %10720 = vmatprep.mubr.msk.f32.mxu1 %vm7602_vm6, %v7942_v20  ;;  %v7914_v38 = vmul.f32 %v11338_v52, %v15484_v55 }
 0x6b3   : > { %v11342_v0 = vpop.eup %11341  ;;  %10721 = vmatmul.mubr.msk.f32.vlgmr.msra.gmra.mrb[68].mxu1 %vm7602_vm6, %v7943_v34  ;;  %v7944_v56 = vcombine.low %v7912_v49, %v7913_v7  ;;  %v7915_v5 = vmul.f32 %v11340_v39, %v15502_v26  ;;  %v9782_v49 = vld [vmem:[%s16739_s23] ss:$0 sm:$0xff]  ;;  %s16805_s23 = sld [smem:[#allocation17_spill]] }
 0x6b4   : > { %v11344_v19 = vpop.eup %11343  ;;  %10733 = vmatpush3.msra.mxu1 %v15459_v48  ;;  %v7916_v53 = vmul.f32 %v11342_v0, %v15506_v36  ;;  %v9792_v0 = vld [vmem:[%s16743_s26] ss:$0 sm:$0xff]  ;;  %s16806_s26 = sld [smem:[#allocation16_spill]] }
 0x6b5   : > { %v11346_v12 = vpop.eup %11345  ;;  %10723 = vmatprep.mubr.msk.f32.mxu1 %vm7602_vm6, %v7944_v56  ;;  %v7945_v27 = vcombine.low %v7914_v38, %v7915_v5  ;;  %v7917_v33 = vmul.f32 %v11344_v19, %v15514_v22  ;;  %10746 = vmatprep.subr.mxu1 %v8277_v43  ;;  %v9783_v38 = vld [vmem:[%s16745_s28] ss:$0 sm:$0xff]  ;;  %s16807_s28 = sld [smem:[#allocation19_spill]] }
 0x6b6   : > { %v11348_v57 = vpop.eup %11347  ;;  %v7918_v55 = vmul.f32 %v11346_v12, %v15519_v11 }
 0x6b7   : > { %v11350_v51 = vpop.eup %11349  ;;  %10724 = vmatmul.mubr.msk.f32.gmra.mrb[70].mxu1 %vm7602_vm6, %v7945_v27  ;;  %v7946_v42 = vcombine.low %v7916_v53, %v7917_v33  ;;  %v7919_v26 = vmul.f32 %v11348_v57, %v15524_v28 }
 0x6b8   : > { %v7873_v60 = vadd.f32 1.0, %v11350_v51  ;;  %v11352_v48 = vpop.eup %11351 }
 0x6b9   : > { %10726 = vmatprep.mubr.msk.f32.mxu1 %vm7602_vm6, %v7946_v42  ;;  %v7947_v41 = vcombine.low %v7918_v55, %v7919_v26  ;;  %v11354_v24 = vpop.eup %11353  ;;  %v7874_v36 = vadd.f32 1.0, %v11352_v48 }
 0x6ba   : > { %11357 = vrcp.f32 %v7873_v60  ;;  %v7875_v22 = vadd.f32 1.0, %v11354_v24  ;;  %v11356_v6 = vpop.eup %11355 }
 0x6bb   : > { %10727 = vmatmul.mubr.msk.f32.gmra.mrb[72].mxu1 %vm7602_vm6, %v7947_v41  ;;  %11359 = vrcp.f32 %v7874_v36  ;;  %v7920_v11 = vmul.f32 %v11356_v6, %v15529_v23  ;;  %v16730_v23 = vld [vmem:[#allocation76_spill] sm:$0xff] }
 0x6bc   : > { %11361 = vrcp.f32 %v7875_v22 }
 0x6c4   : > { %v11358_v45 = vpop.eup %11357 }
 0x6c5   : > { %v7921_v28 = vmul.f32 %v11358_v45, %v15537_v18  ;;  %v11360_v46 = vpop.eup %11359  ;;  %v16731_v18 = vmax.f32 %v16730_v23, 0.0 }
 0x6c6   : > { %v11362_v32 = vpop.eup %11361  ;;  %v7922_v47 = vmul.f32 %v11360_v46, %v15541_v40 }
 0x6c7   : > { %v7948_v61 = vcombine.low %v7920_v11, %v7921_v28  ;;  %v7923_v16 = vmul.f32 %v11362_v32, %v15545_v30  ;;  %v8104_v40 = vcombine.low %v16733_v50, %v16731_v18  ;;  %v16735_v30 = vld [vmem:[#allocation82_spill] sm:$0xff] }
 0x6c8   : > { %v16736_v21 = vmax.f32 %v16735_v30, 0.0 }
 0x6c9   : > { %10729 = vmatprep.mubr.msk.f32.mxu1 %vm7602_vm6, %v7948_v61  ;;  %v7949_v17 = vcombine.low %v7922_v47, %v7923_v16 }
 0x6ca   : > { %v8105_v62 = vcombine.low %v16738_v1, %v16736_v21 }
 0x6cb   : > { %10730 = vmatmul.mubr.msk.f32.gmra.mrb[74].mxu1 %vm7602_vm6, %v7949_v17 }
 0x6cc   : > { %10734 = vmatprep.mubr.msk.f32.mxu1 %vm5786_vm5, %v8102_v15 }
 0x6cf   : > { %10735 = vmatmul.mubr.msk.f32.vlgmr.msra.gmra.mrb[76].mxu1 %vm5786_vm5, %v16734_v13 }
 0x6d0   : > { %10737 = vmatprep.mubr.msk.f32.mxu1 %vm5786_vm5, %v8104_v40  ;;  %10747 = vmatpush3.msra.mxu1 %v8277_v43 }
 0x6d1   : > { %10799 = vmatprep.subr.bf16.mxu1 %v16746_v4 }
 0x6d3   : > { %10738 = vmatmul.mubr.msk.f32.gmra.mrb[78].mxu1 %vm5786_vm5, %v8105_v62 }
 0x6d4   : > { %10740 = vmatprep.mubr.msk.f32.mxu1 %vm5786_vm5, %v16740_v35 }
 0x6d7   : > { %10741 = vmatmul.mubr.msk.f32.gmra.mrb[80].mxu1 %vm5786_vm5, %v16741_v31 }
 0x6d8   : > { %10743 = vmatprep.mubr.msk.f32.mxu1 %vm5786_vm5, %v16742_v8 }
 0x6db   : > { %10744 = vmatmul.mubr.msk.f32.gmra.mrb[82].mxu1 %vm5786_vm5, %v16744_v37 }
 0x786   : > { %v10722_v2 = vpop.f32.mrb[68].mxu1 }
 0x787   : > { %v8032_v9 = vpop.f32.mrb[69].mxu1  ;;  %v8079_v56 = vmul.f32 %v10722_v2, %v9782_v49 }
 0x788   : > { %v8078_v5 = vmul.f32 %v9782_v49, %v8032_v9 }
 0x789   : > { %v8094_v33 = vadd.f32 %v9783_v38, %v8079_v56  ;;  %v8898_v56 = vld [vmem:[%s16749_s2 + $0x8] sm:$0xff] }
 0x78a   : > { %v10725_v29 = vpop.f32.mrb[70].mxu1  ;;  %v8093_v42 = vadd.f32 %v9783_v38, %v8078_v5 }
 0x78b   : > { %v8042_v20 = vpop.f32.mrb[71].mxu1  ;;  %v8081_v57 = vmul.f32 %v10725_v29, %v9782_v49 }
 0x78c   : > { %v8080_v55 = vmul.f32 %v9782_v49, %v8042_v20 }
 0x78d   : > { %v8096_v6 = vadd.f32 %v9783_v38, %v8081_v57  ;;  %v8526_v57 = vld [vmem:[%s16751_s0 + $0x8] sm:$0xff] }
 0x78e   : > { %v10728_v52 = vpop.f32.mrb[72].mxu1  ;;  %v8095_v46 = vadd.f32 %v9783_v38, %v8080_v55 }
 0x78f   : > { %v8052_v34 = vpop.f32.mrb[73].mxu1  ;;  %v8083_v45 = vmul.f32 %v10728_v52, %v9782_v49 }
 0x790   : > { %v8082_v32 = vmul.f32 %v9782_v49, %v8052_v34 }
 0x791   : > { %v8098_v23 = vadd.f32 %v9783_v38, %v8083_v45 }
 0x792   : > { %v8097_v50 = vadd.f32 %v9783_v38, %v8082_v32 }
 0x79e   : > { %v10731_v7 = vpop.f32.mrb[74].mxu1 }
 0x79f   : > { %v8062_v39 = vpop.f32.mrb[75].mxu1  ;;  %v8085_v18 = vmul.f32 %v10731_v7, %v9782_v49 }
 0x7a0   : > { %v8084_v40 = vmul.f32 %v9782_v49, %v8062_v39 }
 0x7a1   : > { %v8100_v37 = vadd.f32 %v9783_v38, %v8085_v18 }
 0x7a2   : > { %v10736_v19 = vpop.f32.mrb[76].mxu1  ;;  %v8099_v9 = vadd.f32 %v9783_v38, %v8084_v40  ;;  %v8899_v38 = vld [vmem:[%s16749_s2 + $0x10] sm:$0xff]  ;;  %v16771_v40 = vld [vmem:[#allocation27_spill] sm:$0xff] }
 0x7a3   : > { %v8239_v12 = vmul.f32 %v10736_v19, %v9792_v0  ;;  %v8192_v27 = vpop.f32.mrb[77].mxu1  ;;  %v8900_v19 = vld [vmem:[%s16749_s2 + $0x18] sm:$0xff] }
 0x7a4   : > { %v8238_v53 = vmul.f32 %v9792_v0, %v8192_v27 }
 0x7a5   : > { %v8254_v51 = vadd.f32 %v9793_v14, %v8239_v12  ;;  %v8525_v12 = vld [vmem:[%s16751_s0] sm:$0xff] }
 0x7a6   : > { %v8253_v26 = vadd.f32 %v9793_v14, %v8238_v53  ;;  %v10739_v60 = vpop.f32.mrb[78].mxu1  ;;  %v15628_v27 = vrot.slane %v8525_v12, %v16724_v3  ;;  %v16753_v53 = vld [vmem:[#allocation53_spill] sm:$0xff] }
 0x7a7   : > { %v8262_v48 = vadd.f32 %v8254_v51, %v8094_v33  ;;  %v8241_v41 = vmul.f32 %v10739_v60, %v9792_v0  ;;  %v8202_v24 = vpop.f32.mrb[79].mxu1  ;;  %v15631_v33 = vrot.slane %v8525_v12, %v16753_v53  ;;  %v15635_v51 = vld [vmem:[%s16751_s0 + $0x10] sm:$0xff] }
 0x7a8   : > { %v8261_v36 = vadd.f32 %v8253_v26, %v8093_v42  ;;  %v8240_v22 = vmul.f32 %v9792_v0, %v8202_v24  ;;  %16752 = vst [vmem:[#allocation69_spill] sm:$0xff] %v15628_v27  ;;  %v16754_v42 = vld [vmem:[#allocation94_spill] sm:$0xff]  ;;  %v16757_v26 = vld [vmem:[#allocation60_spill] sm:$0xff] }
 0x7a9   : > { %v8270_v11 = vmax.f32 %v8262_v48, 0.0  ;;  %v8256_v28 = vadd.f32 %v9793_v14, %v8241_v41  ;;  %v15639_v55 = vmul.f32 %v15628_v27, %v16754_v42  ;;  %v15644_v60 = vrot.slane %v8525_v12, %v16757_v26 }
 0x7aa   : > { %v8269_v61 = vmax.f32 %v8261_v36, 0.0  ;;  %v8255_v47 = vadd.f32 %v9793_v14, %v8240_v22  ;;  %v10742_v16 = vpop.f32.mrb[80].mxu1  ;;  %v15647_v48 = vrot.slane %v8526_v57, %v16753_v53  ;;  %v15650_v41 = vrot.slane %v8526_v57, %v16757_v26  ;;  %v16760_v36 = vld [vmem:[#allocation24_spill] sm:$0xff] }
 0x7ab   : > { %v8264_v17 = vadd.f32 %v8256_v28, %v8096_v6  ;;  %v8243_v59 = vmul.f32 %v10742_v16, %v9792_v0  ;;  %v8212_v54 = vpop.f32.mrb[81].mxu1  ;;  %16755 = vst [vmem:[#allocation39_spill] sm:$0xff] %v15639_v55  ;;  %v15654_v24 = vrot.slane %v15635_v51, %v16757_v26  ;;  %v15658_v22 = vrot.slane %v15635_v51, %v16760_v36  ;;  %v16765_v16 = vld [vmem:[#allocation25_spill] sm:$0xff] }
 0x7ac   : > { %v15606_v25 = vcombine.low %v8269_v61, %v8270_v11  ;;  %v8263_v10 = vadd.f32 %v8255_v47, %v8095_v46  ;;  %v8242_v15 = vmul.f32 %v9792_v0, %v8212_v54  ;;  %10748 = vmatprep.mubr.msk.f32.mxu1 %vm5786_vm5, %v8269_v61  ;;  %16758 = vst [vmem:[#allocation61_spill] sm:$0xff] %v15647_v48 }
 0x7ad   : > { %v8258_v44 = vadd.f32 %v9793_v14, %v8243_v59  ;;  %10749 = vmatmul.mubr.msk.f32.vlgmr.msra.gmra.mrb[84].mxu1 %vm5786_vm5, %v8270_v11  ;;  %v8272_v63 = vmax.f32 %v8264_v17, 0.0  ;;  %16759 = vst [vmem:[#allocation44_spill] sm:$0xff] %v15654_v24  ;;  %v8551_v45 = vmul.f32 %v15644_v60, %v16754_v42  ;;  %v15664_v11 = vrot.slane %v8525_v12, %v16760_v36  ;;  %v15686_v59 = vld [vmem:[%s16756_s11] ss:$0 sm:$0xff]  ;;  %s16811_s11 = sld [smem:[#allocation20_spill]] }
 0x7ae   : > { %16748 = vst [vmem:[#allocation22_spill] sm:$0xff] %v15606_v25  ;;  %v8271_v13 = vmax.f32 %v8263_v10, 0.0  ;;  %v8257_v30 = vadd.f32 %v9793_v14, %v8242_v15  ;;  %v10745_v21 = vpop.f32.mrb[82].mxu1  ;;  %v15668_v28 = vmul.f32 %v15647_v48, %v16754_v42  ;;  %v8639_v46 = vmul.f32 %v15650_v41, %v16754_v42  ;;  %v16767_v10 = vld [vmem:[#allocation26_spill] sm:$0xff] }
 0x7af   : > { %v8266_v1 = vadd.f32 %v8258_v44, %v8098_v23  ;;  %v8245_v62 = vmul.f32 %v10745_v21, %v9792_v0  ;;  %v8222_v35 = vpop.f32.mrb[83].mxu1  ;;  %16761 = vst [vmem:[#allocation67_spill] sm:$0xff] %v15664_v11  ;;  %v15673_v32 = vrot.slane %v8526_v57, %v16760_v36  ;;  %v15677_v61 = vmul.f32 %v15654_v24, %v16754_v42  ;;  %v16774_v21 = vld [vmem:[#allocation28_spill] sm:$0xff] }
 0x7b0   : > { %v8265_v31 = vadd.f32 %v8257_v30, %v8097_v50  ;;  %v8244_v8 = vmul.f32 %v9792_v0, %v8222_v35  ;;  %10751 = vmatprep.mubr.msk.f32.mxu1 %vm5786_vm5, %v8271_v13  ;;  %v8897_v0 = vld [vmem:[%s16749_s2] sm:$0xff]  ;;  %16762 = vst [vmem:[#allocation49_spill] sm:$0xff] %v15668_v28  ;;  %v8737_v47 = vmul.f32 %v15658_v22, %v16754_v42  ;;  %v15704_v50 = vld [vmem:[%s16751_s0 + $0x18] sm:$0x7] }
 0x7b1   : > { %v8274_v43 = vmax.f32 %v8266_v1, 0.0  ;;  %v8260_v2 = vadd.f32 %v9793_v14, %v8245_v62  ;;  %10752 = vmatmul.mubr.msk.f32.gmra.mrb[86].mxu1 %vm5786_vm5, %v8272_v63  ;;  %v10800_v5 = vpack.c.bf16 %v8898_v56, %v8897_v0  ;;  %16764 = vst [vmem:[#allocation64_spill] sm:$0xff] %v15677_v61  ;;  %v15683_v17 = vrot.slane %v15635_v51, %v16765_v16  ;;  %v15716_v62 = vld [vmem:[%s16763_s16] ss:$0 sm:$0xff]  ;;  %s16812_s16 = sld [smem:[#allocation21_spill]] }
 0x7b2   : > { %v8273_v29 = vmax.f32 %v8265_v31, 0.0  ;;  %v8259_v20 = vadd.f32 %v9793_v14, %v8244_v8  ;;  %v10803_v14 = vpack.c.bf16 %v8900_v19, %v8899_v38  ;;  %v15689_v54 = vrot.slane %v8525_v12, %v16765_v16 }
 0x7b3   : > { %v8268_v52 = vadd.f32 %v8260_v2, %v8100_v37  ;;  %10801 = vmatpush3.bf16.msra.mxu1 %v10800_v5  ;;  %v15692_v15 = vrot.slane %v8525_v12, %v16767_v10  ;;  %v15698_v18 = vmul.f32 %v15664_v11, %v16754_v42  ;;  %v15701_v44 = vrot.slane %v8526_v57, %v16767_v10 }
 0x7b4   : > { %v15612_v34 = vcombine.low %v8273_v29, %v8274_v43  ;;  %v8267_v49 = vadd.f32 %v8259_v20, %v8099_v9  ;;  %10754 = vmatprep.mubr.msk.f32.mxu1 %vm5786_vm5, %v8273_v29  ;;  %10802 = vmatprep.subr.bf16.mxu1 %v16746_v4  ;;  %v8541_v4 = vmul.f32 %v15631_v33, %v16754_v42 }
 0x7b5   : > { %10755 = vmatmul.mubr.msk.f32.gmra.mrb[88].mxu1 %vm5786_vm5, %v8274_v43  ;;  %v8276_v39 = vmax.f32 %v8268_v52, 0.0  ;;  %16766 = vst [vmem:[#allocation90_spill] sm:$0xff] %v15689_v54  ;;  %16768 = vst [vmem:[#allocation96_spill] sm:$0xff] %v15692_v15  ;;  %v15707_v13 = vrot.slane %v8525_v12, %v16771_v40  ;;  %v15710_v30 = vrot.slane %v8526_v57, %v16765_v16 }
 0x7b6   : > { %16750 = vst [vmem:[#allocation23_spill] sm:$0xff] %v15612_v34  ;;  %v8275_v7 = vmax.f32 %v8267_v49, 0.0  ;;  %v8544_v6 = vadd.f32 %v8541_v4, %v15639_v55  ;;  %16769 = vst [vmem:[#allocation91_spill] sm:$0xff] %v15698_v18  ;;  %v15713_v63 = vrot.slane %v8526_v57, %v16774_v21  ;;  %v15719_v35 = vrot.slane %v8526_v57, %v16771_v40 }
 0x7b7   : > { %10804 = vmatpush3.bf16.msra.mxu1 %v10803_v14  ;;  %16770 = vst [vmem:[#allocation29_spill] sm:$0xff] %v15701_v44  ;;  %16772 = vst [vmem:[#allocation36_spill] sm:$0xff] %v15707_v13  ;;  %v15723_v31 = vrot.slane %v15635_v51, %v16771_v40  ;;  %v8642_v8 = vadd.f32 %v8639_v46, %v15668_v28  ;;  %v8649_v37 = vmul.f32 %v15673_v32, %v16754_v42 }
 0x7b8   : > { %10757 = vmatprep.mubr.msk.f32.mxu1 %vm5786_vm5, %v8275_v7  ;;  %10771 = vmatprep.subr.mxu1 %v16715_v58  ;;  %v15694_v23 = vadd.f32 %v8551_v45, %v8544_v6  ;;  %16773 = vst [vmem:[#allocation37_spill] sm:$0xff] %v15710_v30  ;;  %16775 = vst [vmem:[#allocation35_spill] sm:$0xff] %v15713_v63  ;;  %v8740_v9 = vadd.f32 %v8737_v47, %v15677_v61 }
 0x7b9   : > { %10758 = vmatmul.mubr.msk.f32.gmra.mrb[90].mxu1 %vm5786_vm5, %v8276_v39  ;;  %16776 = vst [vmem:[#allocation56_spill] sm:$0xff] %v15719_v35  ;;  %v8747_v29 = vmul.f32 %v15683_v17, %v16754_v42  ;;  %v15734_v20 = vrot.slane %v15635_v51, %v16767_v10  ;;  %v15738_v52 = vrot.slane %v15635_v51, %v16774_v21 }
 0x7ba   : > { %10768 = vmatprep.mubr.msk.f32.mxu1 %vm11450_vm7, %v16715_v58  ;;  %v8564_v7 = vadd.f32 %v15698_v18, %v15694_v23  ;;  %v15745_v39 = vrot.slane %v15704_v50, %v16724_v3  ;;  %v15750_v56 = vmul.f32 %v15707_v13, %v16754_v42  ;;  %v15754_v38 = vmul.f32 %v15710_v30, %v16754_v42 }
 0x7bb   : > { %16777 = vst [vmem:[#allocation31_spill] sm:$0xff] %v15734_v20  ;;  %v15758_v5 = vmul.f32 %v15713_v63, %v16754_v42  ;;  %v8652_v14 = vadd.f32 %v8649_v37, %v8642_v8  ;;  %v15762_v36 = vrot.slane %v8525_v12, %v16774_v21  ;;  %v15765_v6 = vrot.slane %v8526_v57, %v16724_v3 }
 0x7bc   : > { %16778 = vst [vmem:[#allocation48_spill] sm:$0xff] %v15745_v39  ;;  %16779 = vst [vmem:[#allocation38_spill] sm:$0xff] %v15754_v38  ;;  %v8750_v46 = vadd.f32 %v8747_v29, %v8740_v9  ;;  %v15769_v47 = vmul.f32 %v15734_v20, %v16754_v42  ;;  %v15778_v12 = vrot.slane %v15635_v51, %v16724_v3 }
 0x7bd   : > { %v8662_v29 = vadd.f32 %v15754_v38, %v8652_v14 }
 0x7be   : > { %16780 = vst [vmem:[#allocation47_spill] sm:$0xff] %v15769_v47 }
 0x880   : > { %v10750_v1 = vpop.f32.mrb[84].mxu1 }
 0x881   : > { %v8415_v43 = vmul.f32 %v10750_v1, %v15686_v59  ;;  %v8368_v2 = vpop.f32.mrb[85].mxu1  ;;  %v15774_v1 = vmul.f32 %v15745_v39, %v16754_v42  ;;  %v15789_v42 = vrot.slane %v15704_v50, %v16753_v53 }
 0x882   : > { %v8414_v49 = vmul.f32 %v15686_v59, %v8368_v2 }
 0x883   : > { %v8430_v0 = vadd.f32 %v15716_v62, %v8415_v43  ;;  %v15784_v43 = vrot.slane %v15635_v51, %v16753_v53  ;;  %16781 = vst [vmem:[#allocation34_spill] sm:$0xff] %v15789_v42 }
 0x884   : > { %v8429_v19 = vadd.f32 %v15716_v62, %v8414_v49  ;;  %v10753_v4 = vpop.f32.mrb[86].mxu1 }
 0x885   : > { %v8438_v45 = vmax.f32 %v8430_v0, 0.0  ;;  %v8417_v16 = vmul.f32 %v10753_v4, %v15686_v59  ;;  %v8378_v10 = vpop.f32.mrb[87].mxu1  ;;  %v8760_v4 = vadd.f32 %v15769_v47, %v8750_v46 }
 0x886   : > { %v8437_v40 = vmax.f32 %v8429_v19, 0.0  ;;  %v8416_v57 = vmul.f32 %v15686_v59, %v8378_v10 }
 0x887   : > { %v8454_v21 = vcombine.high %v8438_v45, %v8438_v45  ;;  %v8463_v8 = vrot.slane %v8438_v45, 7  ;;  %v8432_v37 = vadd.f32 %v15716_v62, %v8417_v16 }
 0x888   : > { %v8453_v2 = vcombine.high %v8437_v40, %v8437_v40  ;;  %v8461_v9 = vrot.slane %v8437_v40, 7  ;;  %v10756_v49 = vpop.f32.mrb[88].mxu1  ;;  %v8431_v34 = vadd.f32 %v15716_v62, %v8416_v57 }
 0x889   : > { %v8464_v0 = vrot.slane %v8454_v21, 7  ;;  %v8495_v19 = vsel %vm3286_vm2, 0.0, %v8463_v8  ;;  %v8440_v45 = vmax.f32 %v8432_v37, 0.0  ;;  %v15793_v16 = vpop.f32.mrb[89].mxu1 }
 0x88a   : > { %v8511_v51 = vsel %vm4702_vm4, %v8495_v19, 0.0  ;;  %v8462_v10 = vrot.slane %v8453_v2, 7  ;;  %v8493_v40 = vsel %vm3286_vm2, 0.0, %v8461_v9 }
 0x88b   : > { %v8496_v25 = vsel %vm3286_vm2, 0.0, %v8464_v0  ;;  %v8573_v53 = vmul.f32 %v15689_v54, %v8511_v51  ;;  %v8671_v21 = vmul.f32 %v15701_v44, %v8511_v51  ;;  %v8769_v8 = vmul.f32 %v15723_v31, %v8511_v51 }
 0x88c   : > { %v8512_v3 = vsel %vm4702_vm4, %v8496_v25, 0.0  ;;  %v8494_v37 = vsel %vm3286_vm2, 0.0, %v8462_v10  ;;  %v8509_v58 = vsel %vm4702_vm4, %v8493_v40, 0.0  ;;  %v8456_v19 = vcombine.high %v8440_v45, %v8440_v45  ;;  %v10759_v2 = vpop.f32.mrb[90].mxu1 }
 0x88d   : > { %v8585_v9 = vmul.f32 %v15692_v15, %v8512_v3  ;;  %v8683_v57 = vmul.f32 %v15719_v35, %v8512_v3  ;;  %v8781_v0 = vmul.f32 %v15738_v52, %v8512_v3  ;;  %v8510_v39 = vsel %vm4702_vm4, %v8494_v37, 0.0  ;;  %v8398_v63 = vpop.f32.mrb[91].mxu1 }
 0x88e   : > { %v8562_v13 = vmul.f32 %v15664_v11, %v8510_v39  ;;  %v8572_v51 = vmul.f32 %v15689_v54, %v8509_v58  ;;  %v8584_v25 = vmul.f32 %v15692_v15, %v8510_v39  ;;  %v8660_v10 = vmul.f32 %v15710_v30, %v8510_v39 }
 0x88f   : > { %v8670_v40 = vmul.f32 %v15701_v44, %v8509_v58  ;;  %v8682_v47 = vmul.f32 %v15719_v35, %v8510_v39  ;;  %v8758_v38 = vmul.f32 %v15734_v20, %v8510_v39  ;;  %v8768_v61 = vmul.f32 %v15723_v31, %v8509_v58 }
 0x890   : > { %v8565_v3 = vadd.f32 %v8562_v13, %v15694_v23  ;;  %v8576_v37 = vadd.f32 %v8572_v51, %v8564_v7  ;;  %v8663_v24 = vadd.f32 %v8660_v10, %v8652_v14  ;;  %v8780_v18 = vmul.f32 %v15738_v52, %v8510_v39 }
 0x891   : > { %v8674_v11 = vadd.f32 %v8670_v40, %v8662_v29  ;;  %v8761_v28 = vadd.f32 %v8758_v38, %v8750_v46  ;;  %v8772_v48 = vadd.f32 %v8768_v61, %v8760_v4  ;;  %v8467_v15 = vrot.slane %v8440_v45, 7 }
 0x892   : > { %v8577_v54 = vadd.f32 %v8573_v53, %v8565_v3  ;;  %v8588_v30 = vadd.f32 %v8584_v25, %v8576_v37  ;;  %v8675_v55 = vadd.f32 %v8671_v21, %v8663_v24  ;;  %v8468_v44 = vrot.slane %v8456_v19, 7 }
 0x893   : > { %v8686_v27 = vadd.f32 %v8682_v47, %v8674_v11  ;;  %v8773_v35 = vadd.f32 %v8769_v8, %v8761_v28  ;;  %v8784_v42 = vadd.f32 %v8780_v18, %v8772_v48  ;;  %v8499_v20 = vsel %vm3286_vm2, 0.0, %v8467_v15 }
 0x894   : > { %v15820_v58 = vadd.f32 %v8585_v9, %v8577_v54  ;;  %v15822_v23 = vadd.f32 %v8683_v57, %v8675_v55  ;;  %v8500_v13 = vsel %vm3286_vm2, 0.0, %v8468_v44  ;;  %v15827_v7 = vrot.slane %v15704_v50, %v16757_v26 }
 0x895   : > { %v15829_v61 = vadd.f32 %v8781_v0, %v8773_v35  ;;  %v8515_v24 = vsel %vm4702_vm4, %v8499_v20, 0.0  ;;  %v8439_v39 = vmax.f32 %v8431_v34, 0.0  ;;  %v8419_v11 = vmul.f32 %v10756_v49, %v15686_v59  ;;  %v16782_v49 = vld [vmem:[#allocation34_spill] sm:$0xff] }
 0x896   : > { %v8599_v48 = vadd.f32 %v15750_v56, %v8588_v30  ;;  %v8697_v28 = vadd.f32 %v15758_v5, %v8686_v27  ;;  %v8795_v55 = vadd.f32 %v15774_v1, %v8784_v42  ;;  %v15837_v54 = vsel %vm4702_vm4, %v8500_v13, 0.0 }
 0x897   : > { %v8543_v15 = vmul.f32 %v15631_v33, %v8515_v24  ;;  %v15842_v26 = vmul.f32 %v15644_v60, %v15837_v54  ;;  %v15845_v18 = vmul.f32 %v15762_v36, %v8515_v24  ;;  %v15848_v34 = vmul.f32 %v15650_v41, %v8515_v24 }
 0x898   : > { %v15852_v27 = vmul.f32 %v15765_v6, %v15837_v54  ;;  %v15856_v44 = vmul.f32 %v15673_v32, %v15837_v54  ;;  %v15859_v50 = vmul.f32 %v15778_v12, %v8515_v24  ;;  %v15863_v30 = vmul.f32 %v15784_v43, %v15837_v54 }
 0x899   : > { %v15866_v35 = vmul.f32 %v15658_v22, %v8515_v24  ;;  %v8455_v20 = vcombine.high %v8439_v39, %v8439_v39  ;;  %v8465_v38 = vrot.slane %v8439_v39, 7  ;;  %v8434_v14 = vadd.f32 %v15716_v62, %v8419_v11 }
 0x89a   : > { %v15871_v46 = vmul.f32 %v15683_v17, %v15837_v54  ;;  %v8418_v47 = vmul.f32 %v15686_v59, %v15793_v16  ;;  %v8421_v29 = vmul.f32 %v10759_v2, %v15686_v59  ;;  %v8420_v42 = vmul.f32 %v15686_v59, %v8398_v63 }
 0x89b   : > { %v15878_v4 = vmul.f32 %v16782_v49, %v8515_v24  ;;  %v8466_v45 = vrot.slane %v8455_v20, 7  ;;  %v8497_v53 = vsel %vm3286_vm2, 0.0, %v8465_v38  ;;  %v8442_v21 = vmax.f32 %v8434_v14, 0.0  ;;  %v16784_v38 = vld [vmem:[#allocation39_spill] sm:$0xff] }
 0x89c   : > { %v8513_v8 = vsel %vm4702_vm4, %v8497_v53, 0.0  ;;  %v8433_v19 = vadd.f32 %v15716_v62, %v8418_v47  ;;  %v15884_v9 = vadd.f32 %v15716_v62, %v8421_v29  ;;  %v15887_v16 = vadd.f32 %v15716_v62, %v8420_v42 }
 0x89d   : > { %v8498_v2 = vsel %vm3286_vm2, 0.0, %v8466_v45  ;;  %v8542_v59 = vmul.f32 %v15631_v33, %v8513_v8  ;;  %v8607_v63 = vmul.f32 %v15762_v36, %v8513_v8  ;;  %v8640_v57 = vmul.f32 %v15650_v41, %v8513_v8 }
 0x89e   : > { %v15894_v0 = vsel %vm4702_vm4, %v8498_v2, 0.0  ;;  %v8705_v51 = vmul.f32 %v15778_v12, %v8513_v8  ;;  %v8738_v25 = vmul.f32 %v15658_v22, %v8513_v8  ;;  %v8803_v10 = vmul.f32 %v16782_v49, %v8513_v8  ;;  %v16783_v22 = vld [vmem:[#allocation69_spill] sm:$0xff]  ;;  %v16785_v2 = vld [vmem:[#allocation90_spill] sm:$0xff] }
 0x89f   : > { %v8611_v40 = vadd.f32 %v8607_v63, %v8599_v48  ;;  %v8619_v62 = vmul.f32 %v15765_v6, %v15894_v0  ;;  %v8717_v33 = vmul.f32 %v15784_v43, %v15894_v0  ;;  %v8815_v3 = vmul.f32 %v15827_v7, %v15894_v0 }
 0x8a0   : > { %v8709_v41 = vadd.f32 %v8705_v51, %v8697_v28  ;;  %v8807_v37 = vadd.f32 %v8803_v10, %v8795_v55  ;;  %v8458_v13 = vcombine.high %v8442_v21, %v8442_v21  ;;  %v8471_v24 = vrot.slane %v8442_v21, 7  ;;  %v16786_v51 = vld [vmem:[#allocation29_spill] sm:$0xff] }
 0x8a1   : > { %v8623_v39 = vadd.f32 %v8619_v62, %v8611_v40  ;;  %v8441_v11 = vmax.f32 %v8433_v19, 0.0  ;;  %v8534_v20 = vmul.f32 %v16783_v22, %v15894_v0  ;;  %v8545_v48 = vadd.f32 %v8542_v59, %v16784_v38 }
 0x8a2   : > { %v8721_v14 = vadd.f32 %v8717_v33, %v8709_v41  ;;  %v15908_v47 = vadd.f32 %v8815_v3, %v8807_v37  ;;  %v8472_v29 = vrot.slane %v8458_v13, 7  ;;  %v8503_v42 = vsel %vm3286_vm2, 0.0, %v8471_v24  ;;  %v16787_v3 = vld [vmem:[#allocation96_spill] sm:$0xff] }
 0x8a3   : > { %v8519_v45 = vsel %vm4702_vm4, %v8503_v42, 0.0  ;;  %v8457_v53 = vcombine.high %v8441_v11, %v8441_v11  ;;  %v8469_v28 = vrot.slane %v8441_v11, 7  ;;  %v8546_v55 = vadd.f32 %v8543_v15, %v8534_v20  ;;  %v16788_v37 = vld [vmem:[#allocation56_spill] sm:$0xff]  ;;  %v16790_v42 = vld [vmem:[#allocation49_spill] sm:$0xff] }
 0x8a4   : > { %v8827_v8 = vrot.slane %v8721_v14, 1  ;;  %v8504_v19 = vsel %vm3286_vm2, 0.0, %v8472_v29  ;;  %v8575_v63 = vmul.f32 %v16785_v2, %v8519_v45  ;;  %v8673_v10 = vmul.f32 %v16786_v51, %v8519_v45  ;;  %v16789_v14 = vld [vmem:[#allocation61_spill] sm:$0xff] }
 0x8a5   : > { %v8520_v59 = vsel %vm4702_vm4, %v8504_v19, 0.0  ;;  %v8771_v40 = vmul.f32 %v15723_v31, %v8519_v45  ;;  %v8470_v62 = vrot.slane %v8457_v53, 7  ;;  %v8501_v24 = vsel %vm3286_vm2, 0.0, %v8469_v28 }
 0x8a6   : > { %v15918_v33 = vadd.f32 %v8827_v8, %v8623_v39  ;;  %v8587_v41 = vmul.f32 %v16787_v3, %v8520_v59  ;;  %v15922_v15 = vmul.f32 %v16788_v37, %v8520_v59  ;;  %v15925_v13 = vmul.f32 %v15738_v52, %v8520_v59  ;;  %v16791_v8 = vld [vmem:[#allocation67_spill] sm:$0xff] }
 0x8a7   : > { %v8502_v11 = vsel %vm3286_vm2, 0.0, %v8470_v62  ;;  %v8552_v22 = vmul.f32 %v15644_v60, %v15894_v0  ;;  %v8556_v20 = vadd.f32 %v15842_v26, %v8546_v55  ;;  %v8517_v39 = vsel %vm4702_vm4, %v8501_v24, 0.0  ;;  %v16792_v55 = vld [vmem:[#allocation37_spill] sm:$0xff] }
 0x8a8   : > { %v8518_v38 = vsel %vm4702_vm4, %v8502_v11, 0.0  ;;  %v8632_v29 = vmul.f32 %v16789_v14, %v15894_v0  ;;  %v8643_v45 = vadd.f32 %v8640_v57, %v16790_v42  ;;  %v8574_v28 = vmul.f32 %v16785_v2, %v8517_v39  ;;  %v16793_v11 = vld [vmem:[#allocation91_spill] sm:$0xff]  ;;  %v16795_v42 = vld [vmem:[#allocation64_spill] sm:$0xff] }
 0x8a9   : > { %v8555_v53 = vadd.f32 %v8552_v22, %v8545_v48  ;;  %v8563_v19 = vmul.f32 %v16791_v8, %v8518_v38  ;;  %v8586_v59 = vmul.f32 %v16787_v3, %v8518_v38  ;;  %v8650_v26 = vmul.f32 %v15673_v32, %v15894_v0  ;;  %v16794_v48 = vld [vmem:[#allocation44_spill] sm:$0xff] }
 0x8aa   : > { %v8644_v60 = vadd.f32 %v15848_v34, %v8632_v29  ;;  %v8661_v62 = vmul.f32 %v16792_v55, %v8518_v38  ;;  %v8672_v24 = vmul.f32 %v16786_v51, %v8517_v39  ;;  %v8684_v57 = vmul.f32 %v16788_v37, %v8518_v38  ;;  %v16796_v55 = vld [vmem:[#allocation31_spill] sm:$0xff] }
 0x8ab   : > { %v8566_v14 = vadd.f32 %v16793_v11, %v8555_v53  ;;  %v8567_v21 = vadd.f32 %v8563_v19, %v8556_v20  ;;  %v8730_v22 = vmul.f32 %v16794_v48, %v15894_v0  ;;  %v8653_v2 = vadd.f32 %v8650_v26, %v8643_v45  ;;  %v16797_v20 = vld [vmem:[#allocation38_spill] sm:$0xff] }
 0x8ac   : > { %v8654_v3 = vadd.f32 %v15856_v44, %v8644_v60  ;;  %v8741_v34 = vadd.f32 %v8738_v25, %v16795_v42  ;;  %v8748_v32 = vmul.f32 %v15683_v17, %v15894_v0  ;;  %v8759_v53 = vmul.f32 %v16796_v55, %v8518_v38 }
 0x8ad   : > { %v8578_v29 = vadd.f32 %v8574_v28, %v8566_v14  ;;  %v8579_v8 = vadd.f32 %v8575_v63, %v8567_v21  ;;  %v8742_v51 = vadd.f32 %v15866_v35, %v8730_v22  ;;  %v8664_v19 = vadd.f32 %v16797_v20, %v8653_v2  ;;  %v16798_v21 = vld [vmem:[#allocation47_spill] sm:$0xff]  ;;  %v16799_v20 = vld [vmem:[#allocation36_spill] sm:$0xff] }
 0x8ae   : > { %v8665_v37 = vadd.f32 %v8661_v62, %v8654_v3  ;;  %v8751_v11 = vadd.f32 %v8748_v32, %v8741_v34  ;;  %v8770_v48 = vmul.f32 %v15723_v31, %v8517_v39  ;;  %v8782_v25 = vmul.f32 %v15738_v52, %v8518_v38 }
 0x8af   : > { %v8590_v45 = vadd.f32 %v8586_v59, %v8578_v29  ;;  %v8752_v44 = vadd.f32 %v15871_v46, %v8742_v51  ;;  %v8444_v60 = vmax.f32 %v15884_v9, 0.0  ;;  %v8676_v17 = vadd.f32 %v8672_v24, %v8664_v19 }
 0x8b0   : > { %v8677_v28 = vadd.f32 %v8673_v10, %v8665_v37  ;;  %v8762_v63 = vadd.f32 %v16798_v21, %v8751_v11  ;;  %v8443_v35 = vmax.f32 %v15887_v16, 0.0  ;;  %v8591_v62 = vadd.f32 %v8587_v41, %v8579_v8 }
 0x8b1   : > { %v8763_v26 = vadd.f32 %v8759_v53, %v8752_v44  ;;  %v8460_v14 = vcombine.high %v8444_v60, %v8444_v60  ;;  %v8475_v22 = vrot.slane %v8444_v60, 7  ;;  %v8688_v2 = vadd.f32 %v8684_v57, %v8676_v17 }
 0x8b2   : > { %v8774_v3 = vadd.f32 %v8770_v48, %v8762_v63  ;;  %v8459_v31 = vcombine.high %v8443_v35, %v8443_v35  ;;  %v8473_v39 = vrot.slane %v8443_v35, 7  ;;  %v8601_v9 = vadd.f32 %v15750_v56, %v8590_v45  ;;  %v16800_v48 = vld [vmem:[#allocation35_spill] sm:$0xff]  ;;  %v16801_v63 = vld [vmem:[#allocation48_spill] sm:$0xff] }
 0x8b3   : > { %v8775_v59 = vadd.f32 %v8771_v40, %v8763_v26  ;;  %v8476_v46 = vrot.slane %v8460_v14, 7  ;;  %v8507_v52 = vsel %vm3286_vm2, 0.0, %v8475_v22  ;;  %v8689_v29 = vadd.f32 %v15922_v15, %v8677_v28 }
 0x8b4   : > { %v8786_v38 = vadd.f32 %v8782_v25, %v8774_v3  ;;  %v8523_v10 = vsel %vm4702_vm4, %v8507_v52, 0.0  ;;  %v8474_v24 = vrot.slane %v8459_v31, 7  ;;  %v8505_v16 = vsel %vm3286_vm2, 0.0, %v8473_v39 }
 0x8b5   : > { %v8508_v42 = vsel %vm3286_vm2, 0.0, %v8476_v46  ;;  %v8610_v41 = vmul.f32 %v15762_v36, %v8523_v10  ;;  %v8708_v57 = vmul.f32 %v15778_v12, %v8523_v10  ;;  %v8806_v34 = vmul.f32 %v16782_v49, %v8523_v10 }
 0x8b6   : > { %v8524_v40 = vsel %vm4702_vm4, %v8508_v42, 0.0  ;;  %v8506_v32 = vsel %vm3286_vm2, 0.0, %v8474_v24  ;;  %v8521_v56 = vsel %vm4702_vm4, %v8505_v16, 0.0  ;;  %v8699_v44 = vadd.f32 %v15758_v5, %v8688_v2 }
 0x8b7   : > { %v8622_v8 = vmul.f32 %v15765_v6, %v8524_v40  ;;  %v8720_v51 = vmul.f32 %v15784_v43, %v8524_v40  ;;  %v8818_v55 = vmul.f32 %v15827_v7, %v8524_v40  ;;  %v8522_v53 = vsel %vm4702_vm4, %v8506_v32, 0.0 }
 0x8b8   : > { %v8598_v19 = vmul.f32 %v16799_v20, %v8522_v53  ;;  %v8609_v37 = vmul.f32 %v15762_v36, %v8521_v56  ;;  %v8621_v11 = vmul.f32 %v15765_v6, %v8522_v53  ;;  %v8696_v45 = vmul.f32 %v16800_v48, %v8522_v53 }
 0x8b9   : > { %v8707_v15 = vmul.f32 %v15778_v12, %v8521_v56  ;;  %v8719_v25 = vmul.f32 %v15784_v43, %v8522_v53  ;;  %v8787_v60 = vadd.f32 %v15925_v13, %v8775_v59  ;;  %v8794_v35 = vmul.f32 %v16801_v63, %v8522_v53 }
 0x8ba   : > { %v8602_v17 = vadd.f32 %v8598_v19, %v8591_v62  ;;  %v8613_v28 = vadd.f32 %v8609_v37, %v8601_v9  ;;  %v8700_v21 = vadd.f32 %v8696_v45, %v8689_v29  ;;  %v8797_v36 = vadd.f32 %v15774_v1, %v8786_v38 }
 0x8bb   : > { %v8711_v26 = vadd.f32 %v8707_v15, %v8699_v44  ;;  %v8805_v6 = vmul.f32 %v16782_v49, %v8521_v56  ;;  %v8817_v14 = vmul.f32 %v15827_v7, %v8522_v53  ;;  %v8798_v12 = vadd.f32 %v8794_v35, %v8787_v60 }
 0x8bc   : > { %v8614_v22 = vadd.f32 %v8610_v41, %v8602_v17  ;;  %v8625_v5 = vadd.f32 %v8621_v11, %v8613_v28  ;;  %v8712_v2 = vadd.f32 %v8708_v57, %v8700_v21  ;;  %v8597_v13 = vmul.f32 %v16799_v20, %v15894_v0  ;;  %v9805_v20 = vld [vmem:[%s16804_s22] ss:$0 sm:$0xff] }
 0x8bd   : > { %v8723_v3 = vadd.f32 %v8719_v25, %v8711_v26  ;;  %v8809_v43 = vadd.f32 %v8805_v6, %v8797_v36  ;;  %v8695_v62 = vmul.f32 %v16800_v48, %v15894_v0  ;;  %v8810_v59 = vadd.f32 %v8806_v34, %v8798_v12  ;;  %v8976_v36 = vld [vmem:[%s16805_s23] sm:$0xff] }
 0x8be   : > { %v8626_v31 = vadd.f32 %v8622_v8, %v8614_v22  ;;  %v8724_v39 = vadd.f32 %v8720_v51, %v8712_v2  ;;  %v8793_v1 = vmul.f32 %v16801_v63, %v15894_v0  ;;  %v8600_v52 = vadd.f32 %v8597_v13, %v15820_v58  ;;  %v8901_v6 = vld [vmem:[%s16806_s26] sm:$0x1] }
 0x8bf   : > { %v8821_v49 = vadd.f32 %v8817_v14, %v8809_v43  ;;  %v8829_v46 = vrot.slane %v8723_v3, 1  ;;  %v8698_v9 = vadd.f32 %v8695_v62, %v15822_v23  ;;  %v8822_v38 = vadd.f32 %v8818_v55, %v8810_v59  ;;  %v9096_v12 = vld [vmem:[%s16807_s28] sm:$0xff]  ;;  %v9097_v3 = vld [vmem:[%s16807_s28 + $0x8] sm:$0xff]  ;;  %v9098_v43 = vld [vmem:[%s16807_s28 + $0x10] sm:$0xff] }
 0x8c0   : > { %v8830_v10 = vrot.slane %v8724_v39, 1  ;;  %v8796_v24 = vadd.f32 %v8793_v1, %v15829_v61  ;;  %v16803_v16 = vrot.slane %v15908_v47, 2  ;;  %v8612_v34 = vadd.f32 %v15845_v18, %v8600_v52  ;;  %v9099_v62 = vld [vmem:[%s16807_s28 + $0x18] sm:$0xff]  ;;  %v9203_v39 = vld [vmem:[%s11629_s12] sm:$0xff] }
 0x8c1   : > { %v8837_v41 = vadd.f32 %v8829_v46, %v8625_v5  ;;  %v8845_v57 = vrot.slane %v8821_v49, 2  ;;  %v8710_v0 = vadd.f32 %v15859_v50, %v8698_v9  ;;  %v8816_v58 = vmul.f32 %v15827_v7, %v15837_v54  ;;  %v8977_v59 = vld [vmem:[%s16809_s1] sm:$0x1] }
 0x8c2   : > { %v8851_v42 = vadd.f32 %v16803_v16, %v15918_v33  ;;  %v8846_v23 = vrot.slane %v8822_v38, 2  ;;  %v8808_v40 = vadd.f32 %v15878_v4, %v8796_v24  ;;  %v8838_v32 = vadd.f32 %v8830_v10, %v8626_v31  ;;  %v9804_v33 = vld [vmem:[%s16802_s18] ss:$0 sm:$0xff]  ;;  %v16810_v24 = vld [vmem:[#allocation55_spill] sm:$0xff]  ;;  %s9824_s18 = sshll.u32 %s16816_s10, 4 }
 0x8c3   : > { %v8853_v56 = vadd.f32 %v8845_v57, %v8837_v41  ;;  %v8624_v61 = vadd.f32 %v15852_v27, %v8612_v34  ;;  %v8722_v47 = vadd.f32 %v15863_v30, %v8710_v0  ;;  %v16808_v26 = vmov 0.0   ;;  %s1126_s22 = scalar_lea.vmem %s11644_s4, %s9824_s18 }
 0x8c4   : > { %v8820_v29 = vadd.f32 %v8816_v58, %v8808_v40  ;;  %v8854_v8 = vadd.f32 %v8846_v23, %v8838_v32  ;;  %v8862_v54 = vmul.f32 %v9804_v33, %v8851_v42  ;;  %v10805_v13 = vpack.c.bf16 %v9097_v3, %v9096_v12 }
 0x8c5   : > { %v8864_v51 = vmul.f32 %v9804_v33, %v8853_v56  ;;  %v8828_v18 = vrot.slane %v8722_v47, 1  ;;  %v10809_v31 = vpack.c.bf16 %v9099_v62, %v9098_v43 }
 0x8c6   : > { %v8865_v55 = vmul.f32 %v9804_v33, %v8854_v8  ;;  %v8844_v53 = vrot.slane %v8820_v29, 2  ;;  %v8873_v48 = vadd.f32 %v9805_v20, %v8862_v54 }
 0x8c7   : > { %v8836_v50 = vadd.f32 %v8828_v18, %v8624_v61  ;;  %v8875_v37 = vadd.f32 %v9805_v20, %v8864_v51 }
 0x8c8   : > { %v8876_v19 = vadd.f32 %v9805_v20, %v8865_v55 }
 0x8c9   : > { %v8852_v7 = vadd.f32 %v8844_v53, %v8836_v50 }
 0x8ca   : > { %v8882_v11 = vcombine.low %v8875_v37, %v8876_v19 }
 0x8cb   : > { %v8863_v4 = vmul.f32 %v9804_v33, %v8852_v7 }
 0x8cc   : > { %v8887_v45 = vsel %vm8885_vm10, %v8882_v11, 0.0 }
 0x8cd   : > { %v8874_v27 = vadd.f32 %v9805_v20, %v8863_v4 }
 0x8cf   : > { %v8881_v30 = vcombine.low %v8873_v48, %v8874_v27 }
 0x8d1   : > { %v8886_v44 = vsel %vm8885_vm10, %v8881_v30, 0.0 }
 0x8d2   : > { %v8888_v15 = vadd.f32 %v8887_v45, %v8886_v44  ;;  %v9815_v45 = vld [vmem:[%s16811_s11] ss:$0 sm:$0xff] }
 0x8d4   : > { %v8889_v25 = vrot.slane %v8888_v15, 4 }
 0x8d6   : > { %v8890_v60 = vadd.f32 %v8889_v25, %v8888_v15  ;;  %v9819_v15 = vld [vmem:[%s11634_s20] ss:$0 sm:$0xff] }
 0x8d8   : > { %v8891_v17 = vrot.slane %v8890_v60, 2 }
 0x8da   : > { %v8892_v28 = vadd.f32 %v8891_v17, %v8890_v60  ;;  %v9816_v60 = vld [vmem:[%s16812_s16] ss:$0 sm:$0xff] }
 0x8dc   : > { %v8893_v21 = vrot.slane %v8892_v28, 1 }
 0x8de   : > { %v8894_v63 = vadd.f32 %v8893_v21, %v8892_v28  ;;  %v9820_v21 = vld [vmem:[%s11639_s27] ss:$0 sm:$0xff] }
 0x8e0   : > { %v8896_v35 = vmul.f32 0.0625, %v8894_v63 }
 0x8e2   : > { %10769 = vmatmul.mubr.msk.f32.vlgmr.msra.gmra.mrb[92].mxu1 %vm8885_vm10, %v8896_v35 }
 0x8e3   : > { %10773 = vmatprep.mubr.msk.f32.mxu1 %vm11450_vm7, %v16808_v26  ;;  %10772 = vmatpush3.msra.mxu1 %v8976_v36 }
 0x8e4   : > { %10806 = vmatprep.subr.bf16.mxu1 %v10805_v13 }
 0x9b5   : > { %v8971_v14 = vpop.f32.mrb[92].mxu1 }
 0x9b6   : > { %v8972_v22 = vadd.f32 %v8971_v14, %v8901_v6  ;;  %v10770_v5 = vpop.f32.mrb[93].mxu1 }
 0x9b8   : > { %v8975_v2 = vmax.f32 %v8972_v22, 0.0 }
 0x9ba   : > { %10774 = vmatmul.mubr.msk.f32.vlgmr.msra.gmra.mrb[94].mxu1 %vm5786_vm5, %v8975_v2 }
 0x9bb   : > { %10808 = vmatpush3.bf16.msra.mxu1 %v10805_v13 }
 0x9bc   : > { %10810 = vmatprep.subr.bf16.mxu1 %v10809_v31 }
 0x9bf   : > { %10812 = vmatpush3.bf16.msra.mxu1 %v10809_v31 }
 0x9c0   : > { %10787 = vmatprep.subr.mxu1 %v9203_v39 }
 0xa8d   : > { %v9047_v1 = vpop.f32.mrb[94].mxu1 }
 0xa8e   : > { %v9048_v49 = vadd.f32 %v9047_v1, %v8977_v59  ;;  %v10775_v46 = vpop.f32.mrb[95].mxu1 }
 0xa90   : > { %v9808_v52 = vmul.f32 -1.442695, %v9048_v49 }
 0xa92   : > { %11363 = vpow2.f32 %v9808_v52 }
 0xa9c   : > { %v11364_v9 = vpop.eup %11363 }
 0xa9d   : > { %v9054_v38 = vadd.f32 1.0, %v11364_v9 }
 0xa9f   : > { %11365 = vrcp.f32 %v9054_v38 }
 0xaa9   : > { %v11366_v10 = vpop.eup %11365 }
 0xaaa   : > { %v9060_v16 = vrot.slane %v11366_v10, %v16810_v24 }
 0xaac   : > { %v9062_v42 = vcombine.high %v9060_v16, %v9060_v16  ;;  %v9064_v41 = vmul.f32 %v9060_v16, %v8873_v48  ;;  %v9066_v57 = vmul.f32 %v9060_v16, %v8875_v37  ;;  %v16813_v48 = vld [vmem:[#allocation22_spill] sm:$0xff] }
 0xaae   : > { %v9065_v34 = vmul.f32 %v9062_v42, %v8874_v27  ;;  %v9067_v0 = vmul.f32 %v9062_v42, %v8876_v19  ;;  %v9809_v58 = vmul.f32 -1.442695, %v9064_v41  ;;  %v9811_v23 = vmul.f32 -1.442695, %v9066_v57  ;;  %v16814_v27 = vld [vmem:[#allocation23_spill] sm:$0xff] }
 0xab0   : > { %11367 = vpow2.f32 %v9809_v58  ;;  %v9810_v40 = vmul.f32 -1.442695, %v9065_v34  ;;  %v9812_v32 = vmul.f32 -1.442695, %v9067_v0 }
 0xab1   : > { %11369 = vpow2.f32 %v9811_v23 }
 0xab2   : > { %11371 = vpow2.f32 %v9810_v40 }
 0xab3   : > { %11373 = vpow2.f32 %v9812_v32 }
 0xaba   : > { %v11368_v56 = vpop.eup %11367 }
 0xabb   : > { %v11370_v61 = vpop.eup %11369  ;;  %v9080_v47 = vadd.f32 1.0, %v11368_v56 }
 0xabc   : > { %v11372_v33 = vpop.eup %11371  ;;  %v9082_v29 = vadd.f32 1.0, %v11370_v61 }
 0xabd   : > { %v11374_v8 = vpop.eup %11373  ;;  %v9081_v51 = vadd.f32 1.0, %v11372_v33  ;;  %11375 = vrcp.f32 %v9080_v47 }
 0xabe   : > { %v9083_v18 = vadd.f32 1.0, %v11374_v8  ;;  %11377 = vrcp.f32 %v9082_v29 }
 0xabf   : > { %11379 = vrcp.f32 %v9081_v51 }
 0xac0   : > { %11381 = vrcp.f32 %v9083_v18 }
 0xac7   : > { %v11376_v55 = vpop.eup %11375 }
 0xac8   : > { %v11378_v50 = vpop.eup %11377  ;;  %v9092_v19 = vmul.f32 %v11376_v55, %v9064_v41 }
 0xac9   : > { %v11380_v53 = vpop.eup %11379  ;;  %v9094_v54 = vmul.f32 %v11378_v50, %v9066_v57 }
 0xaca   : > { %v11382_v20 = vpop.eup %11381  ;;  %v9093_v7 = vmul.f32 %v11380_v53, %v9065_v34 }
 0xacb   : > { %v9095_v37 = vmul.f32 %v11382_v20, %v9067_v0 }
 0xacc   : > { %v9104_v4 = vcombine.low %v9092_v19, %v9093_v7 }
 0xacd   : > { %v9105_v11 = vcombine.low %v9094_v54, %v9095_v37 }
 0xace   : > { %10784 = vmatprep.mubr.msk.f32.mxu1 %vm8885_vm10, %v9104_v4 }
 0xacf   : > { %10785 = vmatmul.mubr.msk.f32.vlgmr.msra.gmra.mrb[96].mxu1 %vm8885_vm10, %v9105_v11 }
 0xad0   : > { %10788 = vmatpush3.msra.mxu1 %v9203_v39  ;;  %10789 = vmatprep.mubr.msk.f32.mxu1 %vm5786_vm5, %v16813_v48 }
 0xad3   : > { %10790 = vmatmul.mubr.msk.f32.vlgmr.msra.gmra.mrb[98].mxu1 %vm5786_vm5, %v16814_v27 }
 0xba2   : > { %v10786_v30 = vpop.f32.mrb[96].mxu1 }
 0xba3   : > { %v9176_v44 = vpop.f32.mrb[97].mxu1  ;;  %v9193_v25 = vmul.f32 %v10786_v30, %v9815_v45 }
 0xba4   : > { %v9192_v17 = vmul.f32 %v9815_v45, %v9176_v44 }
 0xba5   : > { %v9202_v36 = vadd.f32 %v9816_v60, %v9193_v25 }
 0xba6   : > { %v10791_v28 = vpop.f32.mrb[98].mxu1  ;;  %v9201_v14 = vadd.f32 %v9816_v60, %v9192_v17 }
 0xba7   : > { %v9293_v63 = vmul.f32 %v10791_v28, %v9819_v15  ;;  %v9276_v35 = vpop.f32.mrb[99].mxu1 }
 0xba8   : > { %v9292_v26 = vmul.f32 %v9819_v15, %v9276_v35 }
 0xba9   : > { %v9302_v6 = vadd.f32 %v9820_v21, %v9293_v63 }
 0xbaa   : > { %v9301_v22 = vadd.f32 %v9820_v21, %v9292_v26 }
 0xbab   : > { %v9304_v5 = vadd.f32 %v9302_v6, %v9202_v36 }
 0xbac   : > { %v9303_v2 = vadd.f32 %v9301_v22, %v9201_v14 }
 0xbad   : > { %v9306_v12 = vmax.f32 %v9304_v5, 0.0 }
 0xbae   : > { %v9305_v3 = vmax.f32 %v9303_v2, 0.0 }
 0xbaf   : > { %v9310_v43 = vcombine.high %v9306_v12, %v9306_v12  ;;  %9316 = vst.msk [vmem:[%s1126_s22 + $0x8] sm:$0xf] %vm9313_vm11, %v9306_v12 }
 0xbb0   : > { %v9309_v13 = vcombine.high %v9305_v3, %v9305_v3  ;;  %9314 = vst.msk [vmem:[%s1126_s22] sm:$0xf] %vm9313_vm11, %v9305_v3 }
 0xbb1   : > { %9317 = vst.msk [vmem:[%s1126_s22 + $0xc] sm:$0xf] %vm9313_vm11, %v9310_v43 }
 0xbb2   : > { %9315 = vst.msk [vmem:[%s1126_s22 + $0x4] sm:$0xf] %vm9313_vm11, %v9309_v13 }
 0xbb3 PF: > { %s85_s7 = sadd.s32 1, %s11409_s7  }
 0xbb4   : > { %p82_p4 = scmp.ge.s32.totalorder %s85_s7, 4  }
 0xbb6   :  { %84 = sbr.rel (!%p82_p4) target bundleno = 69 (0x45), region = 235 }

</bundles_post_ra>
